<compile_context>
chip_gen: v7x
topology: tpu7x:2x2x1
jax: 0.10.0
libtpu: 0.0.40
codegen_flags: <defaults>
</compile_context>

<pallas_src>
import functools

import jax
import jax.numpy as jnp
import numpy as np
from jax.experimental import pallas as pl
from jax.experimental.pallas import tpu as pltpu

DIMS = [2048, 1024, 512, 256, 128, 32, 16]   # fc1..fc6 in/out dims; fc7: 16 -> 2
OUT_DIM = 2
N_HIDDEN = 6
BN_EPS = 1e-5
_SQRT2 = 1.4142135623730951
_GELU_C = 0.7978845608028654                  # sqrt(2/pi)


# --------------------------------------------------------------------- activations


def _gelu_exact(x):
    # nn.GELU() default = exact erf formulation (erf evaluated in f32 for safety).
    xf = x.astype(jnp.float32)
    return (0.5 * xf * (1.0 + jax.lax.erf(xf / _SQRT2))).astype(x.dtype)


def _gelu_tanh(x):
    # tanh approximation: routes the transcendental through the EUP slot.
    x3 = x * x * x
    return 0.5 * x * (1.0 + jnp.tanh(_GELU_C * (x + 0.044715 * x3)))


def _round_up(n, m):
    return ((n + m - 1) // m) * m


# ------------------------------------------------------------- generation defaults


@functools.lru_cache(maxsize=1)
def _device_kind():
    try:
        return jax.devices()[0].device_kind.lower()
    except Exception:
        return ""


@functools.lru_cache(maxsize=1)
def _auto_config():
    kind = _device_kind()
    if "v7" in kind:
        # 64 MiB physical VMEM per TC: keep headroom.
        return dict(batch_block=512, vmem_limit_bytes=48 * 1024 * 1024,
                    approximate_gelu=True, bf16_activations=True)
    if "v6" in kind:
        # 128 MiB physical VMEM; bf16 VPU/EUP available.
        return dict(batch_block=1024, vmem_limit_bytes=96 * 1024 * 1024,
                    approximate_gelu=True, bf16_activations=True)
    if "v5" in kind:
        # 128 MiB physical VMEM; no bf16 VALU/EUP -> keep f32 activations.
        return dict(batch_block=1024, vmem_limit_bytes=96 * 1024 * 1024,
                    approximate_gelu=True, bf16_activations=False)
    # Unknown generation: conservative.
    return dict(batch_block=256, vmem_limit_bytes=32 * 1024 * 1024,
                approximate_gelu=True, bf16_activations=False)


# ------------------------------------------------ single-buffered resident weights


@functools.lru_cache(maxsize=1)
def _single_buffer_supported():
    """Probe-compile a tiny kernel to check pipeline_mode=pl.Buffered(1) works."""
    try:
        def probe(w_ref, o_ref):
            o_ref[...] = w_ref[...] * 2.0

        f = pl.pallas_call(
            probe,
            out_shape=jax.ShapeDtypeStruct((16, 128), jnp.float32),
            grid=(2,),
            in_specs=[pl.BlockSpec((8, 128), lambda i: (0, 0),
                                   pipeline_mode=pl.Buffered(1))],
            out_specs=pl.BlockSpec((8, 128), lambda i: (i, 0)),
        )
        jax.jit(f).lower(jax.ShapeDtypeStruct((8, 128), jnp.float32)).compile()
        return True
    except Exception:
        return False


def _resident_spec(shape):
    """BlockSpec for a weight that stays VMEM-resident across all grid steps."""
    if _single_buffer_supported():
        return pl.BlockSpec(shape, lambda i: (0,) * len(shape),
                            pipeline_mode=pl.Buffered(1))
    return pl.BlockSpec(shape, lambda i: (0,) * len(shape))


# ----------------------------------------------------------------------------- kernel


def make_mlp_kernel(approximate_gelu: bool, bf16_activations: bool):
    gelu = _gelu_tanh if approximate_gelu else _gelu_exact

    def mlp_kernel(*refs):
        """refs = (x, [w_fold_i, shift_fold_i] * 6, w7, b7, out).

        w_fold_i  = (W_i.T * bn_scale_i)            (in_dim, out_dim), bf16
        shift_i   = b_i * bn_scale_i + bn_shift_i   (1, out_dim), f32
        """
        x_ref = refs[0]
        out_ref = refs[-1]
        p = refs[1:-1]

        h = x_ref[...]                               # bf16 (cast in the wrapper)
        for i in range(N_HIDDEN):
            w = p[2 * i][...]                        # VMEM-resident folded weight
            t = p[2 * i + 1][...]                    # folded bias + BN shift (f32)
            # fc{i+1} (+ folded batch_norm{i+1}): bf16 MXU matmul, f32 accumulate.
            z = jnp.dot(h.astype(w.dtype), w,
                        preferred_element_type=jnp.float32) + t
            # dropout{i+1}: identity in eval mode (no-op).
            if bf16_activations:                     # v6e/v7x: bf16 VPU/EUP
                z = z.astype(jnp.bfloat16)
            h = gelu(z)                              # gelu{i+1}
        w7 = p[2 * N_HIDDEN][...]
        b7 = p[2 * N_HIDDEN + 1][...]
        out_ref[...] = (jnp.dot(h.astype(w7.dtype), w7,
                                preferred_element_type=jnp.float32)
                        + b7).astype(out_ref.dtype)

    return mlp_kernel


# --------------------------------------------------------------- one-time param prep


def init_params(key):
    """Deterministic synthetic parameters matching GeoPredictorNN.__init__ shapes."""
    params = []
    k = key
    for i in range(N_HIDDEN):
        in_dim, out_dim = DIMS[i], DIMS[i + 1]
        k, kw, kb, kg, kbe, km, kv = jax.random.split(k, 7)
        bound = 1.0 / np.sqrt(in_dim)
        W = jax.random.uniform(kw, (out_dim, in_dim), jnp.float32, -bound, bound)
        b = jax.random.uniform(kb, (out_dim,), jnp.float32, -bound, bound)
        gamma = jax.random.uniform(kg, (out_dim,), jnp.float32, 0.5, 1.5)
        beta = jax.random.uniform(kbe, (out_dim,), jnp.float32, -0.1, 0.1)
        rmean = 0.1 * jax.random.normal(km, (out_dim,), jnp.float32)
        rvar = jax.random.uniform(kv, (out_dim,), jnp.float32, 0.5, 1.5)
        params.append(dict(W=W, b=b, gamma=gamma, beta=beta, rmean=rmean, rvar=rvar))
    k, kw, kb = jax.random.split(k, 3)
    bound = 1.0 / np.sqrt(DIMS[-1])
    W7 = jax.random.uniform(kw, (OUT_DIM, DIMS[-1]), jnp.float32, -bound, bound)
    b7 = jax.random.uniform(kb, (OUT_DIM,), jnp.float32, -bound, bound)
    params.append(dict(W=W7, b=b7))
    return params


def prepare_params(params, weight_dtype=jnp.bfloat16):
    """Load-time prep (runs ONCE, not per call): transpose weights, fold the
    BatchNorm running-stat affine into weight/bias, cast weights to bf16."""
    flat = []
    for i in range(N_HIDDEN):
        p = params[i]
        scale = p["gamma"] / jnp.sqrt(p["rvar"] + BN_EPS)               # (out,)
        shift = p["beta"] - p["rmean"] * scale                          # (out,)
        w_fold = (p["W"].T * scale[None, :]).astype(weight_dtype)       # (in, out)
        t_fold = (p["b"] * scale + shift).astype(jnp.float32)           # (out,)
        flat += [w_fold, t_fold.reshape(1, -1)]
    flat += [params[N_HIDDEN]["W"].T.astype(weight_dtype),
             params[N_HIDDEN]["b"].astype(jnp.float32).reshape(1, OUT_DIM)]
    # Warm the Buffered(1) feature probe outside of any jit trace.
    _single_buffer_supported()
    return flat


# -------------------------------------------------------------------------- forward


def _choose_batch_block(B, batch_block):
    """Pick (block, padded_batch) avoiding a wrapper-side pad copy of x when possible."""
    if B <= batch_block:
        return B, B                        # single full-extent block: no pad, no copy
    # Largest multiple-of-8 block <= batch_block that divides B exactly (no pad).
    best = 0
    d = 8
    while d <= batch_block:
        if B % d == 0:
            best = d
        d += 8
    if best >= max(8, batch_block // 4):   # good-enough divisor block: no pad
        return best, B
    bb = _round_up(min(batch_block, B), 8)
    return bb, _round_up(B, bb)            # fall back to padding x


def geo_predictor_forward(x, prepped, *, batch_block=None, vmem_limit_bytes=None,
                          approximate_gelu=None, bf16_activations=None):
    """x: (B, 2048).  prepped: output of prepare_params (folded bf16 weights).

    Passing x already in bf16 is preferred (the wrapper cast becomes a no-op);
    the result is identical either way since weights are bf16 on the MXU.
    """
    cfg = _auto_config()
    if batch_block is None:
        batch_block = cfg["batch_block"]
    if vmem_limit_bytes is None:
        vmem_limit_bytes = cfg["vmem_limit_bytes"]
    if approximate_gelu is None:
        approximate_gelu = cfg["approximate_gelu"]
    if bf16_activations is None:
        bf16_activations = cfg["bf16_activations"]

    B, D = x.shape
    assert D == DIMS[0], (B, D)

    bb, Bp = _choose_batch_block(B, batch_block)
    x_in = x.astype(jnp.bfloat16)            # halves the dominant HBM stream
    if Bp != B:
        x_in = jnp.pad(x_in, ((0, Bp - B), (0, 0)))
    grid = (Bp // bb,)

    in_specs = [pl.BlockSpec((bb, D), lambda i: (i, 0))]
    for arr in prepped:
        in_specs.append(_resident_spec(arr.shape))     # single-buffered residents
    # TODO(synk): lane-dense (bb, 128) output + outside slice is possible, but the
    # output is tiny; a masked vst on 2 lanes beats 64x more writeback traffic.
    out_spec = pl.BlockSpec((bb, OUT_DIM), lambda i: (i, 0))

    out = pl.pallas_call(
        make_mlp_kernel(approximate_gelu, bf16_activations),
        out_shape=jax.ShapeDtypeStruct((Bp, OUT_DIM), jnp.float32),
        grid=grid,
        in_specs=in_specs,
        out_specs=out_spec,
        compiler_params=pltpu.CompilerParams(
            # TODO(synk): if profiling on v7x shows single-TC execution, switch the
            # batch axis to pltpu.CORE_PARALLEL (per-TC weight copies fit VMEM).
            dimension_semantics=("parallel",),
            vmem_limit_bytes=vmem_limit_bytes,
        ),
    )(x_in, *prepped)
    return out[:B] if Bp != B else out


# ------------------------------------------------------------------------ references


def reference_forward_exact(x, params):
    """Pure-JAX f32 reference with eval-mode PyTorch semantics."""
    h = x.astype(jnp.float32)
    for i in range(N_HIDDEN):
        p = params[i]
        h = h @ p["W"].T + p["b"]
        h = p["gamma"] * (h - p["rmean"]) / jnp.sqrt(p["rvar"] + BN_EPS) + p["beta"]
        h = _gelu_exact(h)
    return h @ params[N_HIDDEN]["W"].T + params[N_HIDDEN]["b"]


def reference_forward_prepped(x, prepped, *, approximate_gelu=False,
                              bf16_activations=False):
    """Pure-JAX replica of the kernel math, honoring the same precision flags."""
    gelu = _gelu_tanh if approximate_gelu else _gelu_exact
    h = x.astype(jnp.bfloat16)
    for i in range(N_HIDDEN):
        w, t = prepped[2 * i], prepped[2 * i + 1]
        z = jnp.dot(h.astype(w.dtype), w, preferred_element_type=jnp.float32) + t
        if bf16_activations:
            z = z.astype(jnp.bfloat16)
        h = gelu(z)
    w7, b7 = prepped[-2], prepped[-1]
    return jnp.dot(h.astype(w7.dtype), w7, preferred_element_type=jnp.float32) + b7


if __name__ == "__main__":
    key = jax.random.PRNGKey(0)
    kx, kp = jax.random.split(key)

    B = 8  # small batch
    x = jax.random.normal(kx, (B, DIMS[0]), jnp.float32)
    params = init_params(kp)

    # One-time prep (transpose + BN fold + bf16 cast) -- outside the per-call path.
    prepped = prepare_params(params, weight_dtype=jnp.bfloat16)

    # 1) Numerically-tight config (f32 activations, exact-erf GELU).
    fwd_tight = jax.jit(functools.partial(
        geo_predictor_forward, batch_block=256,
        approximate_gelu=False, bf16_activations=False))
    out_tight = jax.block_until_ready(fwd_tight(x, prepped))
    assert out_tight.shape == (B, OUT_DIM), out_tight.shape

    ref_tight = reference_forward_prepped(x, prepped, approximate_gelu=False,
                                          bf16_activations=False)
    np.testing.assert_allclose(np.asarray(out_tight), np.asarray(ref_tight),
                               rtol=1e-4, atol=1e-4)
    ref_exact = reference_forward_exact(x, params)
    np.testing.assert_allclose(np.asarray(out_tight), np.asarray(ref_exact),
                               rtol=5e-2, atol=5e-2)

    # 2) Throughput config auto-selected for this TPU generation.
    cfg = _auto_config()
    fwd_fast = jax.jit(geo_predictor_forward)
    out_fast = jax.block_until_ready(fwd_fast(x, prepped))
    assert out_fast.shape == (B, OUT_DIM), out_fast.shape

    ref_fast = reference_forward_prepped(x, prepped,
                                         approximate_gelu=cfg["approximate_gelu"],
                                         bf16_activations=cfg["bf16_activations"])
    np.testing.assert_allclose(np.asarray(out_fast), np.asarray(ref_fast),
                               rtol=5e-2, atol=5e-2)
    np.testing.assert_allclose(np.asarray(out_fast), np.asarray(ref_exact),
                               rtol=1e-1, atol=1e-1)

    print("KERNEL_OK")
</pallas_src>

<mosaic_0001>
module attributes {stable_mosaic.version = 11 : i64} {
  func.func @mlp_kernel(%arg0: i32, %arg1: memref<8x2048xbf16, #tpu.memory_space<vmem>>, %arg2: memref<2048x1024xbf16, #tpu.memory_space<vmem>>, %arg3: memref<1x1024xf32, #tpu.memory_space<vmem>>, %arg4: memref<1024x512xbf16, #tpu.memory_space<vmem>>, %arg5: memref<1x512xf32, #tpu.memory_space<vmem>>, %arg6: memref<512x256xbf16, #tpu.memory_space<vmem>>, %arg7: memref<1x256xf32, #tpu.memory_space<vmem>>, %arg8: memref<256x128xbf16, #tpu.memory_space<vmem>>, %arg9: memref<1x128xf32, #tpu.memory_space<vmem>>, %arg10: memref<128x32xbf16, #tpu.memory_space<vmem>>, %arg11: memref<1x32xf32, #tpu.memory_space<vmem>>, %arg12: memref<32x16xbf16, #tpu.memory_space<vmem>>, %arg13: memref<1x16xf32, #tpu.memory_space<vmem>>, %arg14: memref<16x2xbf16, #tpu.memory_space<vmem>>, %arg15: memref<1x2xf32, #tpu.memory_space<vmem>>, %arg16: memref<8x2xf32, #tpu.memory_space<vmem>>) attributes {dimension_semantics = [#tpu.dimension_semantics<parallel>], iteration_bounds = array<i64: 1>, scalar_prefetch = 0 : i64, scratch_operands = 0 : i64, tpu.core_type = #tpu.core_type<tc>, window_params = [{transform_indices = @transform_0, window_bounds = array<i64: 8, 2048>}, {pipeline_mode = #tpu.pipeline_mode<synchronous>, transform_indices = @transform_1, window_bounds = array<i64: 2048, 1024>}, {pipeline_mode = #tpu.pipeline_mode<synchronous>, transform_indices = @transform_2, window_bounds = array<i64: 1, 1024>}, {pipeline_mode = #tpu.pipeline_mode<synchronous>, transform_indices = @transform_3, window_bounds = array<i64: 1024, 512>}, {pipeline_mode = #tpu.pipeline_mode<synchronous>, transform_indices = @transform_4, window_bounds = array<i64: 1, 512>}, {pipeline_mode = #tpu.pipeline_mode<synchronous>, transform_indices = @transform_5, window_bounds = array<i64: 512, 256>}, {pipeline_mode = #tpu.pipeline_mode<synchronous>, transform_indices = @transform_6, window_bounds = array<i64: 1, 256>}, {pipeline_mode = #tpu.pipeline_mode<synchronous>, transform_indices = @transform_7, window_bounds = array<i64: 256, 128>}, {pipeline_mode = #tpu.pipeline_mode<synchronous>, transform_indices = @transform_8, window_bounds = array<i64: 1, 128>}, {pipeline_mode = #tpu.pipeline_mode<synchronous>, transform_indices = @transform_9, window_bounds = array<i64: 128, 32>}, {pipeline_mode = #tpu.pipeline_mode<synchronous>, transform_indices = @transform_10, window_bounds = array<i64: 1, 32>}, {pipeline_mode = #tpu.pipeline_mode<synchronous>, transform_indices = @transform_11, window_bounds = array<i64: 32, 16>}, {pipeline_mode = #tpu.pipeline_mode<synchronous>, transform_indices = @transform_12, window_bounds = array<i64: 1, 16>}, {pipeline_mode = #tpu.pipeline_mode<synchronous>, transform_indices = @transform_13, window_bounds = array<i64: 16, 2>}, {pipeline_mode = #tpu.pipeline_mode<synchronous>, transform_indices = @transform_14, window_bounds = array<i64: 1, 2>}, {transform_indices = @transform_15, window_bounds = array<i64: 8, 2>}]} {
    %c0 = arith.constant 0 : index
    %c0_0 = arith.constant 0 : index
    %0 = vector.load %arg1[%c0, %c0_0] : memref<8x2048xbf16, #tpu.memory_space<vmem>>, vector<8x2048xbf16>
    %c0_1 = arith.constant 0 : index
    %c0_2 = arith.constant 0 : index
    %1 = vector.load %arg2[%c0_1, %c0_2] : memref<2048x1024xbf16, #tpu.memory_space<vmem>>, vector<2048x1024xbf16>
    %c0_3 = arith.constant 0 : index
    %c0_4 = arith.constant 0 : index
    %2 = vector.load %arg3[%c0_3, %c0_4] : memref<1x1024xf32, #tpu.memory_space<vmem>>, vector<1x1024xf32>
    %cst = arith.constant dense<0.000000e+00> : vector<8x1024xf32>
    %3 = tpu.matmul %0, %1, %cst {dimension_numbers = #tpu.dot_dimension_numbers<[1], [0], [0], [1], [0, 0, 1, 1], [], []>} : vector<8x2048xbf16>, vector<2048x1024xbf16>, vector<8x1024xf32> -> vector<8x1024xf32>
    %4 = vector.broadcast %2 : vector<1x1024xf32> to vector<8x1024xf32>
    %5 = arith.addf %3, %4 : vector<8x1024xf32>
    %cst_5 = arith.constant 5.000000e-01 : f32
    %6 = vector.broadcast %cst_5 : f32 to vector<8x1024xf32>
    %7 = arith.mulf %6, %5 : vector<8x1024xf32>
    %cst_6 = arith.constant 1.41421354 : f32
    %8 = vector.broadcast %cst_6 : f32 to vector<8x1024xf32>
    %9 = arith.divf %5, %8 : vector<8x1024xf32>
    %10 = math.erf %9 : vector<8x1024xf32>
    %cst_7 = arith.constant 1.000000e+00 : f32
    %11 = vector.broadcast %cst_7 : f32 to vector<8x1024xf32>
    %12 = arith.addf %11, %10 : vector<8x1024xf32>
    %13 = arith.mulf %7, %12 : vector<8x1024xf32>
    %c0_8 = arith.constant 0 : index
    %c0_9 = arith.constant 0 : index
    %14 = vector.load %arg4[%c0_8, %c0_9] : memref<1024x512xbf16, #tpu.memory_space<vmem>>, vector<1024x512xbf16>
    %c0_10 = arith.constant 0 : index
    %c0_11 = arith.constant 0 : index
    %15 = vector.load %arg5[%c0_10, %c0_11] : memref<1x512xf32, #tpu.memory_space<vmem>>, vector<1x512xf32>
    %16 = arith.truncf %13 : vector<8x1024xf32> to vector<8x1024xbf16>
    %cst_12 = arith.constant dense<0.000000e+00> : vector<8x512xf32>
    %17 = tpu.matmul %16, %14, %cst_12 {dimension_numbers = #tpu.dot_dimension_numbers<[1], [0], [0], [1], [0, 0, 1, 1], [], []>} : vector<8x1024xbf16>, vector<1024x512xbf16>, vector<8x512xf32> -> vector<8x512xf32>
    %18 = vector.broadcast %15 : vector<1x512xf32> to vector<8x512xf32>
    %19 = arith.addf %17, %18 : vector<8x512xf32>
    %cst_13 = arith.constant 5.000000e-01 : f32
    %20 = vector.broadcast %cst_13 : f32 to vector<8x512xf32>
    %21 = arith.mulf %20, %19 : vector<8x512xf32>
    %cst_14 = arith.constant 1.41421354 : f32
    %22 = vector.broadcast %cst_14 : f32 to vector<8x512xf32>
    %23 = arith.divf %19, %22 : vector<8x512xf32>
    %24 = math.erf %23 : vector<8x512xf32>
    %cst_15 = arith.constant 1.000000e+00 : f32
    %25 = vector.broadcast %cst_15 : f32 to vector<8x512xf32>
    %26 = arith.addf %25, %24 : vector<8x512xf32>
    %27 = arith.mulf %21, %26 : vector<8x512xf32>
    %c0_16 = arith.constant 0 : index
    %c0_17 = arith.constant 0 : index
    %28 = vector.load %arg6[%c0_16, %c0_17] : memref<512x256xbf16, #tpu.memory_space<vmem>>, vector<512x256xbf16>
    %c0_18 = arith.constant 0 : index
    %c0_19 = arith.constant 0 : index
    %29 = vector.load %arg7[%c0_18, %c0_19] : memref<1x256xf32, #tpu.memory_space<vmem>>, vector<1x256xf32>
    %30 = arith.truncf %27 : vector<8x512xf32> to vector<8x512xbf16>
    %cst_20 = arith.constant dense<0.000000e+00> : vector<8x256xf32>
    %31 = tpu.matmul %30, %28, %cst_20 {dimension_numbers = #tpu.dot_dimension_numbers<[1], [0], [0], [1], [0, 0, 1, 1], [], []>} : vector<8x512xbf16>, vector<512x256xbf16>, vector<8x256xf32> -> vector<8x256xf32>
    %32 = vector.broadcast %29 : vector<1x256xf32> to vector<8x256xf32>
    %33 = arith.addf %31, %32 : vector<8x256xf32>
    %cst_21 = arith.constant 5.000000e-01 : f32
    %34 = vector.broadcast %cst_21 : f32 to vector<8x256xf32>
    %35 = arith.mulf %34, %33 : vector<8x256xf32>
    %cst_22 = arith.constant 1.41421354 : f32
    %36 = vector.broadcast %cst_22 : f32 to vector<8x256xf32>
    %37 = arith.divf %33, %36 : vector<8x256xf32>
    %38 = math.erf %37 : vector<8x256xf32>
    %cst_23 = arith.constant 1.000000e+00 : f32
    %39 = vector.broadcast %cst_23 : f32 to vector<8x256xf32>
    %40 = arith.addf %39, %38 : vector<8x256xf32>
    %41 = arith.mulf %35, %40 : vector<8x256xf32>
    %c0_24 = arith.constant 0 : index
    %c0_25 = arith.constant 0 : index
    %42 = vector.load %arg8[%c0_24, %c0_25] : memref<256x128xbf16, #tpu.memory_space<vmem>>, vector<256x128xbf16>
    %c0_26 = arith.constant 0 : index
    %c0_27 = arith.constant 0 : index
    %43 = vector.load %arg9[%c0_26, %c0_27] : memref<1x128xf32, #tpu.memory_space<vmem>>, vector<1x128xf32>
    %44 = arith.truncf %41 : vector<8x256xf32> to vector<8x256xbf16>
    %cst_28 = arith.constant dense<0.000000e+00> : vector<8x128xf32>
    %45 = tpu.matmul %44, %42, %cst_28 {dimension_numbers = #tpu.dot_dimension_numbers<[1], [0], [0], [1], [0, 0, 1, 1], [], []>} : vector<8x256xbf16>, vector<256x128xbf16>, vector<8x128xf32> -> vector<8x128xf32>
    %46 = vector.broadcast %43 : vector<1x128xf32> to vector<8x128xf32>
    %47 = arith.addf %45, %46 : vector<8x128xf32>
    %cst_29 = arith.constant 5.000000e-01 : f32
    %48 = vector.broadcast %cst_29 : f32 to vector<8x128xf32>
    %49 = arith.mulf %48, %47 : vector<8x128xf32>
    %cst_30 = arith.constant 1.41421354 : f32
    %50 = vector.broadcast %cst_30 : f32 to vector<8x128xf32>
    %51 = arith.divf %47, %50 : vector<8x128xf32>
    %52 = math.erf %51 : vector<8x128xf32>
    %cst_31 = arith.constant 1.000000e+00 : f32
    %53 = vector.broadcast %cst_31 : f32 to vector<8x128xf32>
    %54 = arith.addf %53, %52 : vector<8x128xf32>
    %55 = arith.mulf %49, %54 : vector<8x128xf32>
    %c0_32 = arith.constant 0 : index
    %c0_33 = arith.constant 0 : index
    %56 = vector.load %arg10[%c0_32, %c0_33] : memref<128x32xbf16, #tpu.memory_space<vmem>>, vector<128x32xbf16>
    %c0_34 = arith.constant 0 : index
    %c0_35 = arith.constant 0 : index
    %57 = vector.load %arg11[%c0_34, %c0_35] : memref<1x32xf32, #tpu.memory_space<vmem>>, vector<1x32xf32>
    %58 = arith.truncf %55 : vector<8x128xf32> to vector<8x128xbf16>
    %cst_36 = arith.constant dense<0.000000e+00> : vector<8x32xf32>
    %59 = tpu.matmul %58, %56, %cst_36 {dimension_numbers = #tpu.dot_dimension_numbers<[1], [0], [0], [1], [0, 0, 1, 1], [], []>} : vector<8x128xbf16>, vector<128x32xbf16>, vector<8x32xf32> -> vector<8x32xf32>
    %60 = vector.broadcast %57 : vector<1x32xf32> to vector<8x32xf32>
    %61 = arith.addf %59, %60 : vector<8x32xf32>
    %cst_37 = arith.constant 5.000000e-01 : f32
    %62 = vector.broadcast %cst_37 : f32 to vector<8x32xf32>
    %63 = arith.mulf %62, %61 : vector<8x32xf32>
    %cst_38 = arith.constant 1.41421354 : f32
    %64 = vector.broadcast %cst_38 : f32 to vector<8x32xf32>
    %65 = arith.divf %61, %64 : vector<8x32xf32>
    %66 = math.erf %65 : vector<8x32xf32>
    %cst_39 = arith.constant 1.000000e+00 : f32
    %67 = vector.broadcast %cst_39 : f32 to vector<8x32xf32>
    %68 = arith.addf %67, %66 : vector<8x32xf32>
    %69 = arith.mulf %63, %68 : vector<8x32xf32>
    %c0_40 = arith.constant 0 : index
    %c0_41 = arith.constant 0 : index
    %70 = vector.load %arg12[%c0_40, %c0_41] : memref<32x16xbf16, #tpu.memory_space<vmem>>, vector<32x16xbf16>
    %c0_42 = arith.constant 0 : index
    %c0_43 = arith.constant 0 : index
    %71 = vector.load %arg13[%c0_42, %c0_43] : memref<1x16xf32, #tpu.memory_space<vmem>>, vector<1x16xf32>
    %72 = arith.truncf %69 : vector<8x32xf32> to vector<8x32xbf16>
    %cst_44 = arith.constant dense<0.000000e+00> : vector<8x16xf32>
    %73 = tpu.matmul %72, %70, %cst_44 {dimension_numbers = #tpu.dot_dimension_numbers<[1], [0], [0], [1], [0, 0, 1, 1], [], []>} : vector<8x32xbf16>, vector<32x16xbf16>, vector<8x16xf32> -> vector<8x16xf32>
    %74 = vector.broadcast %71 : vector<1x16xf32> to vector<8x16xf32>
    %75 = arith.addf %73, %74 : vector<8x16xf32>
    %cst_45 = arith.constant 5.000000e-01 : f32
    %76 = vector.broadcast %cst_45 : f32 to vector<8x16xf32>
    %77 = arith.mulf %76, %75 : vector<8x16xf32>
    %cst_46 = arith.constant 1.41421354 : f32
    %78 = vector.broadcast %cst_46 : f32 to vector<8x16xf32>
    %79 = arith.divf %75, %78 : vector<8x16xf32>
    %80 = math.erf %79 : vector<8x16xf32>
    %cst_47 = arith.constant 1.000000e+00 : f32
    %81 = vector.broadcast %cst_47 : f32 to vector<8x16xf32>
    %82 = arith.addf %81, %80 : vector<8x16xf32>
    %83 = arith.mulf %77, %82 : vector<8x16xf32>
    %c0_48 = arith.constant 0 : index
    %c0_49 = arith.constant 0 : index
    %84 = vector.load %arg14[%c0_48, %c0_49] : memref<16x2xbf16, #tpu.memory_space<vmem>>, vector<16x2xbf16>
    %c0_50 = arith.constant 0 : index
    %c0_51 = arith.constant 0 : index
    %85 = vector.load %arg15[%c0_50, %c0_51] : memref<1x2xf32, #tpu.memory_space<vmem>>, vector<1x2xf32>
    %86 = arith.truncf %83 : vector<8x16xf32> to vector<8x16xbf16>
    %cst_52 = arith.constant dense<0.000000e+00> : vector<8x2xf32>
    %87 = tpu.matmul %86, %84, %cst_52 {dimension_numbers = #tpu.dot_dimension_numbers<[1], [0], [0], [1], [0, 0, 1, 1], [], []>} : vector<8x16xbf16>, vector<16x2xbf16>, vector<8x2xf32> -> vector<8x2xf32>
    %88 = vector.broadcast %85 : vector<1x2xf32> to vector<8x2xf32>
    %89 = arith.addf %87, %88 : vector<8x2xf32>
    %c0_53 = arith.constant 0 : index
    %c0_54 = arith.constant 0 : index
    %90 = vector.load %arg16[%c0_53, %c0_54] : memref<8x2xf32, #tpu.memory_space<vmem>>, vector<8x2xf32>
    tpu.vector_store %arg16[%c0_53, %c0_54], %89 {strides = array<i32>} : memref<8x2xf32, #tpu.memory_space<vmem>>, vector<8x2xf32>,
    return
  }
  func.func @transform_0(%arg0: i32) -> (i32, i32) {
    %c0_i32 = arith.constant 0 : i32
    %c0_i32_0 = arith.constant 0 : i32
    return %arg0, %c0_i32 : i32, i32
  }
  func.func @transform_1(%arg0: i32) -> (i32, i32) {
    %c0_i32 = arith.constant 0 : i32
    %c0_i32_0 = arith.constant 0 : i32
    %c0_i32_1 = arith.constant 0 : i32
    return %c0_i32, %c0_i32_0 : i32, i32
  }
  func.func @transform_2(%arg0: i32) -> (i32, i32) {
    %c0_i32 = arith.constant 0 : i32
    %c0_i32_0 = arith.constant 0 : i32
    %c0_i32_1 = arith.constant 0 : i32
    return %c0_i32, %c0_i32_0 : i32, i32
  }
  func.func @transform_3(%arg0: i32) -> (i32, i32) {
    %c0_i32 = arith.constant 0 : i32
    %c0_i32_0 = arith.constant 0 : i32
    %c0_i32_1 = arith.constant 0 : i32
    return %c0_i32, %c0_i32_0 : i32, i32
  }
  func.func @transform_4(%arg0: i32) -> (i32, i32) {
    %c0_i32 = arith.constant 0 : i32
    %c0_i32_0 = arith.constant 0 : i32
    %c0_i32_1 = arith.constant 0 : i32
    return %c0_i32, %c0_i32_0 : i32, i32
  }
  func.func @transform_5(%arg0: i32) -> (i32, i32) {
    %c0_i32 = arith.constant 0 : i32
    %c0_i32_0 = arith.constant 0 : i32
    %c0_i32_1 = arith.constant 0 : i32
    return %c0_i32, %c0_i32_0 : i32, i32
  }
  func.func @transform_6(%arg0: i32) -> (i32, i32) {
    %c0_i32 = arith.constant 0 : i32
    %c0_i32_0 = arith.constant 0 : i32
    %c0_i32_1 = arith.constant 0 : i32
    return %c0_i32, %c0_i32_0 : i32, i32
  }
  func.func @transform_7(%arg0: i32) -> (i32, i32) {
    %c0_i32 = arith.constant 0 : i32
    %c0_i32_0 = arith.constant 0 : i32
    %c0_i32_1 = arith.constant 0 : i32
    return %c0_i32, %c0_i32_0 : i32, i32
  }
  func.func @transform_8(%arg0: i32) -> (i32, i32) {
    %c0_i32 = arith.constant 0 : i32
    %c0_i32_0 = arith.constant 0 : i32
    %c0_i32_1 = arith.constant 0 : i32
    return %c0_i32, %c0_i32_0 : i32, i32
  }
  func.func @transform_9(%arg0: i32) -> (i32, i32) {
    %c0_i32 = arith.constant 0 : i32
    %c0_i32_0 = arith.constant 0 : i32
    %c0_i32_1 = arith.constant 0 : i32
    return %c0_i32, %c0_i32_0 : i32, i32
  }
  func.func @transform_10(%arg0: i32) -> (i32, i32) {
    %c0_i32 = arith.constant 0 : i32
    %c0_i32_0 = arith.constant 0 : i32
    %c0_i32_1 = arith.constant 0 : i32
    return %c0_i32, %c0_i32_0 : i32, i32
  }
  func.func @transform_11(%arg0: i32) -> (i32, i32) {
    %c0_i32 = arith.constant 0 : i32
    %c0_i32_0 = arith.constant 0 : i32
    %c0_i32_1 = arith.constant 0 : i32
    return %c0_i32, %c0_i32_0 : i32, i32
  }
  func.func @transform_12(%arg0: i32) -> (i32, i32) {
    %c0_i32 = arith.constant 0 : i32
    %c0_i32_0 = arith.constant 0 : i32
    %c0_i32_1 = arith.constant 0 : i32
    return %c0_i32, %c0_i32_0 : i32, i32
  }
  func.func @transform_13(%arg0: i32) -> (i32, i32) {
    %c0_i32 = arith.constant 0 : i32
    %c0_i32_0 = arith.constant 0 : i32
    %c0_i32_1 = arith.constant 0 : i32
    return %c0_i32, %c0_i32_0 : i32, i32
  }
  func.func @transform_14(%arg0: i32) -> (i32, i32) {
    %c0_i32 = arith.constant 0 : i32
    %c0_i32_0 = arith.constant 0 : i32
    %c0_i32_1 = arith.constant 0 : i32
    return %c0_i32, %c0_i32_0 : i32, i32
  }
  func.func @transform_15(%arg0: i32) -> (i32, i32) {
    %c0_i32 = arith.constant 0 : i32
    %c0_i32_0 = arith.constant 0 : i32
    return %arg0, %c0_i32 : i32, i32
  }
}

</mosaic_0001>

<bundles_post_ra>
// kernel: geo_predictor_forward.1
= control target key start
LH: loop header
LB: loop body
LE: loop exit
PB: predicated region body
PF: predicated region fallthrough
CT: control target
= control target key end

     0   :  { %20 = vsyncpa [#allocation3], 0  ;;  %s13618_s0 = inlined_call_operand.vmem [shape: bf16[8,2048], index: 0, kind: input, shape index: {}]   ;;  %s13619_s1 = inlined_call_operand.hbm [shape: bf16[2048,1024], index: 1, kind: input, shape index: {}]   ;;  %s13620_s2 = inlined_call_operand.hbm [shape: f32[1,1024], index: 2, kind: input, shape index: {}]   ;;  %s13621_s3 = inlined_call_operand.hbm [shape: bf16[1024,512], index: 3, kind: input, shape index: {}]   ;;  %s13622_s4 = inlined_call_operand.hbm [shape: f32[1,512], index: 4, kind: input, shape index: {}]   ;;  %s13623_s5 = inlined_call_operand.hbm [shape: bf16[512,256], index: 5, kind: input, shape index: {}]   ;;  %s13624_s6 = inlined_call_operand.hbm [shape: f32[1,256], index: 6, kind: input, shape index: {}]   ;;  %s13625_s7 = inlined_call_operand.hbm [shape: bf16[256,128], index: 7, kind: input, shape index: {}]   ;;  %s13626_s8 = inlined_call_operand.hbm [shape: f32[1,128], index: 8, kind: input, shape index: {}]   ;;  %s13627_s9 = inlined_call_operand.vmem [shape: bf16[128,32], index: 9, kind: input, shape index: {}]   ;;  %s13628_s10 = inlined_call_operand.hbm [shape: f32[1,32], index: 10, kind: input, shape index: {}]   ;;  %s13629_s11 = inlined_call_operand.vmem [shape: bf16[32,16], index: 11, kind: input, shape index: {}]   ;;  %s13630_s12 = inlined_call_operand.hbm [shape: f32[1,16], index: 12, kind: input, shape index: {}]   ;;  %s13631_s13 = inlined_call_operand.vmem [shape: bf16[16,2], index: 13, kind: input, shape index: {}]   ;;  %s13632_s14 = inlined_call_operand.hbm [shape: f32[1,2], index: 14, kind: input, shape index: {}]   ;;  %s13633_s15 = inlined_call_operand.vmem [shape: f32[8,2], index: 15, kind: output, shape index: {}]  }
   0x1   :  { %21 = vsyncpa [#allocation5], 0 }
   0x2   :  { %22 = vsyncpa [#allocation8], 0 }
   0x3   :  { %23 = vsyncpa [#allocation11], 0 }
   0x4   :  { %24 = vsyncpa [#allocation14], 0 }
   0x5   :  { %25 = vsyncpa [#allocation17], 0  ;;  %s13089_s18 = smov [#allocation4]   ;;  %s13090_s20 = smov [#allocation7]  }
   0x6   :  { %s46_s19 = sshll.u32 %s13089_s18, 4  ;;  %s68_s21 = sshll.u32 %s13090_s20, 4  ;;  %s47_s19 = int_to_ptr.vmem [resolvable:$true] %s46_s19  ;;  %s69_s21 = int_to_ptr.vmem [resolvable:$true] %s68_s21 }
   0x7   :  { %s12835_s24 = scalar_lea.hbm %s13620_s2, 128 }
   0x8   :  { %p12836_p0 = scmp.ne.s32.totalorder %s13620_s2, %s12835_s24  ;;  %p12839_p1 = scmp.lt.u32.totalorder %s12835_s24, %s13620_s2 }
   0xa   :  { %p12841_p2 = pnand %p12839_p1, %p12836_p0 }
   0xc   :  { %12844 = shalt.err (!%p12841_p2)
}
   0xd   :  { %s12845_s29 = scalar_lea.vmem %s47_s19, 128  ;;  %p12850_p4 = scmp.lt.s32.totalorder %s47_s19, %s47_s19 }
   0xe   :  { %p12846_p3 = scmp.ne.s32.totalorder %s47_s19, %s12845_s29  ;;  %p12851_p5 = scmp.lt.s32.totalorder %s12845_s29, %s12845_s29 }
  0x10   :  { %p12852_p6 = por %p12851_p5, %p12850_p4 }
  0x12   :  { %p12853_p7 = pnand %p12852_p6, %p12846_p3 }
  0x14   :  { %12856 = shalt.err (!%p12853_p7)
}
  0x15   :  { %49 = dma.hbm_to_vmem [thread:$0]  %s13620_s2, 128, %s47_s19, [#allocation5]  }
  0x16   :  { %s12857_s20 = scalar_lea.hbm %s13622_s4, 64 }
  0x17   :  { %p12858_p8 = scmp.ne.s32.totalorder %s13622_s4, %s12857_s20  ;;  %p12861_p9 = scmp.lt.u32.totalorder %s12857_s20, %s13622_s4 }
  0x19   :  { %p12863_p10 = pnand %p12861_p9, %p12858_p8 }
  0x1b   :  { %12866 = shalt.err (!%p12863_p10)
}
  0x1c   :  { %s12867_s26 = scalar_lea.vmem %s69_s21, 64  ;;  %p12872_p12 = scmp.lt.s32.totalorder %s69_s21, %s69_s21 }
  0x1d   :  { %p12868_p11 = scmp.ne.s32.totalorder %s69_s21, %s12867_s26  ;;  %p12873_p13 = scmp.lt.s32.totalorder %s12867_s26, %s12867_s26 }
  0x1f   :  { %p12874_p0 = por %p12873_p13, %p12872_p12 }
  0x21   :  { %p12875_p1 = pnand %p12874_p0, %p12868_p11 }
  0x23   :  { %12878 = shalt.err (!%p12875_p1)
}
  0x24   :  { %71 = dma.hbm_to_vmem [thread:$0]  %s13622_s4, 64, %s69_s21, [#allocation8]  }
  0x25   :  { %s13091_s27 = smov [#allocation10]   ;;  %s13092_s29 = smov [#allocation13]  }
  0x26   :  { %s90_s28 = sshll.u32 %s13091_s27, 4  ;;  %s112_s30 = sshll.u32 %s13092_s29, 4  ;;  %s91_s28 = int_to_ptr.vmem [resolvable:$true] %s90_s28  ;;  %s113_s30 = int_to_ptr.vmem [resolvable:$true] %s112_s30 }
  0x27   :  { %s12879_s18 = scalar_lea.hbm %s13624_s6, 32 }
  0x28   :  { %p12880_p2 = scmp.ne.s32.totalorder %s13624_s6, %s12879_s18  ;;  %p12883_p3 = scmp.lt.u32.totalorder %s12879_s18, %s13624_s6 }
  0x2a   :  { %p12885_p4 = pnand %p12883_p3, %p12880_p2 }
  0x2c   :  { %12888 = shalt.err (!%p12885_p4)
}
  0x2d   :  { %s12889_s4 = scalar_lea.vmem %s91_s28, 32  ;;  %p12894_p6 = scmp.lt.s32.totalorder %s91_s28, %s91_s28 }
  0x2e   :  { %p12890_p5 = scmp.ne.s32.totalorder %s91_s28, %s12889_s4  ;;  %p12895_p7 = scmp.lt.s32.totalorder %s12889_s4, %s12889_s4 }
  0x30   :  { %p12896_p8 = por %p12895_p7, %p12894_p6 }
  0x32   :  { %p12897_p9 = pnand %p12896_p8, %p12890_p5 }
  0x34   :  { %12900 = shalt.err (!%p12897_p9)
}
  0x35   :  { %93 = dma.hbm_to_vmem [thread:$0]  %s13624_s6, 32, %s91_s28, [#allocation11]  }
  0x36   :  { %s12901_s19 = scalar_lea.hbm %s13626_s8, 16 }
  0x37   :  { %p12902_p10 = scmp.ne.s32.totalorder %s13626_s8, %s12901_s19  ;;  %p12905_p11 = scmp.lt.u32.totalorder %s12901_s19, %s13626_s8 }
  0x39   :  { %p12907_p12 = pnand %p12905_p11, %p12902_p10 }
  0x3b   :  { %12910 = shalt.err (!%p12907_p12)
}
  0x3c   :  { %s12911_s18 = scalar_lea.vmem %s113_s30, 16  ;;  %s12915_s20 = scalar_lea.vmem %s113_s30, 32 }
  0x3d   :  { %p12912_p13 = scmp.ne.s32.totalorder %s113_s30, %s12911_s18  ;;  %p12916_p0 = scmp.lt.s32.totalorder %s113_s30, %s113_s30 }
  0x3e   :  { %p12917_p1 = scmp.lt.s32.totalorder %s12915_s20, %s12911_s18 }
  0x40   :  { %p12918_p2 = por %p12917_p1, %p12916_p0 }
  0x42   :  { %p12919_p3 = pnand %p12918_p2, %p12912_p13 }
  0x44   :  { %12922 = shalt.err (!%p12919_p3)
}
  0x45   :  { %115 = dma.hbm_to_vmem [thread:$0]  %s13626_s8, 16, %s113_s30, [#allocation14]  }
  0x46   :  { %s13093_s22 = smov [#allocation16]   ;;  %s13094_s24 = smov [#allocation2]  }
  0x47   :  { %s136_s23 = sshll.u32 %s13093_s22, 4  ;;  %s33_s4 = sshll.u32 %s13094_s24, 4  ;;  %s137_s23 = int_to_ptr.vmem [resolvable:$true] %s136_s23  ;;  %s13238_s4 = int_to_ptr.vmem [resolvable:$true] %s33_s4 }
  0x48   :  { %s12923_s26 = scalar_lea.hbm %s13630_s12, 16 }
  0x49   :  { %p12924_p4 = scmp.ne.s32.totalorder %s13630_s12, %s12923_s26  ;;  %p12927_p5 = scmp.lt.u32.totalorder %s12923_s26, %s13630_s12 }
  0x4b   :  { %p12929_p6 = pnand %p12927_p5, %p12924_p4 }
  0x4d   :  { %12932 = shalt.err (!%p12929_p6)
}
  0x4e   :  { %s12933_s8 = scalar_lea.vmem %s137_s23, 16  ;;  %s12937_s30 = scalar_lea.vmem %s137_s23, 32 }
  0x4f   :  { %p12934_p7 = scmp.ne.s32.totalorder %s137_s23, %s12933_s8  ;;  %p12938_p8 = scmp.lt.s32.totalorder %s137_s23, %s137_s23 }
  0x50   :  { %p12939_p9 = scmp.lt.s32.totalorder %s12937_s30, %s12933_s8 }
  0x52   :  { %p12940_p10 = por %p12939_p9, %p12938_p8 }
  0x54   :  { %p12941_p11 = pnand %p12940_p10, %p12934_p7 }
  0x56   :  { %12944 = shalt.err (!%p12941_p11)
}
  0x57   :  { %139 = dma.hbm_to_vmem [thread:$0]  %s13630_s12, 16, %s137_s23, [#allocation17]  }
  0x58   :  { %s12945_s6 = scalar_lea.hbm %s13619_s1, 131072 }
  0x59   :  { %p12946_p12 = scmp.ne.s32.totalorder %s13619_s1, %s12945_s6  ;;  %p12949_p13 = scmp.lt.u32.totalorder %s12945_s6, %s13619_s1 }
  0x5b   :  { %p12951_p0 = pnand %p12949_p13, %p12946_p12 }
  0x5d   :  { %12954 = shalt.err (!%p12951_p0)
}
  0x5e   :  { %s12955_s25 = scalar_lea.vmem %s13238_s4, 131072  ;;  %p12960_p2 = scmp.lt.s32.totalorder %s13238_s4, %s13238_s4 }
  0x5f   :  { %p12956_p1 = scmp.ne.s32.totalorder %s13238_s4, %s12955_s25  ;;  %p12961_p3 = scmp.lt.s32.totalorder %s12955_s25, %s12955_s25 }
  0x61   :  { %p12962_p4 = por %p12961_p3, %p12960_p2 }
  0x63   :  { %p12963_p5 = pnand %p12962_p4, %p12956_p1 }
  0x65   :  { %12966 = shalt.err (!%p12963_p5)
}
  0x66   :  { %s13095_s12 = smov 512   ;;  %s13096_s23 = smov 32  }
  0x67   :  { %39 = dma.hbm_to_vmem [thread:$0]  %s13619_s1, 131072, %s13238_s4, [#allocation3], %s13095_s12, %s13095_s12, %s13096_s23  }
  0x68   :  { %s13097_s19 = smov [#allocation6]   ;;  %s12967_s30 = scalar_lea.hbm %s13621_s3, 32768 }
  0x69   :  { %s55_s27 = sshll.u32 %s13097_s19, 4  ;;  %p12968_p6 = scmp.ne.s32.totalorder %s13621_s3, %s12967_s30  ;;  %s56_s27 = int_to_ptr.vmem [resolvable:$true] %s55_s27 }
  0x6a   :  { %p12971_p7 = scmp.lt.u32.totalorder %s12967_s30, %s13621_s3 }
  0x6c   :  { %p12973_p8 = pnand %p12971_p7, %p12968_p6 }
  0x6e   :  { %12976 = shalt.err (!%p12973_p8)
}
  0x6f   :  { %s12977_s6 = scalar_lea.vmem %s56_s27, 32768  ;;  %p12982_p10 = scmp.lt.s32.totalorder %s56_s27, %s56_s27 }
  0x70   :  { %p12978_p9 = scmp.ne.s32.totalorder %s56_s27, %s12977_s6  ;;  %p12983_p11 = scmp.lt.s32.totalorder %s12977_s6, %s12977_s6 }
  0x72   :  { %p12984_p12 = por %p12983_p11, %p12982_p10 }
  0x74   :  { %p12985_p13 = pnand %p12984_p12, %p12978_p9 }
  0x76   :  { %12988 = shalt.err (!%p12985_p13)
}
  0x77   :  { %s13098_s1 = smov 256   ;;  %s13099_s4 = smov 16  }
  0x78   :  { %61 = dma.hbm_to_vmem [thread:$0]  %s13621_s3, 32768, %s56_s27, [#allocation5], %s13098_s1, %s13098_s1, %s13099_s4  }
  0x79   :  { %s13100_s24 = smov [#allocation9]   ;;  %s12989_s23 = scalar_lea.hbm %s13623_s5, 8192 }
  0x7a   :  { %s77_s21 = sshll.u32 %s13100_s24, 4  ;;  %p12990_p0 = scmp.ne.s32.totalorder %s13623_s5, %s12989_s23  ;;  %s78_s21 = int_to_ptr.vmem [resolvable:$true] %s77_s21 }
  0x7b   :  { %p12993_p1 = scmp.lt.u32.totalorder %s12989_s23, %s13623_s5 }
  0x7d   :  { %p12995_p2 = pnand %p12993_p1, %p12990_p0 }
  0x7f   :  { %12998 = shalt.err (!%p12995_p2)
}
  0x80   :  { %s12999_s8 = scalar_lea.vmem %s78_s21, 8192  ;;  %p13004_p4 = scmp.lt.s32.totalorder %s78_s21, %s78_s21 }
  0x81   :  { %p13000_p3 = scmp.ne.s32.totalorder %s78_s21, %s12999_s8  ;;  %p13005_p5 = scmp.lt.s32.totalorder %s12999_s8, %s12999_s8 }
  0x83   :  { %p13006_p6 = por %p13005_p5, %p13004_p4 }
  0x85   :  { %p13007_p7 = pnand %p13006_p6, %p13000_p3 }
  0x87   :  { %13010 = shalt.err (!%p13007_p7)
}
  0x88   :  { %s13101_s3 = smov 128   ;;  %s13102_s27 = smov 8  }
  0x89   :  { %83 = dma.hbm_to_vmem [thread:$0]  %s13623_s5, 8192, %s78_s21, [#allocation8], %s13101_s3, %s13101_s3, %s13102_s27  }
  0x8a   :  { %s13103_s17 = smov [#allocation12]   ;;  %s13011_s1 = scalar_lea.hbm %s13625_s7, 2048 }
  0x8b   :  { %s99_s18 = sshll.u32 %s13103_s17, 4  ;;  %p13012_p8 = scmp.ne.s32.totalorder %s13625_s7, %s13011_s1  ;;  %s100_s18 = int_to_ptr.vmem [resolvable:$true] %s99_s18 }
  0x8c   :  { %p13015_p9 = scmp.lt.u32.totalorder %s13011_s1, %s13625_s7 }
  0x8e   :  { %p13017_p10 = pnand %p13015_p9, %p13012_p8 }
  0x90   :  { %13020 = shalt.err (!%p13017_p10)
}
  0x91   :  { %s13021_s25 = scalar_lea.vmem %s100_s18, 2048  ;;  %p13026_p12 = scmp.lt.s32.totalorder %s100_s18, %s100_s18 }
  0x92   :  { %p13022_p11 = scmp.ne.s32.totalorder %s100_s18, %s13021_s25  ;;  %p13027_p13 = scmp.lt.s32.totalorder %s13021_s25, %s13021_s25 }
  0x94   :  { %p13028_p0 = por %p13027_p13, %p13026_p12 }
  0x96   :  { %p13029_p1 = pnand %p13028_p0, %p13022_p11 }
  0x98   :  { %13032 = shalt.err (!%p13029_p1)
}
  0x99   :  { %s13104_s5 = smov 64   ;;  %s13105_s21 = smov 4  }
  0x9a   :  { %105 = dma.hbm_to_vmem [thread:$0]  %s13625_s7, 2048, %s100_s18, [#allocation11], %s13104_s5, %s13104_s5, %s13105_s21  }
  0x9b   :  { %s13106_s26 = smov [#allocation15]   ;;  %s13107_s19 = smov [#allocation18]  }
  0x9c   :  { %s124_s2 = sshll.u32 %s13106_s26, 4  ;;  %s148_s29 = sshll.u32 %s13107_s19, 4  ;;  %s125_s2 = int_to_ptr.vmem [resolvable:$true] %s124_s2  ;;  %s149_s29 = int_to_ptr.vmem [resolvable:$true] %s148_s29 }
  0x9d   :  { %s13033_s27 = scalar_lea.hbm %s13628_s10, 16 }
  0x9e   :  { %p13034_p2 = scmp.ne.s32.totalorder %s13628_s10, %s13033_s27  ;;  %p13037_p3 = scmp.lt.u32.totalorder %s13033_s27, %s13628_s10 }
  0xa0   :  { %p13039_p4 = pnand %p13037_p3, %p13034_p2 }
  0xa2   :  { %13042 = shalt.err (!%p13039_p4)
}
  0xa3   :  { %s13043_s7 = scalar_lea.vmem %s125_s2, 16  ;;  %s13047_s18 = scalar_lea.vmem %s125_s2, 32 }
  0xa4   :  { %p13044_p5 = scmp.ne.s32.totalorder %s125_s2, %s13043_s7  ;;  %p13048_p6 = scmp.lt.s32.totalorder %s125_s2, %s125_s2 }
  0xa5   :  { %p13049_p7 = scmp.lt.s32.totalorder %s13047_s18, %s13043_s7 }
  0xa7   :  { %p13050_p8 = por %p13049_p7, %p13048_p6 }
  0xa9   :  { %p13051_p9 = pnand %p13050_p8, %p13044_p5 }
  0xab   :  { %13054 = shalt.err (!%p13051_p9)
}
  0xac   :  { %127 = dma.hbm_to_vmem [thread:$0]  %s13628_s10, 16, %s125_s2, [#allocation14]  }
  0xad   :  { %s13055_s22 = scalar_lea.hbm %s13632_s14, 16 }
  0xae   :  { %p13056_p10 = scmp.ne.s32.totalorder %s13632_s14, %s13055_s22  ;;  %p13059_p11 = scmp.lt.u32.totalorder %s13055_s22, %s13632_s14 }
  0xb0   :  { %p13061_p12 = pnand %p13059_p11, %p13056_p10 }
  0xb2   :  { %13064 = shalt.err (!%p13061_p12)
}
  0xb3   :  { %s13065_s12 = scalar_lea.vmem %s149_s29, 16  ;;  %s13069_s23 = scalar_lea.vmem %s149_s29, 32 }
  0xb4   :  { %p13066_p13 = scmp.ne.s32.totalorder %s149_s29, %s13065_s12  ;;  %p13070_p0 = scmp.lt.s32.totalorder %s149_s29, %s149_s29 }
  0xb5   :  { %p13071_p1 = scmp.lt.s32.totalorder %s13069_s23, %s13065_s12 }
  0xb7   :  { %p13072_p2 = por %p13071_p1, %p13070_p0 }
  0xb9   :  { %p13073_p3 = pnand %p13072_p2, %p13066_p13 }
  0xbb   :  { %13076 = shalt.err (!%p13073_p3)
}
  0xbc   :  { %151 = dma.hbm_to_vmem [thread:$0]  %s13632_s14, 16, %s149_s29, [#allocation17]  }
  0xbd   :  { %13077 = dma.done.wait [#allocation3], 131072  }
  0xbe   :  { %13078 = vsyncadd [#allocation3], 4294836224 }
  0xbf   :  { %13079 = dma.done.wait [#allocation5], 32896  }
  0xc0   :  { %13080 = vsyncadd [#allocation5], 4294934400 }
  0xc1   :  { %13081 = dma.done.wait [#allocation8], 8256  }
  0xc2   :  { %13082 = vsyncadd [#allocation8], 4294959040 }
  0xc3   :  { %13083 = dma.done.wait [#allocation11], 2080  }
  0xc4   :  { %13084 = vsyncadd [#allocation11], 4294965216 }
  0xc5   :  { %13085 = dma.done.wait [#allocation14], 32  }
  0xc6   :  { %13086 = vsyncadd [#allocation14], 4294967264 }
  0xc7   :  { %13087 = dma.done.wait [#allocation17], 32  }
  0xc8   :  { %13088 = vsyncadd [#allocation17], 4294967264  ;;  %v194_v0 = vld [vmem:[#allocation2] sm:$0xff]  ;;  %v195_v2 = vld [vmem:[#allocation2 + $0x8] sm:$0xff]  ;;  %vm13109_vm0 = vmmov 0   ;;  %vm10518_vm1 = vcmask 261120  }
  0xc9   :  { %v198_v1 = vld [vmem:[#allocation2 + $0x20] sm:$0xff]  ;;  %v199_v4 = vld [vmem:[#allocation2 + $0x28] sm:$0xff]  ;;  %vm10583_vm2 = vcmask 130048   ;;  %vm10627_vm3 = vcmask 15360  }
  0xca   :  { %v10656_v3 = vcombine.high %v194_v0, %v198_v1  ;;  %v10655_v5 = vcombine.low %v194_v0, %v198_v1  ;;  %v202_v6 = vld [vmem:[#allocation2 + $0x40] sm:$0xff]  ;;  %v10658_v8 = vcombine.high %v195_v2, %v199_v4  ;;  %v10657_v9 = vcombine.low %v195_v2, %v199_v4  ;;  %v203_v11 = vld [vmem:[#allocation2 + $0x48] sm:$0xff] }
  0xcb   :  { %v206_v7 = vld [vmem:[#allocation2 + $0x60] sm:$0xff]  ;;  %v207_v12 = vld [vmem:[#allocation2 + $0x68] sm:$0xff] }
  0xcc   :  { %v10664_v10 = vcombine.high %v202_v6, %v206_v7  ;;  %v210_v13 = vld [vmem:[#allocation2 + $0x80] sm:$0xff]  ;;  %6436 = vmatprep.subr.bf16.mxu0 %v10656_v3  ;;  %v10666_v14 = vcombine.high %v203_v11, %v207_v12  ;;  %v211_v16 = vld [vmem:[#allocation2 + $0x88] sm:$0xff]  ;;  %6764 = vmatprep.subr.bf16.mxu1 %v10658_v8  ;;  %v10663_v18 = vcombine.low %v202_v6, %v206_v7 }
  0xcd   :  { %v214_v15 = vld [vmem:[#allocation2 + $0xa0] sm:$0xff]  ;;  %v215_v17 = vld [vmem:[#allocation2 + $0xa8] sm:$0xff]  ;;  %6437 = vmatpush1.bf16.msra.mxu0 %v10655_v5  ;;  %6765 = vmatpush1.bf16.msra.mxu1 %v10657_v9  ;;  %v10665_v19 = vcombine.low %v203_v11, %v207_v12 }
  0xce   :  { %6438 = vmatprep.subr.bf16.mxu0 %v10664_v10  ;;  %v10672_v20 = vcombine.high %v210_v13, %v214_v15  ;;  %6766 = vmatprep.subr.bf16.mxu1 %v10666_v14  ;;  %v10674_v21 = vcombine.high %v211_v16, %v215_v17  ;;  %v218_v22 = vld [vmem:[#allocation2 + $0xc0] sm:$0xff]  ;;  %v219_v24 = vld [vmem:[#allocation2 + $0xc8] sm:$0xff]  ;;  %v10671_v26 = vcombine.low %v210_v13, %v214_v15 }
  0xcf   :  { %v222_v23 = vld [vmem:[#allocation2 + $0xe0] sm:$0xff]  ;;  %v223_v25 = vld [vmem:[#allocation2 + $0xe8] sm:$0xff]  ;;  %v10673_v27 = vcombine.low %v211_v16, %v215_v17 }
  0xd0   :  { %v10680_v28 = vcombine.high %v218_v22, %v222_v23  ;;  %v10682_v29 = vcombine.high %v219_v24, %v223_v25  ;;  %v226_v30 = vld [vmem:[#allocation2 + $0x100] sm:$0xff]  ;;  %v227_v32 = vld [vmem:[#allocation2 + $0x108] sm:$0xff]  ;;  %v10679_v34 = vcombine.low %v218_v22, %v222_v23  ;;  %v10681_v35 = vcombine.low %v219_v24, %v223_v25 }
  0xd1   :  { %6439 = vmatpush1.bf16.msra.mxu0 %v10663_v18  ;;  %6767 = vmatpush1.bf16.msra.mxu1 %v10665_v19  ;;  %v230_v31 = vld [vmem:[#allocation2 + $0x120] sm:$0xff]  ;;  %v231_v33 = vld [vmem:[#allocation2 + $0x128] sm:$0xff] }
  0xd2   :  { %6440 = vmatprep.subr.bf16.mxu0 %v10672_v20  ;;  %6768 = vmatprep.subr.bf16.mxu1 %v10674_v21  ;;  %v10688_v36 = vcombine.high %v226_v30, %v230_v31  ;;  %v10690_v37 = vcombine.high %v227_v32, %v231_v33  ;;  %v234_v38 = vld [vmem:[#allocation2 + $0x140] sm:$0xff]  ;;  %v235_v40 = vld [vmem:[#allocation2 + $0x148] sm:$0xff]  ;;  %v10687_v42 = vcombine.low %v226_v30, %v230_v31 }
  0xd3   :  { %v238_v39 = vld [vmem:[#allocation2 + $0x160] sm:$0xff]  ;;  %v239_v41 = vld [vmem:[#allocation2 + $0x168] sm:$0xff]  ;;  %v10689_v43 = vcombine.low %v227_v32, %v231_v33 }
  0xd4   :  { %v10696_v44 = vcombine.high %v234_v38, %v238_v39  ;;  %v10698_v45 = vcombine.high %v235_v40, %v239_v41  ;;  %v242_v46 = vld [vmem:[#allocation2 + $0x180] sm:$0xff]  ;;  %v243_v48 = vld [vmem:[#allocation2 + $0x188] sm:$0xff]  ;;  %v10695_v50 = vcombine.low %v234_v38, %v238_v39  ;;  %v10697_v51 = vcombine.low %v235_v40, %v239_v41 }
  0xd5   :  { %6441 = vmatpush1.bf16.msra.mxu0 %v10671_v26  ;;  %6769 = vmatpush1.bf16.msra.mxu1 %v10673_v27  ;;  %v246_v47 = vld [vmem:[#allocation2 + $0x1a0] sm:$0xff]  ;;  %v247_v49 = vld [vmem:[#allocation2 + $0x1a8] sm:$0xff] }
  0xd6   :  { %6442 = vmatprep.subr.bf16.mxu0 %v10680_v28  ;;  %6770 = vmatprep.subr.bf16.mxu1 %v10682_v29  ;;  %v10704_v52 = vcombine.high %v242_v46, %v246_v47  ;;  %v13332_v53 = vld [vmem:[%s13618_s0] sm:$0xff]  ;;  %v10706_v54 = vcombine.high %v243_v48, %v247_v49  ;;  %v251_v58 = vld [vmem:[#allocation2 + $0x1c8] sm:$0xff]  ;;  %v10703_v60 = vcombine.low %v242_v46, %v246_v47 }
  0xd7   :  { %v250_v55 = vld [vmem:[#allocation2 + $0x1c0] sm:$0xff]  ;;  %v13336_v57 = vcombine.high %v13332_v53, %v13332_v53  ;;  %v255_v59 = vld [vmem:[#allocation2 + $0x1e8] sm:$0xff]  ;;  %v10705_v61 = vcombine.low %v243_v48, %v247_v49 }
  0xd8   :  { %v254_v56 = vld [vmem:[#allocation2 + $0x1e0] sm:$0xff]  ;;  %v10714_v63 = vcombine.high %v251_v58, %v255_v59  ;;  %v259_v2 = vld [vmem:[#allocation2 + $0x208] sm:$0xff]  ;;  %v10713_v5 = vcombine.low %v251_v58, %v255_v59 }
  0xd9   :  { %6443 = vmatpush1.bf16.msra.mxu0 %v10679_v34  ;;  %6771 = vmatpush1.bf16.msra.mxu1 %v10681_v35  ;;  %v10712_v62 = vcombine.high %v250_v55, %v254_v56  ;;  %v258_v0 = vld [vmem:[#allocation2 + $0x200] sm:$0xff]  ;;  %v263_v3 = vld [vmem:[#allocation2 + $0x228] sm:$0xff]  ;;  %v10711_v4 = vcombine.low %v250_v55, %v254_v56 }
  0xda   :  { %6444 = vmatprep.subr.bf16.mxu0 %v10688_v36  ;;  %6772 = vmatprep.subr.bf16.mxu1 %v10690_v37  ;;  %v262_v1 = vld [vmem:[#allocation2 + $0x220] sm:$0xff]  ;;  %v10722_v7 = vcombine.high %v259_v2, %v263_v3  ;;  %v267_v10 = vld [vmem:[#allocation2 + $0x248] sm:$0xff]  ;;  %v10721_v13 = vcombine.low %v259_v2, %v263_v3 }
  0xdb   :  { %6468 = vmatprep.mubr.bf16.mxu0 %v13336_v57  ;;  %6796 = vmatprep.mubr.bf16.mxu1 %v13336_v57  ;;  %v10720_v6 = vcombine.high %v258_v0, %v262_v1  ;;  %v266_v8 = vld [vmem:[#allocation2 + $0x240] sm:$0xff]  ;;  %v271_v11 = vld [vmem:[#allocation2 + $0x268] sm:$0xff]  ;;  %v10719_v12 = vcombine.low %v258_v0, %v262_v1 }
  0xdc   :  { %v270_v9 = vld [vmem:[#allocation2 + $0x260] sm:$0xff]  ;;  %v10730_v15 = vcombine.high %v267_v10, %v271_v11  ;;  %v275_v18 = vld [vmem:[#allocation2 + $0x288] sm:$0xff]  ;;  %v10729_v21 = vcombine.low %v267_v10, %v271_v11 }
  0xdd   :  { %6445 = vmatpush1.bf16.msra.mxu0 %v10687_v42  ;;  %6773 = vmatpush1.bf16.msra.mxu1 %v10689_v43  ;;  %v10728_v14 = vcombine.high %v266_v8, %v270_v9  ;;  %v274_v16 = vld [vmem:[#allocation2 + $0x280] sm:$0xff]  ;;  %v279_v19 = vld [vmem:[#allocation2 + $0x2a8] sm:$0xff]  ;;  %v10727_v20 = vcombine.low %v266_v8, %v270_v9 }
  0xde   :  { %6446 = vmatprep.subr.bf16.mxu0 %v10696_v44  ;;  %6774 = vmatprep.subr.bf16.mxu1 %v10698_v45  ;;  %v278_v17 = vld [vmem:[#allocation2 + $0x2a0] sm:$0xff]  ;;  %v10738_v23 = vcombine.high %v275_v18, %v279_v19  ;;  %v283_v26 = vld [vmem:[#allocation2 + $0x2c8] sm:$0xff]  ;;  %v10737_v29 = vcombine.low %v275_v18, %v279_v19 }
  0xdf   :  { %v10736_v22 = vcombine.high %v274_v16, %v278_v17  ;;  %v282_v24 = vld [vmem:[#allocation2 + $0x2c0] sm:$0xff]  ;;  %v287_v27 = vld [vmem:[#allocation2 + $0x2e8] sm:$0xff]  ;;  %v10735_v28 = vcombine.low %v274_v16, %v278_v17 }
  0xe0   :  { %v286_v25 = vld [vmem:[#allocation2 + $0x2e0] sm:$0xff]  ;;  %v10746_v31 = vcombine.high %v283_v26, %v287_v27  ;;  %v291_v34 = vld [vmem:[#allocation2 + $0x308] sm:$0xff]  ;;  %v10745_v37 = vcombine.low %v283_v26, %v287_v27 }
  0xe1   :  { %6447 = vmatpush1.bf16.msra.mxu0 %v10695_v50  ;;  %6775 = vmatpush1.bf16.msra.mxu1 %v10697_v51  ;;  %v10744_v30 = vcombine.high %v282_v24, %v286_v25  ;;  %v290_v32 = vld [vmem:[#allocation2 + $0x300] sm:$0xff]  ;;  %v295_v35 = vld [vmem:[#allocation2 + $0x328] sm:$0xff]  ;;  %v10743_v36 = vcombine.low %v282_v24, %v286_v25 }
  0xe2   :  { %6448 = vmatprep.subr.bf16.mxu0 %v10704_v52  ;;  %6776 = vmatprep.subr.bf16.mxu1 %v10706_v54  ;;  %v294_v33 = vld [vmem:[#allocation2 + $0x320] sm:$0xff]  ;;  %v10754_v39 = vcombine.high %v291_v34, %v295_v35  ;;  %v299_v42 = vld [vmem:[#allocation2 + $0x348] sm:$0xff]  ;;  %v10753_v45 = vcombine.low %v291_v34, %v295_v35 }
  0xe3   :  { %v10752_v38 = vcombine.high %v290_v32, %v294_v33  ;;  %v298_v40 = vld [vmem:[#allocation2 + $0x340] sm:$0xff]  ;;  %v303_v43 = vld [vmem:[#allocation2 + $0x368] sm:$0xff]  ;;  %v10751_v44 = vcombine.low %v290_v32, %v294_v33 }
  0xe4   :  { %v302_v41 = vld [vmem:[#allocation2 + $0x360] sm:$0xff]  ;;  %v10762_v47 = vcombine.high %v299_v42, %v303_v43  ;;  %v307_v50 = vld [vmem:[#allocation2 + $0x388] sm:$0xff]  ;;  %v10761_v54 = vcombine.low %v299_v42, %v303_v43 }
  0xe5   :  { %6449 = vmatpush1.bf16.msra.mxu0 %v10703_v60  ;;  %6777 = vmatpush1.bf16.msra.mxu1 %v10705_v61  ;;  %v10760_v46 = vcombine.high %v298_v40, %v302_v41  ;;  %v306_v48 = vld [vmem:[#allocation2 + $0x380] sm:$0xff]  ;;  %v311_v51 = vld [vmem:[#allocation2 + $0x3a8] sm:$0xff]  ;;  %v10759_v52 = vcombine.low %v298_v40, %v302_v41 }
  0xe6   :  { %6450 = vmatprep.subr.bf16.mxu0 %v10712_v62  ;;  %6778 = vmatprep.subr.bf16.mxu1 %v10714_v63  ;;  %v310_v49 = vld [vmem:[#allocation2 + $0x3a0] sm:$0xff]  ;;  %v10770_v56 = vcombine.high %v307_v50, %v311_v51  ;;  %v315_v60 = vld [vmem:[#allocation2 + $0x3c8] sm:$0xff]  ;;  %v10769_v63 = vcombine.low %v307_v50, %v311_v51 }
  0xe7   :  { %v10768_v55 = vcombine.high %v306_v48, %v310_v49  ;;  %v314_v58 = vld [vmem:[#allocation2 + $0x3c0] sm:$0xff]  ;;  %v319_v61 = vld [vmem:[#allocation2 + $0x3e8] sm:$0xff]  ;;  %v10767_v62 = vcombine.low %v306_v48, %v310_v49 }
  0xe8   :  { %v318_v59 = vld [vmem:[#allocation2 + $0x3e0] sm:$0xff]  ;;  %v10778_v1 = vcombine.high %v315_v60, %v319_v61 }
  0xe9   :  { %6451 = vmatpush1.bf16.msra.mxu0 %v10711_v4  ;;  %6779 = vmatpush1.bf16.msra.mxu1 %v10713_v5  ;;  %v10776_v0 = vcombine.high %v314_v58, %v318_v59  ;;  %v322_v2 = vld [vmem:[#allocation2 + $0x400] sm:$0xff]  ;;  %v323_v4 = vld [vmem:[#allocation2 + $0x408] sm:$0xff] }
  0xea   :  { %6452 = vmatprep.subr.bf16.mxu0 %v10720_v6  ;;  %6780 = vmatprep.subr.bf16.mxu1 %v10722_v7  ;;  %v326_v3 = vld [vmem:[#allocation2 + $0x420] sm:$0xff]  ;;  %v327_v5 = vld [vmem:[#allocation2 + $0x428] sm:$0xff]  ;;  %v10775_v6 = vcombine.low %v314_v58, %v318_v59  ;;  %v10777_v7 = vcombine.low %v315_v60, %v319_v61 }
  0xeb   :  { %v10784_v8 = vcombine.high %v322_v2, %v326_v3  ;;  %v10786_v9 = vcombine.high %v323_v4, %v327_v5  ;;  %v330_v10 = vld [vmem:[#allocation2 + $0x440] sm:$0xff]  ;;  %v10783_v16 = vcombine.low %v322_v2, %v326_v3  ;;  %v10785_v17 = vcombine.low %v323_v4, %v327_v5 }
  0xec   :  { %v334_v11 = vld [vmem:[#allocation2 + $0x460] sm:$0xff] }
  0xed   :  { %6453 = vmatpush1.bf16.msra.mxu0 %v10719_v12  ;;  %6781 = vmatpush1.bf16.msra.mxu1 %v10721_v13  ;;  %v13342_v12 = vcombine.low %v13332_v53, %v13332_v53  ;;  %v331_v13 = vld [vmem:[#allocation2 + $0x448] sm:$0xff]  ;;  %v10792_v18 = vcombine.high %v330_v10, %v334_v11  ;;  %v338_v19 = vld [vmem:[#allocation2 + $0x480] sm:$0xff]  ;;  %v10791_v24 = vcombine.low %v330_v10, %v334_v11 }
  0xee   :  { %6454 = vmatprep.subr.bf16.mxu0 %v10728_v14  ;;  %6782 = vmatprep.subr.bf16.mxu1 %v10730_v15  ;;  %v335_v14 = vld [vmem:[#allocation2 + $0x468] sm:$0xff]  ;;  %v346_v27 = vld [vmem:[#allocation2 + $0x4c0] sm:$0xff] }
  0xef   :  { %v13347_v15 = vld [vmem:[%s13618_s0 + $0x8] sm:$0xff]  ;;  %v10793_v25 = vcombine.low %v331_v13, %v335_v14  ;;  %v354_v35 = vld [vmem:[#allocation2 + $0x500] sm:$0xff] }
  0xf0   :  { %v343_v53 = vld [vmem:[#allocation2 + $0x4a8] sm:$0xff]  ;;  %v362_v43 = vld [vmem:[#allocation2 + $0x540] sm:$0xff] }
  0xf1   :  { %6455 = vmatpush1.bf16.msra.mxu0 %v10727_v20  ;;  %6783 = vmatpush1.bf16.msra.mxu1 %v10729_v21  ;;  %v342_v20 = vld [vmem:[#allocation2 + $0x4a0] sm:$0xff]  ;;  %v10794_v21 = vcombine.high %v331_v13, %v335_v14 }
  0xf2   :  { %6456 = vmatprep.subr.bf16.mxu0 %v10736_v22  ;;  %6784 = vmatprep.subr.bf16.mxu1 %v10738_v23  ;;  %v339_v22 = vld [vmem:[#allocation2 + $0x488] sm:$0xff]  ;;  %v13351_v23 = vcombine.high %v13347_v15, %v13347_v15  ;;  %v10800_v26 = vcombine.high %v338_v19, %v342_v20  ;;  %v10799_v32 = vcombine.low %v338_v19, %v342_v20  ;;  %v370_v51 = vld [vmem:[#allocation2 + $0x580] sm:$0xff] }
  0xf3   :  { %v10801_v33 = vcombine.low %v339_v22, %v343_v53  ;;  %v378_v61 = vld [vmem:[#allocation2 + $0x5c0] sm:$0xff]  ;;  %v399_v19 = vld [vmem:[#allocation2 + $0x668] sm:$0xff] }
  0xf4   :  { %v386_v5 = vld [vmem:[#allocation2 + $0x600] sm:$0xff] }
  0xf5   :  { %6457 = vmatpush1.bf16.msra.mxu0 %v10735_v28  ;;  %6785 = vmatpush1.bf16.msra.mxu1 %v10737_v29  ;;  %v350_v28 = vld [vmem:[#allocation2 + $0x4e0] sm:$0xff]  ;;  %v347_v29 = vld [vmem:[#allocation2 + $0x4c8] sm:$0xff] }
  0xf6   :  { %6458 = vmatprep.subr.bf16.mxu0 %v10744_v30  ;;  %6786 = vmatprep.subr.bf16.mxu1 %v10746_v31  ;;  %v10802_v30 = vcombine.high %v339_v22, %v343_v53  ;;  %v351_v31 = vld [vmem:[#allocation2 + $0x4e8] sm:$0xff]  ;;  %v10808_v34 = vcombine.high %v346_v27, %v350_v28  ;;  %v10807_v40 = vcombine.low %v346_v27, %v350_v28  ;;  %v394_v14 = vld [vmem:[#allocation2 + $0x640] sm:$0xff] }
  0xf7   :  { %v10809_v41 = vcombine.low %v347_v29, %v351_v31  ;;  %v402_v53 = vld [vmem:[#allocation2 + $0x680] sm:$0xff]  ;;  %v407_v27 = vld [vmem:[#allocation2 + $0x6a8] sm:$0xff] }
  0xf9   :  { %6459 = vmatpush1.bf16.msra.mxu0 %v10743_v36  ;;  %6787 = vmatpush1.bf16.msra.mxu1 %v10745_v37  ;;  %v358_v36 = vld [vmem:[#allocation2 + $0x520] sm:$0xff]  ;;  %v355_v37 = vld [vmem:[#allocation2 + $0x508] sm:$0xff] }
  0xfa   :  { %6460 = vmatprep.subr.bf16.mxu0 %v10752_v38  ;;  %6788 = vmatprep.subr.bf16.mxu1 %v10754_v39  ;;  %v10810_v38 = vcombine.high %v347_v29, %v351_v31  ;;  %v359_v39 = vld [vmem:[#allocation2 + $0x528] sm:$0xff]  ;;  %v10816_v42 = vcombine.high %v354_v35, %v358_v36  ;;  %v10815_v48 = vcombine.low %v354_v35, %v358_v36  ;;  %v410_v31 = vld [vmem:[#allocation2 + $0x6c0] sm:$0xff] }
  0xfb   :  { %v10817_v49 = vcombine.low %v355_v37, %v359_v39  ;;  %v415_v35 = vld [vmem:[#allocation2 + $0x6e8] sm:$0xff] }
  0xfd   :  { %6461 = vmatpush1.bf16.msra.mxu0 %v10751_v44  ;;  %6789 = vmatpush1.bf16.msra.mxu1 %v10753_v45  ;;  %v366_v44 = vld [vmem:[#allocation2 + $0x560] sm:$0xff]  ;;  %v363_v45 = vld [vmem:[#allocation2 + $0x548] sm:$0xff] }
  0xfe   :  { %6462 = vmatprep.subr.bf16.mxu0 %v10760_v46  ;;  %6790 = vmatprep.subr.bf16.mxu1 %v10762_v47  ;;  %v10818_v46 = vcombine.high %v355_v37, %v359_v39  ;;  %v367_v47 = vld [vmem:[#allocation2 + $0x568] sm:$0xff]  ;;  %v10824_v50 = vcombine.high %v362_v43, %v366_v44  ;;  %v10823_v58 = vcombine.low %v362_v43, %v366_v44  ;;  %v418_v39 = vld [vmem:[#allocation2 + $0x700] sm:$0xff] }
  0xff   :  { %v10825_v59 = vcombine.low %v363_v45, %v367_v47  ;;  %v423_v43 = vld [vmem:[#allocation2 + $0x728] sm:$0xff] }
 0x101   :  { %6463 = vmatpush1.bf16.msra.mxu0 %v10759_v52  ;;  %6791 = vmatpush1.bf16.msra.mxu1 %v10761_v54  ;;  %v374_v52 = vld [vmem:[#allocation2 + $0x5a0] sm:$0xff]  ;;  %v371_v54 = vld [vmem:[#allocation2 + $0x588] sm:$0xff] }
 0x102   :  { %6464 = vmatprep.subr.bf16.mxu0 %v10768_v55  ;;  %6792 = vmatprep.subr.bf16.mxu1 %v10770_v56  ;;  %v10826_v55 = vcombine.high %v363_v45, %v367_v47  ;;  %v375_v56 = vld [vmem:[#allocation2 + $0x5a8] sm:$0xff]  ;;  %v10832_v60 = vcombine.high %v370_v51, %v374_v52  ;;  %v10831_v2 = vcombine.low %v370_v51, %v374_v52  ;;  %v426_v47 = vld [vmem:[#allocation2 + $0x740] sm:$0xff] }
 0x103   :  { %v10833_v3 = vcombine.low %v371_v54, %v375_v56  ;;  %v431_v51 = vld [vmem:[#allocation2 + $0x768] sm:$0xff] }
 0x105   :  { %6465 = vmatpush1.bf16.msra.mxu0 %v10767_v62  ;;  %6793 = vmatpush1.bf16.msra.mxu1 %v10769_v63  ;;  %v382_v62 = vld [vmem:[#allocation2 + $0x5e0] sm:$0xff]  ;;  %v379_v63 = vld [vmem:[#allocation2 + $0x5c8] sm:$0xff] }
 0x106   :  { %6466 = vmatprep.subr.bf16.mxu0 %v10776_v0  ;;  %6794 = vmatprep.subr.bf16.mxu1 %v10778_v1  ;;  %v10834_v0 = vcombine.high %v371_v54, %v375_v56  ;;  %v383_v1 = vld [vmem:[#allocation2 + $0x5e8] sm:$0xff]  ;;  %v10840_v4 = vcombine.high %v378_v61, %v382_v62  ;;  %v10839_v10 = vcombine.low %v378_v61, %v382_v62  ;;  %v434_v56 = vld [vmem:[#allocation2 + $0x780] sm:$0xff] }
 0x107   :  { %v10841_v11 = vcombine.low %v379_v63, %v383_v1  ;;  %v439_v61 = vld [vmem:[#allocation2 + $0x7a8] sm:$0xff] }
 0x109   :  { %6467 = vmatpush1.bf16.msra.mxu0 %v10775_v6  ;;  %6795 = vmatpush1.bf16.msra.mxu1 %v10777_v7  ;;  %v390_v6 = vld [vmem:[#allocation2 + $0x620] sm:$0xff]  ;;  %v387_v7 = vld [vmem:[#allocation2 + $0x608] sm:$0xff] }
 0x10a   :  { %6477 = vmatprep.subr.bf16.mxu0 %v10784_v8  ;;  %6805 = vmatprep.subr.bf16.mxu1 %v10786_v9  ;;  %v10842_v8 = vcombine.high %v379_v63, %v383_v1  ;;  %v391_v9 = vld [vmem:[#allocation2 + $0x628] sm:$0xff]  ;;  %v10848_v13 = vcombine.high %v386_v5, %v390_v6  ;;  %v10847_v20 = vcombine.low %v386_v5, %v390_v6  ;;  %v442_v1 = vld [vmem:[#allocation2 + $0x7c0] sm:$0xff] }
 0x10b   :  { %v447_v5 = vld [vmem:[#allocation2 + $0x7e8] sm:$0xff] }
 0x10c   :  { %6469 = vmatmul.mubr.bf16.vlgmr.msra.gmra.mrb[0].mxu0 %v13342_v12  ;;  %6797 = vmatmul.mubr.bf16.vlgmr.msra.gmra.mrb[0].mxu1 %v13342_v12 }
 0x10d   :  { %6478 = vmatpush1.bf16.msra.mxu0 %v10783_v16  ;;  %6806 = vmatpush1.bf16.msra.mxu1 %v10785_v17  ;;  %v398_v16 = vld [vmem:[#allocation2 + $0x660] sm:$0xff]  ;;  %v395_v17 = vld [vmem:[#allocation2 + $0x648] sm:$0xff] }
 0x10e   :  { %6479 = vmatprep.subr.bf16.mxu0 %v10792_v18  ;;  %6807 = vmatprep.subr.bf16.mxu1 %v10794_v21  ;;  %v10850_v18 = vcombine.high %v387_v7, %v391_v9  ;;  %v10849_v21 = vcombine.low %v387_v7, %v391_v9  ;;  %v10856_v22 = vcombine.high %v394_v14, %v398_v16  ;;  %v450_v9 = vld [vmem:[#allocation2 + $0x800] sm:$0xff] }
 0x10f   :  { %6509 = vmatprep.mubr.bf16.mxu0 %v13351_v23  ;;  %6837 = vmatprep.mubr.bf16.mxu1 %v13351_v23  ;;  %v10855_v28 = vcombine.low %v394_v14, %v398_v16  ;;  %v10857_v29 = vcombine.low %v395_v17, %v399_v19  ;;  %v455_v14 = vld [vmem:[#allocation2 + $0x828] sm:$0xff] }
 0x111   :  { %6480 = vmatpush1.bf16.msra.mxu0 %v10791_v24  ;;  %6808 = vmatpush1.bf16.msra.mxu1 %v10793_v25  ;;  %v406_v24 = vld [vmem:[#allocation2 + $0x6a0] sm:$0xff]  ;;  %v403_v25 = vld [vmem:[#allocation2 + $0x688] sm:$0xff] }
 0x112   :  { %6481 = vmatprep.subr.bf16.mxu0 %v10800_v26  ;;  %6809 = vmatprep.subr.bf16.mxu1 %v10802_v30  ;;  %v10858_v26 = vcombine.high %v395_v17, %v399_v19  ;;  %v10864_v30 = vcombine.high %v402_v53, %v406_v24  ;;  %v10863_v36 = vcombine.low %v402_v53, %v406_v24  ;;  %v458_v17 = vld [vmem:[#allocation2 + $0x840] sm:$0xff]  ;;  %v13360_v24 = vld [vmem:[%s13618_s0 + $0x10] sm:$0xff] }
 0x113   :  { %v10865_v37 = vcombine.low %v403_v25, %v407_v27 }
 0x115   :  { %6482 = vmatpush1.bf16.msra.mxu0 %v10799_v32  ;;  %6810 = vmatpush1.bf16.msra.mxu1 %v10801_v33  ;;  %v414_v32 = vld [vmem:[#allocation2 + $0x6e0] sm:$0xff]  ;;  %v411_v33 = vld [vmem:[#allocation2 + $0x6c8] sm:$0xff] }
 0x116   :  { %6483 = vmatprep.subr.bf16.mxu0 %v10808_v34  ;;  %6811 = vmatprep.subr.bf16.mxu1 %v10810_v38  ;;  %v10866_v34 = vcombine.high %v403_v25, %v407_v27  ;;  %v10872_v38 = vcombine.high %v410_v31, %v414_v32  ;;  %v10871_v44 = vcombine.low %v410_v31, %v414_v32  ;;  %v467_v32 = vld [vmem:[#allocation2 + $0x888] sm:$0xff] }
 0x117   :  { %v10873_v45 = vcombine.low %v411_v33, %v415_v35  ;;  %v13364_v25 = vcombine.low %v13347_v15, %v13347_v15 }
 0x119   :  { %6484 = vmatpush1.bf16.msra.mxu0 %v10807_v40  ;;  %6812 = vmatpush1.bf16.msra.mxu1 %v10809_v41  ;;  %v422_v40 = vld [vmem:[#allocation2 + $0x720] sm:$0xff]  ;;  %v419_v41 = vld [vmem:[#allocation2 + $0x708] sm:$0xff] }
 0x11a   :  { %6485 = vmatprep.subr.bf16.mxu0 %v10816_v42  ;;  %6813 = vmatprep.subr.bf16.mxu1 %v10818_v46  ;;  %v10874_v42 = vcombine.high %v411_v33, %v415_v35  ;;  %v10880_v46 = vcombine.high %v418_v39, %v422_v40  ;;  %v10879_v52 = vcombine.low %v418_v39, %v422_v40  ;;  %v471_v33 = vld [vmem:[#allocation2 + $0x8a8] sm:$0xff] }
 0x11b   :  { %v10881_v54 = vcombine.low %v419_v41, %v423_v43  ;;  %v475_v39 = vld [vmem:[#allocation2 + $0x8c8] sm:$0xff]  ;;  %v10930_v40 = vcombine.high %v467_v32, %v471_v33 }
 0x11d   :  { %6486 = vmatpush1.bf16.msra.mxu0 %v10815_v48  ;;  %6814 = vmatpush1.bf16.msra.mxu1 %v10817_v49  ;;  %v430_v48 = vld [vmem:[#allocation2 + $0x760] sm:$0xff]  ;;  %v427_v49 = vld [vmem:[#allocation2 + $0x748] sm:$0xff] }
 0x11e   :  { %6487 = vmatprep.subr.bf16.mxu0 %v10824_v50  ;;  %6815 = vmatprep.subr.bf16.mxu1 %v10826_v55  ;;  %v10882_v50 = vcombine.high %v419_v41, %v423_v43  ;;  %v10888_v55 = vcombine.high %v426_v47, %v430_v48  ;;  %v10887_v62 = vcombine.low %v426_v47, %v430_v48  ;;  %v479_v41 = vld [vmem:[#allocation2 + $0x8e8] sm:$0xff] }
 0x11f   :  { %v10889_v63 = vcombine.low %v427_v49, %v431_v51  ;;  %v10929_v43 = vcombine.low %v467_v32, %v471_v33  ;;  %v483_v47 = vld [vmem:[#allocation2 + $0x908] sm:$0xff]  ;;  %v10938_v48 = vcombine.high %v475_v39, %v479_v41 }
 0x121   :  { %6488 = vmatpush1.bf16.msra.mxu0 %v10823_v58  ;;  %6816 = vmatpush1.bf16.msra.mxu1 %v10825_v59  ;;  %v438_v58 = vld [vmem:[#allocation2 + $0x7a0] sm:$0xff]  ;;  %v435_v59 = vld [vmem:[#allocation2 + $0x788] sm:$0xff] }
 0x122   :  { %6489 = vmatprep.subr.bf16.mxu0 %v10832_v60  ;;  %6817 = vmatprep.subr.bf16.mxu1 %v10834_v0  ;;  %v10890_v60 = vcombine.high %v427_v49, %v431_v51  ;;  %v10896_v0 = vcombine.high %v434_v56, %v438_v58  ;;  %v10895_v6 = vcombine.low %v434_v56, %v438_v58  ;;  %v487_v49 = vld [vmem:[#allocation2 + $0x928] sm:$0xff] }
 0x123   :  { %v10897_v7 = vcombine.low %v435_v59, %v439_v61  ;;  %v10937_v51 = vcombine.low %v475_v39, %v479_v41  ;;  %v491_v56 = vld [vmem:[#allocation2 + $0x948] sm:$0xff]  ;;  %v10946_v58 = vcombine.high %v483_v47, %v487_v49 }
 0x124   :  { %v535_v39 = vld [vmem:[#allocation2 + $0xaa8] sm:$0xff] }
 0x125   :  { %6490 = vmatpush1.bf16.msra.mxu0 %v10831_v2  ;;  %6818 = vmatpush1.bf16.msra.mxu1 %v10833_v3  ;;  %v446_v2 = vld [vmem:[#allocation2 + $0x7e0] sm:$0xff]  ;;  %v443_v3 = vld [vmem:[#allocation2 + $0x7c8] sm:$0xff] }
 0x126   :  { %6491 = vmatprep.subr.bf16.mxu0 %v10840_v4  ;;  %6819 = vmatprep.subr.bf16.mxu1 %v10842_v8  ;;  %v10898_v4 = vcombine.high %v435_v59, %v439_v61  ;;  %v10904_v8 = vcombine.high %v442_v1, %v446_v2  ;;  %v10903_v16 = vcombine.low %v442_v1, %v446_v2  ;;  %v495_v59 = vld [vmem:[#allocation2 + $0x968] sm:$0xff] }
 0x127   :  { %v10945_v61 = vcombine.low %v483_v47, %v487_v49  ;;  %v499_v1 = vld [vmem:[#allocation2 + $0x988] sm:$0xff]  ;;  %v10954_v2 = vcombine.high %v491_v56, %v495_v59 }
 0x128   :  { %v543_v47 = vld [vmem:[#allocation2 + $0xae8] sm:$0xff] }
 0x129   :  { %6492 = vmatpush1.bf16.msra.mxu0 %v10839_v10  ;;  %6820 = vmatpush1.bf16.msra.mxu1 %v10841_v11  ;;  %v454_v10 = vld [vmem:[#allocation2 + $0x820] sm:$0xff]  ;;  %v451_v11 = vld [vmem:[#allocation2 + $0x808] sm:$0xff] }
 0x12a   :  { %6493 = vmatprep.subr.bf16.mxu0 %v10848_v13  ;;  %6821 = vmatprep.subr.bf16.mxu1 %v10850_v18  ;;  %v10906_v13 = vcombine.high %v443_v3, %v447_v5  ;;  %v10905_v18 = vcombine.low %v443_v3, %v447_v5  ;;  %v10912_v19 = vcombine.high %v450_v9, %v454_v10  ;;  %v503_v3 = vld [vmem:[#allocation2 + $0x9a8] sm:$0xff] }
 0x12b   :  { %v10914_v53 = vcombine.high %v451_v11, %v455_v14  ;;  %v10913_v27 = vcombine.low %v451_v11, %v455_v14  ;;  %v10953_v5 = vcombine.low %v491_v56, %v495_v59  ;;  %v511_v11 = vld [vmem:[#allocation2 + $0x9e8] sm:$0xff]  ;;  %v10961_v14 = vcombine.low %v499_v1, %v503_v3 }
 0x12c   :  { %v551_v56 = vld [vmem:[#allocation2 + $0xb28] sm:$0xff] }
 0x12d   :  { %6494 = vmatpush1.bf16.msra.mxu0 %v10847_v20  ;;  %6822 = vmatpush1.bf16.msra.mxu1 %v10849_v21  ;;  %v462_v20 = vld [vmem:[#allocation2 + $0x860] sm:$0xff]  ;;  %v459_v21 = vld [vmem:[#allocation2 + $0x848] sm:$0xff] }
 0x12e   :  { %6495 = vmatprep.subr.bf16.mxu0 %v10856_v22  ;;  %6823 = vmatprep.subr.bf16.mxu1 %v10858_v26  ;;  %v463_v22 = vld [vmem:[#allocation2 + $0x868] sm:$0xff]  ;;  %v10911_v26 = vcombine.low %v450_v9, %v454_v10  ;;  %v10919_v15 = vcombine.low %v458_v17, %v462_v20  ;;  %v10962_v10 = vcombine.high %v499_v1, %v503_v3 }
 0x12f   :  { %v10922_v31 = vcombine.high %v459_v21, %v463_v22  ;;  %v10921_v35 = vcombine.low %v459_v21, %v463_v22  ;;  %v507_v9 = vld [vmem:[#allocation2 + $0x9c8] sm:$0xff] }
 0x130   :  { %v519_v21 = vld [vmem:[#allocation2 + $0xa28] sm:$0xff] }
 0x131   :  { %6496 = vmatpush1.bf16.msra.mxu0 %v10855_v28  ;;  %6824 = vmatpush1.bf16.msra.mxu1 %v10857_v29  ;;  %v10920_v28 = vcombine.high %v458_v17, %v462_v20  ;;  %v466_v29 = vld [vmem:[#allocation2 + $0x880] sm:$0xff]  ;;  %v10970_v20 = vcombine.high %v507_v9, %v511_v11  ;;  %v559_v1 = vld [vmem:[#allocation2 + $0xb68] sm:$0xff] }
 0x132   :  { %6497 = vmatprep.subr.bf16.mxu0 %v10864_v30  ;;  %6825 = vmatprep.subr.bf16.mxu1 %v10866_v34  ;;  %v470_v30 = vld [vmem:[#allocation2 + $0x8a0] sm:$0xff]  ;;  %v13368_v34 = vcombine.high %v13360_v24, %v13360_v24 }
 0x133   :  { %v514_v17 = vld [vmem:[#allocation2 + $0xa00] sm:$0xff] }
 0x135   :  { %6498 = vmatpush1.bf16.msra.mxu0 %v10863_v36  ;;  %6826 = vmatpush1.bf16.msra.mxu1 %v10865_v37  ;;  %v10928_v36 = vcombine.high %v466_v29, %v470_v30  ;;  %v474_v37 = vld [vmem:[#allocation2 + $0x8c0] sm:$0xff] }
 0x136   :  { %6499 = vmatprep.subr.bf16.mxu0 %v10872_v38  ;;  %6827 = vmatprep.subr.bf16.mxu1 %v10874_v42  ;;  %v478_v38 = vld [vmem:[#allocation2 + $0x8e0] sm:$0xff]  ;;  %v10927_v42 = vcombine.low %v466_v29, %v470_v30  ;;  %v523_v29 = vld [vmem:[#allocation2 + $0xa48] sm:$0xff] }
 0x139   :  { %6500 = vmatpush1.bf16.msra.mxu0 %v10871_v44  ;;  %6828 = vmatpush1.bf16.msra.mxu1 %v10873_v45  ;;  %v10936_v44 = vcombine.high %v474_v37, %v478_v38  ;;  %v482_v45 = vld [vmem:[#allocation2 + $0x900] sm:$0xff] }
 0x13a   :  { %6501 = vmatprep.subr.bf16.mxu0 %v10880_v46  ;;  %6829 = vmatprep.subr.bf16.mxu1 %v10882_v50  ;;  %v486_v46 = vld [vmem:[#allocation2 + $0x920] sm:$0xff]  ;;  %v10935_v50 = vcombine.low %v474_v37, %v478_v38  ;;  %v531_v37 = vld [vmem:[#allocation2 + $0xa88] sm:$0xff] }
 0x13b   :  { %v10993_v49 = vcombine.low %v531_v37, %v535_v39 }
 0x13d   :  { %6502 = vmatpush1.bf16.msra.mxu0 %v10879_v52  ;;  %6830 = vmatpush1.bf16.msra.mxu1 %v10881_v54  ;;  %v10944_v52 = vcombine.high %v482_v45, %v486_v46  ;;  %v490_v54 = vld [vmem:[#allocation2 + $0x940] sm:$0xff] }
 0x13e   :  { %6503 = vmatprep.subr.bf16.mxu0 %v10888_v55  ;;  %6831 = vmatprep.subr.bf16.mxu1 %v10890_v60  ;;  %v494_v55 = vld [vmem:[#allocation2 + $0x960] sm:$0xff]  ;;  %v10943_v60 = vcombine.low %v482_v45, %v486_v46  ;;  %v539_v45 = vld [vmem:[#allocation2 + $0xac8] sm:$0xff]  ;;  %v10994_v46 = vcombine.high %v531_v37, %v535_v39  ;;  %v13381_v39 = vcombine.low %v13360_v24, %v13360_v24 }
 0x13f   :  { %v11001_v59 = vcombine.low %v539_v45, %v543_v47 }
 0x141   :  { %6504 = vmatpush1.bf16.msra.mxu0 %v10887_v62  ;;  %6832 = vmatpush1.bf16.msra.mxu1 %v10889_v63  ;;  %v10952_v62 = vcombine.high %v490_v54, %v494_v55  ;;  %v498_v63 = vld [vmem:[#allocation2 + $0x980] sm:$0xff] }
 0x142   :  { %6505 = vmatprep.subr.bf16.mxu0 %v10896_v0  ;;  %6833 = vmatprep.subr.bf16.mxu1 %v10898_v4  ;;  %v502_v0 = vld [vmem:[#allocation2 + $0x9a0] sm:$0xff]  ;;  %v10951_v4 = vcombine.low %v490_v54, %v494_v55  ;;  %v547_v54 = vld [vmem:[#allocation2 + $0xb08] sm:$0xff]  ;;  %v11002_v55 = vcombine.high %v539_v45, %v543_v47 }
 0x143   :  { %v11009_v3 = vcombine.low %v547_v54, %v551_v56  ;;  %v599_v47 = vld [vmem:[#allocation2 + $0xca8] sm:$0xff] }
 0x145   :  { %6506 = vmatpush1.bf16.msra.mxu0 %v10895_v6  ;;  %6834 = vmatpush1.bf16.msra.mxu1 %v10897_v7  ;;  %v10960_v6 = vcombine.high %v498_v63, %v502_v0  ;;  %v506_v7 = vld [vmem:[#allocation2 + $0x9c0] sm:$0xff] }
 0x146   :  { %6507 = vmatprep.subr.bf16.mxu0 %v10904_v8  ;;  %6835 = vmatprep.subr.bf16.mxu1 %v10906_v13  ;;  %v510_v8 = vld [vmem:[#allocation2 + $0x9e0] sm:$0xff]  ;;  %v10959_v13 = vcombine.low %v498_v63, %v502_v0  ;;  %v555_v63 = vld [vmem:[#allocation2 + $0xb48] sm:$0xff]  ;;  %v11010_v0 = vcombine.high %v547_v54, %v551_v56 }
 0x147   :  { %v10967_v22 = vcombine.low %v506_v7, %v510_v8  ;;  %v603_v54 = vld [vmem:[#allocation2 + $0xcc8] sm:$0xff] }
 0x148   :  { %v607_v56 = vld [vmem:[#allocation2 + $0xce8] sm:$0xff] }
 0x149   :  { %6508 = vmatpush1.bf16.msra.mxu0 %v10903_v16  ;;  %6836 = vmatpush1.bf16.msra.mxu1 %v10905_v18  ;;  %v10968_v16 = vcombine.high %v506_v7, %v510_v8  ;;  %v518_v18 = vld [vmem:[#allocation2 + $0xa20] sm:$0xff]  ;;  %v563_v7 = vld [vmem:[#allocation2 + $0xb88] sm:$0xff]  ;;  %v11018_v8 = vcombine.high %v555_v63, %v559_v1 }
 0x14a   :  { %6518 = vmatprep.subr.bf16.mxu0 %v10912_v19  ;;  %6846 = vmatprep.subr.bf16.mxu1 %v10914_v53  ;;  %v515_v19 = vld [vmem:[#allocation2 + $0xa08] sm:$0xff]  ;;  %v10969_v53 = vcombine.low %v507_v9, %v511_v11  ;;  %v10975_v32 = vcombine.low %v514_v17, %v518_v18  ;;  %v11017_v11 = vcombine.low %v555_v63, %v559_v1 }
 0x14b   :  { %v10978_v30 = vcombine.high %v515_v19, %v519_v21  ;;  %v10977_v33 = vcombine.low %v515_v19, %v519_v21  ;;  %v567_v9 = vld [vmem:[#allocation2 + $0xba8] sm:$0xff] }
 0x14c   :  { %6510 = vmatmul.mubr.bf16.vlgmr.msra.gmra.mrb[0].mxu0 %v13364_v25  ;;  %6838 = vmatmul.mubr.bf16.vlgmr.msra.gmra.mrb[0].mxu1 %v13364_v25  ;;  %v575_v19 = vld [vmem:[#allocation2 + $0xbe8] sm:$0xff]  ;;  %v11025_v21 = vcombine.low %v563_v7, %v567_v9 }
 0x14d   :  { %6519 = vmatpush1.bf16.msra.mxu0 %v10911_v26  ;;  %6847 = vmatpush1.bf16.msra.mxu1 %v10913_v27  ;;  %v10976_v26 = vcombine.high %v514_v17, %v518_v18  ;;  %v522_v27 = vld [vmem:[#allocation2 + $0xa40] sm:$0xff]  ;;  %v571_v17 = vld [vmem:[#allocation2 + $0xbc8] sm:$0xff]  ;;  %v11026_v18 = vcombine.high %v563_v7, %v567_v9 }
 0x14e   :  { %6520 = vmatprep.subr.bf16.mxu0 %v10920_v28  ;;  %6848 = vmatprep.subr.bf16.mxu1 %v10922_v31  ;;  %v526_v28 = vld [vmem:[#allocation2 + $0xa60] sm:$0xff]  ;;  %v527_v31 = vld [vmem:[#allocation2 + $0xa68] sm:$0xff] }
 0x14f   :  { %6550 = vmatprep.mubr.bf16.mxu0 %v13368_v34  ;;  %6878 = vmatprep.mubr.bf16.mxu1 %v13368_v34  ;;  %v10986_v38 = vcombine.high %v523_v29, %v527_v31  ;;  %v10985_v41 = vcombine.low %v523_v29, %v527_v31  ;;  %v583_v29 = vld [vmem:[#allocation2 + $0xc28] sm:$0xff]  ;;  %v586_v31 = vld [vmem:[#allocation2 + $0xc40] sm:$0xff] }
 0x150   :  { %v611_v63 = vld [vmem:[#allocation2 + $0xd08] sm:$0xff] }
 0x151   :  { %6521 = vmatpush1.bf16.msra.mxu0 %v10919_v15  ;;  %6849 = vmatpush1.bf16.msra.mxu1 %v10921_v35  ;;  %v10984_v15 = vcombine.high %v522_v27, %v526_v28  ;;  %v530_v35 = vld [vmem:[#allocation2 + $0xa80] sm:$0xff]  ;;  %v615_v1 = vld [vmem:[#allocation2 + $0xd28] sm:$0xff] }
 0x152   :  { %6522 = vmatprep.subr.bf16.mxu0 %v10928_v36  ;;  %6850 = vmatprep.subr.bf16.mxu1 %v10930_v40  ;;  %v534_v36 = vld [vmem:[#allocation2 + $0xaa0] sm:$0xff]  ;;  %v10983_v40 = vcombine.low %v522_v27, %v526_v28  ;;  %v579_v27 = vld [vmem:[#allocation2 + $0xc08] sm:$0xff]  ;;  %v11034_v28 = vcombine.high %v571_v17, %v575_v19 }
 0x153   :  { %v11042_v37 = vcombine.high %v579_v27, %v583_v29  ;;  %v619_v7 = vld [vmem:[#allocation2 + $0xd48] sm:$0xff] }
 0x154   :  { %v623_v9 = vld [vmem:[#allocation2 + $0xd68] sm:$0xff] }
 0x155   :  { %6523 = vmatpush1.bf16.msra.mxu0 %v10927_v42  ;;  %6851 = vmatpush1.bf16.msra.mxu1 %v10929_v43  ;;  %v10992_v42 = vcombine.high %v530_v35, %v534_v36  ;;  %v538_v43 = vld [vmem:[#allocation2 + $0xac0] sm:$0xff] }
 0x156   :  { %6524 = vmatprep.subr.bf16.mxu0 %v10936_v44  ;;  %6852 = vmatprep.subr.bf16.mxu1 %v10938_v48  ;;  %v542_v44 = vld [vmem:[#allocation2 + $0xae0] sm:$0xff]  ;;  %v10991_v48 = vcombine.low %v530_v35, %v534_v36  ;;  %v587_v35 = vld [vmem:[#allocation2 + $0xc48] sm:$0xff] }
 0x157   :  { %v591_v36 = vld [vmem:[#allocation2 + $0xc68] sm:$0xff] }
 0x158   :  { %v11050_v45 = vcombine.high %v587_v35, %v591_v36 }
 0x159   :  { %6525 = vmatpush1.bf16.msra.mxu0 %v10935_v50  ;;  %6853 = vmatpush1.bf16.msra.mxu1 %v10937_v51  ;;  %v11000_v50 = vcombine.high %v538_v43, %v542_v44  ;;  %v546_v51 = vld [vmem:[#allocation2 + $0xb00] sm:$0xff] }
 0x15a   :  { %6526 = vmatprep.subr.bf16.mxu0 %v10944_v52  ;;  %6854 = vmatprep.subr.bf16.mxu1 %v10946_v58  ;;  %v550_v52 = vld [vmem:[#allocation2 + $0xb20] sm:$0xff]  ;;  %v10999_v58 = vcombine.low %v538_v43, %v542_v44 }
 0x15b   :  { %v594_v43 = vld [vmem:[#allocation2 + $0xc80] sm:$0xff] }
 0x15c   :  { %v598_v44 = vld [vmem:[#allocation2 + $0xca0] sm:$0xff] }
 0x15d   :  { %6527 = vmatpush1.bf16.msra.mxu0 %v10943_v60  ;;  %6855 = vmatpush1.bf16.msra.mxu1 %v10945_v61  ;;  %v11008_v60 = vcombine.high %v546_v51, %v550_v52  ;;  %v554_v61 = vld [vmem:[#allocation2 + $0xb40] sm:$0xff] }
 0x15e   :  { %6528 = vmatprep.subr.bf16.mxu0 %v10952_v62  ;;  %6856 = vmatprep.subr.bf16.mxu1 %v10954_v2  ;;  %v558_v62 = vld [vmem:[#allocation2 + $0xb60] sm:$0xff]  ;;  %v11007_v2 = vcombine.low %v546_v51, %v550_v52 }
 0x15f   :  { %v602_v51 = vld [vmem:[#allocation2 + $0xcc0] sm:$0xff] }
 0x160   :  { %v606_v52 = vld [vmem:[#allocation2 + $0xce0] sm:$0xff] }
 0x161   :  { %6529 = vmatpush1.bf16.msra.mxu0 %v10951_v4  ;;  %6857 = vmatpush1.bf16.msra.mxu1 %v10953_v5  ;;  %v11016_v4 = vcombine.high %v554_v61, %v558_v62  ;;  %v562_v5 = vld [vmem:[#allocation2 + $0xb80] sm:$0xff] }
 0x162   :  { %6530 = vmatprep.subr.bf16.mxu0 %v10960_v6  ;;  %6858 = vmatprep.subr.bf16.mxu1 %v10962_v10  ;;  %v566_v6 = vld [vmem:[#allocation2 + $0xba0] sm:$0xff]  ;;  %v11015_v10 = vcombine.low %v554_v61, %v558_v62 }
 0x163   :  { %v610_v61 = vld [vmem:[#allocation2 + $0xd00] sm:$0xff] }
 0x164   :  { %v614_v62 = vld [vmem:[#allocation2 + $0xd20] sm:$0xff] }
 0x165   :  { %6531 = vmatpush1.bf16.msra.mxu0 %v10959_v13  ;;  %6859 = vmatpush1.bf16.msra.mxu1 %v10961_v14  ;;  %v11024_v13 = vcombine.high %v562_v5, %v566_v6  ;;  %v570_v14 = vld [vmem:[#allocation2 + $0xbc0] sm:$0xff] }
 0x166   :  { %6532 = vmatprep.subr.bf16.mxu0 %v10968_v16  ;;  %6860 = vmatprep.subr.bf16.mxu1 %v10970_v20  ;;  %v574_v16 = vld [vmem:[#allocation2 + $0xbe0] sm:$0xff]  ;;  %v11023_v20 = vcombine.low %v562_v5, %v566_v6 }
 0x167   :  { %v618_v5 = vld [vmem:[#allocation2 + $0xd40] sm:$0xff] }
 0x168   :  { %v622_v6 = vld [vmem:[#allocation2 + $0xd60] sm:$0xff] }
 0x169   :  { %6533 = vmatpush1.bf16.msra.mxu0 %v10967_v22  ;;  %6861 = vmatpush1.bf16.msra.mxu1 %v10969_v53  ;;  %v11032_v22 = vcombine.high %v570_v14, %v574_v16  ;;  %v578_v53 = vld [vmem:[#allocation2 + $0xc00] sm:$0xff] }
 0x16a   :  { %6534 = vmatprep.subr.bf16.mxu0 %v10976_v26  ;;  %6862 = vmatprep.subr.bf16.mxu1 %v10978_v30  ;;  %v582_v26 = vld [vmem:[#allocation2 + $0xc20] sm:$0xff]  ;;  %v11031_v30 = vcombine.low %v570_v14, %v574_v16 }
 0x16b   :  { %v626_v14 = vld [vmem:[#allocation2 + $0xd80] sm:$0xff] }
 0x16c   :  { %v630_v16 = vld [vmem:[#allocation2 + $0xda0] sm:$0xff] }
 0x16d   :  { %6535 = vmatpush1.bf16.msra.mxu0 %v10975_v32  ;;  %6863 = vmatpush1.bf16.msra.mxu1 %v10977_v33  ;;  %v11033_v32 = vcombine.low %v571_v17, %v575_v19  ;;  %v11040_v33 = vcombine.high %v578_v53, %v582_v26  ;;  %v627_v17 = vld [vmem:[#allocation2 + $0xd88] sm:$0xff] }
 0x16e   :  { %6536 = vmatprep.subr.bf16.mxu0 %v10984_v15  ;;  %6864 = vmatprep.subr.bf16.mxu1 %v10986_v38  ;;  %v590_v15 = vld [vmem:[#allocation2 + $0xc60] sm:$0xff]  ;;  %v13377_v38 = vld [vmem:[%s13618_s0 + $0x18] sm:$0xff]  ;;  %v631_v19 = vld [vmem:[#allocation2 + $0xda8] sm:$0xff] }
 0x16f   :  { %v11047_v24 = vcombine.low %v586_v31, %v590_v15 }
 0x171   :  { %6537 = vmatpush1.bf16.msra.mxu0 %v10983_v40  ;;  %6865 = vmatpush1.bf16.msra.mxu1 %v10985_v41  ;;  %v11039_v40 = vcombine.low %v578_v53, %v582_v26  ;;  %v11041_v41 = vcombine.low %v579_v27, %v583_v29  ;;  %v634_v53 = vld [vmem:[#allocation2 + $0xdc0] sm:$0xff]  ;;  %v635_v27 = vld [vmem:[#allocation2 + $0xdc8] sm:$0xff] }
 0x172   :  { %6538 = vmatprep.subr.bf16.mxu0 %v10992_v42  ;;  %6866 = vmatprep.subr.bf16.mxu1 %v10994_v46  ;;  %v11048_v42 = vcombine.high %v586_v31, %v590_v15  ;;  %v595_v46 = vld [vmem:[#allocation2 + $0xc88] sm:$0xff]  ;;  %v638_v26 = vld [vmem:[#allocation2 + $0xde0] sm:$0xff]  ;;  %v11089_v31 = vcombine.low %v627_v17, %v631_v19 }
 0x173   :  { %v639_v29 = vld [vmem:[#allocation2 + $0xde8] sm:$0xff]  ;;  %v646_v15 = vld [vmem:[#allocation2 + $0xe20] sm:$0xff] }
 0x175   :  { %6539 = vmatpush1.bf16.msra.mxu0 %v10991_v48  ;;  %6867 = vmatpush1.bf16.msra.mxu1 %v10993_v49  ;;  %v13385_v48 = vcombine.high %v13377_v38, %v13377_v38  ;;  %v11049_v49 = vcombine.low %v587_v35, %v591_v36  ;;  %v643_v35 = vld [vmem:[#allocation2 + $0xe08] sm:$0xff]  ;;  %v11098_v36 = vcombine.high %v635_v27, %v639_v29 }
 0x176   :  { %6540 = vmatprep.subr.bf16.mxu0 %v11000_v50  ;;  %6868 = vmatprep.subr.bf16.mxu1 %v11002_v55  ;;  %v11056_v50 = vcombine.high %v594_v43, %v598_v44  ;;  %v11058_v55 = vcombine.high %v595_v46, %v599_v47 }
 0x179   :  { %6541 = vmatpush1.bf16.msra.mxu0 %v10999_v58  ;;  %6869 = vmatpush1.bf16.msra.mxu1 %v11001_v59  ;;  %v11055_v58 = vcombine.low %v594_v43, %v598_v44  ;;  %v11057_v59 = vcombine.low %v595_v46, %v599_v47  ;;  %v650_v43 = vld [vmem:[#allocation2 + $0xe40] sm:$0xff]  ;;  %v655_v47 = vld [vmem:[#allocation2 + $0xe68] sm:$0xff] }
 0x17a   :  { %6542 = vmatprep.subr.bf16.mxu0 %v11008_v60  ;;  %6870 = vmatprep.subr.bf16.mxu1 %v11010_v0  ;;  %v11064_v60 = vcombine.high %v602_v51, %v606_v52  ;;  %v11066_v0 = vcombine.high %v603_v54, %v607_v56  ;;  %v654_v44 = vld [vmem:[#allocation2 + $0xe60] sm:$0xff] }
 0x17d   :  { %6543 = vmatpush1.bf16.msra.mxu0 %v11007_v2  ;;  %6871 = vmatpush1.bf16.msra.mxu1 %v11009_v3  ;;  %v11063_v2 = vcombine.low %v602_v51, %v606_v52  ;;  %v11065_v3 = vcombine.low %v603_v54, %v607_v56  ;;  %v658_v51 = vld [vmem:[#allocation2 + $0xe80] sm:$0xff]  ;;  %v659_v54 = vld [vmem:[#allocation2 + $0xe88] sm:$0xff] }
 0x17e   :  { %6544 = vmatprep.subr.bf16.mxu0 %v11016_v4  ;;  %6872 = vmatprep.subr.bf16.mxu1 %v11018_v8  ;;  %v11072_v4 = vcombine.high %v610_v61, %v614_v62  ;;  %v11074_v8 = vcombine.high %v611_v63, %v615_v1  ;;  %v662_v52 = vld [vmem:[#allocation2 + $0xea0] sm:$0xff]  ;;  %v663_v56 = vld [vmem:[#allocation2 + $0xea8] sm:$0xff] }
 0x181   :  { %6545 = vmatpush1.bf16.msra.mxu0 %v11015_v10  ;;  %6873 = vmatpush1.bf16.msra.mxu1 %v11017_v11  ;;  %v11071_v10 = vcombine.low %v610_v61, %v614_v62  ;;  %v11073_v11 = vcombine.low %v611_v63, %v615_v1  ;;  %v666_v61 = vld [vmem:[#allocation2 + $0xec0] sm:$0xff]  ;;  %v667_v63 = vld [vmem:[#allocation2 + $0xec8] sm:$0xff] }
 0x182   :  { %6546 = vmatprep.subr.bf16.mxu0 %v11024_v13  ;;  %6874 = vmatprep.subr.bf16.mxu1 %v11026_v18  ;;  %v11080_v13 = vcombine.high %v618_v5, %v622_v6  ;;  %v11082_v18 = vcombine.high %v619_v7, %v623_v9  ;;  %v670_v62 = vld [vmem:[#allocation2 + $0xee0] sm:$0xff]  ;;  %v671_v1 = vld [vmem:[#allocation2 + $0xee8] sm:$0xff] }
 0x185   :  { %6547 = vmatpush1.bf16.msra.mxu0 %v11023_v20  ;;  %6875 = vmatpush1.bf16.msra.mxu1 %v11025_v21  ;;  %v11079_v20 = vcombine.low %v618_v5, %v622_v6  ;;  %v11081_v21 = vcombine.low %v619_v7, %v623_v9  ;;  %v674_v5 = vld [vmem:[#allocation2 + $0xf00] sm:$0xff]  ;;  %v675_v7 = vld [vmem:[#allocation2 + $0xf08] sm:$0xff] }
 0x186   :  { %6548 = vmatprep.subr.bf16.mxu0 %v11032_v22  ;;  %6876 = vmatprep.subr.bf16.mxu1 %v11034_v28  ;;  %v11088_v22 = vcombine.high %v626_v14, %v630_v16  ;;  %v11090_v28 = vcombine.high %v627_v17, %v631_v19  ;;  %v678_v6 = vld [vmem:[#allocation2 + $0xf20] sm:$0xff]  ;;  %v679_v9 = vld [vmem:[#allocation2 + $0xf28] sm:$0xff] }
 0x187   :  { %v683_v17 = vld [vmem:[#allocation2 + $0xf48] sm:$0xff] }
 0x188   :  { %v687_v19 = vld [vmem:[#allocation2 + $0xf68] sm:$0xff] }
 0x189   :  { %6549 = vmatpush1.bf16.msra.mxu0 %v11031_v30  ;;  %6877 = vmatpush1.bf16.msra.mxu1 %v11033_v32  ;;  %v11087_v30 = vcombine.low %v626_v14, %v630_v16  ;;  %v11096_v32 = vcombine.high %v634_v53, %v638_v26  ;;  %v682_v14 = vld [vmem:[#allocation2 + $0xf40] sm:$0xff] }
 0x18a   :  { %6559 = vmatprep.subr.bf16.mxu0 %v11040_v33  ;;  %6887 = vmatprep.subr.bf16.mxu1 %v11042_v37  ;;  %v642_v33 = vld [vmem:[#allocation2 + $0xe00] sm:$0xff]  ;;  %v647_v37 = vld [vmem:[#allocation2 + $0xe28] sm:$0xff] }
 0x18b   :  { %v11106_v46 = vcombine.high %v643_v35, %v647_v37  ;;  %v686_v16 = vld [vmem:[#allocation2 + $0xf60] sm:$0xff] }
 0x18c   :  { %6551 = vmatmul.mubr.bf16.vlgmr.msra.gmra.mrb[0].mxu0 %v13381_v39  ;;  %6879 = vmatmul.mubr.bf16.vlgmr.msra.gmra.mrb[0].mxu1 %v13381_v39 }
 0x18d   :  { %6560 = vmatpush1.bf16.msra.mxu0 %v11039_v40  ;;  %6888 = vmatpush1.bf16.msra.mxu1 %v11041_v41  ;;  %v11095_v40 = vcombine.low %v634_v53, %v638_v26  ;;  %v11097_v41 = vcombine.low %v635_v27, %v639_v29  ;;  %v690_v53 = vld [vmem:[#allocation2 + $0xf80] sm:$0xff]  ;;  %v691_v27 = vld [vmem:[#allocation2 + $0xf88] sm:$0xff] }
 0x18e   :  { %6561 = vmatprep.subr.bf16.mxu0 %v11048_v42  ;;  %6889 = vmatprep.subr.bf16.mxu1 %v11050_v45  ;;  %v11104_v42 = vcombine.high %v642_v33, %v646_v15  ;;  %v651_v45 = vld [vmem:[#allocation2 + $0xe48] sm:$0xff]  ;;  %v694_v26 = vld [vmem:[#allocation2 + $0xfa0] sm:$0xff] }
 0x18f   :  { %6591 = vmatprep.mubr.bf16.mxu0 %v13385_v48  ;;  %6919 = vmatprep.mubr.bf16.mxu1 %v13385_v48  ;;  %v695_v29 = vld [vmem:[#allocation2 + $0xfa8] sm:$0xff] }
 0x191   :  { %6562 = vmatpush1.bf16.msra.mxu0 %v11047_v24  ;;  %6890 = vmatpush1.bf16.msra.mxu1 %v11049_v49  ;;  %v11103_v24 = vcombine.low %v642_v33, %v646_v15  ;;  %v11105_v49 = vcombine.low %v643_v35, %v647_v37  ;;  %v698_v33 = vld [vmem:[#allocation2 + $0xfc0] sm:$0xff]  ;;  %v699_v35 = vld [vmem:[#allocation2 + $0xfc8] sm:$0xff] }
 0x192   :  { %6563 = vmatprep.subr.bf16.mxu0 %v11056_v50  ;;  %6891 = vmatprep.subr.bf16.mxu1 %v11058_v55  ;;  %v11112_v50 = vcombine.high %v650_v43, %v654_v44  ;;  %v11114_v55 = vcombine.high %v651_v45, %v655_v47  ;;  %v702_v15 = vld [vmem:[#allocation2 + $0xfe0] sm:$0xff]  ;;  %v703_v37 = vld [vmem:[#allocation2 + $0xfe8] sm:$0xff] }
 0x195   :  { %6564 = vmatpush1.bf16.msra.mxu0 %v11055_v58  ;;  %6892 = vmatpush1.bf16.msra.mxu1 %v11057_v59  ;;  %v11111_v58 = vcombine.low %v650_v43, %v654_v44  ;;  %v11113_v59 = vcombine.low %v651_v45, %v655_v47  ;;  %v706_v43 = vld [vmem:[#allocation2 + $0x1000] sm:$0xff]  ;;  %v707_v45 = vld [vmem:[#allocation2 + $0x1008] sm:$0xff] }
 0x196   :  { %6565 = vmatprep.subr.bf16.mxu0 %v11064_v60  ;;  %6893 = vmatprep.subr.bf16.mxu1 %v11066_v0  ;;  %v11120_v60 = vcombine.high %v658_v51, %v662_v52  ;;  %v11122_v0 = vcombine.high %v659_v54, %v663_v56  ;;  %v710_v44 = vld [vmem:[#allocation2 + $0x1020] sm:$0xff]  ;;  %v711_v47 = vld [vmem:[#allocation2 + $0x1028] sm:$0xff] }
 0x199   :  { %6566 = vmatpush1.bf16.msra.mxu0 %v11063_v2  ;;  %6894 = vmatpush1.bf16.msra.mxu1 %v11065_v3  ;;  %v11119_v2 = vcombine.low %v658_v51, %v662_v52  ;;  %v11121_v3 = vcombine.low %v659_v54, %v663_v56  ;;  %v11170_v51 = vcombine.high %v707_v45, %v711_v47  ;;  %v714_v52 = vld [vmem:[#allocation2 + $0x1040] sm:$0xff]  ;;  %v715_v56 = vld [vmem:[#allocation2 + $0x1048] sm:$0xff] }
 0x19a   :  { %6567 = vmatprep.subr.bf16.mxu0 %v11072_v4  ;;  %6895 = vmatprep.subr.bf16.mxu1 %v11074_v8  ;;  %v11128_v4 = vcombine.high %v666_v61, %v670_v62  ;;  %v11130_v8 = vcombine.high %v667_v63, %v671_v1  ;;  %v718_v54 = vld [vmem:[#allocation2 + $0x1060] sm:$0xff] }
 0x19d   :  { %6568 = vmatpush1.bf16.msra.mxu0 %v11071_v10  ;;  %6896 = vmatpush1.bf16.msra.mxu1 %v11073_v11  ;;  %v11127_v10 = vcombine.low %v666_v61, %v670_v62  ;;  %v11129_v11 = vcombine.low %v667_v63, %v671_v1  ;;  %v11169_v61 = vcombine.low %v707_v45, %v711_v47  ;;  %v726_v1 = vld [vmem:[#allocation2 + $0x10a0] sm:$0xff] }
 0x19e   :  { %6569 = vmatprep.subr.bf16.mxu0 %v11080_v13  ;;  %6897 = vmatprep.subr.bf16.mxu1 %v11082_v18  ;;  %v11136_v13 = vcombine.high %v674_v5, %v678_v6  ;;  %v11138_v18 = vcombine.high %v675_v7, %v679_v9  ;;  %v11176_v62 = vcombine.high %v714_v52, %v718_v54  ;;  %v766_v47 = vld [vmem:[#allocation2 + $0x11e0] sm:$0xff] }
 0x1a1   :  { %6570 = vmatpush1.bf16.msra.mxu0 %v11079_v20  ;;  %6898 = vmatpush1.bf16.msra.mxu1 %v11081_v21  ;;  %v11135_v20 = vcombine.low %v674_v5, %v678_v6  ;;  %v11137_v21 = vcombine.low %v675_v7, %v679_v9  ;;  %v734_v9 = vld [vmem:[#allocation2 + $0x10e0] sm:$0xff] }
 0x1a2   :  { %6571 = vmatprep.subr.bf16.mxu0 %v11088_v22  ;;  %6899 = vmatprep.subr.bf16.mxu1 %v11090_v28  ;;  %v11144_v22 = vcombine.high %v682_v14, %v686_v16  ;;  %v11146_v28 = vcombine.high %v683_v17, %v687_v19 }
 0x1a5   :  { %6572 = vmatpush1.bf16.msra.mxu0 %v11087_v30  ;;  %6900 = vmatpush1.bf16.msra.mxu1 %v11089_v31  ;;  %v11143_v30 = vcombine.low %v682_v14, %v686_v16  ;;  %v11145_v31 = vcombine.low %v683_v17, %v687_v19  ;;  %v742_v19 = vld [vmem:[#allocation2 + $0x1120] sm:$0xff] }
 0x1a6   :  { %6573 = vmatprep.subr.bf16.mxu0 %v11096_v32  ;;  %6901 = vmatprep.subr.bf16.mxu1 %v11098_v36  ;;  %v11152_v32 = vcombine.high %v690_v53, %v694_v26  ;;  %v11154_v36 = vcombine.high %v691_v27, %v695_v29 }
 0x1a9   :  { %6574 = vmatpush1.bf16.msra.mxu0 %v11095_v40  ;;  %6902 = vmatpush1.bf16.msra.mxu1 %v11097_v41  ;;  %v11151_v40 = vcombine.low %v690_v53, %v694_v26  ;;  %v11153_v41 = vcombine.low %v691_v27, %v695_v29  ;;  %v750_v29 = vld [vmem:[#allocation2 + $0x1160] sm:$0xff] }
 0x1aa   :  { %6575 = vmatprep.subr.bf16.mxu0 %v11104_v42  ;;  %6903 = vmatprep.subr.bf16.mxu1 %v11106_v46  ;;  %v11160_v42 = vcombine.high %v698_v33, %v702_v15  ;;  %v11162_v46 = vcombine.high %v699_v35, %v703_v37 }
 0x1ad   :  { %6576 = vmatpush1.bf16.msra.mxu0 %v11103_v24  ;;  %6904 = vmatpush1.bf16.msra.mxu1 %v11105_v49  ;;  %v11159_v24 = vcombine.low %v698_v33, %v702_v15  ;;  %v11161_v49 = vcombine.low %v699_v35, %v703_v37  ;;  %v758_v37 = vld [vmem:[#allocation2 + $0x11a0] sm:$0xff] }
 0x1ae   :  { %6577 = vmatprep.subr.bf16.mxu0 %v11112_v50  ;;  %6905 = vmatprep.subr.bf16.mxu1 %v11114_v55  ;;  %v11168_v50 = vcombine.high %v706_v43, %v710_v44  ;;  %v13393_v55 = vcombine.low %v13377_v38, %v13377_v38 }
 0x1b1   :  { %6578 = vmatpush1.bf16.msra.mxu0 %v11111_v58  ;;  %6906 = vmatpush1.bf16.msra.mxu1 %v11113_v59  ;;  %v719_v58 = vld [vmem:[#allocation2 + $0x1068] sm:$0xff]  ;;  %v13398_v59 = vld [vmem:[%s13618_s0 + $0x20] sm:$0xff] }
 0x1b2   :  { %6579 = vmatprep.subr.bf16.mxu0 %v11120_v60  ;;  %6907 = vmatprep.subr.bf16.mxu1 %v11122_v0  ;;  %v11167_v60 = vcombine.low %v706_v43, %v710_v44  ;;  %v11178_v63 = vcombine.high %v715_v56, %v719_v58  ;;  %v722_v0 = vld [vmem:[#allocation2 + $0x1080] sm:$0xff]  ;;  %v13402_v38 = vcombine.high %v13398_v59, %v13398_v59 }
 0x1b3   :  { %v11177_v5 = vcombine.low %v715_v56, %v719_v58  ;;  %v11184_v6 = vcombine.high %v722_v0, %v726_v1  ;;  %v770_v56 = vld [vmem:[#allocation2 + $0x1200] sm:$0xff] }
 0x1b4   :  { %v774_v58 = vld [vmem:[#allocation2 + $0x1220] sm:$0xff] }
 0x1b5   :  { %6580 = vmatpush1.bf16.msra.mxu0 %v11119_v2  ;;  %6908 = vmatpush1.bf16.msra.mxu1 %v11121_v3  ;;  %v723_v2 = vld [vmem:[#allocation2 + $0x1088] sm:$0xff] }
 0x1b6   :  { %6581 = vmatprep.subr.bf16.mxu0 %v11128_v4  ;;  %6909 = vmatprep.subr.bf16.mxu1 %v11130_v8  ;;  %v727_v3 = vld [vmem:[#allocation2 + $0x10a8] sm:$0xff]  ;;  %v11175_v4 = vcombine.low %v714_v52, %v718_v54  ;;  %v730_v8 = vld [vmem:[#allocation2 + $0x10c0] sm:$0xff] }
 0x1b7   :  { %v11186_v7 = vcombine.high %v723_v2, %v727_v3  ;;  %v11185_v14 = vcombine.low %v723_v2, %v727_v3  ;;  %v11192_v16 = vcombine.high %v730_v8, %v734_v9  ;;  %v778_v2 = vld [vmem:[#allocation2 + $0x1240] sm:$0xff] }
 0x1b8   :  { %v782_v3 = vld [vmem:[#allocation2 + $0x1260] sm:$0xff] }
 0x1b9   :  { %6582 = vmatpush1.bf16.msra.mxu0 %v11127_v10  ;;  %6910 = vmatpush1.bf16.msra.mxu1 %v11129_v11  ;;  %v731_v10 = vld [vmem:[#allocation2 + $0x10c8] sm:$0xff] }
 0x1ba   :  { %6583 = vmatprep.subr.bf16.mxu0 %v11136_v13  ;;  %6911 = vmatprep.subr.bf16.mxu1 %v11138_v18  ;;  %v735_v11 = vld [vmem:[#allocation2 + $0x10e8] sm:$0xff]  ;;  %v11183_v13 = vcombine.low %v722_v0, %v726_v1  ;;  %v738_v18 = vld [vmem:[#allocation2 + $0x1100] sm:$0xff]  ;;  %v11232_v0 = vcombine.high %v770_v56, %v774_v58 }
 0x1bb   :  { %v11194_v17 = vcombine.high %v731_v10, %v735_v11  ;;  %v11193_v53 = vcombine.low %v731_v10, %v735_v11  ;;  %v11200_v26 = vcombine.high %v738_v18, %v742_v19  ;;  %v786_v10 = vld [vmem:[#allocation2 + $0x1280] sm:$0xff] }
 0x1bc   :  { %v790_v11 = vld [vmem:[#allocation2 + $0x12a0] sm:$0xff] }
 0x1bd   :  { %6584 = vmatpush1.bf16.msra.mxu0 %v11135_v20  ;;  %6912 = vmatpush1.bf16.msra.mxu1 %v11137_v21  ;;  %v739_v20 = vld [vmem:[#allocation2 + $0x1108] sm:$0xff] }
 0x1be   :  { %6585 = vmatprep.subr.bf16.mxu0 %v11144_v22  ;;  %6913 = vmatprep.subr.bf16.mxu1 %v11146_v28  ;;  %v743_v21 = vld [vmem:[#allocation2 + $0x1128] sm:$0xff]  ;;  %v11191_v22 = vcombine.low %v730_v8, %v734_v9  ;;  %v746_v28 = vld [vmem:[#allocation2 + $0x1140] sm:$0xff]  ;;  %v11240_v8 = vcombine.high %v778_v2, %v782_v3 }
 0x1bf   :  { %v11202_v27 = vcombine.high %v739_v20, %v743_v21  ;;  %v11201_v33 = vcombine.low %v739_v20, %v743_v21  ;;  %v11208_v15 = vcombine.high %v746_v28, %v750_v29  ;;  %v794_v20 = vld [vmem:[#allocation2 + $0x12c0] sm:$0xff] }
 0x1c0   :  { %v798_v21 = vld [vmem:[#allocation2 + $0x12e0] sm:$0xff] }
 0x1c1   :  { %6586 = vmatpush1.bf16.msra.mxu0 %v11143_v30  ;;  %6914 = vmatpush1.bf16.msra.mxu1 %v11145_v31  ;;  %v747_v30 = vld [vmem:[#allocation2 + $0x1148] sm:$0xff] }
 0x1c2   :  { %6587 = vmatprep.subr.bf16.mxu0 %v11152_v32  ;;  %6915 = vmatprep.subr.bf16.mxu1 %v11154_v36  ;;  %v751_v31 = vld [vmem:[#allocation2 + $0x1168] sm:$0xff]  ;;  %v11199_v32 = vcombine.low %v738_v18, %v742_v19  ;;  %v754_v36 = vld [vmem:[#allocation2 + $0x1180] sm:$0xff]  ;;  %v11248_v18 = vcombine.high %v786_v10, %v790_v11 }
 0x1c3   :  { %v11210_v35 = vcombine.high %v747_v30, %v751_v31  ;;  %v11209_v43 = vcombine.low %v747_v30, %v751_v31  ;;  %v11216_v44 = vcombine.high %v754_v36, %v758_v37  ;;  %v802_v30 = vld [vmem:[#allocation2 + $0x1300] sm:$0xff] }
 0x1c4   :  { %v806_v31 = vld [vmem:[#allocation2 + $0x1320] sm:$0xff] }
 0x1c5   :  { %6588 = vmatpush1.bf16.msra.mxu0 %v11151_v40  ;;  %6916 = vmatpush1.bf16.msra.mxu1 %v11153_v41  ;;  %v755_v40 = vld [vmem:[#allocation2 + $0x1188] sm:$0xff] }
 0x1c6   :  { %6589 = vmatprep.subr.bf16.mxu0 %v11160_v42  ;;  %6917 = vmatprep.subr.bf16.mxu1 %v11162_v46  ;;  %v759_v41 = vld [vmem:[#allocation2 + $0x11a8] sm:$0xff]  ;;  %v11207_v42 = vcombine.low %v746_v28, %v750_v29  ;;  %v762_v46 = vld [vmem:[#allocation2 + $0x11c0] sm:$0xff]  ;;  %v11256_v28 = vcombine.high %v794_v20, %v798_v21 }
 0x1c7   :  { %v11218_v45 = vcombine.high %v755_v40, %v759_v41  ;;  %v11224_v52 = vcombine.high %v762_v46, %v766_v47 }
 0x1c9   :  { %6590 = vmatpush1.bf16.msra.mxu0 %v11159_v24  ;;  %6918 = vmatpush1.bf16.msra.mxu1 %v11161_v49  ;;  %v763_v24 = vld [vmem:[#allocation2 + $0x11c8] sm:$0xff] }
 0x1ca   :  { %6600 = vmatprep.subr.bf16.mxu0 %v11168_v50  ;;  %6928 = vmatprep.subr.bf16.mxu1 %v11170_v51  ;;  %v767_v49 = vld [vmem:[#allocation2 + $0x11e8] sm:$0xff]  ;;  %v11215_v50 = vcombine.low %v754_v36, %v758_v37  ;;  %v11217_v51 = vcombine.low %v755_v40, %v759_v41  ;;  %v11264_v36 = vcombine.high %v802_v30, %v806_v31  ;;  %v810_v40 = vld [vmem:[#allocation2 + $0x1340] sm:$0xff] }
 0x1cb   :  { %v11226_v54 = vcombine.high %v763_v24, %v767_v49  ;;  %v814_v41 = vld [vmem:[#allocation2 + $0x1360] sm:$0xff] }
 0x1cc   :  { %6592 = vmatmul.mubr.bf16.vlgmr.msra.gmra.mrb[0].mxu0 %v13393_v55  ;;  %6920 = vmatmul.mubr.bf16.vlgmr.msra.gmra.mrb[0].mxu1 %v13393_v55 }
 0x1cd   :  { %6601 = vmatpush1.bf16.msra.mxu0 %v11167_v60  ;;  %6929 = vmatpush1.bf16.msra.mxu1 %v11169_v61  ;;  %v771_v60 = vld [vmem:[#allocation2 + $0x1208] sm:$0xff] }
 0x1ce   :  { %6602 = vmatprep.subr.bf16.mxu0 %v11176_v62  ;;  %6930 = vmatprep.subr.bf16.mxu1 %v11178_v63  ;;  %v775_v61 = vld [vmem:[#allocation2 + $0x1228] sm:$0xff]  ;;  %v11223_v62 = vcombine.low %v762_v46, %v766_v47  ;;  %v11225_v63 = vcombine.low %v763_v24, %v767_v49  ;;  %v11272_v46 = vcombine.high %v810_v40, %v814_v41  ;;  %v818_v24 = vld [vmem:[#allocation2 + $0x1380] sm:$0xff] }
 0x1cf   :  { %6632 = vmatprep.mubr.bf16.mxu0 %v13402_v38  ;;  %6960 = vmatprep.mubr.bf16.mxu1 %v13402_v38  ;;  %v11234_v1 = vcombine.high %v771_v60, %v775_v61  ;;  %v822_v49 = vld [vmem:[#allocation2 + $0x13a0] sm:$0xff] }
 0x1d1   :  { %6603 = vmatpush1.bf16.msra.mxu0 %v11175_v4  ;;  %6931 = vmatpush1.bf16.msra.mxu1 %v11177_v5  ;;  %v779_v4 = vld [vmem:[#allocation2 + $0x1248] sm:$0xff] }
 0x1d2   :  { %6604 = vmatprep.subr.bf16.mxu0 %v11184_v6  ;;  %6932 = vmatprep.subr.bf16.mxu1 %v11186_v7  ;;  %v783_v5 = vld [vmem:[#allocation2 + $0x1268] sm:$0xff]  ;;  %v11231_v6 = vcombine.low %v770_v56, %v774_v58  ;;  %v11233_v7 = vcombine.low %v771_v60, %v775_v61  ;;  %v11280_v56 = vcombine.high %v818_v24, %v822_v49  ;;  %v826_v60 = vld [vmem:[#allocation2 + $0x13c0] sm:$0xff] }
 0x1d3   :  { %v11242_v9 = vcombine.high %v779_v4, %v783_v5  ;;  %v830_v61 = vld [vmem:[#allocation2 + $0x13e0] sm:$0xff] }
 0x1d5   :  { %6605 = vmatpush1.bf16.msra.mxu0 %v11183_v13  ;;  %6933 = vmatpush1.bf16.msra.mxu1 %v11185_v14  ;;  %v787_v13 = vld [vmem:[#allocation2 + $0x1288] sm:$0xff] }
 0x1d6   :  { %6606 = vmatprep.subr.bf16.mxu0 %v11192_v16  ;;  %6934 = vmatprep.subr.bf16.mxu1 %v11194_v17  ;;  %v791_v14 = vld [vmem:[#allocation2 + $0x12a8] sm:$0xff]  ;;  %v11239_v16 = vcombine.low %v778_v2, %v782_v3  ;;  %v11241_v17 = vcombine.low %v779_v4, %v783_v5  ;;  %v11288_v2 = vcombine.high %v826_v60, %v830_v61  ;;  %v834_v4 = vld [vmem:[#allocation2 + $0x1400] sm:$0xff] }
 0x1d7   :  { %v11250_v19 = vcombine.high %v787_v13, %v791_v14  ;;  %v838_v5 = vld [vmem:[#allocation2 + $0x1420] sm:$0xff] }
 0x1d9   :  { %6607 = vmatpush1.bf16.msra.mxu0 %v11191_v22  ;;  %6935 = vmatpush1.bf16.msra.mxu1 %v11193_v53  ;;  %v795_v22 = vld [vmem:[#allocation2 + $0x12c8] sm:$0xff] }
 0x1da   :  { %6608 = vmatprep.subr.bf16.mxu0 %v11200_v26  ;;  %6936 = vmatprep.subr.bf16.mxu1 %v11202_v27  ;;  %v799_v53 = vld [vmem:[#allocation2 + $0x12e8] sm:$0xff]  ;;  %v11247_v26 = vcombine.low %v786_v10, %v790_v11  ;;  %v11249_v27 = vcombine.low %v787_v13, %v791_v14  ;;  %v11296_v10 = vcombine.high %v834_v4, %v838_v5  ;;  %v842_v13 = vld [vmem:[#allocation2 + $0x1440] sm:$0xff] }
 0x1db   :  { %v11258_v29 = vcombine.high %v795_v22, %v799_v53  ;;  %v846_v14 = vld [vmem:[#allocation2 + $0x1460] sm:$0xff] }
 0x1dd   :  { %6609 = vmatpush1.bf16.msra.mxu0 %v11199_v32  ;;  %6937 = vmatpush1.bf16.msra.mxu1 %v11201_v33  ;;  %v803_v32 = vld [vmem:[#allocation2 + $0x1308] sm:$0xff] }
 0x1de   :  { %6610 = vmatprep.subr.bf16.mxu0 %v11208_v15  ;;  %6938 = vmatprep.subr.bf16.mxu1 %v11210_v35  ;;  %v807_v33 = vld [vmem:[#allocation2 + $0x1328] sm:$0xff]  ;;  %v11255_v15 = vcombine.low %v794_v20, %v798_v21  ;;  %v11257_v35 = vcombine.low %v795_v22, %v799_v53  ;;  %v11295_v20 = vcombine.low %v834_v4, %v838_v5 }
 0x1df   :  { %v11266_v37 = vcombine.high %v803_v32, %v807_v33  ;;  %v11304_v22 = vcombine.high %v842_v13, %v846_v14 }
 0x1e1   :  { %6611 = vmatpush1.bf16.msra.mxu0 %v11207_v42  ;;  %6939 = vmatpush1.bf16.msra.mxu1 %v11209_v43  ;;  %v811_v42 = vld [vmem:[#allocation2 + $0x1348] sm:$0xff] }
 0x1e2   :  { %6612 = vmatprep.subr.bf16.mxu0 %v11216_v44  ;;  %6940 = vmatprep.subr.bf16.mxu1 %v11218_v45  ;;  %v815_v43 = vld [vmem:[#allocation2 + $0x1368] sm:$0xff]  ;;  %v11263_v44 = vcombine.low %v802_v30, %v806_v31  ;;  %v11265_v45 = vcombine.low %v803_v32, %v807_v33  ;;  %v11303_v30 = vcombine.low %v842_v13, %v846_v14 }
 0x1e3   :  { %v11274_v47 = vcombine.high %v811_v42, %v815_v43 }
 0x1e5   :  { %6613 = vmatpush1.bf16.msra.mxu0 %v11215_v50  ;;  %6941 = vmatpush1.bf16.msra.mxu1 %v11217_v51  ;;  %v819_v50 = vld [vmem:[#allocation2 + $0x1388] sm:$0xff] }
 0x1e6   :  { %6614 = vmatprep.subr.bf16.mxu0 %v11224_v52  ;;  %6942 = vmatprep.subr.bf16.mxu1 %v11226_v54  ;;  %v823_v51 = vld [vmem:[#allocation2 + $0x13a8] sm:$0xff]  ;;  %v11271_v52 = vcombine.low %v810_v40, %v814_v41  ;;  %v11273_v54 = vcombine.low %v811_v42, %v815_v43 }
 0x1e7   :  { %v11282_v58 = vcombine.high %v819_v50, %v823_v51 }
 0x1e9   :  { %6615 = vmatpush1.bf16.msra.mxu0 %v11223_v62  ;;  %6943 = vmatpush1.bf16.msra.mxu1 %v11225_v63  ;;  %v827_v62 = vld [vmem:[#allocation2 + $0x13c8] sm:$0xff] }
 0x1ea   :  { %6616 = vmatprep.subr.bf16.mxu0 %v11232_v0  ;;  %6944 = vmatprep.subr.bf16.mxu1 %v11234_v1  ;;  %v831_v63 = vld [vmem:[#allocation2 + $0x13e8] sm:$0xff]  ;;  %v11279_v0 = vcombine.low %v818_v24, %v822_v49  ;;  %v11281_v1 = vcombine.low %v819_v50, %v823_v51 }
 0x1eb   :  { %v11290_v3 = vcombine.high %v827_v62, %v831_v63 }
 0x1ed   :  { %6617 = vmatpush1.bf16.msra.mxu0 %v11231_v6  ;;  %6945 = vmatpush1.bf16.msra.mxu1 %v11233_v7  ;;  %v835_v6 = vld [vmem:[#allocation2 + $0x1408] sm:$0xff] }
 0x1ee   :  { %6618 = vmatprep.subr.bf16.mxu0 %v11240_v8  ;;  %6946 = vmatprep.subr.bf16.mxu1 %v11242_v9  ;;  %v839_v7 = vld [vmem:[#allocation2 + $0x1428] sm:$0xff]  ;;  %v11287_v8 = vcombine.low %v826_v60, %v830_v61  ;;  %v11289_v9 = vcombine.low %v827_v62, %v831_v63 }
 0x1ef   :  { %v11298_v11 = vcombine.high %v835_v6, %v839_v7  ;;  %v11297_v21 = vcombine.low %v835_v6, %v839_v7 }
 0x1f1   :  { %6619 = vmatpush1.bf16.msra.mxu0 %v11239_v16  ;;  %6947 = vmatpush1.bf16.msra.mxu1 %v11241_v17  ;;  %v13410_v16 = vcombine.low %v13398_v59, %v13398_v59  ;;  %v843_v17 = vld [vmem:[#allocation2 + $0x1448] sm:$0xff] }
 0x1f2   :  { %6620 = vmatprep.subr.bf16.mxu0 %v11248_v18  ;;  %6948 = vmatprep.subr.bf16.mxu1 %v11250_v19  ;;  %v847_v18 = vld [vmem:[#allocation2 + $0x1468] sm:$0xff] }
 0x1f3   :  { %v13415_v19 = vld [vmem:[%s13618_s0 + $0x28] sm:$0xff]  ;;  %v11306_v53 = vcombine.high %v843_v17, %v847_v18  ;;  %v11305_v31 = vcombine.low %v843_v17, %v847_v18 }
 0x1f4   :  { %v13419_v59 = vcombine.high %v13415_v19, %v13415_v19 }
 0x1f5   :  { %6621 = vmatpush1.bf16.msra.mxu0 %v11247_v26  ;;  %6949 = vmatpush1.bf16.msra.mxu1 %v11249_v27  ;;  %v850_v26 = vld [vmem:[#allocation2 + $0x1480] sm:$0xff] }
 0x1f6   :  { %6622 = vmatprep.subr.bf16.mxu0 %v11256_v28  ;;  %6950 = vmatprep.subr.bf16.mxu1 %v11258_v29  ;;  %v854_v27 = vld [vmem:[#allocation2 + $0x14a0] sm:$0xff]  ;;  %v851_v28 = vld [vmem:[#allocation2 + $0x1488] sm:$0xff] }
 0x1f7   :  { %v855_v29 = vld [vmem:[#allocation2 + $0x14a8] sm:$0xff]  ;;  %v11312_v32 = vcombine.high %v850_v26, %v854_v27  ;;  %v11311_v40 = vcombine.low %v850_v26, %v854_v27 }
 0x1f8   :  { %v11314_v33 = vcombine.high %v851_v28, %v855_v29  ;;  %v11313_v41 = vcombine.low %v851_v28, %v855_v29 }
 0x1f9   :  { %6623 = vmatpush1.bf16.msra.mxu0 %v11255_v15  ;;  %6951 = vmatpush1.bf16.msra.mxu1 %v11257_v35  ;;  %v858_v15 = vld [vmem:[#allocation2 + $0x14c0] sm:$0xff] }
 0x1fa   :  { %6624 = vmatprep.subr.bf16.mxu0 %v11264_v36  ;;  %6952 = vmatprep.subr.bf16.mxu1 %v11266_v37  ;;  %v862_v35 = vld [vmem:[#allocation2 + $0x14e0] sm:$0xff]  ;;  %v859_v36 = vld [vmem:[#allocation2 + $0x14c8] sm:$0xff] }
 0x1fb   :  { %v863_v37 = vld [vmem:[#allocation2 + $0x14e8] sm:$0xff]  ;;  %v11320_v42 = vcombine.high %v858_v15, %v862_v35  ;;  %v11319_v24 = vcombine.low %v858_v15, %v862_v35 }
 0x1fc   :  { %v11322_v43 = vcombine.high %v859_v36, %v863_v37  ;;  %v11321_v49 = vcombine.low %v859_v36, %v863_v37 }
 0x1fd   :  { %6625 = vmatpush1.bf16.msra.mxu0 %v11263_v44  ;;  %6953 = vmatpush1.bf16.msra.mxu1 %v11265_v45  ;;  %v866_v44 = vld [vmem:[#allocation2 + $0x1500] sm:$0xff] }
 0x1fe   :  { %6626 = vmatprep.subr.bf16.mxu0 %v11272_v46  ;;  %6954 = vmatprep.subr.bf16.mxu1 %v11274_v47  ;;  %v870_v45 = vld [vmem:[#allocation2 + $0x1520] sm:$0xff]  ;;  %v867_v46 = vld [vmem:[#allocation2 + $0x1508] sm:$0xff] }
 0x1ff   :  { %v871_v47 = vld [vmem:[#allocation2 + $0x1528] sm:$0xff]  ;;  %v11328_v50 = vcombine.high %v866_v44, %v870_v45  ;;  %v11327_v60 = vcombine.low %v866_v44, %v870_v45 }
 0x200   :  { %v11330_v51 = vcombine.high %v867_v46, %v871_v47  ;;  %v11329_v61 = vcombine.low %v867_v46, %v871_v47 }
 0x201   :  { %6627 = vmatpush1.bf16.msra.mxu0 %v11271_v52  ;;  %6955 = vmatpush1.bf16.msra.mxu1 %v11273_v54  ;;  %v874_v52 = vld [vmem:[#allocation2 + $0x1540] sm:$0xff] }
 0x202   :  { %6628 = vmatprep.subr.bf16.mxu0 %v11280_v56  ;;  %6956 = vmatprep.subr.bf16.mxu1 %v11282_v58  ;;  %v878_v54 = vld [vmem:[#allocation2 + $0x1560] sm:$0xff]  ;;  %v875_v56 = vld [vmem:[#allocation2 + $0x1548] sm:$0xff] }
 0x203   :  { %v879_v58 = vld [vmem:[#allocation2 + $0x1568] sm:$0xff]  ;;  %v11336_v62 = vcombine.high %v874_v52, %v878_v54  ;;  %v11335_v4 = vcombine.low %v874_v52, %v878_v54 }
 0x204   :  { %v11338_v63 = vcombine.high %v875_v56, %v879_v58  ;;  %v11337_v5 = vcombine.low %v875_v56, %v879_v58 }
 0x205   :  { %6629 = vmatpush1.bf16.msra.mxu0 %v11279_v0  ;;  %6957 = vmatpush1.bf16.msra.mxu1 %v11281_v1  ;;  %v882_v0 = vld [vmem:[#allocation2 + $0x1580] sm:$0xff] }
 0x206   :  { %6630 = vmatprep.subr.bf16.mxu0 %v11288_v2  ;;  %6958 = vmatprep.subr.bf16.mxu1 %v11290_v3  ;;  %v886_v1 = vld [vmem:[#allocation2 + $0x15a0] sm:$0xff]  ;;  %v883_v2 = vld [vmem:[#allocation2 + $0x1588] sm:$0xff] }
 0x207   :  { %v887_v3 = vld [vmem:[#allocation2 + $0x15a8] sm:$0xff]  ;;  %v11344_v6 = vcombine.high %v882_v0, %v886_v1  ;;  %v11343_v13 = vcombine.low %v882_v0, %v886_v1 }
 0x208   :  { %v11346_v7 = vcombine.high %v883_v2, %v887_v3  ;;  %v11345_v14 = vcombine.low %v883_v2, %v887_v3 }
 0x209   :  { %6631 = vmatpush1.bf16.msra.mxu0 %v11287_v8  ;;  %6959 = vmatpush1.bf16.msra.mxu1 %v11289_v9  ;;  %v890_v8 = vld [vmem:[#allocation2 + $0x15c0] sm:$0xff] }
 0x20a   :  { %6641 = vmatprep.subr.bf16.mxu0 %v11296_v10  ;;  %6969 = vmatprep.subr.bf16.mxu1 %v11298_v11  ;;  %v894_v9 = vld [vmem:[#allocation2 + $0x15e0] sm:$0xff]  ;;  %v891_v10 = vld [vmem:[#allocation2 + $0x15c8] sm:$0xff] }
 0x20b   :  { %v895_v11 = vld [vmem:[#allocation2 + $0x15e8] sm:$0xff]  ;;  %v11352_v17 = vcombine.high %v890_v8, %v894_v9  ;;  %v11351_v26 = vcombine.low %v890_v8, %v894_v9 }
 0x20c   :  { %6633 = vmatmul.mubr.bf16.vlgmr.msra.gmra.mrb[0].mxu0 %v13410_v16  ;;  %6961 = vmatmul.mubr.bf16.vlgmr.msra.gmra.mrb[0].mxu1 %v13410_v16  ;;  %v11354_v18 = vcombine.high %v891_v10, %v895_v11  ;;  %v11353_v27 = vcombine.low %v891_v10, %v895_v11 }
 0x20d   :  { %6642 = vmatpush1.bf16.msra.mxu0 %v11295_v20  ;;  %6970 = vmatpush1.bf16.msra.mxu1 %v11297_v21  ;;  %v898_v20 = vld [vmem:[#allocation2 + $0x1600] sm:$0xff] }
 0x20e   :  { %6643 = vmatprep.subr.bf16.mxu0 %v11304_v22  ;;  %6971 = vmatprep.subr.bf16.mxu1 %v11306_v53  ;;  %v902_v21 = vld [vmem:[#allocation2 + $0x1620] sm:$0xff]  ;;  %v899_v22 = vld [vmem:[#allocation2 + $0x1608] sm:$0xff] }
 0x20f   :  { %6673 = vmatprep.mubr.bf16.mxu0 %v13419_v59  ;;  %7001 = vmatprep.mubr.bf16.mxu1 %v13419_v59  ;;  %v903_v53 = vld [vmem:[#allocation2 + $0x1628] sm:$0xff]  ;;  %v11360_v28 = vcombine.high %v898_v20, %v902_v21  ;;  %v11359_v15 = vcombine.low %v898_v20, %v902_v21 }
 0x210   :  { %v11362_v29 = vcombine.high %v899_v22, %v903_v53  ;;  %v11361_v35 = vcombine.low %v899_v22, %v903_v53 }
 0x211   :  { %6644 = vmatpush1.bf16.msra.mxu0 %v11303_v30  ;;  %6972 = vmatpush1.bf16.msra.mxu1 %v11305_v31  ;;  %v906_v30 = vld [vmem:[#allocation2 + $0x1640] sm:$0xff] }
 0x212   :  { %6645 = vmatprep.subr.bf16.mxu0 %v11312_v32  ;;  %6973 = vmatprep.subr.bf16.mxu1 %v11314_v33  ;;  %v910_v31 = vld [vmem:[#allocation2 + $0x1660] sm:$0xff]  ;;  %v907_v32 = vld [vmem:[#allocation2 + $0x1648] sm:$0xff] }
 0x213   :  { %v911_v33 = vld [vmem:[#allocation2 + $0x1668] sm:$0xff]  ;;  %v11368_v36 = vcombine.high %v906_v30, %v910_v31  ;;  %v11367_v44 = vcombine.low %v906_v30, %v910_v31 }
 0x214   :  { %v11370_v37 = vcombine.high %v907_v32, %v911_v33  ;;  %v11369_v45 = vcombine.low %v907_v32, %v911_v33 }
 0x215   :  { %6646 = vmatpush1.bf16.msra.mxu0 %v11311_v40  ;;  %6974 = vmatpush1.bf16.msra.mxu1 %v11313_v41  ;;  %v914_v40 = vld [vmem:[#allocation2 + $0x1680] sm:$0xff] }
 0x216   :  { %6647 = vmatprep.subr.bf16.mxu0 %v11320_v42  ;;  %6975 = vmatprep.subr.bf16.mxu1 %v11322_v43  ;;  %v918_v41 = vld [vmem:[#allocation2 + $0x16a0] sm:$0xff]  ;;  %v915_v42 = vld [vmem:[#allocation2 + $0x1688] sm:$0xff] }
 0x217   :  { %v919_v43 = vld [vmem:[#allocation2 + $0x16a8] sm:$0xff]  ;;  %v11376_v46 = vcombine.high %v914_v40, %v918_v41  ;;  %v11375_v52 = vcombine.low %v914_v40, %v918_v41 }
 0x218   :  { %v11378_v47 = vcombine.high %v915_v42, %v919_v43  ;;  %v11377_v54 = vcombine.low %v915_v42, %v919_v43 }
 0x219   :  { %6648 = vmatpush1.bf16.msra.mxu0 %v11319_v24  ;;  %6976 = vmatpush1.bf16.msra.mxu1 %v11321_v49  ;;  %v922_v24 = vld [vmem:[#allocation2 + $0x16c0] sm:$0xff] }
 0x21a   :  { %6649 = vmatprep.subr.bf16.mxu0 %v11328_v50  ;;  %6977 = vmatprep.subr.bf16.mxu1 %v11330_v51  ;;  %v926_v49 = vld [vmem:[#allocation2 + $0x16e0] sm:$0xff]  ;;  %v923_v50 = vld [vmem:[#allocation2 + $0x16c8] sm:$0xff] }
 0x21b   :  { %v927_v51 = vld [vmem:[#allocation2 + $0x16e8] sm:$0xff]  ;;  %v11384_v56 = vcombine.high %v922_v24, %v926_v49  ;;  %v11383_v0 = vcombine.low %v922_v24, %v926_v49  ;;  %v13432_v49 = vld [vmem:[%s13618_s0 + $0x30] sm:$0xff] }
 0x21c   :  { %v11386_v58 = vcombine.high %v923_v50, %v927_v51  ;;  %v11385_v1 = vcombine.low %v923_v50, %v927_v51  ;;  %v975_v24 = vld [vmem:[#allocation2 + $0x1868] sm:$0xff] }
 0x21d   :  { %6650 = vmatpush1.bf16.msra.mxu0 %v11327_v60  ;;  %6978 = vmatpush1.bf16.msra.mxu1 %v11329_v61  ;;  %v930_v60 = vld [vmem:[#allocation2 + $0x1700] sm:$0xff] }
 0x21e   :  { %6651 = vmatprep.subr.bf16.mxu0 %v11336_v62  ;;  %6979 = vmatprep.subr.bf16.mxu1 %v11338_v63  ;;  %v934_v61 = vld [vmem:[#allocation2 + $0x1720] sm:$0xff]  ;;  %v931_v62 = vld [vmem:[#allocation2 + $0x1708] sm:$0xff] }
 0x21f   :  { %v935_v63 = vld [vmem:[#allocation2 + $0x1728] sm:$0xff]  ;;  %v11392_v2 = vcombine.high %v930_v60, %v934_v61  ;;  %v11391_v8 = vcombine.low %v930_v60, %v934_v61 }
 0x220   :  { %v11394_v3 = vcombine.high %v931_v62, %v935_v63  ;;  %v11393_v9 = vcombine.low %v931_v62, %v935_v63  ;;  %v979_v60 = vld [vmem:[#allocation2 + $0x1888] sm:$0xff] }
 0x221   :  { %6652 = vmatpush1.bf16.msra.mxu0 %v11335_v4  ;;  %6980 = vmatpush1.bf16.msra.mxu1 %v11337_v5  ;;  %v938_v4 = vld [vmem:[#allocation2 + $0x1740] sm:$0xff]  ;;  %v983_v61 = vld [vmem:[#allocation2 + $0x18a8] sm:$0xff] }
 0x222   :  { %6653 = vmatprep.subr.bf16.mxu0 %v11344_v6  ;;  %6981 = vmatprep.subr.bf16.mxu1 %v11346_v7  ;;  %v942_v5 = vld [vmem:[#allocation2 + $0x1760] sm:$0xff]  ;;  %v939_v6 = vld [vmem:[#allocation2 + $0x1748] sm:$0xff] }
 0x223   :  { %v943_v7 = vld [vmem:[#allocation2 + $0x1768] sm:$0xff]  ;;  %v11400_v10 = vcombine.high %v938_v4, %v942_v5  ;;  %v11399_v20 = vcombine.low %v938_v4, %v942_v5 }
 0x224   :  { %v11402_v11 = vcombine.high %v939_v6, %v943_v7  ;;  %v11401_v21 = vcombine.low %v939_v6, %v943_v7  ;;  %v987_v4 = vld [vmem:[#allocation2 + $0x18c8] sm:$0xff]  ;;  %v11441_v7 = vcombine.low %v979_v60, %v983_v61 }
 0x225   :  { %6654 = vmatpush1.bf16.msra.mxu0 %v11343_v13  ;;  %6982 = vmatpush1.bf16.msra.mxu1 %v11345_v14  ;;  %v946_v13 = vld [vmem:[#allocation2 + $0x1780] sm:$0xff]  ;;  %v991_v5 = vld [vmem:[#allocation2 + $0x18e8] sm:$0xff] }
 0x226   :  { %6655 = vmatprep.subr.bf16.mxu0 %v11352_v17  ;;  %6983 = vmatprep.subr.bf16.mxu1 %v11354_v18  ;;  %v950_v14 = vld [vmem:[#allocation2 + $0x17a0] sm:$0xff]  ;;  %v947_v17 = vld [vmem:[#allocation2 + $0x1788] sm:$0xff] }
 0x227   :  { %v951_v18 = vld [vmem:[#allocation2 + $0x17a8] sm:$0xff]  ;;  %v11408_v22 = vcombine.high %v946_v13, %v950_v14  ;;  %v11407_v30 = vcombine.low %v946_v13, %v950_v14 }
 0x228   :  { %v11410_v53 = vcombine.high %v947_v17, %v951_v18  ;;  %v11409_v31 = vcombine.low %v947_v17, %v951_v18  ;;  %v995_v13 = vld [vmem:[#allocation2 + $0x1908] sm:$0xff]  ;;  %v11449_v18 = vcombine.low %v987_v4, %v991_v5 }
 0x229   :  { %6656 = vmatpush1.bf16.msra.mxu0 %v11351_v26  ;;  %6984 = vmatpush1.bf16.msra.mxu1 %v11353_v27  ;;  %v954_v26 = vld [vmem:[#allocation2 + $0x17c0] sm:$0xff]  ;;  %v999_v14 = vld [vmem:[#allocation2 + $0x1928] sm:$0xff] }
 0x22a   :  { %6657 = vmatprep.subr.bf16.mxu0 %v11360_v28  ;;  %6985 = vmatprep.subr.bf16.mxu1 %v11362_v29  ;;  %v958_v27 = vld [vmem:[#allocation2 + $0x17e0] sm:$0xff]  ;;  %v955_v28 = vld [vmem:[#allocation2 + $0x17c8] sm:$0xff] }
 0x22b   :  { %v959_v29 = vld [vmem:[#allocation2 + $0x17e8] sm:$0xff]  ;;  %v11416_v32 = vcombine.high %v954_v26, %v958_v27  ;;  %v11415_v40 = vcombine.low %v954_v26, %v958_v27 }
 0x22c   :  { %v11418_v33 = vcombine.high %v955_v28, %v959_v29  ;;  %v11417_v41 = vcombine.low %v955_v28, %v959_v29  ;;  %v1003_v26 = vld [vmem:[#allocation2 + $0x1948] sm:$0xff]  ;;  %v11457_v29 = vcombine.low %v995_v13, %v999_v14 }
 0x22d   :  { %6658 = vmatpush1.bf16.msra.mxu0 %v11359_v15  ;;  %6986 = vmatpush1.bf16.msra.mxu1 %v11361_v35  ;;  %v962_v15 = vld [vmem:[#allocation2 + $0x1800] sm:$0xff]  ;;  %v1007_v27 = vld [vmem:[#allocation2 + $0x1968] sm:$0xff] }
 0x22e   :  { %6659 = vmatprep.subr.bf16.mxu0 %v11368_v36  ;;  %6987 = vmatprep.subr.bf16.mxu1 %v11370_v37  ;;  %v966_v35 = vld [vmem:[#allocation2 + $0x1820] sm:$0xff]  ;;  %v963_v36 = vld [vmem:[#allocation2 + $0x1808] sm:$0xff] }
 0x22f   :  { %v967_v37 = vld [vmem:[#allocation2 + $0x1828] sm:$0xff]  ;;  %v11424_v42 = vcombine.high %v962_v15, %v966_v35  ;;  %v11423_v50 = vcombine.low %v962_v15, %v966_v35 }
 0x230   :  { %v11426_v43 = vcombine.high %v963_v36, %v967_v37  ;;  %v11425_v51 = vcombine.low %v963_v36, %v967_v37  ;;  %v1011_v15 = vld [vmem:[#allocation2 + $0x1988] sm:$0xff]  ;;  %v11465_v37 = vcombine.low %v1003_v26, %v1007_v27 }
 0x231   :  { %6660 = vmatpush1.bf16.msra.mxu0 %v11367_v44  ;;  %6988 = vmatpush1.bf16.msra.mxu1 %v11369_v45  ;;  %v970_v44 = vld [vmem:[#allocation2 + $0x1840] sm:$0xff]  ;;  %v1015_v35 = vld [vmem:[#allocation2 + $0x19a8] sm:$0xff] }
 0x232   :  { %6661 = vmatprep.subr.bf16.mxu0 %v11376_v46  ;;  %6989 = vmatprep.subr.bf16.mxu1 %v11378_v47  ;;  %v974_v45 = vld [vmem:[#allocation2 + $0x1860] sm:$0xff]  ;;  %v13427_v46 = vcombine.low %v13415_v19, %v13415_v19  ;;  %v971_v47 = vld [vmem:[#allocation2 + $0x1848] sm:$0xff]  ;;  %v13436_v19 = vcombine.high %v13432_v49, %v13432_v49 }
 0x233   :  { %v11431_v62 = vcombine.low %v970_v44, %v974_v45  ;;  %v11433_v63 = vcombine.low %v971_v47, %v975_v24 }
 0x235   :  { %6662 = vmatpush1.bf16.msra.mxu0 %v11375_v52  ;;  %6990 = vmatpush1.bf16.msra.mxu1 %v11377_v54  ;;  %v11432_v52 = vcombine.high %v970_v44, %v974_v45  ;;  %v11434_v54 = vcombine.high %v971_v47, %v975_v24  ;;  %v1019_v44 = vld [vmem:[#allocation2 + $0x19c8] sm:$0xff]  ;;  %v11473_v24 = vcombine.low %v1011_v15, %v1015_v35 }
 0x236   :  { %6663 = vmatprep.subr.bf16.mxu0 %v11384_v56  ;;  %6991 = vmatprep.subr.bf16.mxu1 %v11386_v58  ;;  %v978_v56 = vld [vmem:[#allocation2 + $0x1880] sm:$0xff]  ;;  %v1023_v45 = vld [vmem:[#allocation2 + $0x19e8] sm:$0xff] }
 0x237   :  { %v982_v58 = vld [vmem:[#allocation2 + $0x18a0] sm:$0xff] }
 0x238   :  { %v11439_v6 = vcombine.low %v978_v56, %v982_v58 }
 0x239   :  { %6664 = vmatpush1.bf16.msra.mxu0 %v11383_v0  ;;  %6992 = vmatpush1.bf16.msra.mxu1 %v11385_v1  ;;  %v11440_v0 = vcombine.high %v978_v56, %v982_v58  ;;  %v11442_v1 = vcombine.high %v979_v60, %v983_v61  ;;  %v1027_v56 = vld [vmem:[#allocation2 + $0x1a08] sm:$0xff]  ;;  %v11481_v61 = vcombine.low %v1019_v44, %v1023_v45 }
 0x23a   :  { %6665 = vmatprep.subr.bf16.mxu0 %v11392_v2  ;;  %6993 = vmatprep.subr.bf16.mxu1 %v11394_v3  ;;  %v986_v2 = vld [vmem:[#allocation2 + $0x18c0] sm:$0xff]  ;;  %v1031_v58 = vld [vmem:[#allocation2 + $0x1a28] sm:$0xff] }
 0x23b   :  { %v990_v3 = vld [vmem:[#allocation2 + $0x18e0] sm:$0xff] }
 0x23c   :  { %v11447_v17 = vcombine.low %v986_v2, %v990_v3 }
 0x23d   :  { %6666 = vmatpush1.bf16.msra.mxu0 %v11391_v8  ;;  %6994 = vmatpush1.bf16.msra.mxu1 %v11393_v9  ;;  %v11448_v8 = vcombine.high %v986_v2, %v990_v3  ;;  %v11450_v9 = vcombine.high %v987_v4, %v991_v5  ;;  %v1035_v2 = vld [vmem:[#allocation2 + $0x1a48] sm:$0xff]  ;;  %v11489_v5 = vcombine.low %v1027_v56, %v1031_v58 }
 0x23e   :  { %6667 = vmatprep.subr.bf16.mxu0 %v11400_v10  ;;  %6995 = vmatprep.subr.bf16.mxu1 %v11402_v11  ;;  %v994_v10 = vld [vmem:[#allocation2 + $0x1900] sm:$0xff]  ;;  %v1039_v3 = vld [vmem:[#allocation2 + $0x1a68] sm:$0xff] }
 0x23f   :  { %v998_v11 = vld [vmem:[#allocation2 + $0x1920] sm:$0xff] }
 0x240   :  { %v11455_v28 = vcombine.low %v994_v10, %v998_v11 }
 0x241   :  { %6668 = vmatpush1.bf16.msra.mxu0 %v11399_v20  ;;  %6996 = vmatpush1.bf16.msra.mxu1 %v11401_v21  ;;  %v11456_v20 = vcombine.high %v994_v10, %v998_v11  ;;  %v11458_v21 = vcombine.high %v995_v13, %v999_v14  ;;  %v1043_v10 = vld [vmem:[#allocation2 + $0x1a88] sm:$0xff]  ;;  %v11497_v14 = vcombine.low %v1035_v2, %v1039_v3 }
 0x242   :  { %6669 = vmatprep.subr.bf16.mxu0 %v11408_v22  ;;  %6997 = vmatprep.subr.bf16.mxu1 %v11410_v53  ;;  %v1002_v22 = vld [vmem:[#allocation2 + $0x1940] sm:$0xff]  ;;  %v1047_v11 = vld [vmem:[#allocation2 + $0x1aa8] sm:$0xff] }
 0x243   :  { %v1006_v53 = vld [vmem:[#allocation2 + $0x1960] sm:$0xff] }
 0x244   :  { %v11463_v36 = vcombine.low %v1002_v22, %v1006_v53 }
 0x245   :  { %6670 = vmatpush1.bf16.msra.mxu0 %v11407_v30  ;;  %6998 = vmatpush1.bf16.msra.mxu1 %v11409_v31  ;;  %v11464_v30 = vcombine.high %v1002_v22, %v1006_v53  ;;  %v11466_v31 = vcombine.high %v1003_v26, %v1007_v27  ;;  %v1051_v22 = vld [vmem:[#allocation2 + $0x1ac8] sm:$0xff]  ;;  %v11505_v27 = vcombine.low %v1043_v10, %v1047_v11 }
 0x246   :  { %6671 = vmatprep.subr.bf16.mxu0 %v11416_v32  ;;  %6999 = vmatprep.subr.bf16.mxu1 %v11418_v33  ;;  %v1010_v32 = vld [vmem:[#allocation2 + $0x1980] sm:$0xff]  ;;  %v1055_v53 = vld [vmem:[#allocation2 + $0x1ae8] sm:$0xff] }
 0x247   :  { %v1014_v33 = vld [vmem:[#allocation2 + $0x19a0] sm:$0xff] }
 0x248   :  { %v11471_v47 = vcombine.low %v1010_v32, %v1014_v33 }
 0x249   :  { %6672 = vmatpush1.bf16.msra.mxu0 %v11415_v40  ;;  %7000 = vmatpush1.bf16.msra.mxu1 %v11417_v41  ;;  %v11472_v40 = vcombine.high %v1010_v32, %v1014_v33  ;;  %v11474_v41 = vcombine.high %v1011_v15, %v1015_v35  ;;  %v1059_v32 = vld [vmem:[#allocation2 + $0x1b08] sm:$0xff]  ;;  %v11513_v35 = vcombine.low %v1051_v22, %v1055_v53 }
 0x24a   :  { %6682 = vmatprep.subr.bf16.mxu0 %v11424_v42  ;;  %7010 = vmatprep.subr.bf16.mxu1 %v11426_v43  ;;  %v1018_v42 = vld [vmem:[#allocation2 + $0x19c0] sm:$0xff]  ;;  %v1063_v33 = vld [vmem:[#allocation2 + $0x1b28] sm:$0xff] }
 0x24b   :  { %v1022_v43 = vld [vmem:[#allocation2 + $0x19e0] sm:$0xff] }
 0x24c   :  { %6674 = vmatmul.mubr.bf16.vlgmr.msra.gmra.mrb[0].mxu0 %v13427_v46  ;;  %7002 = vmatmul.mubr.bf16.vlgmr.msra.gmra.mrb[0].mxu1 %v13427_v46  ;;  %v11479_v60 = vcombine.low %v1018_v42, %v1022_v43 }
 0x24d   :  { %6683 = vmatpush1.bf16.msra.mxu0 %v11423_v50  ;;  %7011 = vmatpush1.bf16.msra.mxu1 %v11425_v51  ;;  %v11480_v50 = vcombine.high %v1018_v42, %v1022_v43  ;;  %v11482_v51 = vcombine.high %v1019_v44, %v1023_v45  ;;  %v1067_v42 = vld [vmem:[#allocation2 + $0x1b48] sm:$0xff]  ;;  %v11521_v45 = vcombine.low %v1059_v32, %v1063_v33 }
 0x24e   :  { %6684 = vmatprep.subr.bf16.mxu0 %v11432_v52  ;;  %7012 = vmatprep.subr.bf16.mxu1 %v11434_v54  ;;  %v1026_v52 = vld [vmem:[#allocation2 + $0x1a00] sm:$0xff]  ;;  %v1071_v43 = vld [vmem:[#allocation2 + $0x1b68] sm:$0xff] }
 0x24f   :  { %6714 = vmatprep.mubr.bf16.mxu0 %v13436_v19  ;;  %7042 = vmatprep.mubr.bf16.mxu1 %v13436_v19  ;;  %v1030_v54 = vld [vmem:[#allocation2 + $0x1a20] sm:$0xff] }
 0x250   :  { %v11487_v4 = vcombine.low %v1026_v52, %v1030_v54 }
 0x251   :  { %6685 = vmatpush1.bf16.msra.mxu0 %v11431_v62  ;;  %7013 = vmatpush1.bf16.msra.mxu1 %v11433_v63  ;;  %v11488_v62 = vcombine.high %v1026_v52, %v1030_v54  ;;  %v11490_v63 = vcombine.high %v1027_v56, %v1031_v58  ;;  %v1075_v52 = vld [vmem:[#allocation2 + $0x1b88] sm:$0xff]  ;;  %v11529_v58 = vcombine.low %v1067_v42, %v1071_v43 }
 0x252   :  { %6686 = vmatprep.subr.bf16.mxu0 %v11440_v0  ;;  %7014 = vmatprep.subr.bf16.mxu1 %v11442_v1  ;;  %v1034_v0 = vld [vmem:[#allocation2 + $0x1a40] sm:$0xff]  ;;  %v1079_v54 = vld [vmem:[#allocation2 + $0x1ba8] sm:$0xff] }
 0x253   :  { %v1038_v1 = vld [vmem:[#allocation2 + $0x1a60] sm:$0xff] }
 0x254   :  { %v11495_v13 = vcombine.low %v1034_v0, %v1038_v1 }
 0x255   :  { %6687 = vmatpush1.bf16.msra.mxu0 %v11439_v6  ;;  %7015 = vmatpush1.bf16.msra.mxu1 %v11441_v7  ;;  %v11496_v6 = vcombine.high %v1034_v0, %v1038_v1  ;;  %v11498_v7 = vcombine.high %v1035_v2, %v1039_v3  ;;  %v1083_v0 = vld [vmem:[#allocation2 + $0x1bc8] sm:$0xff]  ;;  %v11537_v3 = vcombine.low %v1075_v52, %v1079_v54 }
 0x256   :  { %6688 = vmatprep.subr.bf16.mxu0 %v11448_v8  ;;  %7016 = vmatprep.subr.bf16.mxu1 %v11450_v9  ;;  %v1042_v8 = vld [vmem:[#allocation2 + $0x1a80] sm:$0xff]  ;;  %v1087_v1 = vld [vmem:[#allocation2 + $0x1be8] sm:$0xff] }
 0x257   :  { %v1046_v9 = vld [vmem:[#allocation2 + $0x1aa0] sm:$0xff] }
 0x258   :  { %v11503_v26 = vcombine.low %v1042_v8, %v1046_v9 }
 0x259   :  { %6689 = vmatpush1.bf16.msra.mxu0 %v11447_v17  ;;  %7017 = vmatpush1.bf16.msra.mxu1 %v11449_v18  ;;  %v11504_v17 = vcombine.high %v1042_v8, %v1046_v9  ;;  %v11506_v18 = vcombine.high %v1043_v10, %v1047_v11  ;;  %v1091_v8 = vld [vmem:[#allocation2 + $0x1c08] sm:$0xff]  ;;  %v11545_v11 = vcombine.low %v1083_v0, %v1087_v1 }
 0x25a   :  { %6690 = vmatprep.subr.bf16.mxu0 %v11456_v20  ;;  %7018 = vmatprep.subr.bf16.mxu1 %v11458_v21  ;;  %v1050_v20 = vld [vmem:[#allocation2 + $0x1ac0] sm:$0xff]  ;;  %v1095_v9 = vld [vmem:[#allocation2 + $0x1c28] sm:$0xff] }
 0x25b   :  { %v1054_v21 = vld [vmem:[#allocation2 + $0x1ae0] sm:$0xff] }
 0x25c   :  { %v11511_v15 = vcombine.low %v1050_v20, %v1054_v21 }
 0x25d   :  { %6691 = vmatpush1.bf16.msra.mxu0 %v11455_v28  ;;  %7019 = vmatpush1.bf16.msra.mxu1 %v11457_v29  ;;  %v11512_v28 = vcombine.high %v1050_v20, %v1054_v21  ;;  %v11514_v29 = vcombine.high %v1051_v22, %v1055_v53  ;;  %v13444_v20 = vcombine.low %v13432_v49, %v13432_v49  ;;  %v1099_v21 = vld [vmem:[#allocation2 + $0x1c48] sm:$0xff]  ;;  %v13449_v53 = vld [vmem:[%s13618_s0 + $0x38] sm:$0xff] }
 0x25e   :  { %6692 = vmatprep.subr.bf16.mxu0 %v11464_v30  ;;  %7020 = vmatprep.subr.bf16.mxu1 %v11466_v31  ;;  %v1058_v30 = vld [vmem:[#allocation2 + $0x1b00] sm:$0xff]  ;;  %v1103_v22 = vld [vmem:[#allocation2 + $0x1c68] sm:$0xff]  ;;  %v13453_v49 = vcombine.high %v13449_v53, %v13449_v53 }
 0x25f   :  { %v1062_v31 = vld [vmem:[#allocation2 + $0x1b20] sm:$0xff] }
 0x260   :  { %v11519_v44 = vcombine.low %v1058_v30, %v1062_v31 }
 0x261   :  { %6693 = vmatpush1.bf16.msra.mxu0 %v11463_v36  ;;  %7021 = vmatpush1.bf16.msra.mxu1 %v11465_v37  ;;  %v11520_v36 = vcombine.high %v1058_v30, %v1062_v31  ;;  %v11522_v37 = vcombine.high %v1059_v32, %v1063_v33  ;;  %v1106_v30 = vld [vmem:[#allocation2 + $0x1c80] sm:$0xff]  ;;  %v1107_v32 = vld [vmem:[#allocation2 + $0x1c88] sm:$0xff] }
 0x262   :  { %6694 = vmatprep.subr.bf16.mxu0 %v11472_v40  ;;  %7022 = vmatprep.subr.bf16.mxu1 %v11474_v41  ;;  %v1066_v40 = vld [vmem:[#allocation2 + $0x1b40] sm:$0xff]  ;;  %v1111_v33 = vld [vmem:[#allocation2 + $0x1ca8] sm:$0xff] }
 0x263   :  { %v1070_v41 = vld [vmem:[#allocation2 + $0x1b60] sm:$0xff] }
 0x264   :  { %v11527_v56 = vcombine.low %v1066_v40, %v1070_v41  ;;  %v1110_v31 = vld [vmem:[#allocation2 + $0x1ca0] sm:$0xff] }
 0x265   :  { %6695 = vmatpush1.bf16.msra.mxu0 %v11471_v47  ;;  %7023 = vmatpush1.bf16.msra.mxu1 %v11473_v24  ;;  %v11528_v47 = vcombine.high %v1066_v40, %v1070_v41  ;;  %v11530_v24 = vcombine.high %v1067_v42, %v1071_v43  ;;  %v1114_v40 = vld [vmem:[#allocation2 + $0x1cc0] sm:$0xff]  ;;  %v1115_v42 = vld [vmem:[#allocation2 + $0x1cc8] sm:$0xff] }
 0x266   :  { %6696 = vmatprep.subr.bf16.mxu0 %v11480_v50  ;;  %7024 = vmatprep.subr.bf16.mxu1 %v11482_v51  ;;  %v1074_v50 = vld [vmem:[#allocation2 + $0x1b80] sm:$0xff]  ;;  %v1119_v43 = vld [vmem:[#allocation2 + $0x1ce8] sm:$0xff] }
 0x267   :  { %v1078_v51 = vld [vmem:[#allocation2 + $0x1ba0] sm:$0xff] }
 0x268   :  { %v11535_v2 = vcombine.low %v1074_v50, %v1078_v51  ;;  %v1118_v41 = vld [vmem:[#allocation2 + $0x1ce0] sm:$0xff] }
 0x269   :  { %6697 = vmatpush1.bf16.msra.mxu0 %v11479_v60  ;;  %7025 = vmatpush1.bf16.msra.mxu1 %v11481_v61  ;;  %v11536_v60 = vcombine.high %v1074_v50, %v1078_v51  ;;  %v11538_v61 = vcombine.high %v1075_v52, %v1079_v54  ;;  %v1122_v50 = vld [vmem:[#allocation2 + $0x1d00] sm:$0xff]  ;;  %v1123_v52 = vld [vmem:[#allocation2 + $0x1d08] sm:$0xff] }
 0x26a   :  { %6698 = vmatprep.subr.bf16.mxu0 %v11488_v62  ;;  %7026 = vmatprep.subr.bf16.mxu1 %v11490_v63  ;;  %v1082_v62 = vld [vmem:[#allocation2 + $0x1bc0] sm:$0xff]  ;;  %v1127_v54 = vld [vmem:[#allocation2 + $0x1d28] sm:$0xff] }
 0x26b   :  { %v1086_v63 = vld [vmem:[#allocation2 + $0x1be0] sm:$0xff] }
 0x26c   :  { %v11543_v10 = vcombine.low %v1082_v62, %v1086_v63  ;;  %v1126_v51 = vld [vmem:[#allocation2 + $0x1d20] sm:$0xff] }
 0x26d   :  { %6699 = vmatpush1.bf16.msra.mxu0 %v11487_v4  ;;  %7027 = vmatpush1.bf16.msra.mxu1 %v11489_v5  ;;  %v11544_v4 = vcombine.high %v1082_v62, %v1086_v63  ;;  %v11546_v5 = vcombine.high %v1083_v0, %v1087_v1  ;;  %v1130_v62 = vld [vmem:[#allocation2 + $0x1d40] sm:$0xff]  ;;  %v1131_v0 = vld [vmem:[#allocation2 + $0x1d48] sm:$0xff] }
 0x26e   :  { %6700 = vmatprep.subr.bf16.mxu0 %v11496_v6  ;;  %7028 = vmatprep.subr.bf16.mxu1 %v11498_v7  ;;  %v1090_v6 = vld [vmem:[#allocation2 + $0x1c00] sm:$0xff]  ;;  %v1135_v1 = vld [vmem:[#allocation2 + $0x1d68] sm:$0xff] }
 0x26f   :  { %v1094_v7 = vld [vmem:[#allocation2 + $0x1c20] sm:$0xff] }
 0x270   :  { %v1134_v63 = vld [vmem:[#allocation2 + $0x1d60] sm:$0xff] }
 0x271   :  { %6701 = vmatpush1.bf16.msra.mxu0 %v11495_v13  ;;  %7029 = vmatpush1.bf16.msra.mxu1 %v11497_v14  ;;  %v11552_v13 = vcombine.high %v1090_v6, %v1094_v7  ;;  %v11554_v14 = vcombine.high %v1091_v8, %v1095_v9 }
 0x272   :  { %6702 = vmatprep.subr.bf16.mxu0 %v11504_v17  ;;  %7030 = vmatprep.subr.bf16.mxu1 %v11506_v18  ;;  %v1098_v17 = vld [vmem:[#allocation2 + $0x1c40] sm:$0xff] }
 0x273   :  { %v1102_v18 = vld [vmem:[#allocation2 + $0x1c60] sm:$0xff] }
 0x275   :  { %6703 = vmatpush1.bf16.msra.mxu0 %v11503_v26  ;;  %7031 = vmatpush1.bf16.msra.mxu1 %v11505_v27  ;;  %v11551_v26 = vcombine.low %v1090_v6, %v1094_v7  ;;  %v11553_v27 = vcombine.low %v1091_v8, %v1095_v9  ;;  %v1138_v6 = vld [vmem:[#allocation2 + $0x1d80] sm:$0xff]  ;;  %v1139_v8 = vld [vmem:[#allocation2 + $0x1d88] sm:$0xff] }
 0x276   :  { %6704 = vmatprep.subr.bf16.mxu0 %v11512_v28  ;;  %7032 = vmatprep.subr.bf16.mxu1 %v11514_v29  ;;  %v11560_v28 = vcombine.high %v1098_v17, %v1102_v18  ;;  %v11562_v29 = vcombine.high %v1099_v21, %v1103_v22  ;;  %v1142_v7 = vld [vmem:[#allocation2 + $0x1da0] sm:$0xff]  ;;  %v1143_v9 = vld [vmem:[#allocation2 + $0x1da8] sm:$0xff] }
 0x279   :  { %6705 = vmatpush1.bf16.msra.mxu0 %v11511_v15  ;;  %7033 = vmatpush1.bf16.msra.mxu1 %v11513_v35  ;;  %v11559_v15 = vcombine.low %v1098_v17, %v1102_v18  ;;  %v11561_v35 = vcombine.low %v1099_v21, %v1103_v22  ;;  %v1146_v17 = vld [vmem:[#allocation2 + $0x1dc0] sm:$0xff]  ;;  %v1147_v21 = vld [vmem:[#allocation2 + $0x1dc8] sm:$0xff] }
 0x27a   :  { %6706 = vmatprep.subr.bf16.mxu0 %v11520_v36  ;;  %7034 = vmatprep.subr.bf16.mxu1 %v11522_v37  ;;  %v11568_v36 = vcombine.high %v1106_v30, %v1110_v31  ;;  %v11570_v37 = vcombine.high %v1107_v32, %v1111_v33  ;;  %v1150_v18 = vld [vmem:[#allocation2 + $0x1de0] sm:$0xff]  ;;  %v1151_v22 = vld [vmem:[#allocation2 + $0x1de8] sm:$0xff] }
 0x27d   :  { %6707 = vmatpush1.bf16.msra.mxu0 %v11519_v44  ;;  %7035 = vmatpush1.bf16.msra.mxu1 %v11521_v45  ;;  %v11567_v44 = vcombine.low %v1106_v30, %v1110_v31  ;;  %v11569_v45 = vcombine.low %v1107_v32, %v1111_v33  ;;  %v1154_v30 = vld [vmem:[#allocation2 + $0x1e00] sm:$0xff]  ;;  %v1155_v32 = vld [vmem:[#allocation2 + $0x1e08] sm:$0xff] }
 0x27e   :  { %6708 = vmatprep.subr.bf16.mxu0 %v11528_v47  ;;  %7036 = vmatprep.subr.bf16.mxu1 %v11530_v24  ;;  %v11576_v47 = vcombine.high %v1114_v40, %v1118_v41  ;;  %v11578_v24 = vcombine.high %v1115_v42, %v1119_v43  ;;  %v1158_v31 = vld [vmem:[#allocation2 + $0x1e20] sm:$0xff]  ;;  %v1159_v33 = vld [vmem:[#allocation2 + $0x1e28] sm:$0xff] }
 0x281   :  { %6709 = vmatpush1.bf16.msra.mxu0 %v11527_v56  ;;  %7037 = vmatpush1.bf16.msra.mxu1 %v11529_v58  ;;  %v11575_v56 = vcombine.low %v1114_v40, %v1118_v41  ;;  %v11577_v58 = vcombine.low %v1115_v42, %v1119_v43  ;;  %v1162_v40 = vld [vmem:[#allocation2 + $0x1e40] sm:$0xff]  ;;  %v1163_v42 = vld [vmem:[#allocation2 + $0x1e48] sm:$0xff] }
 0x282   :  { %6710 = vmatprep.subr.bf16.mxu0 %v11536_v60  ;;  %7038 = vmatprep.subr.bf16.mxu1 %v11538_v61  ;;  %v11584_v60 = vcombine.high %v1122_v50, %v1126_v51  ;;  %v11586_v61 = vcombine.high %v1123_v52, %v1127_v54  ;;  %v1166_v41 = vld [vmem:[#allocation2 + $0x1e60] sm:$0xff]  ;;  %v1167_v43 = vld [vmem:[#allocation2 + $0x1e68] sm:$0xff] }
 0x285   :  { %6711 = vmatpush1.bf16.msra.mxu0 %v11535_v2  ;;  %7039 = vmatpush1.bf16.msra.mxu1 %v11537_v3  ;;  %v11583_v2 = vcombine.low %v1122_v50, %v1126_v51  ;;  %v11585_v3 = vcombine.low %v1123_v52, %v1127_v54  ;;  %v1170_v50 = vld [vmem:[#allocation2 + $0x1e80] sm:$0xff]  ;;  %v1171_v52 = vld [vmem:[#allocation2 + $0x1e88] sm:$0xff] }
 0x286   :  { %6712 = vmatprep.subr.bf16.mxu0 %v11544_v4  ;;  %7040 = vmatprep.subr.bf16.mxu1 %v11546_v5  ;;  %v11592_v4 = vcombine.high %v1130_v62, %v1134_v63  ;;  %v11594_v5 = vcombine.high %v1131_v0, %v1135_v1  ;;  %v1174_v51 = vld [vmem:[#allocation2 + $0x1ea0] sm:$0xff]  ;;  %v1175_v54 = vld [vmem:[#allocation2 + $0x1ea8] sm:$0xff] }
 0x289   :  { %6713 = vmatpush1.bf16.msra.mxu0 %v11543_v10  ;;  %7041 = vmatpush1.bf16.msra.mxu1 %v11545_v11  ;;  %v11591_v10 = vcombine.low %v1130_v62, %v1134_v63  ;;  %v11593_v11 = vcombine.low %v1131_v0, %v1135_v1  ;;  %v1178_v62 = vld [vmem:[#allocation2 + $0x1ec0] sm:$0xff]  ;;  %v1179_v0 = vld [vmem:[#allocation2 + $0x1ec8] sm:$0xff] }
 0x28a   :  { %6723 = vmatprep.subr.bf16.mxu0 %v11552_v13  ;;  %7051 = vmatprep.subr.bf16.mxu1 %v11554_v14  ;;  %v11600_v13 = vcombine.high %v1138_v6, %v1142_v7  ;;  %v11602_v14 = vcombine.high %v1139_v8, %v1143_v9  ;;  %v1182_v63 = vld [vmem:[#allocation2 + $0x1ee0] sm:$0xff]  ;;  %v1183_v1 = vld [vmem:[#allocation2 + $0x1ee8] sm:$0xff] }
 0x28c   :  { %6715 = vmatmul.mubr.bf16.vlgmr.msra.gmra.mrb[0].mxu0 %v13444_v20  ;;  %7043 = vmatmul.mubr.bf16.vlgmr.msra.gmra.mrb[0].mxu1 %v13444_v20 }
 0x28d   :  { %6724 = vmatpush1.bf16.msra.mxu0 %v11551_v26  ;;  %7052 = vmatpush1.bf16.msra.mxu1 %v11553_v27  ;;  %v11599_v26 = vcombine.low %v1138_v6, %v1142_v7  ;;  %v11601_v27 = vcombine.low %v1139_v8, %v1143_v9  ;;  %v1186_v6 = vld [vmem:[#allocation2 + $0x1f00] sm:$0xff]  ;;  %v1187_v8 = vld [vmem:[#allocation2 + $0x1f08] sm:$0xff] }
 0x28e   :  { %6725 = vmatprep.subr.bf16.mxu0 %v11560_v28  ;;  %7053 = vmatprep.subr.bf16.mxu1 %v11562_v29  ;;  %v11608_v28 = vcombine.high %v1146_v17, %v1150_v18  ;;  %v11610_v29 = vcombine.high %v1147_v21, %v1151_v22  ;;  %v1190_v7 = vld [vmem:[#allocation2 + $0x1f20] sm:$0xff]  ;;  %v1191_v9 = vld [vmem:[#allocation2 + $0x1f28] sm:$0xff] }
 0x28f   :  { %6755 = vmatprep.mubr.bf16.mxu0 %v13453_v49  ;;  %7083 = vmatprep.mubr.bf16.mxu1 %v13453_v49 }
 0x291   :  { %6726 = vmatpush1.bf16.msra.mxu0 %v11559_v15  ;;  %7054 = vmatpush1.bf16.msra.mxu1 %v11561_v35  ;;  %v11607_v15 = vcombine.low %v1146_v17, %v1150_v18  ;;  %v11609_v35 = vcombine.low %v1147_v21, %v1151_v22  ;;  %v1194_v17 = vld [vmem:[#allocation2 + $0x1f40] sm:$0xff]  ;;  %v1195_v21 = vld [vmem:[#allocation2 + $0x1f48] sm:$0xff] }
 0x292   :  { %6727 = vmatprep.subr.bf16.mxu0 %v11568_v36  ;;  %7055 = vmatprep.subr.bf16.mxu1 %v11570_v37  ;;  %v11616_v36 = vcombine.high %v1154_v30, %v1158_v31  ;;  %v11618_v37 = vcombine.high %v1155_v32, %v1159_v33  ;;  %v1198_v18 = vld [vmem:[#allocation2 + $0x1f60] sm:$0xff]  ;;  %v1199_v22 = vld [vmem:[#allocation2 + $0x1f68] sm:$0xff] }
 0x295   :  { %6728 = vmatpush1.bf16.msra.mxu0 %v11567_v44  ;;  %7056 = vmatpush1.bf16.msra.mxu1 %v11569_v45  ;;  %v11615_v44 = vcombine.low %v1154_v30, %v1158_v31  ;;  %v11617_v45 = vcombine.low %v1155_v32, %v1159_v33  ;;  %v1202_v30 = vld [vmem:[#allocation2 + $0x1f80] sm:$0xff]  ;;  %v1203_v32 = vld [vmem:[#allocation2 + $0x1f88] sm:$0xff] }
 0x296   :  { %6729 = vmatprep.subr.bf16.mxu0 %v11576_v47  ;;  %7057 = vmatprep.subr.bf16.mxu1 %v11578_v24  ;;  %v11624_v47 = vcombine.high %v1162_v40, %v1166_v41  ;;  %v11626_v24 = vcombine.high %v1163_v42, %v1167_v43  ;;  %v1206_v31 = vld [vmem:[#allocation2 + $0x1fa0] sm:$0xff]  ;;  %v1207_v33 = vld [vmem:[#allocation2 + $0x1fa8] sm:$0xff] }
 0x299   :  { %6730 = vmatpush1.bf16.msra.mxu0 %v11575_v56  ;;  %7058 = vmatpush1.bf16.msra.mxu1 %v11577_v58  ;;  %v11623_v56 = vcombine.low %v1162_v40, %v1166_v41  ;;  %v11625_v58 = vcombine.low %v1163_v42, %v1167_v43  ;;  %v1210_v40 = vld [vmem:[#allocation2 + $0x1fc0] sm:$0xff]  ;;  %v1211_v42 = vld [vmem:[#allocation2 + $0x1fc8] sm:$0xff] }
 0x29a   :  { %6731 = vmatprep.subr.bf16.mxu0 %v11584_v60  ;;  %7059 = vmatprep.subr.bf16.mxu1 %v11586_v61  ;;  %v11632_v60 = vcombine.high %v1170_v50, %v1174_v51  ;;  %v11634_v61 = vcombine.high %v1171_v52, %v1175_v54  ;;  %v1214_v41 = vld [vmem:[#allocation2 + $0x1fe0] sm:$0xff]  ;;  %v1215_v43 = vld [vmem:[#allocation2 + $0x1fe8] sm:$0xff] }
 0x29d   :  { %6732 = vmatpush1.bf16.msra.mxu0 %v11583_v2  ;;  %7060 = vmatpush1.bf16.msra.mxu1 %v11585_v3  ;;  %v11631_v2 = vcombine.low %v1170_v50, %v1174_v51  ;;  %v11633_v3 = vcombine.low %v1171_v52, %v1175_v54  ;;  %v196_v50 = vld [vmem:[#allocation2 + $0x10] sm:$0xff]  ;;  %v197_v52 = vld [vmem:[#allocation2 + $0x18] sm:$0xff] }
 0x29e   :  { %6733 = vmatprep.subr.bf16.mxu0 %v11592_v4  ;;  %7061 = vmatprep.subr.bf16.mxu1 %v11594_v5  ;;  %v11640_v4 = vcombine.high %v1178_v62, %v1182_v63  ;;  %v11642_v5 = vcombine.high %v1179_v0, %v1183_v1  ;;  %v200_v51 = vld [vmem:[#allocation2 + $0x30] sm:$0xff]  ;;  %v201_v54 = vld [vmem:[#allocation2 + $0x38] sm:$0xff] }
 0x2a1   :  { %6734 = vmatpush1.bf16.msra.mxu0 %v11591_v10  ;;  %7062 = vmatpush1.bf16.msra.mxu1 %v11593_v11  ;;  %v11639_v10 = vcombine.low %v1178_v62, %v1182_v63  ;;  %v11641_v11 = vcombine.low %v1179_v0, %v1183_v1  ;;  %v204_v62 = vld [vmem:[#allocation2 + $0x50] sm:$0xff]  ;;  %v13461_v0 = vcombine.low %v13449_v53, %v13449_v53  ;;  %v205_v1 = vld [vmem:[#allocation2 + $0x58] sm:$0xff] }
 0x2a2   :  { %6735 = vmatprep.subr.bf16.mxu0 %v11600_v13  ;;  %7063 = vmatprep.subr.bf16.mxu1 %v11602_v14  ;;  %v11648_v13 = vcombine.high %v1186_v6, %v1190_v7  ;;  %v11650_v14 = vcombine.high %v1187_v8, %v1191_v9  ;;  %v208_v63 = vld [vmem:[#allocation2 + $0x70] sm:$0xff] }
 0x2a3   :  { %v10667_v53 = vcombine.low %v204_v62, %v208_v63 }
 0x2a5   :  { %6736 = vmatpush1.bf16.msra.mxu0 %v11599_v26  ;;  %7064 = vmatpush1.bf16.msra.mxu1 %v11601_v27  ;;  %v11647_v26 = vcombine.low %v1186_v6, %v1190_v7  ;;  %v11649_v27 = vcombine.low %v1187_v8, %v1191_v9  ;;  %v212_v7 = vld [vmem:[#allocation2 + $0x90] sm:$0xff]  ;;  %v213_v9 = vld [vmem:[#allocation2 + $0x98] sm:$0xff] }
 0x2a6   :  { %6737 = vmatprep.subr.bf16.mxu0 %v11608_v28  ;;  %7065 = vmatprep.subr.bf16.mxu1 %v11610_v29  ;;  %v11656_v28 = vcombine.high %v1194_v17, %v1198_v18  ;;  %v11658_v29 = vcombine.high %v1195_v21, %v1199_v22  ;;  %v216_v8 = vld [vmem:[#allocation2 + $0xb0] sm:$0xff] }
 0x2a9   :  { %6738 = vmatpush1.bf16.msra.mxu0 %v11607_v15  ;;  %7066 = vmatpush1.bf16.msra.mxu1 %v11609_v35  ;;  %v11655_v15 = vcombine.low %v1194_v17, %v1198_v18  ;;  %v11657_v35 = vcombine.low %v1195_v21, %v1199_v22  ;;  %v220_v17 = vld [vmem:[#allocation2 + $0xd0] sm:$0xff]  ;;  %v221_v21 = vld [vmem:[#allocation2 + $0xd8] sm:$0xff] }
 0x2aa   :  { %6739 = vmatprep.subr.bf16.mxu0 %v11616_v36  ;;  %7067 = vmatprep.subr.bf16.mxu1 %v11618_v37  ;;  %v11664_v36 = vcombine.high %v1202_v30, %v1206_v31  ;;  %v11666_v37 = vcombine.high %v1203_v32, %v1207_v33  ;;  %v224_v18 = vld [vmem:[#allocation2 + $0xf0] sm:$0xff]  ;;  %v225_v22 = vld [vmem:[#allocation2 + $0xf8] sm:$0xff] }
 0x2ad   :  { %6740 = vmatpush1.bf16.msra.mxu0 %v11615_v44  ;;  %7068 = vmatpush1.bf16.msra.mxu1 %v11617_v45  ;;  %v11663_v44 = vcombine.low %v1202_v30, %v1206_v31  ;;  %v11665_v45 = vcombine.low %v1203_v32, %v1207_v33  ;;  %v228_v30 = vld [vmem:[#allocation2 + $0x110] sm:$0xff]  ;;  %v229_v32 = vld [vmem:[#allocation2 + $0x118] sm:$0xff] }
 0x2ae   :  { %6741 = vmatprep.subr.bf16.mxu0 %v11624_v47  ;;  %7069 = vmatprep.subr.bf16.mxu1 %v11626_v24  ;;  %v11672_v47 = vcombine.high %v1210_v40, %v1214_v41  ;;  %v11674_v24 = vcombine.high %v1211_v42, %v1215_v43  ;;  %v232_v31 = vld [vmem:[#allocation2 + $0x130] sm:$0xff]  ;;  %v233_v33 = vld [vmem:[#allocation2 + $0x138] sm:$0xff] }
 0x2b1   :  { %6742 = vmatpush1.bf16.msra.mxu0 %v11623_v56  ;;  %7070 = vmatpush1.bf16.msra.mxu1 %v11625_v58  ;;  %v11671_v56 = vcombine.low %v1210_v40, %v1214_v41  ;;  %v11673_v58 = vcombine.low %v1211_v42, %v1215_v43  ;;  %v240_v40 = vld [vmem:[#allocation2 + $0x170] sm:$0xff]  ;;  %v237_v41 = vld [vmem:[#allocation2 + $0x158] sm:$0xff]  ;;  %v10691_v43 = vcombine.low %v228_v30, %v232_v31 }
 0x2b2   :  { %6743 = vmatprep.subr.bf16.mxu0 %v11632_v60  ;;  %7071 = vmatprep.subr.bf16.mxu1 %v11634_v61  ;;  %v10660_v60 = vcombine.high %v196_v50, %v200_v51  ;;  %v10662_v61 = vcombine.high %v197_v52, %v201_v54  ;;  %v241_v42 = vld [vmem:[#allocation2 + $0x178] sm:$0xff] }
 0x2b5   :  { %6744 = vmatpush1.bf16.msra.mxu0 %v11631_v2  ;;  %7072 = vmatpush1.bf16.msra.mxu1 %v11633_v3  ;;  %v209_v2 = vld [vmem:[#allocation2 + $0x78] sm:$0xff]  ;;  %v10659_v3 = vcombine.low %v196_v50, %v200_v51  ;;  %v248_v50 = vld [vmem:[#allocation2 + $0x1b0] sm:$0xff] }
 0x2b6   :  { %6745 = vmatprep.subr.bf16.mxu0 %v11640_v4  ;;  %7073 = vmatprep.subr.bf16.mxu1 %v11642_v5  ;;  %v10661_v4 = vcombine.low %v197_v52, %v201_v54  ;;  %v10668_v5 = vcombine.high %v204_v62, %v208_v63  ;;  %v10670_v6 = vcombine.high %v205_v1, %v209_v2  ;;  %v245_v51 = vld [vmem:[#allocation2 + $0x198] sm:$0xff]  ;;  %v256_v62 = vld [vmem:[#allocation2 + $0x1f0] sm:$0xff] }
 0x2b7   :  { %v249_v52 = vld [vmem:[#allocation2 + $0x1b8] sm:$0xff] }
 0x2b8   :  { %v253_v63 = vld [vmem:[#allocation2 + $0x1d8] sm:$0xff] }
 0x2b9   :  { %6746 = vmatpush1.bf16.msra.mxu0 %v11639_v10  ;;  %7074 = vmatpush1.bf16.msra.mxu1 %v11641_v11  ;;  %v217_v10 = vld [vmem:[#allocation2 + $0xb8] sm:$0xff]  ;;  %v10669_v11 = vcombine.low %v205_v1, %v209_v2 }
 0x2ba   :  { %6747 = vmatprep.subr.bf16.mxu0 %v11648_v13  ;;  %7075 = vmatprep.subr.bf16.mxu1 %v11650_v14  ;;  %v10676_v13 = vcombine.high %v212_v7, %v216_v8  ;;  %v10678_v14 = vcombine.high %v213_v9, %v217_v10  ;;  %v257_v1 = vld [vmem:[#allocation2 + $0x1f8] sm:$0xff] }
 0x2bd   :  { %6748 = vmatpush1.bf16.msra.mxu0 %v11647_v26  ;;  %7076 = vmatpush1.bf16.msra.mxu1 %v11649_v27  ;;  %v10675_v26 = vcombine.low %v212_v7, %v216_v8  ;;  %v10677_v27 = vcombine.low %v213_v9, %v217_v10  ;;  %v264_v7 = vld [vmem:[#allocation2 + $0x230] sm:$0xff]  ;;  %v261_v8 = vld [vmem:[#allocation2 + $0x218] sm:$0xff] }
 0x2be   :  { %6749 = vmatprep.subr.bf16.mxu0 %v11656_v28  ;;  %7077 = vmatprep.subr.bf16.mxu1 %v11658_v29  ;;  %v10684_v28 = vcombine.high %v220_v17, %v224_v18  ;;  %v10686_v29 = vcombine.high %v221_v21, %v225_v22  ;;  %v265_v9 = vld [vmem:[#allocation2 + $0x238] sm:$0xff] }
 0x2c1   :  { %6750 = vmatpush1.bf16.msra.mxu0 %v11655_v15  ;;  %7078 = vmatpush1.bf16.msra.mxu1 %v11657_v35  ;;  %v10683_v15 = vcombine.low %v220_v17, %v224_v18  ;;  %v10685_v35 = vcombine.low %v221_v21, %v225_v22  ;;  %v272_v17 = vld [vmem:[#allocation2 + $0x270] sm:$0xff]  ;;  %v269_v18 = vld [vmem:[#allocation2 + $0x258] sm:$0xff] }
 0x2c2   :  { %6751 = vmatprep.subr.bf16.mxu0 %v11664_v36  ;;  %7079 = vmatprep.subr.bf16.mxu1 %v11666_v37  ;;  %v10692_v36 = vcombine.high %v228_v30, %v232_v31  ;;  %v236_v37 = vld [vmem:[#allocation2 + $0x150] sm:$0xff]  ;;  %v273_v21 = vld [vmem:[#allocation2 + $0x278] sm:$0xff] }
 0x2c3   :  { %v10699_v54 = vcombine.low %v236_v37, %v240_v40  ;;  %v280_v30 = vld [vmem:[#allocation2 + $0x2b0] sm:$0xff]  ;;  %v277_v31 = vld [vmem:[#allocation2 + $0x298] sm:$0xff] }
 0x2c5   :  { %6752 = vmatpush1.bf16.msra.mxu0 %v11663_v44  ;;  %7080 = vmatpush1.bf16.msra.mxu1 %v11665_v45  ;;  %v10693_v44 = vcombine.low %v229_v32, %v233_v33  ;;  %v10700_v45 = vcombine.high %v236_v37, %v240_v40  ;;  %v288_v37 = vld [vmem:[#allocation2 + $0x2f0] sm:$0xff]  ;;  %v285_v40 = vld [vmem:[#allocation2 + $0x2d8] sm:$0xff] }
 0x2c6   :  { %6753 = vmatprep.subr.bf16.mxu0 %v11672_v47  ;;  %7081 = vmatprep.subr.bf16.mxu1 %v11674_v24  ;;  %v10702_v47 = vcombine.high %v237_v41, %v241_v42  ;;  %v244_v24 = vld [vmem:[#allocation2 + $0x190] sm:$0xff] }
 0x2c7   :  { %v10707_v2 = vcombine.low %v244_v24, %v248_v50 }
 0x2c9   :  { %6754 = vmatpush1.bf16.msra.mxu0 %v11671_v56  ;;  %7082 = vmatpush1.bf16.msra.mxu1 %v11673_v58  ;;  %v10701_v56 = vcombine.low %v237_v41, %v241_v42  ;;  %v10708_v58 = vcombine.high %v244_v24, %v248_v50  ;;  %v289_v41 = vld [vmem:[#allocation2 + $0x2f8] sm:$0xff]  ;;  %v296_v24 = vld [vmem:[#allocation2 + $0x330] sm:$0xff] }
 0x2ca   :  { %7092 = vmatprep.subr.bf16.mxu0 %v10660_v60  ;;  %7420 = vmatprep.subr.bf16.mxu1 %v10662_v61  ;;  %v10710_v60 = vcombine.high %v245_v51, %v249_v52  ;;  %v252_v61 = vld [vmem:[#allocation2 + $0x1d0] sm:$0xff]  ;;  %v293_v50 = vld [vmem:[#allocation2 + $0x318] sm:$0xff] }
 0x2cb   :  { %v10715_v10 = vcombine.low %v252_v61, %v256_v62 }
 0x2cc   :  { %6756 = vmatmul.mubr.bf16.vlgmr.msra.gmra.mrb[0].mxu0 %v13461_v0  ;;  %7084 = vmatmul.mubr.bf16.vlgmr.msra.gmra.mrb[0].mxu1 %v13461_v0 }
 0x2cd   :  { %7093 = vmatpush1.bf16.msra.mxu0 %v10659_v3  ;;  %7421 = vmatpush1.bf16.msra.mxu1 %v10661_v4  ;;  %v10709_v3 = vcombine.low %v245_v51, %v249_v52  ;;  %v10716_v4 = vcombine.high %v252_v61, %v256_v62  ;;  %v297_v51 = vld [vmem:[#allocation2 + $0x338] sm:$0xff]  ;;  %v304_v61 = vld [vmem:[#allocation2 + $0x370] sm:$0xff] }
 0x2ce   :  { %7094 = vmatprep.subr.bf16.mxu0 %v10668_v5  ;;  %7422 = vmatprep.subr.bf16.mxu1 %v10670_v6  ;;  %v10718_v5 = vcombine.high %v253_v63, %v257_v1  ;;  %v260_v6 = vld [vmem:[#allocation2 + $0x210] sm:$0xff]  ;;  %v301_v62 = vld [vmem:[#allocation2 + $0x358] sm:$0xff] }
 0x2cf   :  { %7124 = vmatprep.mubr.bf16.mxu0 %v13336_v57  ;;  %7452 = vmatprep.mubr.bf16.mxu1 %v13336_v57  ;;  %v10694_v57 = vcombine.high %v229_v32, %v233_v33  ;;  %v10723_v22 = vcombine.low %v260_v6, %v264_v7  ;;  %v281_v32 = vld [vmem:[#allocation2 + $0x2b8] sm:$0xff] }
 0x2d1   :  { %7095 = vmatpush1.bf16.msra.mxu0 %v10667_v53  ;;  %7423 = vmatpush1.bf16.msra.mxu1 %v10669_v11  ;;  %v10717_v53 = vcombine.low %v253_v63, %v257_v1  ;;  %v10724_v11 = vcombine.high %v260_v6, %v264_v7  ;;  %v305_v63 = vld [vmem:[#allocation2 + $0x378] sm:$0xff]  ;;  %v312_v6 = vld [vmem:[#allocation2 + $0x3b0] sm:$0xff] }
 0x2d2   :  { %7096 = vmatprep.subr.bf16.mxu0 %v10676_v13  ;;  %7424 = vmatprep.subr.bf16.mxu1 %v10678_v14  ;;  %v10726_v13 = vcombine.high %v261_v8, %v265_v9  ;;  %v268_v14 = vld [vmem:[#allocation2 + $0x250] sm:$0xff]  ;;  %v309_v7 = vld [vmem:[#allocation2 + $0x398] sm:$0xff] }
 0x2d3   :  { %v10731_v33 = vcombine.low %v268_v14, %v272_v17 }
 0x2d5   :  { %7097 = vmatpush1.bf16.msra.mxu0 %v10675_v26  ;;  %7425 = vmatpush1.bf16.msra.mxu1 %v10677_v27  ;;  %v10725_v26 = vcombine.low %v261_v8, %v265_v9  ;;  %v10732_v27 = vcombine.high %v268_v14, %v272_v17  ;;  %v313_v8 = vld [vmem:[#allocation2 + $0x3b8] sm:$0xff]  ;;  %v320_v14 = vld [vmem:[#allocation2 + $0x3f0] sm:$0xff] }
 0x2d6   :  { %7098 = vmatprep.subr.bf16.mxu0 %v10684_v28  ;;  %7426 = vmatprep.subr.bf16.mxu1 %v10686_v29  ;;  %v10734_v28 = vcombine.high %v269_v18, %v273_v21  ;;  %v276_v29 = vld [vmem:[#allocation2 + $0x290] sm:$0xff]  ;;  %v317_v17 = vld [vmem:[#allocation2 + $0x3d8] sm:$0xff] }
 0x2d7   :  { %v10739_v42 = vcombine.low %v276_v29, %v280_v30 }
 0x2d9   :  { %7099 = vmatpush1.bf16.msra.mxu0 %v10683_v15  ;;  %7427 = vmatpush1.bf16.msra.mxu1 %v10685_v35  ;;  %v10733_v15 = vcombine.low %v269_v18, %v273_v21  ;;  %v10740_v35 = vcombine.high %v276_v29, %v280_v30  ;;  %v321_v18 = vld [vmem:[#allocation2 + $0x3f8] sm:$0xff]  ;;  %v328_v29 = vld [vmem:[#allocation2 + $0x430] sm:$0xff] }
 0x2da   :  { %7100 = vmatprep.subr.bf16.mxu0 %v10692_v36  ;;  %7428 = vmatprep.subr.bf16.mxu1 %v10694_v57  ;;  %v10742_v36 = vcombine.high %v277_v31, %v281_v32  ;;  %v284_v57 = vld [vmem:[#allocation2 + $0x2d0] sm:$0xff]  ;;  %v325_v30 = vld [vmem:[#allocation2 + $0x418] sm:$0xff] }
 0x2db   :  { %v10747_v52 = vcombine.low %v284_v57, %v288_v37 }
 0x2dd   :  { %7101 = vmatpush1.bf16.msra.mxu0 %v10691_v43  ;;  %7429 = vmatpush1.bf16.msra.mxu1 %v10693_v44  ;;  %v10741_v43 = vcombine.low %v277_v31, %v281_v32  ;;  %v10748_v44 = vcombine.high %v284_v57, %v288_v37  ;;  %v329_v31 = vld [vmem:[#allocation2 + $0x438] sm:$0xff]  ;;  %v336_v57 = vld [vmem:[#allocation2 + $0x470] sm:$0xff] }
 0x2de   :  { %7102 = vmatprep.subr.bf16.mxu0 %v10700_v45  ;;  %7430 = vmatprep.subr.bf16.mxu1 %v10702_v47  ;;  %v10750_v45 = vcombine.high %v285_v40, %v289_v41  ;;  %v292_v47 = vld [vmem:[#allocation2 + $0x310] sm:$0xff]  ;;  %v333_v37 = vld [vmem:[#allocation2 + $0x458] sm:$0xff] }
 0x2df   :  { %v10755_v1 = vcombine.low %v292_v47, %v296_v24 }
 0x2e1   :  { %7103 = vmatpush1.bf16.msra.mxu0 %v10699_v54  ;;  %7431 = vmatpush1.bf16.msra.mxu1 %v10701_v56  ;;  %v10749_v54 = vcombine.low %v285_v40, %v289_v41  ;;  %v10756_v56 = vcombine.high %v292_v47, %v296_v24  ;;  %v337_v40 = vld [vmem:[#allocation2 + $0x478] sm:$0xff]  ;;  %v344_v47 = vld [vmem:[#allocation2 + $0x4b0] sm:$0xff] }
 0x2e2   :  { %7104 = vmatprep.subr.bf16.mxu0 %v10708_v58  ;;  %7432 = vmatprep.subr.bf16.mxu1 %v10710_v60  ;;  %v10758_v58 = vcombine.high %v293_v50, %v297_v51  ;;  %v300_v60 = vld [vmem:[#allocation2 + $0x350] sm:$0xff]  ;;  %v341_v24 = vld [vmem:[#allocation2 + $0x498] sm:$0xff] }
 0x2e3   :  { %v10763_v9 = vcombine.low %v300_v60, %v304_v61 }
 0x2e5   :  { %7105 = vmatpush1.bf16.msra.mxu0 %v10707_v2  ;;  %7433 = vmatpush1.bf16.msra.mxu1 %v10709_v3  ;;  %v10757_v2 = vcombine.low %v293_v50, %v297_v51  ;;  %v10764_v3 = vcombine.high %v300_v60, %v304_v61  ;;  %v345_v50 = vld [vmem:[#allocation2 + $0x4b8] sm:$0xff]  ;;  %v352_v60 = vld [vmem:[#allocation2 + $0x4f0] sm:$0xff] }
 0x2e6   :  { %7106 = vmatprep.subr.bf16.mxu0 %v10716_v4  ;;  %7434 = vmatprep.subr.bf16.mxu1 %v10718_v5  ;;  %v10766_v4 = vcombine.high %v301_v62, %v305_v63  ;;  %v308_v5 = vld [vmem:[#allocation2 + $0x390] sm:$0xff]  ;;  %v349_v61 = vld [vmem:[#allocation2 + $0x4d8] sm:$0xff] }
 0x2e7   :  { %v10771_v21 = vcombine.low %v308_v5, %v312_v6 }
 0x2e9   :  { %7107 = vmatpush1.bf16.msra.mxu0 %v10715_v10  ;;  %7435 = vmatpush1.bf16.msra.mxu1 %v10717_v53  ;;  %v10765_v10 = vcombine.low %v301_v62, %v305_v63  ;;  %v10772_v53 = vcombine.high %v308_v5, %v312_v6  ;;  %v353_v62 = vld [vmem:[#allocation2 + $0x4f8] sm:$0xff] }
 0x2ea   :  { %7108 = vmatprep.subr.bf16.mxu0 %v10724_v11  ;;  %7436 = vmatprep.subr.bf16.mxu1 %v10726_v13  ;;  %v10774_v11 = vcombine.high %v309_v7, %v313_v8  ;;  %v316_v13 = vld [vmem:[#allocation2 + $0x3d0] sm:$0xff]  ;;  %v357_v5 = vld [vmem:[#allocation2 + $0x518] sm:$0xff] }
 0x2eb   :  { %v10779_v32 = vcombine.low %v316_v13, %v320_v14  ;;  %v361_v6 = vld [vmem:[#allocation2 + $0x538] sm:$0xff] }
 0x2ed   :  { %7109 = vmatpush1.bf16.msra.mxu0 %v10723_v22  ;;  %7437 = vmatpush1.bf16.msra.mxu1 %v10725_v26  ;;  %v10773_v22 = vcombine.low %v309_v7, %v313_v8  ;;  %v10780_v26 = vcombine.high %v316_v13, %v320_v14  ;;  %v10813_v8 = vcombine.low %v349_v61, %v353_v62  ;;  %v369_v13 = vld [vmem:[#allocation2 + $0x578] sm:$0xff] }
 0x2ee   :  { %7110 = vmatprep.subr.bf16.mxu0 %v10732_v27  ;;  %7438 = vmatprep.subr.bf16.mxu1 %v10734_v28  ;;  %v10782_v27 = vcombine.high %v317_v17, %v321_v18  ;;  %v324_v28 = vld [vmem:[#allocation2 + $0x410] sm:$0xff] }
 0x2ef   :  { %v10787_v41 = vcombine.low %v324_v28, %v328_v29 }
 0x2f1   :  { %7111 = vmatpush1.bf16.msra.mxu0 %v10731_v33  ;;  %7439 = vmatpush1.bf16.msra.mxu1 %v10733_v15  ;;  %v10781_v33 = vcombine.low %v317_v17, %v321_v18  ;;  %v10788_v15 = vcombine.high %v324_v28, %v328_v29  ;;  %v10821_v17 = vcombine.low %v357_v5, %v361_v6  ;;  %v377_v28 = vld [vmem:[#allocation2 + $0x5b8] sm:$0xff] }
 0x2f2   :  { %7112 = vmatprep.subr.bf16.mxu0 %v10740_v35  ;;  %7440 = vmatprep.subr.bf16.mxu1 %v10742_v36  ;;  %v10790_v35 = vcombine.high %v325_v30, %v329_v31  ;;  %v332_v36 = vld [vmem:[#allocation2 + $0x450] sm:$0xff] }
 0x2f3   :  { %v10795_v51 = vcombine.low %v332_v36, %v336_v57 }
 0x2f5   :  { %7113 = vmatpush1.bf16.msra.mxu0 %v10739_v42  ;;  %7441 = vmatpush1.bf16.msra.mxu1 %v10741_v43  ;;  %v10789_v42 = vcombine.low %v325_v30, %v329_v31  ;;  %v10796_v43 = vcombine.high %v332_v36, %v336_v57  ;;  %v385_v36 = vld [vmem:[#allocation2 + $0x5f8] sm:$0xff] }
 0x2f6   :  { %7114 = vmatprep.subr.bf16.mxu0 %v10748_v44  ;;  %7442 = vmatprep.subr.bf16.mxu1 %v10750_v45  ;;  %v10798_v44 = vcombine.high %v333_v37, %v337_v40  ;;  %v340_v45 = vld [vmem:[#allocation2 + $0x490] sm:$0xff] }
 0x2f7   :  { %v10803_v63 = vcombine.low %v340_v45, %v344_v47 }
 0x2f9   :  { %7115 = vmatpush1.bf16.msra.mxu0 %v10747_v52  ;;  %7443 = vmatpush1.bf16.msra.mxu1 %v10749_v54  ;;  %v10797_v52 = vcombine.low %v333_v37, %v337_v40  ;;  %v10804_v54 = vcombine.high %v340_v45, %v344_v47  ;;  %v393_v45 = vld [vmem:[#allocation2 + $0x638] sm:$0xff] }
 0x2fa   :  { %7116 = vmatprep.subr.bf16.mxu0 %v10756_v56  ;;  %7444 = vmatprep.subr.bf16.mxu1 %v10758_v58  ;;  %v10806_v56 = vcombine.high %v341_v24, %v345_v50  ;;  %v348_v58 = vld [vmem:[#allocation2 + $0x4d0] sm:$0xff] }
 0x2fb   :  { %v10811_v7 = vcombine.low %v348_v58, %v352_v60 }
 0x2fd   :  { %7117 = vmatpush1.bf16.msra.mxu0 %v10755_v1  ;;  %7445 = vmatpush1.bf16.msra.mxu1 %v10757_v2  ;;  %v10812_v1 = vcombine.high %v348_v58, %v352_v60  ;;  %v10814_v2 = vcombine.high %v349_v61, %v353_v62  ;;  %v401_v58 = vld [vmem:[#allocation2 + $0x678] sm:$0xff] }
 0x2fe   :  { %7118 = vmatprep.subr.bf16.mxu0 %v10764_v3  ;;  %7446 = vmatprep.subr.bf16.mxu1 %v10766_v4  ;;  %v356_v3 = vld [vmem:[#allocation2 + $0x510] sm:$0xff] }
 0x2ff   :  { %v360_v4 = vld [vmem:[#allocation2 + $0x530] sm:$0xff] }
 0x300   :  { %v10819_v14 = vcombine.low %v356_v3, %v360_v4 }
 0x301   :  { %7119 = vmatpush1.bf16.msra.mxu0 %v10763_v9  ;;  %7447 = vmatpush1.bf16.msra.mxu1 %v10765_v10  ;;  %v10820_v9 = vcombine.high %v356_v3, %v360_v4  ;;  %v364_v10 = vld [vmem:[#allocation2 + $0x550] sm:$0xff]  ;;  %v409_v3 = vld [vmem:[#allocation2 + $0x6b8] sm:$0xff] }
 0x302   :  { %7120 = vmatprep.subr.bf16.mxu0 %v10772_v53  ;;  %7448 = vmatprep.subr.bf16.mxu1 %v10774_v11  ;;  %v368_v53 = vld [vmem:[#allocation2 + $0x570] sm:$0xff]  ;;  %v365_v11 = vld [vmem:[#allocation2 + $0x558] sm:$0xff] }
 0x303   :  { %v10828_v18 = vcombine.high %v364_v10, %v368_v53  ;;  %v10827_v29 = vcombine.low %v364_v10, %v368_v53  ;;  %v10829_v30 = vcombine.low %v365_v11, %v369_v13  ;;  %v417_v10 = vld [vmem:[#allocation2 + $0x6f8] sm:$0xff] }
 0x305   :  { %7121 = vmatpush1.bf16.msra.mxu0 %v10771_v21  ;;  %7449 = vmatpush1.bf16.msra.mxu1 %v10773_v22  ;;  %v10830_v21 = vcombine.high %v365_v11, %v369_v13  ;;  %v372_v22 = vld [vmem:[#allocation2 + $0x590] sm:$0xff] }
 0x306   :  { %7122 = vmatprep.subr.bf16.mxu0 %v10780_v26  ;;  %7450 = vmatprep.subr.bf16.mxu1 %v10782_v27  ;;  %v376_v26 = vld [vmem:[#allocation2 + $0x5b0] sm:$0xff]  ;;  %v373_v27 = vld [vmem:[#allocation2 + $0x598] sm:$0xff] }
 0x307   :  { %v10836_v31 = vcombine.high %v372_v22, %v376_v26  ;;  %v10835_v57 = vcombine.low %v372_v22, %v376_v26  ;;  %v10837_v37 = vcombine.low %v373_v27, %v377_v28  ;;  %v425_v22 = vld [vmem:[#allocation2 + $0x738] sm:$0xff] }
 0x309   :  { %7123 = vmatpush1.bf16.msra.mxu0 %v10779_v32  ;;  %7451 = vmatpush1.bf16.msra.mxu1 %v10781_v33  ;;  %v10838_v32 = vcombine.high %v373_v27, %v377_v28  ;;  %v380_v33 = vld [vmem:[#allocation2 + $0x5d0] sm:$0xff] }
 0x30a   :  { %7133 = vmatprep.subr.bf16.mxu0 %v10788_v15  ;;  %7461 = vmatprep.subr.bf16.mxu1 %v10790_v35  ;;  %v384_v15 = vld [vmem:[#allocation2 + $0x5f0] sm:$0xff]  ;;  %v381_v35 = vld [vmem:[#allocation2 + $0x5d8] sm:$0xff] }
 0x30b   :  { %v10844_v40 = vcombine.high %v380_v33, %v384_v15  ;;  %v10843_v47 = vcombine.low %v380_v33, %v384_v15  ;;  %v433_v33 = vld [vmem:[#allocation2 + $0x778] sm:$0xff] }
 0x30c   :  { %7125 = vmatmul.mubr.bf16.vlgmr.msra.gmra.mrb[4].mxu0 %v13342_v12  ;;  %7453 = vmatmul.mubr.bf16.vlgmr.msra.gmra.mrb[4].mxu1 %v13342_v12  ;;  %v10805_v12 = vcombine.low %v341_v24, %v345_v50  ;;  %v10845_v24 = vcombine.low %v381_v35, %v385_v36 }
 0x30d   :  { %7134 = vmatpush1.bf16.msra.mxu0 %v10787_v41  ;;  %7462 = vmatpush1.bf16.msra.mxu1 %v10789_v42  ;;  %v10846_v41 = vcombine.high %v381_v35, %v385_v36  ;;  %v388_v42 = vld [vmem:[#allocation2 + $0x610] sm:$0xff] }
 0x30e   :  { %7135 = vmatprep.subr.bf16.mxu0 %v10796_v43  ;;  %7463 = vmatprep.subr.bf16.mxu1 %v10798_v44  ;;  %v392_v43 = vld [vmem:[#allocation2 + $0x630] sm:$0xff]  ;;  %v389_v44 = vld [vmem:[#allocation2 + $0x618] sm:$0xff] }
 0x30f   :  { %7165 = vmatprep.mubr.bf16.mxu0 %v13351_v23  ;;  %7493 = vmatprep.mubr.bf16.mxu1 %v13351_v23  ;;  %v10822_v23 = vcombine.high %v357_v5, %v361_v6  ;;  %v10852_v50 = vcombine.high %v388_v42, %v392_v43  ;;  %v10851_v60 = vcombine.low %v388_v42, %v392_v43  ;;  %v441_v42 = vld [vmem:[#allocation2 + $0x7b8] sm:$0xff] }
 0x310   :  { %v10853_v61 = vcombine.low %v389_v44, %v393_v45 }
 0x311   :  { %7136 = vmatpush1.bf16.msra.mxu0 %v10795_v51  ;;  %7464 = vmatpush1.bf16.msra.mxu1 %v10797_v52  ;;  %v10854_v51 = vcombine.high %v389_v44, %v393_v45  ;;  %v396_v52 = vld [vmem:[#allocation2 + $0x650] sm:$0xff] }
 0x312   :  { %7137 = vmatprep.subr.bf16.mxu0 %v10804_v54  ;;  %7465 = vmatprep.subr.bf16.mxu1 %v10806_v56  ;;  %v400_v54 = vld [vmem:[#allocation2 + $0x670] sm:$0xff]  ;;  %v397_v56 = vld [vmem:[#allocation2 + $0x658] sm:$0xff] }
 0x313   :  { %v10860_v62 = vcombine.high %v396_v52, %v400_v54  ;;  %v10859_v4 = vcombine.low %v396_v52, %v400_v54  ;;  %v10861_v5 = vcombine.low %v397_v56, %v401_v58  ;;  %v449_v52 = vld [vmem:[#allocation2 + $0x7f8] sm:$0xff] }
 0x315   :  { %7138 = vmatpush1.bf16.msra.mxu0 %v10803_v63  ;;  %7466 = vmatpush1.bf16.msra.mxu1 %v10805_v12  ;;  %v10862_v63 = vcombine.high %v397_v56, %v401_v58  ;;  %v404_v12 = vld [vmem:[#allocation2 + $0x690] sm:$0xff] }
 0x316   :  { %7139 = vmatprep.subr.bf16.mxu0 %v10812_v1  ;;  %7467 = vmatprep.subr.bf16.mxu1 %v10814_v2  ;;  %v408_v1 = vld [vmem:[#allocation2 + $0x6b0] sm:$0xff]  ;;  %v405_v2 = vld [vmem:[#allocation2 + $0x698] sm:$0xff] }
 0x317   :  { %v10868_v6 = vcombine.high %v404_v12, %v408_v1  ;;  %v10867_v53 = vcombine.low %v404_v12, %v408_v1  ;;  %v10869_v11 = vcombine.low %v405_v2, %v409_v3  ;;  %v457_v12 = vld [vmem:[#allocation2 + $0x838] sm:$0xff] }
 0x319   :  { %7140 = vmatpush1.bf16.msra.mxu0 %v10811_v7  ;;  %7468 = vmatpush1.bf16.msra.mxu1 %v10813_v8  ;;  %v10870_v7 = vcombine.high %v405_v2, %v409_v3  ;;  %v412_v8 = vld [vmem:[#allocation2 + $0x6d0] sm:$0xff] }
 0x31a   :  { %7141 = vmatprep.subr.bf16.mxu0 %v10820_v9  ;;  %7469 = vmatprep.subr.bf16.mxu1 %v10822_v23  ;;  %v416_v9 = vld [vmem:[#allocation2 + $0x6f0] sm:$0xff]  ;;  %v413_v23 = vld [vmem:[#allocation2 + $0x6d8] sm:$0xff] }
 0x31b   :  { %v10876_v13 = vcombine.high %v412_v8, %v416_v9  ;;  %v10875_v26 = vcombine.low %v412_v8, %v416_v9  ;;  %v10877_v27 = vcombine.low %v413_v23, %v417_v10  ;;  %v465_v8 = vld [vmem:[#allocation2 + $0x878] sm:$0xff] }
 0x31d   :  { %7142 = vmatpush1.bf16.msra.mxu0 %v10819_v14  ;;  %7470 = vmatpush1.bf16.msra.mxu1 %v10821_v17  ;;  %v10878_v14 = vcombine.high %v413_v23, %v417_v10  ;;  %v420_v17 = vld [vmem:[#allocation2 + $0x710] sm:$0xff] }
 0x31e   :  { %7143 = vmatprep.subr.bf16.mxu0 %v10828_v18  ;;  %7471 = vmatprep.subr.bf16.mxu1 %v10830_v21  ;;  %v424_v18 = vld [vmem:[#allocation2 + $0x730] sm:$0xff]  ;;  %v421_v21 = vld [vmem:[#allocation2 + $0x718] sm:$0xff] }
 0x31f   :  { %v10884_v28 = vcombine.high %v420_v17, %v424_v18  ;;  %v10883_v15 = vcombine.low %v420_v17, %v424_v18  ;;  %v10885_v35 = vcombine.low %v421_v21, %v425_v22  ;;  %v473_v17 = vld [vmem:[#allocation2 + $0x8b8] sm:$0xff] }
 0x321   :  { %7144 = vmatpush1.bf16.msra.mxu0 %v10827_v29  ;;  %7472 = vmatpush1.bf16.msra.mxu1 %v10829_v30  ;;  %v10886_v29 = vcombine.high %v421_v21, %v425_v22  ;;  %v428_v30 = vld [vmem:[#allocation2 + $0x750] sm:$0xff] }
 0x322   :  { %7145 = vmatprep.subr.bf16.mxu0 %v10836_v31  ;;  %7473 = vmatprep.subr.bf16.mxu1 %v10838_v32  ;;  %v432_v31 = vld [vmem:[#allocation2 + $0x770] sm:$0xff]  ;;  %v429_v32 = vld [vmem:[#allocation2 + $0x758] sm:$0xff] }
 0x323   :  { %v10892_v36 = vcombine.high %v428_v30, %v432_v31  ;;  %v10891_v43 = vcombine.low %v428_v30, %v432_v31  ;;  %v10893_v44 = vcombine.low %v429_v32, %v433_v33  ;;  %v481_v30 = vld [vmem:[#allocation2 + $0x8f8] sm:$0xff] }
 0x325   :  { %7146 = vmatpush1.bf16.msra.mxu0 %v10835_v57  ;;  %7474 = vmatpush1.bf16.msra.mxu1 %v10837_v37  ;;  %v10894_v57 = vcombine.high %v429_v32, %v433_v33  ;;  %v436_v37 = vld [vmem:[#allocation2 + $0x790] sm:$0xff] }
 0x326   :  { %7147 = vmatprep.subr.bf16.mxu0 %v10844_v40  ;;  %7475 = vmatprep.subr.bf16.mxu1 %v10846_v41  ;;  %v440_v40 = vld [vmem:[#allocation2 + $0x7b0] sm:$0xff]  ;;  %v437_v41 = vld [vmem:[#allocation2 + $0x798] sm:$0xff] }
 0x327   :  { %v10900_v45 = vcombine.high %v436_v37, %v440_v40  ;;  %v10899_v54 = vcombine.low %v436_v37, %v440_v40  ;;  %v10901_v56 = vcombine.low %v437_v41, %v441_v42 }
 0x329   :  { %7148 = vmatpush1.bf16.msra.mxu0 %v10843_v47  ;;  %7476 = vmatpush1.bf16.msra.mxu1 %v10845_v24  ;;  %v10902_v47 = vcombine.high %v437_v41, %v441_v42  ;;  %v444_v24 = vld [vmem:[#allocation2 + $0x7d0] sm:$0xff] }
 0x32a   :  { %7149 = vmatprep.subr.bf16.mxu0 %v10852_v50  ;;  %7477 = vmatprep.subr.bf16.mxu1 %v10854_v51  ;;  %v448_v50 = vld [vmem:[#allocation2 + $0x7f0] sm:$0xff]  ;;  %v445_v51 = vld [vmem:[#allocation2 + $0x7d8] sm:$0xff] }
 0x32b   :  { %v10908_v58 = vcombine.high %v444_v24, %v448_v50  ;;  %v10907_v1 = vcombine.low %v444_v24, %v448_v50  ;;  %v10909_v2 = vcombine.low %v445_v51, %v449_v52  ;;  %v492_v42 = vld [vmem:[#allocation2 + $0x950] sm:$0xff] }
 0x32d   :  { %7150 = vmatpush1.bf16.msra.mxu0 %v10851_v60  ;;  %7478 = vmatpush1.bf16.msra.mxu1 %v10853_v61  ;;  %v10910_v60 = vcombine.high %v445_v51, %v449_v52  ;;  %v452_v61 = vld [vmem:[#allocation2 + $0x810] sm:$0xff] }
 0x32e   :  { %7151 = vmatprep.subr.bf16.mxu0 %v10860_v62  ;;  %7479 = vmatprep.subr.bf16.mxu1 %v10862_v63  ;;  %v456_v62 = vld [vmem:[#allocation2 + $0x830] sm:$0xff]  ;;  %v453_v63 = vld [vmem:[#allocation2 + $0x818] sm:$0xff] }
 0x32f   :  { %v10916_v3 = vcombine.high %v452_v61, %v456_v62  ;;  %v10915_v9 = vcombine.low %v452_v61, %v456_v62  ;;  %v10917_v23 = vcombine.low %v453_v63, %v457_v12  ;;  %v500_v52 = vld [vmem:[#allocation2 + $0x990] sm:$0xff] }
 0x331   :  { %7152 = vmatpush1.bf16.msra.mxu0 %v10859_v4  ;;  %7480 = vmatpush1.bf16.msra.mxu1 %v10861_v5  ;;  %v10918_v4 = vcombine.high %v453_v63, %v457_v12  ;;  %v460_v5 = vld [vmem:[#allocation2 + $0x850] sm:$0xff] }
 0x332   :  { %7153 = vmatprep.subr.bf16.mxu0 %v10868_v6  ;;  %7481 = vmatprep.subr.bf16.mxu1 %v10870_v7  ;;  %v464_v6 = vld [vmem:[#allocation2 + $0x870] sm:$0xff]  ;;  %v461_v7 = vld [vmem:[#allocation2 + $0x858] sm:$0xff] }
 0x333   :  { %v10924_v10 = vcombine.high %v460_v5, %v464_v6  ;;  %v10923_v18 = vcombine.low %v460_v5, %v464_v6  ;;  %v10925_v21 = vcombine.low %v461_v7, %v465_v8  ;;  %v508_v12 = vld [vmem:[#allocation2 + $0x9d0] sm:$0xff] }
 0x335   :  { %7154 = vmatpush1.bf16.msra.mxu0 %v10867_v53  ;;  %7482 = vmatpush1.bf16.msra.mxu1 %v10869_v11  ;;  %v10926_v53 = vcombine.high %v461_v7, %v465_v8  ;;  %v468_v11 = vld [vmem:[#allocation2 + $0x890] sm:$0xff] }
 0x336   :  { %7155 = vmatprep.subr.bf16.mxu0 %v10876_v13  ;;  %7483 = vmatprep.subr.bf16.mxu1 %v10878_v14  ;;  %v472_v13 = vld [vmem:[#allocation2 + $0x8b0] sm:$0xff]  ;;  %v469_v14 = vld [vmem:[#allocation2 + $0x898] sm:$0xff] }
 0x337   :  { %v10932_v22 = vcombine.high %v468_v11, %v472_v13  ;;  %v10931_v31 = vcombine.low %v468_v11, %v472_v13  ;;  %v516_v8 = vld [vmem:[#allocation2 + $0xa10] sm:$0xff] }
 0x339   :  { %7156 = vmatpush1.bf16.msra.mxu0 %v10875_v26  ;;  %7484 = vmatpush1.bf16.msra.mxu1 %v10877_v27  ;;  %v10934_v26 = vcombine.high %v469_v14, %v473_v17  ;;  %v476_v27 = vld [vmem:[#allocation2 + $0x8d0] sm:$0xff] }
 0x33a   :  { %7157 = vmatprep.subr.bf16.mxu0 %v10884_v28  ;;  %7485 = vmatprep.subr.bf16.mxu1 %v10886_v29  ;;  %v480_v28 = vld [vmem:[#allocation2 + $0x8f0] sm:$0xff]  ;;  %v477_v29 = vld [vmem:[#allocation2 + $0x8d8] sm:$0xff] }
 0x33b   :  { %v10940_v32 = vcombine.high %v476_v27, %v480_v28  ;;  %v10942_v33 = vcombine.high %v477_v29, %v481_v30  ;;  %v10939_v37 = vcombine.low %v476_v27, %v480_v28  ;;  %v10941_v40 = vcombine.low %v477_v29, %v481_v30  ;;  %v532_v30 = vld [vmem:[#allocation2 + $0xa90] sm:$0xff] }
 0x33d   :  { %7158 = vmatpush1.bf16.msra.mxu0 %v10883_v15  ;;  %7486 = vmatpush1.bf16.msra.mxu1 %v10885_v35  ;;  %v484_v15 = vld [vmem:[#allocation2 + $0x910] sm:$0xff] }
 0x33e   :  { %7159 = vmatprep.subr.bf16.mxu0 %v10892_v36  ;;  %7487 = vmatprep.subr.bf16.mxu1 %v10894_v57  ;;  %v488_v35 = vld [vmem:[#allocation2 + $0x930] sm:$0xff]  ;;  %v485_v36 = vld [vmem:[#allocation2 + $0x918] sm:$0xff] }
 0x33f   :  { %v489_v57 = vld [vmem:[#allocation2 + $0x938] sm:$0xff]  ;;  %v10948_v41 = vcombine.high %v484_v15, %v488_v35 }
 0x340   :  { %v10949_v24 = vcombine.low %v485_v36, %v489_v57 }
 0x341   :  { %7160 = vmatpush1.bf16.msra.mxu0 %v10891_v43  ;;  %7488 = vmatpush1.bf16.msra.mxu1 %v10893_v44  ;;  %v496_v43 = vld [vmem:[#allocation2 + $0x970] sm:$0xff]  ;;  %v493_v44 = vld [vmem:[#allocation2 + $0x958] sm:$0xff] }
 0x342   :  { %7161 = vmatprep.subr.bf16.mxu0 %v10900_v45  ;;  %7489 = vmatprep.subr.bf16.mxu1 %v10902_v47  ;;  %v497_v45 = vld [vmem:[#allocation2 + $0x978] sm:$0xff]  ;;  %v10947_v47 = vcombine.low %v484_v15, %v488_v35  ;;  %v10956_v50 = vcombine.high %v492_v42, %v496_v43 }
 0x343   :  { %v10958_v51 = vcombine.high %v493_v44, %v497_v45  ;;  %v10957_v61 = vcombine.low %v493_v44, %v497_v45  ;;  %v548_v45 = vld [vmem:[#allocation2 + $0xb10] sm:$0xff] }
 0x345   :  { %7162 = vmatpush1.bf16.msra.mxu0 %v10899_v54  ;;  %7490 = vmatpush1.bf16.msra.mxu1 %v10901_v56  ;;  %v504_v54 = vld [vmem:[#allocation2 + $0x9b0] sm:$0xff]  ;;  %v501_v56 = vld [vmem:[#allocation2 + $0x998] sm:$0xff] }
 0x346   :  { %7163 = vmatprep.subr.bf16.mxu0 %v10908_v58  ;;  %7491 = vmatprep.subr.bf16.mxu1 %v10910_v60  ;;  %v505_v58 = vld [vmem:[#allocation2 + $0x9b8] sm:$0xff]  ;;  %v10955_v60 = vcombine.low %v492_v42, %v496_v43  ;;  %v10964_v62 = vcombine.high %v500_v52, %v504_v54 }
 0x347   :  { %v10966_v63 = vcombine.high %v501_v56, %v505_v58  ;;  %v10965_v5 = vcombine.low %v501_v56, %v505_v58  ;;  %v556_v58 = vld [vmem:[#allocation2 + $0xb50] sm:$0xff] }
 0x349   :  { %7164 = vmatpush1.bf16.msra.mxu0 %v10907_v1  ;;  %7492 = vmatpush1.bf16.msra.mxu1 %v10909_v2  ;;  %v512_v1 = vld [vmem:[#allocation2 + $0x9f0] sm:$0xff]  ;;  %v509_v2 = vld [vmem:[#allocation2 + $0x9d8] sm:$0xff] }
 0x34a   :  { %7174 = vmatprep.subr.bf16.mxu0 %v10916_v3  ;;  %7502 = vmatprep.subr.bf16.mxu1 %v10918_v4  ;;  %v513_v3 = vld [vmem:[#allocation2 + $0x9f8] sm:$0xff]  ;;  %v10963_v4 = vcombine.low %v500_v52, %v504_v54  ;;  %v10972_v6 = vcombine.high %v508_v12, %v512_v1 }
 0x34b   :  { %v10974_v7 = vcombine.high %v509_v2, %v513_v3  ;;  %v10973_v11 = vcombine.low %v509_v2, %v513_v3  ;;  %v564_v3 = vld [vmem:[#allocation2 + $0xb90] sm:$0xff] }
 0x34c   :  { %7166 = vmatmul.mubr.bf16.vlgmr.msra.gmra.mrb[4].mxu0 %v13364_v25  ;;  %7494 = vmatmul.mubr.bf16.vlgmr.msra.gmra.mrb[4].mxu1 %v13364_v25  ;;  %v10933_v25 = vcombine.low %v469_v14, %v473_v17  ;;  %v524_v17 = vld [vmem:[#allocation2 + $0xa50] sm:$0xff] }
 0x34d   :  { %7175 = vmatpush1.bf16.msra.mxu0 %v10915_v9  ;;  %7503 = vmatpush1.bf16.msra.mxu1 %v10917_v23  ;;  %v520_v9 = vld [vmem:[#allocation2 + $0xa30] sm:$0xff]  ;;  %v517_v23 = vld [vmem:[#allocation2 + $0xa18] sm:$0xff] }
 0x34e   :  { %7176 = vmatprep.subr.bf16.mxu0 %v10924_v10  ;;  %7504 = vmatprep.subr.bf16.mxu1 %v10926_v53  ;;  %v521_v10 = vld [vmem:[#allocation2 + $0xa38] sm:$0xff]  ;;  %v10971_v53 = vcombine.low %v508_v12, %v512_v1  ;;  %v10980_v13 = vcombine.high %v516_v8, %v520_v9 }
 0x34f   :  { %7206 = vmatprep.mubr.bf16.mxu0 %v13368_v34  ;;  %7534 = vmatprep.mubr.bf16.mxu1 %v13368_v34  ;;  %v10950_v34 = vcombine.high %v485_v36, %v489_v57  ;;  %v10982_v14 = vcombine.high %v517_v23, %v521_v10  ;;  %v10981_v27 = vcombine.low %v517_v23, %v521_v10  ;;  %v540_v57 = vld [vmem:[#allocation2 + $0xad0] sm:$0xff] }
 0x350   :  { %v572_v10 = vld [vmem:[#allocation2 + $0xbd0] sm:$0xff] }
 0x351   :  { %7177 = vmatpush1.bf16.msra.mxu0 %v10923_v18  ;;  %7505 = vmatpush1.bf16.msra.mxu1 %v10925_v21  ;;  %v528_v18 = vld [vmem:[#allocation2 + $0xa70] sm:$0xff]  ;;  %v525_v21 = vld [vmem:[#allocation2 + $0xa58] sm:$0xff] }
 0x352   :  { %7178 = vmatprep.subr.bf16.mxu0 %v10932_v22  ;;  %7506 = vmatprep.subr.bf16.mxu1 %v10934_v26  ;;  %v529_v22 = vld [vmem:[#allocation2 + $0xa78] sm:$0xff]  ;;  %v10979_v26 = vcombine.low %v516_v8, %v520_v9  ;;  %v10988_v28 = vcombine.high %v524_v17, %v528_v18 }
 0x353   :  { %v10990_v29 = vcombine.high %v525_v21, %v529_v22  ;;  %v10989_v15 = vcombine.low %v525_v21, %v529_v22  ;;  %v580_v22 = vld [vmem:[#allocation2 + $0xc10] sm:$0xff] }
 0x355   :  { %7179 = vmatpush1.bf16.msra.mxu0 %v10931_v31  ;;  %7507 = vmatpush1.bf16.msra.mxu1 %v10933_v25  ;;  %v536_v31 = vld [vmem:[#allocation2 + $0xab0] sm:$0xff]  ;;  %v533_v25 = vld [vmem:[#allocation2 + $0xa98] sm:$0xff] }
 0x356   :  { %7180 = vmatprep.subr.bf16.mxu0 %v10940_v32  ;;  %7508 = vmatprep.subr.bf16.mxu1 %v10942_v33  ;;  %v537_v32 = vld [vmem:[#allocation2 + $0xab8] sm:$0xff]  ;;  %v10987_v33 = vcombine.low %v524_v17, %v528_v18  ;;  %v10996_v35 = vcombine.high %v532_v30, %v536_v31 }
 0x357   :  { %v10998_v36 = vcombine.high %v533_v25, %v537_v32  ;;  %v10997_v42 = vcombine.low %v533_v25, %v537_v32  ;;  %v588_v32 = vld [vmem:[#allocation2 + $0xc50] sm:$0xff] }
 0x359   :  { %7181 = vmatpush1.bf16.msra.mxu0 %v10939_v37  ;;  %7509 = vmatpush1.bf16.msra.mxu1 %v10941_v40  ;;  %v544_v37 = vld [vmem:[#allocation2 + $0xaf0] sm:$0xff]  ;;  %v541_v40 = vld [vmem:[#allocation2 + $0xad8] sm:$0xff] }
 0x35a   :  { %7182 = vmatprep.subr.bf16.mxu0 %v10948_v41  ;;  %7510 = vmatprep.subr.bf16.mxu1 %v10950_v34  ;;  %v545_v41 = vld [vmem:[#allocation2 + $0xaf8] sm:$0xff]  ;;  %v10995_v34 = vcombine.low %v532_v30, %v536_v31  ;;  %v11004_v43 = vcombine.high %v540_v57, %v544_v37 }
 0x35b   :  { %v11006_v44 = vcombine.high %v541_v40, %v545_v41  ;;  %v11005_v52 = vcombine.low %v541_v40, %v545_v41  ;;  %v596_v41 = vld [vmem:[#allocation2 + $0xc90] sm:$0xff] }
 0x35d   :  { %7183 = vmatpush1.bf16.msra.mxu0 %v10947_v47  ;;  %7511 = vmatpush1.bf16.msra.mxu1 %v10949_v24  ;;  %v552_v47 = vld [vmem:[#allocation2 + $0xb30] sm:$0xff]  ;;  %v549_v24 = vld [vmem:[#allocation2 + $0xb18] sm:$0xff] }
 0x35e   :  { %7184 = vmatprep.subr.bf16.mxu0 %v10956_v50  ;;  %7512 = vmatprep.subr.bf16.mxu1 %v10958_v51  ;;  %v553_v50 = vld [vmem:[#allocation2 + $0xb38] sm:$0xff]  ;;  %v11003_v51 = vcombine.low %v540_v57, %v544_v37  ;;  %v11012_v54 = vcombine.high %v548_v45, %v552_v47 }
 0x35f   :  { %v11014_v56 = vcombine.high %v549_v24, %v553_v50  ;;  %v11013_v12 = vcombine.low %v549_v24, %v553_v50  ;;  %v604_v50 = vld [vmem:[#allocation2 + $0xcd0] sm:$0xff] }
 0x361   :  { %7185 = vmatpush1.bf16.msra.mxu0 %v10955_v60  ;;  %7513 = vmatpush1.bf16.msra.mxu1 %v10957_v61  ;;  %v560_v60 = vld [vmem:[#allocation2 + $0xb70] sm:$0xff]  ;;  %v557_v61 = vld [vmem:[#allocation2 + $0xb58] sm:$0xff] }
 0x362   :  { %7186 = vmatprep.subr.bf16.mxu0 %v10964_v62  ;;  %7514 = vmatprep.subr.bf16.mxu1 %v10966_v63  ;;  %v561_v62 = vld [vmem:[#allocation2 + $0xb78] sm:$0xff]  ;;  %v11011_v63 = vcombine.low %v548_v45, %v552_v47  ;;  %v11020_v1 = vcombine.high %v556_v58, %v560_v60 }
 0x363   :  { %v11022_v2 = vcombine.high %v557_v61, %v561_v62  ;;  %v11021_v8 = vcombine.low %v557_v61, %v561_v62  ;;  %v612_v61 = vld [vmem:[#allocation2 + $0xd10] sm:$0xff] }
 0x364   :  { %v616_v62 = vld [vmem:[#allocation2 + $0xd30] sm:$0xff] }
 0x365   :  { %7187 = vmatpush1.bf16.msra.mxu0 %v10963_v4  ;;  %7515 = vmatpush1.bf16.msra.mxu1 %v10965_v5  ;;  %v568_v4 = vld [vmem:[#allocation2 + $0xbb0] sm:$0xff]  ;;  %v565_v5 = vld [vmem:[#allocation2 + $0xb98] sm:$0xff] }
 0x366   :  { %7188 = vmatprep.subr.bf16.mxu0 %v10972_v6  ;;  %7516 = vmatprep.subr.bf16.mxu1 %v10974_v7  ;;  %v569_v6 = vld [vmem:[#allocation2 + $0xbb8] sm:$0xff]  ;;  %v11019_v7 = vcombine.low %v556_v58, %v560_v60  ;;  %v11028_v9 = vcombine.high %v564_v3, %v568_v4 }
 0x367   :  { %v11030_v23 = vcombine.high %v565_v5, %v569_v6  ;;  %v11029_v17 = vcombine.low %v565_v5, %v569_v6  ;;  %v624_v5 = vld [vmem:[#allocation2 + $0xd70] sm:$0xff]  ;;  %v621_v6 = vld [vmem:[#allocation2 + $0xd58] sm:$0xff] }
 0x369   :  { %7189 = vmatpush1.bf16.msra.mxu0 %v10971_v53  ;;  %7517 = vmatpush1.bf16.msra.mxu1 %v10973_v11  ;;  %v576_v53 = vld [vmem:[#allocation2 + $0xbf0] sm:$0xff]  ;;  %v573_v11 = vld [vmem:[#allocation2 + $0xbd8] sm:$0xff] }
 0x36a   :  { %7190 = vmatprep.subr.bf16.mxu0 %v10980_v13  ;;  %7518 = vmatprep.subr.bf16.mxu1 %v10982_v14  ;;  %v577_v13 = vld [vmem:[#allocation2 + $0xbf8] sm:$0xff]  ;;  %v11027_v14 = vcombine.low %v564_v3, %v568_v4  ;;  %v11036_v18 = vcombine.high %v572_v10, %v576_v53  ;;  %v11076_v3 = vcombine.high %v612_v61, %v616_v62  ;;  %v620_v4 = vld [vmem:[#allocation2 + $0xd50] sm:$0xff] }
 0x36b   :  { %v11038_v21 = vcombine.high %v573_v11, %v577_v13  ;;  %v11037_v30 = vcombine.low %v573_v11, %v577_v13  ;;  %v632_v11 = vld [vmem:[#allocation2 + $0xdb0] sm:$0xff]  ;;  %v629_v13 = vld [vmem:[#allocation2 + $0xd98] sm:$0xff] }
 0x36d   :  { %7191 = vmatpush1.bf16.msra.mxu0 %v10979_v26  ;;  %7519 = vmatpush1.bf16.msra.mxu1 %v10981_v27  ;;  %v584_v26 = vld [vmem:[#allocation2 + $0xc30] sm:$0xff]  ;;  %v581_v27 = vld [vmem:[#allocation2 + $0xc18] sm:$0xff] }
 0x36e   :  { %7192 = vmatprep.subr.bf16.mxu0 %v10988_v28  ;;  %7520 = vmatprep.subr.bf16.mxu1 %v10990_v29  ;;  %v585_v28 = vld [vmem:[#allocation2 + $0xc38] sm:$0xff]  ;;  %v11035_v29 = vcombine.low %v572_v10, %v576_v53  ;;  %v11044_v31 = vcombine.high %v580_v22, %v584_v26  ;;  %v628_v53 = vld [vmem:[#allocation2 + $0xd90] sm:$0xff] }
 0x36f   :  { %v11046_v25 = vcombine.high %v581_v27, %v585_v28  ;;  %v11045_v57 = vcombine.low %v581_v27, %v585_v28  ;;  %v636_v27 = vld [vmem:[#allocation2 + $0xdd0] sm:$0xff] }
 0x370   :  { %v640_v28 = vld [vmem:[#allocation2 + $0xdf0] sm:$0xff] }
 0x371   :  { %7193 = vmatpush1.bf16.msra.mxu0 %v10987_v33  ;;  %7521 = vmatpush1.bf16.msra.mxu1 %v10989_v15  ;;  %v592_v33 = vld [vmem:[#allocation2 + $0xc70] sm:$0xff]  ;;  %v589_v15 = vld [vmem:[#allocation2 + $0xc58] sm:$0xff] }
 0x372   :  { %7194 = vmatprep.subr.bf16.mxu0 %v10996_v35  ;;  %7522 = vmatprep.subr.bf16.mxu1 %v10998_v36  ;;  %v593_v35 = vld [vmem:[#allocation2 + $0xc78] sm:$0xff]  ;;  %v11043_v36 = vcombine.low %v580_v22, %v584_v26  ;;  %v11052_v37 = vcombine.high %v588_v32, %v592_v33 }
 0x373   :  { %v11054_v40 = vcombine.high %v589_v15, %v593_v35  ;;  %v11053_v45 = vcombine.low %v589_v15, %v593_v35  ;;  %v11091_v15 = vcombine.low %v628_v53, %v632_v11 }
 0x375   :  { %7195 = vmatpush1.bf16.msra.mxu0 %v10995_v34  ;;  %7523 = vmatpush1.bf16.msra.mxu1 %v10997_v42  ;;  %v600_v34 = vld [vmem:[#allocation2 + $0xcb0] sm:$0xff]  ;;  %v597_v42 = vld [vmem:[#allocation2 + $0xc98] sm:$0xff] }
 0x376   :  { %7196 = vmatprep.subr.bf16.mxu0 %v11004_v43  ;;  %7524 = vmatprep.subr.bf16.mxu1 %v11006_v44  ;;  %v601_v43 = vld [vmem:[#allocation2 + $0xcb8] sm:$0xff]  ;;  %v11051_v44 = vcombine.low %v588_v32, %v592_v33  ;;  %v11060_v47 = vcombine.high %v596_v41, %v600_v34 }
 0x377   :  { %v11062_v24 = vcombine.high %v597_v42, %v601_v43 }
 0x379   :  { %7197 = vmatpush1.bf16.msra.mxu0 %v11003_v51  ;;  %7525 = vmatpush1.bf16.msra.mxu1 %v11005_v52  ;;  %v608_v51 = vld [vmem:[#allocation2 + $0xcf0] sm:$0xff]  ;;  %v605_v52 = vld [vmem:[#allocation2 + $0xcd8] sm:$0xff] }
 0x37a   :  { %7198 = vmatprep.subr.bf16.mxu0 %v11012_v54  ;;  %7526 = vmatprep.subr.bf16.mxu1 %v11014_v56  ;;  %v609_v54 = vld [vmem:[#allocation2 + $0xcf8] sm:$0xff]  ;;  %v11059_v56 = vcombine.low %v596_v41, %v600_v34  ;;  %v11068_v58 = vcombine.high %v604_v50, %v608_v51  ;;  %v644_v41 = vld [vmem:[#allocation2 + $0xe10] sm:$0xff] }
 0x37b   :  { %v11070_v60 = vcombine.high %v605_v52, %v609_v54  ;;  %v648_v34 = vld [vmem:[#allocation2 + $0xe30] sm:$0xff] }
 0x37d   :  { %7199 = vmatpush1.bf16.msra.mxu0 %v11011_v63  ;;  %7527 = vmatpush1.bf16.msra.mxu1 %v11013_v12  ;;  %v613_v63 = vld [vmem:[#allocation2 + $0xd18] sm:$0xff] }
 0x37e   :  { %7200 = vmatprep.subr.bf16.mxu0 %v11020_v1  ;;  %7528 = vmatprep.subr.bf16.mxu1 %v11022_v2  ;;  %v617_v12 = vld [vmem:[#allocation2 + $0xd38] sm:$0xff]  ;;  %v11067_v1 = vcombine.low %v604_v50, %v608_v51  ;;  %v11069_v2 = vcombine.low %v605_v52, %v609_v54  ;;  %v652_v51 = vld [vmem:[#allocation2 + $0xe50] sm:$0xff] }
 0x37f   :  { %v656_v52 = vld [vmem:[#allocation2 + $0xe70] sm:$0xff]  ;;  %v653_v54 = vld [vmem:[#allocation2 + $0xe58] sm:$0xff] }
 0x381   :  { %7201 = vmatpush1.bf16.msra.mxu0 %v11019_v7  ;;  %7529 = vmatpush1.bf16.msra.mxu1 %v11021_v8  ;;  %v625_v7 = vld [vmem:[#allocation2 + $0xd78] sm:$0xff]  ;;  %v11075_v8 = vcombine.low %v612_v61, %v616_v62  ;;  %v660_v62 = vld [vmem:[#allocation2 + $0xe90] sm:$0xff] }
 0x382   :  { %7202 = vmatprep.subr.bf16.mxu0 %v11028_v9  ;;  %7530 = vmatprep.subr.bf16.mxu1 %v11030_v23  ;;  %v11077_v9 = vcombine.low %v613_v63, %v617_v12  ;;  %v11084_v23 = vcombine.high %v620_v4, %v624_v5  ;;  %v11086_v10 = vcombine.high %v621_v6, %v625_v7 }
 0x385   :  { %7203 = vmatpush1.bf16.msra.mxu0 %v11027_v14  ;;  %7531 = vmatpush1.bf16.msra.mxu1 %v11029_v17  ;;  %v633_v14 = vld [vmem:[#allocation2 + $0xdb8] sm:$0xff]  ;;  %v11083_v17 = vcombine.low %v620_v4, %v624_v5  ;;  %v668_v5 = vld [vmem:[#allocation2 + $0xed0] sm:$0xff] }
 0x386   :  { %7204 = vmatprep.subr.bf16.mxu0 %v11036_v18  ;;  %7532 = vmatprep.subr.bf16.mxu1 %v11038_v21  ;;  %v11085_v18 = vcombine.low %v621_v6, %v625_v7  ;;  %v11092_v21 = vcombine.high %v628_v53, %v632_v11  ;;  %v11094_v26 = vcombine.high %v629_v13, %v633_v14  ;;  %v672_v6 = vld [vmem:[#allocation2 + $0xef0] sm:$0xff]  ;;  %v669_v7 = vld [vmem:[#allocation2 + $0xed8] sm:$0xff] }
 0x387   :  { %v676_v11 = vld [vmem:[#allocation2 + $0xf10] sm:$0xff] }
 0x389   :  { %7205 = vmatpush1.bf16.msra.mxu0 %v11035_v29  ;;  %7533 = vmatpush1.bf16.msra.mxu1 %v11037_v30 }
 0x38a   :  { %7215 = vmatprep.subr.bf16.mxu0 %v11044_v31  ;;  %7543 = vmatprep.subr.bf16.mxu1 %v11046_v25  ;;  %v637_v31 = vld [vmem:[#allocation2 + $0xdd8] sm:$0xff] }
 0x38b   :  { %v641_v25 = vld [vmem:[#allocation2 + $0xdf8] sm:$0xff] }
 0x38c   :  { %7207 = vmatmul.mubr.bf16.vlgmr.msra.gmra.mrb[4].mxu0 %v13381_v39  ;;  %7535 = vmatmul.mubr.bf16.vlgmr.msra.gmra.mrb[4].mxu1 %v13381_v39  ;;  %v11061_v39 = vcombine.low %v597_v42, %v601_v43  ;;  %v645_v43 = vld [vmem:[#allocation2 + $0xe18] sm:$0xff] }
 0x38d   :  { %7216 = vmatpush1.bf16.msra.mxu0 %v11043_v36  ;;  %7544 = vmatpush1.bf16.msra.mxu1 %v11045_v57  ;;  %v11093_v57 = vcombine.low %v629_v13, %v633_v14  ;;  %v680_v13 = vld [vmem:[#allocation2 + $0xf30] sm:$0xff]  ;;  %v677_v14 = vld [vmem:[#allocation2 + $0xf18] sm:$0xff] }
 0x38e   :  { %7217 = vmatprep.subr.bf16.mxu0 %v11052_v37  ;;  %7545 = vmatprep.subr.bf16.mxu1 %v11054_v40  ;;  %v11100_v37 = vcombine.high %v636_v27, %v640_v28  ;;  %v11102_v40 = vcombine.high %v637_v31, %v641_v25 }
 0x38f   :  { %7247 = vmatprep.mubr.bf16.mxu0 %v13385_v48  ;;  %7575 = vmatprep.mubr.bf16.mxu1 %v13385_v48  ;;  %v11078_v48 = vcombine.high %v613_v63, %v617_v12  ;;  %v664_v63 = vld [vmem:[#allocation2 + $0xeb0] sm:$0xff]  ;;  %v661_v12 = vld [vmem:[#allocation2 + $0xe98] sm:$0xff] }
 0x391   :  { %7218 = vmatpush1.bf16.msra.mxu0 %v11051_v44  ;;  %7546 = vmatpush1.bf16.msra.mxu1 %v11053_v45  ;;  %v649_v44 = vld [vmem:[#allocation2 + $0xe38] sm:$0xff]  ;;  %v11099_v45 = vcombine.low %v636_v27, %v640_v28  ;;  %v684_v28 = vld [vmem:[#allocation2 + $0xf50] sm:$0xff] }
 0x392   :  { %7219 = vmatprep.subr.bf16.mxu0 %v11060_v47  ;;  %7547 = vmatprep.subr.bf16.mxu1 %v11062_v24  ;;  %v11101_v47 = vcombine.low %v637_v31, %v641_v25  ;;  %v11108_v24 = vcombine.high %v644_v41, %v648_v34  ;;  %v11110_v50 = vcombine.high %v645_v43, %v649_v44  ;;  %v688_v31 = vld [vmem:[#allocation2 + $0xf70] sm:$0xff]  ;;  %v685_v25 = vld [vmem:[#allocation2 + $0xf58] sm:$0xff] }
 0x395   :  { %7220 = vmatpush1.bf16.msra.mxu0 %v11059_v56  ;;  %7548 = vmatpush1.bf16.msra.mxu1 %v11061_v39  ;;  %v657_v56 = vld [vmem:[#allocation2 + $0xe78] sm:$0xff]  ;;  %v11107_v39 = vcombine.low %v644_v41, %v648_v34 }
 0x396   :  { %7221 = vmatprep.subr.bf16.mxu0 %v11068_v58  ;;  %7549 = vmatprep.subr.bf16.mxu1 %v11070_v60  ;;  %v11109_v58 = vcombine.low %v645_v43, %v649_v44  ;;  %v11116_v60 = vcombine.high %v652_v51, %v656_v52  ;;  %v11118_v61 = vcombine.high %v653_v54, %v657_v56  ;;  %v693_v41 = vld [vmem:[#allocation2 + $0xf98] sm:$0xff] }
 0x397   :  { %v697_v34 = vld [vmem:[#allocation2 + $0xfb8] sm:$0xff] }
 0x399   :  { %7222 = vmatpush1.bf16.msra.mxu0 %v11067_v1  ;;  %7550 = vmatpush1.bf16.msra.mxu1 %v11069_v2  ;;  %v665_v1 = vld [vmem:[#allocation2 + $0xeb8] sm:$0xff]  ;;  %v11115_v2 = vcombine.low %v652_v51, %v656_v52 }
 0x39a   :  { %7223 = vmatprep.subr.bf16.mxu0 %v11076_v3  ;;  %7551 = vmatprep.subr.bf16.mxu1 %v11078_v48  ;;  %v11117_v3 = vcombine.low %v653_v54, %v657_v56  ;;  %v11124_v48 = vcombine.high %v660_v62, %v664_v63  ;;  %v11126_v4 = vcombine.high %v661_v12, %v665_v1  ;;  %v705_v51 = vld [vmem:[#allocation2 + $0xff8] sm:$0xff] }
 0x39b   :  { %v11157_v54 = vcombine.low %v693_v41, %v697_v34 }
 0x39d   :  { %7224 = vmatpush1.bf16.msra.mxu0 %v11075_v8  ;;  %7552 = vmatpush1.bf16.msra.mxu1 %v11077_v9  ;;  %v673_v8 = vld [vmem:[#allocation2 + $0xef8] sm:$0xff]  ;;  %v11123_v9 = vcombine.low %v660_v62, %v664_v63 }
 0x39e   :  { %7225 = vmatprep.subr.bf16.mxu0 %v11084_v23  ;;  %7553 = vmatprep.subr.bf16.mxu1 %v11086_v10  ;;  %v11125_v23 = vcombine.low %v661_v12, %v665_v1  ;;  %v11132_v10 = vcombine.high %v668_v5, %v672_v6  ;;  %v11134_v53 = vcombine.high %v669_v7, %v673_v8  ;;  %v713_v62 = vld [vmem:[#allocation2 + $0x1038] sm:$0xff] }
 0x39f   :  { %v13479_v22 = vpop.f32.mrb[0].mxu0  ;;  %v13481_v29 = vpop.f32.mrb[0].mxu1 }
 0x3a0   :  { %v13483_v30 = vpop.f32.mrb[1].mxu0  ;;  %v13485_v32 = vpop.f32.mrb[1].mxu1 }
 0x3a1   :  { %v6761_v33 = vpop.f32.mrb[2].mxu0  ;;  %7226 = vmatpush1.bf16.msra.mxu0 %v11083_v17  ;;  %v7089_v35 = vpop.f32.mrb[2].mxu1  ;;  %7554 = vmatpush1.bf16.msra.mxu1 %v11085_v18  ;;  %v681_v17 = vld [vmem:[#allocation2 + $0xf38] sm:$0xff]  ;;  %v11131_v18 = vcombine.low %v668_v5, %v672_v6 }
 0x3a2   :  { %v6762_v36 = vpop.f32.mrb[3].mxu0  ;;  %7227 = vmatprep.subr.bf16.mxu0 %v11092_v21  ;;  %7555 = vmatprep.subr.bf16.mxu1 %v11094_v26  ;;  %v7090_v42 = vpop.f32.mrb[3].mxu1  ;;  %v11133_v21 = vcombine.low %v669_v7, %v673_v8  ;;  %v11140_v26 = vcombine.high %v676_v11, %v680_v13  ;;  %v11142_v27 = vcombine.high %v677_v14, %v681_v17  ;;  %v689_v33 = vld [vmem:[#allocation2 + $0xf78] sm:$0xff] }
 0x3a3   :  { %v11141_v35 = vcombine.low %v677_v14, %v681_v17  ;;  %v11148_v36 = vcombine.high %v684_v28, %v688_v31  ;;  %v11147_v42 = vcombine.low %v684_v28, %v688_v31  ;;  %v11149_v43 = vcombine.low %v685_v25, %v689_v33  ;;  %v721_v5 = vld [vmem:[#allocation2 + $0x1078] sm:$0xff] }
 0x3a4   :  { %v737_v28 = vld [vmem:[#allocation2 + $0x10f8] sm:$0xff] }
 0x3a5   :  { %7228 = vmatpush1.bf16.msra.mxu0 %v11091_v15  ;;  %7556 = vmatpush1.bf16.msra.mxu1 %v11093_v57  ;;  %v11139_v15 = vcombine.low %v676_v11, %v680_v13  ;;  %v11150_v57 = vcombine.high %v685_v25, %v689_v33  ;;  %v729_v11 = vld [vmem:[#allocation2 + $0x10b8] sm:$0xff] }
 0x3a6   :  { %7229 = vmatprep.subr.bf16.mxu0 %v11100_v37  ;;  %7557 = vmatprep.subr.bf16.mxu1 %v11102_v40  ;;  %v692_v37 = vld [vmem:[#allocation2 + $0xf90] sm:$0xff] }
 0x3a7   :  { %v696_v40 = vld [vmem:[#allocation2 + $0xfb0] sm:$0xff] }
 0x3a8   :  { %v11156_v44 = vcombine.high %v692_v37, %v696_v40  ;;  %v11155_v52 = vcombine.low %v692_v37, %v696_v40 }
 0x3a9   :  { %7230 = vmatpush1.bf16.msra.mxu0 %v11099_v45  ;;  %7558 = vmatpush1.bf16.msra.mxu1 %v11101_v47  ;;  %v11158_v45 = vcombine.high %v693_v41, %v697_v34  ;;  %v700_v47 = vld [vmem:[#allocation2 + $0xfd0] sm:$0xff] }
 0x3aa   :  { %7231 = vmatprep.subr.bf16.mxu0 %v11108_v24  ;;  %7559 = vmatprep.subr.bf16.mxu1 %v11110_v50  ;;  %v704_v24 = vld [vmem:[#allocation2 + $0xff0] sm:$0xff]  ;;  %v701_v50 = vld [vmem:[#allocation2 + $0xfd8] sm:$0xff] }
 0x3ab   :  { %v11164_v56 = vcombine.high %v700_v47, %v704_v24  ;;  %v11163_v63 = vcombine.low %v700_v47, %v704_v24  ;;  %v11165_v12 = vcombine.low %v701_v50, %v705_v51  ;;  %v748_v34 = vld [vmem:[#allocation2 + $0x1150] sm:$0xff] }
 0x3ad   :  { %7232 = vmatpush1.bf16.msra.mxu0 %v11107_v39  ;;  %7560 = vmatpush1.bf16.msra.mxu1 %v11109_v58  ;;  %v11166_v39 = vcombine.high %v701_v50, %v705_v51  ;;  %v708_v58 = vld [vmem:[#allocation2 + $0x1010] sm:$0xff] }
 0x3ae   :  { %7233 = vmatprep.subr.bf16.mxu0 %v11116_v60  ;;  %7561 = vmatprep.subr.bf16.mxu1 %v11118_v61  ;;  %v712_v60 = vld [vmem:[#allocation2 + $0x1030] sm:$0xff]  ;;  %v709_v61 = vld [vmem:[#allocation2 + $0x1018] sm:$0xff] }
 0x3af   :  { %v11172_v1 = vcombine.high %v708_v58, %v712_v60  ;;  %v11171_v6 = vcombine.low %v708_v58, %v712_v60  ;;  %v11173_v7 = vcombine.low %v709_v61, %v713_v62  ;;  %v756_v51 = vld [vmem:[#allocation2 + $0x1190] sm:$0xff] }
 0x3b1   :  { %7234 = vmatpush1.bf16.msra.mxu0 %v11115_v2  ;;  %7562 = vmatpush1.bf16.msra.mxu1 %v11117_v3  ;;  %v11174_v2 = vcombine.high %v709_v61, %v713_v62  ;;  %v716_v3 = vld [vmem:[#allocation2 + $0x1050] sm:$0xff] }
 0x3b2   :  { %7235 = vmatprep.subr.bf16.mxu0 %v11124_v48  ;;  %7563 = vmatprep.subr.bf16.mxu1 %v11126_v4  ;;  %v720_v48 = vld [vmem:[#allocation2 + $0x1070] sm:$0xff]  ;;  %v717_v4 = vld [vmem:[#allocation2 + $0x1058] sm:$0xff] }
 0x3b3   :  { %v11180_v8 = vcombine.high %v716_v3, %v720_v48  ;;  %v11179_v13 = vcombine.low %v716_v3, %v720_v48  ;;  %v11181_v14 = vcombine.low %v717_v4, %v721_v5  ;;  %v764_v62 = vld [vmem:[#allocation2 + $0x11d0] sm:$0xff] }
 0x3b5   :  { %7236 = vmatpush1.bf16.msra.mxu0 %v11123_v9  ;;  %7564 = vmatpush1.bf16.msra.mxu1 %v11125_v23  ;;  %v11182_v9 = vcombine.high %v717_v4, %v721_v5  ;;  %v724_v23 = vld [vmem:[#allocation2 + $0x1090] sm:$0xff] }
 0x3b6   :  { %7237 = vmatprep.subr.bf16.mxu0 %v11132_v10  ;;  %7565 = vmatprep.subr.bf16.mxu1 %v11134_v53  ;;  %v728_v10 = vld [vmem:[#allocation2 + $0x10b0] sm:$0xff]  ;;  %v725_v53 = vld [vmem:[#allocation2 + $0x1098] sm:$0xff] }
 0x3b7   :  { %v11188_v17 = vcombine.high %v724_v23, %v728_v10  ;;  %v11187_v31 = vcombine.low %v724_v23, %v728_v10  ;;  %v772_v5 = vld [vmem:[#allocation2 + $0x1210] sm:$0xff] }
 0x3b9   :  { %7238 = vmatpush1.bf16.msra.mxu0 %v11131_v18  ;;  %7566 = vmatpush1.bf16.msra.mxu1 %v11133_v21  ;;  %v11190_v18 = vcombine.high %v725_v53, %v729_v11  ;;  %v732_v21 = vld [vmem:[#allocation2 + $0x10d0] sm:$0xff] }
 0x3ba   :  { %7239 = vmatprep.subr.bf16.mxu0 %v11140_v26  ;;  %7567 = vmatprep.subr.bf16.mxu1 %v11142_v27  ;;  %v736_v26 = vld [vmem:[#allocation2 + $0x10f0] sm:$0xff]  ;;  %v733_v27 = vld [vmem:[#allocation2 + $0x10d8] sm:$0xff] }
 0x3bb   :  { %v11196_v25 = vcombine.high %v732_v21, %v736_v26  ;;  %v11198_v33 = vcombine.high %v733_v27, %v737_v28  ;;  %v11195_v37 = vcombine.low %v732_v21, %v736_v26  ;;  %v11197_v40 = vcombine.low %v733_v27, %v737_v28  ;;  %v788_v28 = vld [vmem:[#allocation2 + $0x1290] sm:$0xff] }
 0x3bd   :  { %7240 = vmatpush1.bf16.msra.mxu0 %v11139_v15  ;;  %7568 = vmatpush1.bf16.msra.mxu1 %v11141_v35  ;;  %v740_v15 = vld [vmem:[#allocation2 + $0x1110] sm:$0xff] }
 0x3be   :  { %7241 = vmatprep.subr.bf16.mxu0 %v11148_v36  ;;  %7569 = vmatprep.subr.bf16.mxu1 %v11150_v57  ;;  %v744_v35 = vld [vmem:[#allocation2 + $0x1130] sm:$0xff]  ;;  %v741_v36 = vld [vmem:[#allocation2 + $0x1118] sm:$0xff] }
 0x3bf   :  { %v745_v57 = vld [vmem:[#allocation2 + $0x1138] sm:$0xff]  ;;  %v11204_v41 = vcombine.high %v740_v15, %v744_v35 }
 0x3c0   :  { %v11205_v47 = vcombine.low %v741_v36, %v745_v57 }
 0x3c1   :  { %7242 = vmatpush1.bf16.msra.mxu0 %v11147_v42  ;;  %7570 = vmatpush1.bf16.msra.mxu1 %v11149_v43  ;;  %v752_v42 = vld [vmem:[#allocation2 + $0x1170] sm:$0xff]  ;;  %v749_v43 = vld [vmem:[#allocation2 + $0x1158] sm:$0xff] }
 0x3c2   :  { %7243 = vmatprep.subr.bf16.mxu0 %v11156_v44  ;;  %7571 = vmatprep.subr.bf16.mxu1 %v11158_v45  ;;  %v753_v44 = vld [vmem:[#allocation2 + $0x1178] sm:$0xff]  ;;  %v11203_v45 = vcombine.low %v740_v15, %v744_v35  ;;  %v11212_v24 = vcombine.high %v748_v34, %v752_v42 }
 0x3c3   :  { %v11214_v50 = vcombine.high %v749_v43, %v753_v44  ;;  %v11213_v58 = vcombine.low %v749_v43, %v753_v44  ;;  %v804_v44 = vld [vmem:[#allocation2 + $0x1310] sm:$0xff] }
 0x3c5   :  { %7244 = vmatpush1.bf16.msra.mxu0 %v11155_v52  ;;  %7572 = vmatpush1.bf16.msra.mxu1 %v11157_v54  ;;  %v760_v52 = vld [vmem:[#allocation2 + $0x11b0] sm:$0xff]  ;;  %v757_v54 = vld [vmem:[#allocation2 + $0x1198] sm:$0xff] }
 0x3c6   :  { %7245 = vmatprep.subr.bf16.mxu0 %v11164_v56  ;;  %7573 = vmatprep.subr.bf16.mxu1 %v11166_v39  ;;  %v761_v56 = vld [vmem:[#allocation2 + $0x11b8] sm:$0xff]  ;;  %v11211_v39 = vcombine.low %v748_v34, %v752_v42  ;;  %v11220_v60 = vcombine.high %v756_v51, %v760_v52 }
 0x3c7   :  { %v11222_v61 = vcombine.high %v757_v54, %v761_v56  ;;  %v11221_v3 = vcombine.low %v757_v54, %v761_v56  ;;  %v812_v56 = vld [vmem:[#allocation2 + $0x1350] sm:$0xff] }
 0x3c9   :  { %7246 = vmatpush1.bf16.msra.mxu0 %v11163_v63  ;;  %7574 = vmatpush1.bf16.msra.mxu1 %v11165_v12  ;;  %v768_v63 = vld [vmem:[#allocation2 + $0x11f0] sm:$0xff]  ;;  %v765_v12 = vld [vmem:[#allocation2 + $0x11d8] sm:$0xff] }
 0x3ca   :  { %7256 = vmatprep.subr.bf16.mxu0 %v11172_v1  ;;  %7584 = vmatprep.subr.bf16.mxu1 %v11174_v2  ;;  %v769_v1 = vld [vmem:[#allocation2 + $0x11f8] sm:$0xff]  ;;  %v11219_v2 = vcombine.low %v756_v51, %v760_v52  ;;  %v11228_v48 = vcombine.high %v764_v62, %v768_v63 }
 0x3cb   :  { %v11230_v4 = vcombine.high %v765_v12, %v769_v1  ;;  %v11229_v23 = vcombine.low %v765_v12, %v769_v1  ;;  %v820_v1 = vld [vmem:[#allocation2 + $0x1390] sm:$0xff] }
 0x3cc   :  { %7248 = vmatmul.mubr.bf16.vlgmr.msra.gmra.mrb[4].mxu0 %v13393_v55  ;;  %7576 = vmatmul.mubr.bf16.vlgmr.msra.gmra.mrb[4].mxu1 %v13393_v55  ;;  %v11189_v55 = vcombine.low %v725_v53, %v729_v11  ;;  %v780_v11 = vld [vmem:[#allocation2 + $0x1250] sm:$0xff] }
 0x3cd   :  { %7257 = vmatpush1.bf16.msra.mxu0 %v11171_v6  ;;  %7585 = vmatpush1.bf16.msra.mxu1 %v11173_v7  ;;  %v776_v6 = vld [vmem:[#allocation2 + $0x1230] sm:$0xff]  ;;  %v773_v7 = vld [vmem:[#allocation2 + $0x1218] sm:$0xff] }
 0x3ce   :  { %7258 = vmatprep.subr.bf16.mxu0 %v11180_v8  ;;  %7586 = vmatprep.subr.bf16.mxu1 %v11182_v9  ;;  %v777_v8 = vld [vmem:[#allocation2 + $0x1238] sm:$0xff]  ;;  %v11227_v9 = vcombine.low %v764_v62, %v768_v63  ;;  %v11236_v10 = vcombine.high %v772_v5, %v776_v6 }
 0x3cf   :  { %7288 = vmatprep.mubr.bf16.mxu0 %v13402_v38  ;;  %7616 = vmatprep.mubr.bf16.mxu1 %v13402_v38  ;;  %v11206_v38 = vcombine.high %v741_v36, %v745_v57  ;;  %v11238_v53 = vcombine.high %v773_v7, %v777_v8  ;;  %v11237_v21 = vcombine.low %v773_v7, %v777_v8  ;;  %v796_v57 = vld [vmem:[#allocation2 + $0x12d0] sm:$0xff] }
 0x3d0   :  { %v828_v8 = vld [vmem:[#allocation2 + $0x13d0] sm:$0xff] }
 0x3d1   :  { %7259 = vmatpush1.bf16.msra.mxu0 %v11179_v13  ;;  %7587 = vmatpush1.bf16.msra.mxu1 %v11181_v14  ;;  %v784_v13 = vld [vmem:[#allocation2 + $0x1270] sm:$0xff]  ;;  %v781_v14 = vld [vmem:[#allocation2 + $0x1258] sm:$0xff] }
 0x3d2   :  { %7260 = vmatprep.subr.bf16.mxu0 %v11188_v17  ;;  %7588 = vmatprep.subr.bf16.mxu1 %v11190_v18  ;;  %v785_v17 = vld [vmem:[#allocation2 + $0x1278] sm:$0xff]  ;;  %v11235_v18 = vcombine.low %v772_v5, %v776_v6  ;;  %v11244_v26 = vcombine.high %v780_v11, %v784_v13 }
 0x3d3   :  { %v11246_v27 = vcombine.high %v781_v14, %v785_v17  ;;  %v11245_v15 = vcombine.low %v781_v14, %v785_v17  ;;  %v836_v17 = vld [vmem:[#allocation2 + $0x1410] sm:$0xff] }
 0x3d5   :  { %7261 = vmatpush1.bf16.msra.mxu0 %v11187_v31  ;;  %7589 = vmatpush1.bf16.msra.mxu1 %v11189_v55  ;;  %v792_v31 = vld [vmem:[#allocation2 + $0x12b0] sm:$0xff]  ;;  %v789_v55 = vld [vmem:[#allocation2 + $0x1298] sm:$0xff] }
 0x3d6   :  { %7262 = vmatprep.subr.bf16.mxu0 %v11196_v25  ;;  %7590 = vmatprep.subr.bf16.mxu1 %v11198_v33  ;;  %v793_v25 = vld [vmem:[#allocation2 + $0x12b8] sm:$0xff]  ;;  %v11243_v33 = vcombine.low %v780_v11, %v784_v13  ;;  %v11252_v35 = vcombine.high %v788_v28, %v792_v31 }
 0x3d7   :  { %v11254_v36 = vcombine.high %v789_v55, %v793_v25  ;;  %v11253_v34 = vcombine.low %v789_v55, %v793_v25  ;;  %v844_v25 = vld [vmem:[#allocation2 + $0x1450] sm:$0xff] }
 0x3d9   :  { %7263 = vmatpush1.bf16.msra.mxu0 %v11195_v37  ;;  %7591 = vmatpush1.bf16.msra.mxu1 %v11197_v40  ;;  %v800_v37 = vld [vmem:[#allocation2 + $0x12f0] sm:$0xff]  ;;  %v797_v40 = vld [vmem:[#allocation2 + $0x12d8] sm:$0xff] }
 0x3da   :  { %7264 = vmatprep.subr.bf16.mxu0 %v11204_v41  ;;  %7592 = vmatprep.subr.bf16.mxu1 %v11206_v38  ;;  %v801_v41 = vld [vmem:[#allocation2 + $0x12f8] sm:$0xff]  ;;  %v11251_v38 = vcombine.low %v788_v28, %v792_v31  ;;  %v11260_v42 = vcombine.high %v796_v57, %v800_v37 }
 0x3db   :  { %v11262_v43 = vcombine.high %v797_v40, %v801_v41  ;;  %v11261_v51 = vcombine.low %v797_v40, %v801_v41  ;;  %v852_v41 = vld [vmem:[#allocation2 + $0x1490] sm:$0xff] }
 0x3dd   :  { %7265 = vmatpush1.bf16.msra.mxu0 %v11203_v45  ;;  %7593 = vmatpush1.bf16.msra.mxu1 %v11205_v47  ;;  %v808_v45 = vld [vmem:[#allocation2 + $0x1330] sm:$0xff]  ;;  %v805_v47 = vld [vmem:[#allocation2 + $0x1318] sm:$0xff] }
 0x3de   :  { %7266 = vmatprep.subr.bf16.mxu0 %v11212_v24  ;;  %7594 = vmatprep.subr.bf16.mxu1 %v11214_v50  ;;  %v809_v24 = vld [vmem:[#allocation2 + $0x1338] sm:$0xff]  ;;  %v11259_v50 = vcombine.low %v796_v57, %v800_v37  ;;  %v11268_v52 = vcombine.high %v804_v44, %v808_v45 }
 0x3df   :  { %v11270_v54 = vcombine.high %v805_v47, %v809_v24  ;;  %v11269_v62 = vcombine.low %v805_v47, %v809_v24  ;;  %v860_v24 = vld [vmem:[#allocation2 + $0x14d0] sm:$0xff] }
 0x3e1   :  { %7267 = vmatpush1.bf16.msra.mxu0 %v11211_v39  ;;  %7595 = vmatpush1.bf16.msra.mxu1 %v11213_v58  ;;  %v816_v39 = vld [vmem:[#allocation2 + $0x1370] sm:$0xff]  ;;  %v813_v58 = vld [vmem:[#allocation2 + $0x1358] sm:$0xff] }
 0x3e2   :  { %7268 = vmatprep.subr.bf16.mxu0 %v11220_v60  ;;  %7596 = vmatprep.subr.bf16.mxu1 %v11222_v61  ;;  %v817_v60 = vld [vmem:[#allocation2 + $0x1378] sm:$0xff]  ;;  %v11267_v61 = vcombine.low %v804_v44, %v808_v45  ;;  %v11276_v63 = vcombine.high %v812_v56, %v816_v39 }
 0x3e3   :  { %v11278_v12 = vcombine.high %v813_v58, %v817_v60  ;;  %v11277_v5 = vcombine.low %v813_v58, %v817_v60  ;;  %v868_v58 = vld [vmem:[#allocation2 + $0x1510] sm:$0xff] }
 0x3e4   :  { %v872_v60 = vld [vmem:[#allocation2 + $0x1530] sm:$0xff] }
 0x3e5   :  { %7269 = vmatpush1.bf16.msra.mxu0 %v11219_v2  ;;  %7597 = vmatpush1.bf16.msra.mxu1 %v11221_v3  ;;  %v824_v2 = vld [vmem:[#allocation2 + $0x13b0] sm:$0xff]  ;;  %v821_v3 = vld [vmem:[#allocation2 + $0x1398] sm:$0xff] }
 0x3e6   :  { %7270 = vmatprep.subr.bf16.mxu0 %v11228_v48  ;;  %7598 = vmatprep.subr.bf16.mxu1 %v11230_v4  ;;  %v825_v48 = vld [vmem:[#allocation2 + $0x13b8] sm:$0xff]  ;;  %v11275_v4 = vcombine.low %v812_v56, %v816_v39  ;;  %v11284_v6 = vcombine.high %v820_v1, %v824_v2 }
 0x3e7   :  { %v11286_v7 = vcombine.high %v821_v3, %v825_v48  ;;  %v11285_v11 = vcombine.low %v821_v3, %v825_v48  ;;  %v880_v3 = vld [vmem:[#allocation2 + $0x1570] sm:$0xff]  ;;  %v877_v48 = vld [vmem:[#allocation2 + $0x1558] sm:$0xff] }
 0x3e9   :  { %7271 = vmatpush1.bf16.msra.mxu0 %v11227_v9  ;;  %7599 = vmatpush1.bf16.msra.mxu1 %v11229_v23  ;;  %v832_v9 = vld [vmem:[#allocation2 + $0x13f0] sm:$0xff]  ;;  %v829_v23 = vld [vmem:[#allocation2 + $0x13d8] sm:$0xff] }
 0x3ea   :  { %7272 = vmatprep.subr.bf16.mxu0 %v11236_v10  ;;  %7600 = vmatprep.subr.bf16.mxu1 %v11238_v53  ;;  %v833_v10 = vld [vmem:[#allocation2 + $0x13f8] sm:$0xff]  ;;  %v11283_v53 = vcombine.low %v820_v1, %v824_v2  ;;  %v11292_v13 = vcombine.high %v828_v8, %v832_v9  ;;  %v11332_v1 = vcombine.high %v868_v58, %v872_v60  ;;  %v876_v2 = vld [vmem:[#allocation2 + $0x1550] sm:$0xff] }
 0x3eb   :  { %v11294_v14 = vcombine.high %v829_v23, %v833_v10  ;;  %v11293_v28 = vcombine.low %v829_v23, %v833_v10  ;;  %v888_v23 = vld [vmem:[#allocation2 + $0x15b0] sm:$0xff]  ;;  %v885_v10 = vld [vmem:[#allocation2 + $0x1598] sm:$0xff] }
 0x3ed   :  { %7273 = vmatpush1.bf16.msra.mxu0 %v11235_v18  ;;  %7601 = vmatpush1.bf16.msra.mxu1 %v11237_v21  ;;  %v840_v18 = vld [vmem:[#allocation2 + $0x1430] sm:$0xff]  ;;  %v837_v21 = vld [vmem:[#allocation2 + $0x1418] sm:$0xff] }
 0x3ee   :  { %7274 = vmatprep.subr.bf16.mxu0 %v11244_v26  ;;  %7602 = vmatprep.subr.bf16.mxu1 %v11246_v27  ;;  %v841_v26 = vld [vmem:[#allocation2 + $0x1438] sm:$0xff]  ;;  %v11291_v27 = vcombine.low %v828_v8, %v832_v9  ;;  %v11300_v31 = vcombine.high %v836_v17, %v840_v18  ;;  %v884_v9 = vld [vmem:[#allocation2 + $0x1590] sm:$0xff] }
 0x3ef   :  { %v11302_v55 = vcombine.high %v837_v21, %v841_v26  ;;  %v11301_v57 = vcombine.low %v837_v21, %v841_v26  ;;  %v896_v21 = vld [vmem:[#allocation2 + $0x15f0] sm:$0xff]  ;;  %v893_v26 = vld [vmem:[#allocation2 + $0x15d8] sm:$0xff] }
 0x3f1   :  { %7275 = vmatpush1.bf16.msra.mxu0 %v11243_v33  ;;  %7603 = vmatpush1.bf16.msra.mxu1 %v11245_v15  ;;  %v848_v33 = vld [vmem:[#allocation2 + $0x1470] sm:$0xff]  ;;  %v845_v15 = vld [vmem:[#allocation2 + $0x1458] sm:$0xff] }
 0x3f2   :  { %7276 = vmatprep.subr.bf16.mxu0 %v11252_v35  ;;  %7604 = vmatprep.subr.bf16.mxu1 %v11254_v36  ;;  %v849_v35 = vld [vmem:[#allocation2 + $0x1478] sm:$0xff]  ;;  %v11299_v36 = vcombine.low %v836_v17, %v840_v18  ;;  %v11308_v37 = vcombine.high %v844_v25, %v848_v33  ;;  %v892_v18 = vld [vmem:[#allocation2 + $0x15d0] sm:$0xff] }
 0x3f3   :  { %v11310_v40 = vcombine.high %v845_v15, %v849_v35  ;;  %v11309_v44 = vcombine.low %v845_v15, %v849_v35  ;;  %v904_v15 = vld [vmem:[#allocation2 + $0x1630] sm:$0xff]  ;;  %v901_v35 = vld [vmem:[#allocation2 + $0x1618] sm:$0xff] }
 0x3f5   :  { %7277 = vmatpush1.bf16.msra.mxu0 %v11251_v38  ;;  %7605 = vmatpush1.bf16.msra.mxu1 %v11253_v34  ;;  %v856_v38 = vld [vmem:[#allocation2 + $0x14b0] sm:$0xff]  ;;  %v853_v34 = vld [vmem:[#allocation2 + $0x1498] sm:$0xff] }
 0x3f6   :  { %7278 = vmatprep.subr.bf16.mxu0 %v11260_v42  ;;  %7606 = vmatprep.subr.bf16.mxu1 %v11262_v43  ;;  %v857_v42 = vld [vmem:[#allocation2 + $0x14b8] sm:$0xff]  ;;  %v11307_v43 = vcombine.low %v844_v25, %v848_v33  ;;  %v11316_v45 = vcombine.high %v852_v41, %v856_v38  ;;  %v900_v33 = vld [vmem:[#allocation2 + $0x1610] sm:$0xff] }
 0x3f7   :  { %v11318_v47 = vcombine.high %v853_v34, %v857_v42 }
 0x3f9   :  { %7279 = vmatpush1.bf16.msra.mxu0 %v11259_v50  ;;  %7607 = vmatpush1.bf16.msra.mxu1 %v11261_v51  ;;  %v864_v50 = vld [vmem:[#allocation2 + $0x14f0] sm:$0xff]  ;;  %v861_v51 = vld [vmem:[#allocation2 + $0x14d8] sm:$0xff] }
 0x3fa   :  { %7280 = vmatprep.subr.bf16.mxu0 %v11268_v52  ;;  %7608 = vmatprep.subr.bf16.mxu1 %v11270_v54  ;;  %v865_v52 = vld [vmem:[#allocation2 + $0x14f8] sm:$0xff]  ;;  %v11315_v54 = vcombine.low %v852_v41, %v856_v38  ;;  %v11324_v56 = vcombine.high %v860_v24, %v864_v50  ;;  %v908_v38 = vld [vmem:[#allocation2 + $0x1650] sm:$0xff] }
 0x3fb   :  { %v11326_v39 = vcombine.high %v861_v51, %v865_v52 }
 0x3fd   :  { %7281 = vmatpush1.bf16.msra.mxu0 %v11267_v61  ;;  %7609 = vmatpush1.bf16.msra.mxu1 %v11269_v62  ;;  %v869_v61 = vld [vmem:[#allocation2 + $0x1518] sm:$0xff] }
 0x3fe   :  { %7282 = vmatprep.subr.bf16.mxu0 %v11276_v63  ;;  %7610 = vmatprep.subr.bf16.mxu1 %v11278_v12  ;;  %v873_v62 = vld [vmem:[#allocation2 + $0x1538] sm:$0xff]  ;;  %v11323_v63 = vcombine.low %v860_v24, %v864_v50  ;;  %v11325_v12 = vcombine.low %v861_v51, %v865_v52  ;;  %v916_v50 = vld [vmem:[#allocation2 + $0x1690] sm:$0xff] }
 0x3ff   :  { %v920_v51 = vld [vmem:[#allocation2 + $0x16b0] sm:$0xff]  ;;  %v917_v52 = vld [vmem:[#allocation2 + $0x1698] sm:$0xff] }
 0x401   :  { %7283 = vmatpush1.bf16.msra.mxu0 %v11275_v4  ;;  %7611 = vmatpush1.bf16.msra.mxu1 %v11277_v5  ;;  %v881_v4 = vld [vmem:[#allocation2 + $0x1578] sm:$0xff]  ;;  %v11331_v5 = vcombine.low %v868_v58, %v872_v60  ;;  %v924_v60 = vld [vmem:[#allocation2 + $0x16d0] sm:$0xff] }
 0x402   :  { %7284 = vmatprep.subr.bf16.mxu0 %v11284_v6  ;;  %7612 = vmatprep.subr.bf16.mxu1 %v11286_v7  ;;  %v11333_v6 = vcombine.low %v869_v61, %v873_v62  ;;  %v11340_v7 = vcombine.high %v876_v2, %v880_v3  ;;  %v11342_v8 = vcombine.high %v877_v48, %v881_v4 }
 0x405   :  { %7285 = vmatpush1.bf16.msra.mxu0 %v11283_v53  ;;  %7613 = vmatpush1.bf16.msra.mxu1 %v11285_v11  ;;  %v889_v53 = vld [vmem:[#allocation2 + $0x15b8] sm:$0xff]  ;;  %v11339_v11 = vcombine.low %v876_v2, %v880_v3  ;;  %v932_v3 = vld [vmem:[#allocation2 + $0x1710] sm:$0xff] }
 0x406   :  { %7286 = vmatprep.subr.bf16.mxu0 %v11292_v13  ;;  %7614 = vmatprep.subr.bf16.mxu1 %v11294_v14  ;;  %v11341_v13 = vcombine.low %v877_v48, %v881_v4  ;;  %v11348_v14 = vcombine.high %v884_v9, %v888_v23  ;;  %v11350_v17 = vcombine.high %v885_v10, %v889_v53  ;;  %v936_v48 = vld [vmem:[#allocation2 + $0x1730] sm:$0xff]  ;;  %v933_v4 = vld [vmem:[#allocation2 + $0x1718] sm:$0xff] }
 0x409   :  { %7287 = vmatpush1.bf16.msra.mxu0 %v11291_v27  ;;  %7615 = vmatpush1.bf16.msra.mxu1 %v11293_v28  ;;  %v897_v27 = vld [vmem:[#allocation2 + $0x15f8] sm:$0xff]  ;;  %v11347_v28 = vcombine.low %v884_v9, %v888_v23  ;;  %v940_v23 = vld [vmem:[#allocation2 + $0x1750] sm:$0xff] }
 0x40a   :  { %7297 = vmatprep.subr.bf16.mxu0 %v11300_v31  ;;  %7625 = vmatprep.subr.bf16.mxu1 %v11302_v55  ;;  %v11349_v31 = vcombine.low %v885_v10, %v889_v53  ;;  %v11356_v55 = vcombine.high %v892_v18, %v896_v21  ;;  %v11358_v25 = vcombine.high %v893_v26, %v897_v27  ;;  %v944_v10 = vld [vmem:[#allocation2 + $0x1770] sm:$0xff]  ;;  %v941_v53 = vld [vmem:[#allocation2 + $0x1758] sm:$0xff] }
 0x40c   :  { %7289 = vmatmul.mubr.bf16.vlgmr.msra.gmra.mrb[4].mxu0 %v13410_v16  ;;  %7617 = vmatmul.mubr.bf16.vlgmr.msra.gmra.mrb[4].mxu1 %v13410_v16  ;;  %v11317_v16 = vcombine.low %v853_v34, %v857_v42  ;;  %v912_v34 = vld [vmem:[#allocation2 + $0x1670] sm:$0xff]  ;;  %v909_v42 = vld [vmem:[#allocation2 + $0x1658] sm:$0xff] }
 0x40d   :  { %7298 = vmatpush1.bf16.msra.mxu0 %v11299_v36  ;;  %7626 = vmatpush1.bf16.msra.mxu1 %v11301_v57  ;;  %v905_v36 = vld [vmem:[#allocation2 + $0x1638] sm:$0xff]  ;;  %v11355_v57 = vcombine.low %v892_v18, %v896_v21  ;;  %v948_v21 = vld [vmem:[#allocation2 + $0x1790] sm:$0xff] }
 0x40e   :  { %7299 = vmatprep.subr.bf16.mxu0 %v11308_v37  ;;  %7627 = vmatprep.subr.bf16.mxu1 %v11310_v40  ;;  %v11357_v37 = vcombine.low %v893_v26, %v897_v27  ;;  %v11364_v40 = vcombine.high %v900_v33, %v904_v15  ;;  %v11366_v41 = vcombine.high %v901_v35, %v905_v36  ;;  %v952_v26 = vld [vmem:[#allocation2 + $0x17b0] sm:$0xff]  ;;  %v949_v27 = vld [vmem:[#allocation2 + $0x1798] sm:$0xff] }
 0x40f   :  { %7329 = vmatprep.mubr.bf16.mxu0 %v13419_v59  ;;  %7657 = vmatprep.mubr.bf16.mxu1 %v13419_v59  ;;  %v11334_v59 = vcombine.high %v869_v61, %v873_v62  ;;  %v928_v61 = vld [vmem:[#allocation2 + $0x16f0] sm:$0xff]  ;;  %v925_v62 = vld [vmem:[#allocation2 + $0x16d8] sm:$0xff] }
 0x411   :  { %7300 = vmatpush1.bf16.msra.mxu0 %v11307_v43  ;;  %7628 = vmatpush1.bf16.msra.mxu1 %v11309_v44  ;;  %v913_v43 = vld [vmem:[#allocation2 + $0x1678] sm:$0xff]  ;;  %v11363_v44 = vcombine.low %v900_v33, %v904_v15  ;;  %v956_v15 = vld [vmem:[#allocation2 + $0x17d0] sm:$0xff] }
 0x412   :  { %7301 = vmatprep.subr.bf16.mxu0 %v11316_v45  ;;  %7629 = vmatprep.subr.bf16.mxu1 %v11318_v47  ;;  %v11365_v45 = vcombine.low %v901_v35, %v905_v36  ;;  %v11372_v47 = vcombine.high %v908_v38, %v912_v34  ;;  %v11374_v24 = vcombine.high %v909_v42, %v913_v43  ;;  %v960_v35 = vld [vmem:[#allocation2 + $0x17f0] sm:$0xff]  ;;  %v957_v36 = vld [vmem:[#allocation2 + $0x17d8] sm:$0xff] }
 0x415   :  { %7302 = vmatpush1.bf16.msra.mxu0 %v11315_v54  ;;  %7630 = vmatpush1.bf16.msra.mxu1 %v11317_v16  ;;  %v921_v54 = vld [vmem:[#allocation2 + $0x16b8] sm:$0xff]  ;;  %v11371_v16 = vcombine.low %v908_v38, %v912_v34  ;;  %v964_v34 = vld [vmem:[#allocation2 + $0x1810] sm:$0xff] }
 0x416   :  { %7303 = vmatprep.subr.bf16.mxu0 %v11324_v56  ;;  %7631 = vmatprep.subr.bf16.mxu1 %v11326_v39  ;;  %v11373_v56 = vcombine.low %v909_v42, %v913_v43  ;;  %v11380_v39 = vcombine.high %v916_v50, %v920_v51  ;;  %v11382_v58 = vcombine.high %v917_v52, %v921_v54  ;;  %v968_v42 = vld [vmem:[#allocation2 + $0x1830] sm:$0xff]  ;;  %v965_v43 = vld [vmem:[#allocation2 + $0x1818] sm:$0xff] }
 0x419   :  { %7304 = vmatpush1.bf16.msra.mxu0 %v11323_v63  ;;  %7632 = vmatpush1.bf16.msra.mxu1 %v11325_v12  ;;  %v929_v63 = vld [vmem:[#allocation2 + $0x16f8] sm:$0xff]  ;;  %v11379_v12 = vcombine.low %v916_v50, %v920_v51  ;;  %v972_v51 = vld [vmem:[#allocation2 + $0x1850] sm:$0xff] }
 0x41a   :  { %7305 = vmatprep.subr.bf16.mxu0 %v11332_v1  ;;  %7633 = vmatprep.subr.bf16.mxu1 %v11334_v59  ;;  %v11381_v1 = vcombine.low %v917_v52, %v921_v54  ;;  %v11388_v59 = vcombine.high %v924_v60, %v928_v61  ;;  %v11390_v2 = vcombine.high %v925_v62, %v929_v63  ;;  %v976_v52 = vld [vmem:[#allocation2 + $0x1870] sm:$0xff]  ;;  %v973_v54 = vld [vmem:[#allocation2 + $0x1858] sm:$0xff] }
 0x41d   :  { %7306 = vmatpush1.bf16.msra.mxu0 %v11331_v5  ;;  %7634 = vmatpush1.bf16.msra.mxu1 %v11333_v6  ;;  %v937_v5 = vld [vmem:[#allocation2 + $0x1738] sm:$0xff]  ;;  %v11387_v6 = vcombine.low %v924_v60, %v928_v61  ;;  %v980_v61 = vld [vmem:[#allocation2 + $0x1890] sm:$0xff] }
 0x41e   :  { %7307 = vmatprep.subr.bf16.mxu0 %v11340_v7  ;;  %7635 = vmatprep.subr.bf16.mxu1 %v11342_v8  ;;  %v11389_v7 = vcombine.low %v925_v62, %v929_v63  ;;  %v11396_v8 = vcombine.high %v932_v3, %v936_v48  ;;  %v11398_v9 = vcombine.high %v933_v4, %v937_v5  ;;  %v984_v62 = vld [vmem:[#allocation2 + $0x18b0] sm:$0xff]  ;;  %v981_v63 = vld [vmem:[#allocation2 + $0x1898] sm:$0xff] }
 0x421   :  { %7308 = vmatpush1.bf16.msra.mxu0 %v11339_v11  ;;  %7636 = vmatpush1.bf16.msra.mxu1 %v11341_v13  ;;  %v945_v11 = vld [vmem:[#allocation2 + $0x1778] sm:$0xff]  ;;  %v11395_v13 = vcombine.low %v932_v3, %v936_v48  ;;  %v988_v48 = vld [vmem:[#allocation2 + $0x18d0] sm:$0xff] }
 0x422   :  { %7309 = vmatprep.subr.bf16.mxu0 %v11348_v14  ;;  %7637 = vmatprep.subr.bf16.mxu1 %v11350_v17  ;;  %v11397_v14 = vcombine.low %v933_v4, %v937_v5  ;;  %v11404_v17 = vcombine.high %v940_v23, %v944_v10  ;;  %v11406_v18 = vcombine.high %v941_v53, %v945_v11  ;;  %v992_v4 = vld [vmem:[#allocation2 + $0x18f0] sm:$0xff]  ;;  %v989_v5 = vld [vmem:[#allocation2 + $0x18d8] sm:$0xff] }
 0x425   :  { %7310 = vmatpush1.bf16.msra.mxu0 %v11347_v28  ;;  %7638 = vmatpush1.bf16.msra.mxu1 %v11349_v31  ;;  %v953_v28 = vld [vmem:[#allocation2 + $0x17b8] sm:$0xff]  ;;  %v11403_v31 = vcombine.low %v940_v23, %v944_v10  ;;  %v996_v23 = vld [vmem:[#allocation2 + $0x1910] sm:$0xff] }
 0x426   :  { %7311 = vmatprep.subr.bf16.mxu0 %v11356_v55  ;;  %7639 = vmatprep.subr.bf16.mxu1 %v11358_v25  ;;  %v11405_v55 = vcombine.low %v941_v53, %v945_v11  ;;  %v11412_v25 = vcombine.high %v948_v21, %v952_v26  ;;  %v11414_v33 = vcombine.high %v949_v27, %v953_v28  ;;  %v1000_v10 = vld [vmem:[#allocation2 + $0x1930] sm:$0xff]  ;;  %v997_v53 = vld [vmem:[#allocation2 + $0x1918] sm:$0xff] }
 0x427   :  { %v1001_v11 = vld [vmem:[#allocation2 + $0x1938] sm:$0xff] }
 0x429   :  { %7312 = vmatpush1.bf16.msra.mxu0 %v11355_v57  ;;  %7640 = vmatpush1.bf16.msra.mxu1 %v11357_v37  ;;  %v961_v57 = vld [vmem:[#allocation2 + $0x17f8] sm:$0xff]  ;;  %v11411_v37 = vcombine.low %v948_v21, %v952_v26  ;;  %v1008_v21 = vld [vmem:[#allocation2 + $0x1970] sm:$0xff] }
 0x42a   :  { %7313 = vmatprep.subr.bf16.mxu0 %v11364_v40  ;;  %7641 = vmatprep.subr.bf16.mxu1 %v11366_v41  ;;  %v11413_v40 = vcombine.low %v949_v27, %v953_v28  ;;  %v11420_v41 = vcombine.high %v956_v15, %v960_v35  ;;  %v11422_v38 = vcombine.high %v957_v36, %v961_v57  ;;  %v1005_v26 = vld [vmem:[#allocation2 + $0x1958] sm:$0xff] }
 0x42b   :  { %v1009_v27 = vld [vmem:[#allocation2 + $0x1978] sm:$0xff]  ;;  %v11459_v28 = vcombine.low %v996_v23, %v1000_v10 }
 0x42d   :  { %7314 = vmatpush1.bf16.msra.mxu0 %v11363_v44  ;;  %7642 = vmatpush1.bf16.msra.mxu1 %v11365_v45  ;;  %v969_v44 = vld [vmem:[#allocation2 + $0x1838] sm:$0xff]  ;;  %v11419_v45 = vcombine.low %v956_v15, %v960_v35  ;;  %v1016_v15 = vld [vmem:[#allocation2 + $0x19b0] sm:$0xff] }
 0x42e   :  { %7315 = vmatprep.subr.bf16.mxu0 %v11372_v47  ;;  %7643 = vmatprep.subr.bf16.mxu1 %v11374_v24  ;;  %v11421_v47 = vcombine.low %v957_v36, %v961_v57  ;;  %v11428_v24 = vcombine.high %v964_v34, %v968_v42  ;;  %v11430_v50 = vcombine.high %v965_v43, %v969_v44  ;;  %v1013_v35 = vld [vmem:[#allocation2 + $0x1998] sm:$0xff] }
 0x42f   :  { %v1017_v36 = vld [vmem:[#allocation2 + $0x19b8] sm:$0xff] }
 0x431   :  { %7316 = vmatpush1.bf16.msra.mxu0 %v11371_v16  ;;  %7644 = vmatpush1.bf16.msra.mxu1 %v11373_v56  ;;  %v977_v16 = vld [vmem:[#allocation2 + $0x1878] sm:$0xff]  ;;  %v11427_v56 = vcombine.low %v964_v34, %v968_v42  ;;  %v1024_v34 = vld [vmem:[#allocation2 + $0x19f0] sm:$0xff] }
 0x432   :  { %7317 = vmatprep.subr.bf16.mxu0 %v11380_v39  ;;  %7645 = vmatprep.subr.bf16.mxu1 %v11382_v58  ;;  %v11429_v39 = vcombine.low %v965_v43, %v969_v44  ;;  %v11436_v58 = vcombine.high %v972_v51, %v976_v52  ;;  %v11438_v60 = vcombine.high %v973_v54, %v977_v16  ;;  %v1021_v42 = vld [vmem:[#allocation2 + $0x19d8] sm:$0xff] }
 0x433   :  { %v1025_v43 = vld [vmem:[#allocation2 + $0x19f8] sm:$0xff] }
 0x435   :  { %7318 = vmatpush1.bf16.msra.mxu0 %v11379_v12  ;;  %7646 = vmatpush1.bf16.msra.mxu1 %v11381_v1  ;;  %v985_v12 = vld [vmem:[#allocation2 + $0x18b8] sm:$0xff]  ;;  %v11435_v1 = vcombine.low %v972_v51, %v976_v52  ;;  %v1032_v51 = vld [vmem:[#allocation2 + $0x1a30] sm:$0xff] }
 0x436   :  { %7319 = vmatprep.subr.bf16.mxu0 %v11388_v59  ;;  %7647 = vmatprep.subr.bf16.mxu1 %v11390_v2  ;;  %v11437_v59 = vcombine.low %v973_v54, %v977_v16  ;;  %v11444_v2 = vcombine.high %v980_v61, %v984_v62  ;;  %v11446_v3 = vcombine.high %v981_v63, %v985_v12  ;;  %v1029_v52 = vld [vmem:[#allocation2 + $0x1a18] sm:$0xff] }
 0x437   :  { %v1033_v54 = vld [vmem:[#allocation2 + $0x1a38] sm:$0xff] }
 0x439   :  { %7320 = vmatpush1.bf16.msra.mxu0 %v11387_v6  ;;  %7648 = vmatpush1.bf16.msra.mxu1 %v11389_v7  ;;  %v993_v6 = vld [vmem:[#allocation2 + $0x18f8] sm:$0xff]  ;;  %v11443_v7 = vcombine.low %v980_v61, %v984_v62  ;;  %v1040_v61 = vld [vmem:[#allocation2 + $0x1a70] sm:$0xff] }
 0x43a   :  { %7321 = vmatprep.subr.bf16.mxu0 %v11396_v8  ;;  %7649 = vmatprep.subr.bf16.mxu1 %v11398_v9  ;;  %v11452_v8 = vcombine.high %v988_v48, %v992_v4  ;;  %v11454_v9 = vcombine.high %v989_v5, %v993_v6  ;;  %v1037_v62 = vld [vmem:[#allocation2 + $0x1a58] sm:$0xff] }
 0x43d   :  { %7322 = vmatpush1.bf16.msra.mxu0 %v11395_v13  ;;  %7650 = vmatpush1.bf16.msra.mxu1 %v11397_v14  ;;  %v11451_v13 = vcombine.low %v988_v48, %v992_v4  ;;  %v11453_v14 = vcombine.low %v989_v5, %v993_v6  ;;  %v1048_v48 = vld [vmem:[#allocation2 + $0x1ab0] sm:$0xff]  ;;  %v1045_v4 = vld [vmem:[#allocation2 + $0x1a98] sm:$0xff] }
 0x43e   :  { %7323 = vmatprep.subr.bf16.mxu0 %v11404_v17  ;;  %7651 = vmatprep.subr.bf16.mxu1 %v11406_v18  ;;  %v11460_v17 = vcombine.high %v996_v23, %v1000_v10  ;;  %v1004_v18 = vld [vmem:[#allocation2 + $0x1950] sm:$0xff]  ;;  %v1049_v5 = vld [vmem:[#allocation2 + $0x1ab8] sm:$0xff] }
 0x43f   :  { %v11467_v57 = vcombine.low %v1004_v18, %v1008_v21  ;;  %v1056_v23 = vld [vmem:[#allocation2 + $0x1af0] sm:$0xff]  ;;  %v1053_v10 = vld [vmem:[#allocation2 + $0x1ad8] sm:$0xff] }
 0x441   :  { %7324 = vmatpush1.bf16.msra.mxu0 %v11403_v31  ;;  %7652 = vmatpush1.bf16.msra.mxu1 %v11405_v55  ;;  %v11461_v31 = vcombine.low %v997_v53, %v1001_v11  ;;  %v11468_v55 = vcombine.high %v1004_v18, %v1008_v21  ;;  %v1064_v18 = vld [vmem:[#allocation2 + $0x1b30] sm:$0xff]  ;;  %v1061_v21 = vld [vmem:[#allocation2 + $0x1b18] sm:$0xff] }
 0x442   :  { %7325 = vmatprep.subr.bf16.mxu0 %v11412_v25  ;;  %7653 = vmatprep.subr.bf16.mxu1 %v11414_v33  ;;  %v11470_v25 = vcombine.high %v1005_v26, %v1009_v27  ;;  %v1012_v33 = vld [vmem:[#allocation2 + $0x1990] sm:$0xff] }
 0x443   :  { %v11475_v44 = vcombine.low %v1012_v33, %v1016_v15 }
 0x445   :  { %7326 = vmatpush1.bf16.msra.mxu0 %v11411_v37  ;;  %7654 = vmatpush1.bf16.msra.mxu1 %v11413_v40  ;;  %v11469_v37 = vcombine.low %v1005_v26, %v1009_v27  ;;  %v11476_v40 = vcombine.high %v1012_v33, %v1016_v15  ;;  %v1065_v26 = vld [vmem:[#allocation2 + $0x1b38] sm:$0xff]  ;;  %v1072_v33 = vld [vmem:[#allocation2 + $0x1b70] sm:$0xff] }
 0x446   :  { %7327 = vmatprep.subr.bf16.mxu0 %v11420_v41  ;;  %7655 = vmatprep.subr.bf16.mxu1 %v11422_v38  ;;  %v11478_v41 = vcombine.high %v1013_v35, %v1017_v36  ;;  %v1020_v38 = vld [vmem:[#allocation2 + $0x19d0] sm:$0xff]  ;;  %v1069_v15 = vld [vmem:[#allocation2 + $0x1b58] sm:$0xff] }
 0x447   :  { %v11483_v16 = vcombine.low %v1020_v38, %v1024_v34 }
 0x449   :  { %7328 = vmatpush1.bf16.msra.mxu0 %v11419_v45  ;;  %7656 = vmatpush1.bf16.msra.mxu1 %v11421_v47  ;;  %v11477_v45 = vcombine.low %v1013_v35, %v1017_v36  ;;  %v11484_v47 = vcombine.high %v1020_v38, %v1024_v34  ;;  %v1073_v35 = vld [vmem:[#allocation2 + $0x1b78] sm:$0xff]  ;;  %v1080_v38 = vld [vmem:[#allocation2 + $0x1bb0] sm:$0xff] }
 0x44a   :  { %7338 = vmatprep.subr.bf16.mxu0 %v11428_v24  ;;  %7666 = vmatprep.subr.bf16.mxu1 %v11430_v50  ;;  %v11486_v24 = vcombine.high %v1021_v42, %v1025_v43  ;;  %v1028_v50 = vld [vmem:[#allocation2 + $0x1a10] sm:$0xff]  ;;  %v1077_v34 = vld [vmem:[#allocation2 + $0x1b98] sm:$0xff] }
 0x44c   :  { %7330 = vmatmul.mubr.bf16.vlgmr.msra.gmra.mrb[4].mxu0 %v13427_v46  ;;  %7658 = vmatmul.mubr.bf16.vlgmr.msra.gmra.mrb[4].mxu1 %v13427_v46  ;;  %v11445_v46 = vcombine.low %v981_v63, %v985_v12  ;;  %v1041_v63 = vld [vmem:[#allocation2 + $0x1a78] sm:$0xff]  ;;  %v11491_v12 = vcombine.low %v1028_v50, %v1032_v51 }
 0x44d   :  { %7339 = vmatpush1.bf16.msra.mxu0 %v11427_v56  ;;  %7667 = vmatpush1.bf16.msra.mxu1 %v11429_v39  ;;  %v11485_v56 = vcombine.low %v1021_v42, %v1025_v43  ;;  %v11492_v39 = vcombine.high %v1028_v50, %v1032_v51  ;;  %v1081_v42 = vld [vmem:[#allocation2 + $0x1bb8] sm:$0xff]  ;;  %v1088_v50 = vld [vmem:[#allocation2 + $0x1bf0] sm:$0xff] }
 0x44e   :  { %7340 = vmatprep.subr.bf16.mxu0 %v11436_v58  ;;  %7668 = vmatprep.subr.bf16.mxu1 %v11438_v60  ;;  %v11494_v58 = vcombine.high %v1029_v52, %v1033_v54  ;;  %v1036_v60 = vld [vmem:[#allocation2 + $0x1a50] sm:$0xff]  ;;  %v1085_v51 = vld [vmem:[#allocation2 + $0x1bd8] sm:$0xff] }
 0x44f   :  { %7370 = vmatprep.mubr.bf16.mxu0 %v13436_v19  ;;  %7698 = vmatprep.mubr.bf16.mxu1 %v13436_v19  ;;  %v11462_v19 = vcombine.high %v997_v53, %v1001_v11  ;;  %v11499_v6 = vcombine.low %v1036_v60, %v1040_v61  ;;  %v1057_v53 = vld [vmem:[#allocation2 + $0x1af8] sm:$0xff] }
 0x451   :  { %7341 = vmatpush1.bf16.msra.mxu0 %v11435_v1  ;;  %7669 = vmatpush1.bf16.msra.mxu1 %v11437_v59  ;;  %v11493_v1 = vcombine.low %v1029_v52, %v1033_v54  ;;  %v11500_v59 = vcombine.high %v1036_v60, %v1040_v61  ;;  %v1089_v52 = vld [vmem:[#allocation2 + $0x1bf8] sm:$0xff]  ;;  %v1096_v60 = vld [vmem:[#allocation2 + $0x1c30] sm:$0xff] }
 0x452   :  { %7342 = vmatprep.subr.bf16.mxu0 %v11444_v2  ;;  %7670 = vmatprep.subr.bf16.mxu1 %v11446_v3  ;;  %v11502_v2 = vcombine.high %v1037_v62, %v1041_v63  ;;  %v1044_v3 = vld [vmem:[#allocation2 + $0x1a90] sm:$0xff]  ;;  %v1093_v61 = vld [vmem:[#allocation2 + $0x1c18] sm:$0xff] }
 0x453   :  { %v11507_v11 = vcombine.low %v1044_v3, %v1048_v48 }
 0x455   :  { %7343 = vmatpush1.bf16.msra.mxu0 %v11443_v7  ;;  %7671 = vmatpush1.bf16.msra.mxu1 %v11445_v46  ;;  %v11501_v7 = vcombine.low %v1037_v62, %v1041_v63  ;;  %v11508_v46 = vcombine.high %v1044_v3, %v1048_v48  ;;  %v1097_v62 = vld [vmem:[#allocation2 + $0x1c38] sm:$0xff]  ;;  %v1104_v3 = vld [vmem:[#allocation2 + $0x1c70] sm:$0xff] }
 0x456   :  { %7344 = vmatprep.subr.bf16.mxu0 %v11452_v8  ;;  %7672 = vmatprep.subr.bf16.mxu1 %v11454_v9  ;;  %v11510_v8 = vcombine.high %v1045_v4, %v1049_v5  ;;  %v1052_v9 = vld [vmem:[#allocation2 + $0x1ad0] sm:$0xff]  ;;  %v1101_v48 = vld [vmem:[#allocation2 + $0x1c58] sm:$0xff] }
 0x457   :  { %v11515_v27 = vcombine.low %v1052_v9, %v1056_v23 }
 0x459   :  { %7345 = vmatpush1.bf16.msra.mxu0 %v11451_v13  ;;  %7673 = vmatpush1.bf16.msra.mxu1 %v11453_v14  ;;  %v11509_v13 = vcombine.low %v1045_v4, %v1049_v5  ;;  %v11516_v14 = vcombine.high %v1052_v9, %v1056_v23  ;;  %v1105_v4 = vld [vmem:[#allocation2 + $0x1c78] sm:$0xff]  ;;  %v1112_v9 = vld [vmem:[#allocation2 + $0x1cb0] sm:$0xff] }
 0x45a   :  { %7346 = vmatprep.subr.bf16.mxu0 %v11460_v17  ;;  %7674 = vmatprep.subr.bf16.mxu1 %v11462_v19  ;;  %v11518_v17 = vcombine.high %v1053_v10, %v1057_v53  ;;  %v1060_v19 = vld [vmem:[#allocation2 + $0x1b10] sm:$0xff]  ;;  %v1109_v23 = vld [vmem:[#allocation2 + $0x1c98] sm:$0xff] }
 0x45b   :  { %v11523_v36 = vcombine.low %v1060_v19, %v1064_v18 }
 0x45d   :  { %7347 = vmatpush1.bf16.msra.mxu0 %v11459_v28  ;;  %7675 = vmatpush1.bf16.msra.mxu1 %v11461_v31  ;;  %v11517_v28 = vcombine.low %v1053_v10, %v1057_v53  ;;  %v11524_v31 = vcombine.high %v1060_v19, %v1064_v18  ;;  %v1113_v10 = vld [vmem:[#allocation2 + $0x1cb8] sm:$0xff]  ;;  %v1120_v19 = vld [vmem:[#allocation2 + $0x1cf0] sm:$0xff] }
 0x45e   :  { %7348 = vmatprep.subr.bf16.mxu0 %v11468_v55  ;;  %7676 = vmatprep.subr.bf16.mxu1 %v11470_v25  ;;  %v11526_v55 = vcombine.high %v1061_v21, %v1065_v26  ;;  %v1068_v25 = vld [vmem:[#allocation2 + $0x1b50] sm:$0xff]  ;;  %v1117_v18 = vld [vmem:[#allocation2 + $0x1cd8] sm:$0xff] }
 0x45f   :  { %v11531_v43 = vcombine.low %v1068_v25, %v1072_v33 }
 0x461   :  { %7349 = vmatpush1.bf16.msra.mxu0 %v11467_v57  ;;  %7677 = vmatpush1.bf16.msra.mxu1 %v11469_v37  ;;  %v11525_v57 = vcombine.low %v1061_v21, %v1065_v26  ;;  %v11532_v37 = vcombine.high %v1068_v25, %v1072_v33  ;;  %v1121_v21 = vld [vmem:[#allocation2 + $0x1cf8] sm:$0xff] }
 0x462   :  { %7350 = vmatprep.subr.bf16.mxu0 %v11476_v40  ;;  %7678 = vmatprep.subr.bf16.mxu1 %v11478_v41  ;;  %v11534_v40 = vcombine.high %v1069_v15, %v1073_v35  ;;  %v1076_v41 = vld [vmem:[#allocation2 + $0x1b90] sm:$0xff]  ;;  %v1125_v25 = vld [vmem:[#allocation2 + $0x1d18] sm:$0xff] }
 0x463   :  { %v11539_v54 = vcombine.low %v1076_v41, %v1080_v38  ;;  %v1129_v33 = vld [vmem:[#allocation2 + $0x1d38] sm:$0xff] }
 0x465   :  { %7351 = vmatpush1.bf16.msra.mxu0 %v11475_v44  ;;  %7679 = vmatpush1.bf16.msra.mxu1 %v11477_v45  ;;  %v11533_v44 = vcombine.low %v1069_v15, %v1073_v35  ;;  %v11540_v45 = vcombine.high %v1076_v41, %v1080_v38  ;;  %v11581_v35 = vcombine.low %v1117_v18, %v1121_v21  ;;  %v1137_v41 = vld [vmem:[#allocation2 + $0x1d78] sm:$0xff] }
 0x466   :  { %7352 = vmatprep.subr.bf16.mxu0 %v11484_v47  ;;  %7680 = vmatprep.subr.bf16.mxu1 %v11486_v24  ;;  %v11542_v47 = vcombine.high %v1077_v34, %v1081_v42  ;;  %v1084_v24 = vld [vmem:[#allocation2 + $0x1bd0] sm:$0xff] }
 0x467   :  { %v11547_v63 = vcombine.low %v1084_v24, %v1088_v50 }
 0x469   :  { %7353 = vmatpush1.bf16.msra.mxu0 %v11483_v16  ;;  %7681 = vmatpush1.bf16.msra.mxu1 %v11485_v56  ;;  %v11541_v16 = vcombine.low %v1077_v34, %v1081_v42  ;;  %v11548_v56 = vcombine.high %v1084_v24, %v1088_v50  ;;  %v11589_v34 = vcombine.low %v1125_v25, %v1129_v33  ;;  %v1145_v24 = vld [vmem:[#allocation2 + $0x1db8] sm:$0xff] }
 0x46a   :  { %7354 = vmatprep.subr.bf16.mxu0 %v11492_v39  ;;  %7682 = vmatprep.subr.bf16.mxu1 %v11494_v58  ;;  %v11550_v39 = vcombine.high %v1085_v51, %v1089_v52  ;;  %v1092_v58 = vld [vmem:[#allocation2 + $0x1c10] sm:$0xff] }
 0x46b   :  { %v11555_v5 = vcombine.low %v1092_v58, %v1096_v60 }
 0x46d   :  { %7355 = vmatpush1.bf16.msra.mxu0 %v11491_v12  ;;  %7683 = vmatpush1.bf16.msra.mxu1 %v11493_v1  ;;  %v11549_v12 = vcombine.low %v1085_v51, %v1089_v52  ;;  %v11556_v1 = vcombine.high %v1092_v58, %v1096_v60  ;;  %v1149_v58 = vld [vmem:[#allocation2 + $0x1dd8] sm:$0xff] }
 0x46e   :  { %7356 = vmatprep.subr.bf16.mxu0 %v11500_v59  ;;  %7684 = vmatprep.subr.bf16.mxu1 %v11502_v2  ;;  %v11558_v59 = vcombine.high %v1093_v61, %v1097_v62  ;;  %v1100_v2 = vld [vmem:[#allocation2 + $0x1c50] sm:$0xff]  ;;  %v1153_v60 = vld [vmem:[#allocation2 + $0x1df8] sm:$0xff] }
 0x46f   :  { %v11563_v53 = vcombine.low %v1100_v2, %v1104_v3 }
 0x471   :  { %7357 = vmatpush1.bf16.msra.mxu0 %v11499_v6  ;;  %7685 = vmatpush1.bf16.msra.mxu1 %v11501_v7  ;;  %v11557_v6 = vcombine.low %v1093_v61, %v1097_v62  ;;  %v11564_v7 = vcombine.high %v1100_v2, %v1104_v3  ;;  %v1160_v2 = vld [vmem:[#allocation2 + $0x1e30] sm:$0xff]  ;;  %v1157_v3 = vld [vmem:[#allocation2 + $0x1e18] sm:$0xff] }
 0x472   :  { %7358 = vmatprep.subr.bf16.mxu0 %v11508_v46  ;;  %7686 = vmatprep.subr.bf16.mxu1 %v11510_v8  ;;  %v11566_v46 = vcombine.high %v1101_v48, %v1105_v4  ;;  %v1108_v8 = vld [vmem:[#allocation2 + $0x1c90] sm:$0xff] }
 0x473   :  { %v11571_v26 = vcombine.low %v1108_v8, %v1112_v9 }
 0x475   :  { %7359 = vmatpush1.bf16.msra.mxu0 %v11507_v11  ;;  %7687 = vmatpush1.bf16.msra.mxu1 %v11509_v13  ;;  %v11565_v11 = vcombine.low %v1101_v48, %v1105_v4  ;;  %v11572_v13 = vcombine.high %v1108_v8, %v1112_v9  ;;  %v1161_v48 = vld [vmem:[#allocation2 + $0x1e38] sm:$0xff]  ;;  %v1164_v8 = vld [vmem:[#allocation2 + $0x1e50] sm:$0xff] }
 0x476   :  { %7360 = vmatprep.subr.bf16.mxu0 %v11516_v14  ;;  %7688 = vmatprep.subr.bf16.mxu1 %v11518_v17  ;;  %v11574_v14 = vcombine.high %v1109_v23, %v1113_v10  ;;  %v1116_v17 = vld [vmem:[#allocation2 + $0x1cd0] sm:$0xff] }
 0x477   :  { %v11579_v15 = vcombine.low %v1116_v17, %v1120_v19  ;;  %v1168_v9 = vld [vmem:[#allocation2 + $0x1e70] sm:$0xff] }
 0x479   :  { %7361 = vmatpush1.bf16.msra.mxu0 %v11515_v27  ;;  %7689 = vmatpush1.bf16.msra.mxu1 %v11517_v28  ;;  %v11580_v27 = vcombine.high %v1116_v17, %v1120_v19  ;;  %v11582_v28 = vcombine.high %v1117_v18, %v1121_v21  ;;  %v1172_v18 = vld [vmem:[#allocation2 + $0x1e90] sm:$0xff] }
 0x47a   :  { %7362 = vmatprep.subr.bf16.mxu0 %v11524_v31  ;;  %7690 = vmatprep.subr.bf16.mxu1 %v11526_v55  ;;  %v1124_v31 = vld [vmem:[#allocation2 + $0x1d10] sm:$0xff] }
 0x47b   :  { %v1128_v55 = vld [vmem:[#allocation2 + $0x1d30] sm:$0xff] }
 0x47c   :  { %v11587_v38 = vcombine.low %v1124_v31, %v1128_v55  ;;  %v1176_v21 = vld [vmem:[#allocation2 + $0x1eb0] sm:$0xff] }
 0x47d   :  { %7363 = vmatpush1.bf16.msra.mxu0 %v11523_v36  ;;  %7691 = vmatpush1.bf16.msra.mxu1 %v11525_v57  ;;  %v11588_v36 = vcombine.high %v1124_v31, %v1128_v55  ;;  %v1132_v57 = vld [vmem:[#allocation2 + $0x1d50] sm:$0xff]  ;;  %v11636_v31 = vcombine.high %v1172_v18, %v1176_v21 }
 0x47e   :  { %7364 = vmatprep.subr.bf16.mxu0 %v11532_v37  ;;  %7692 = vmatprep.subr.bf16.mxu1 %v11534_v40  ;;  %v1136_v37 = vld [vmem:[#allocation2 + $0x1d70] sm:$0xff]  ;;  %v1133_v40 = vld [vmem:[#allocation2 + $0x1d58] sm:$0xff] }
 0x47f   :  { %v11596_v42 = vcombine.high %v1132_v57, %v1136_v37  ;;  %v11595_v50 = vcombine.low %v1132_v57, %v1136_v37  ;;  %v11597_v51 = vcombine.low %v1133_v40, %v1137_v41 }
 0x481   :  { %7365 = vmatpush1.bf16.msra.mxu0 %v11531_v43  ;;  %7693 = vmatpush1.bf16.msra.mxu1 %v11533_v44  ;;  %v11598_v43 = vcombine.high %v1133_v40, %v1137_v41  ;;  %v1140_v44 = vld [vmem:[#allocation2 + $0x1d90] sm:$0xff] }
 0x482   :  { %7366 = vmatprep.subr.bf16.mxu0 %v11540_v45  ;;  %7694 = vmatprep.subr.bf16.mxu1 %v11542_v47  ;;  %v1144_v45 = vld [vmem:[#allocation2 + $0x1db0] sm:$0xff]  ;;  %v1141_v47 = vld [vmem:[#allocation2 + $0x1d98] sm:$0xff] }
 0x483   :  { %v11604_v52 = vcombine.high %v1140_v44, %v1144_v45  ;;  %v11603_v61 = vcombine.low %v1140_v44, %v1144_v45  ;;  %v11605_v62 = vcombine.low %v1141_v47, %v1145_v24 }
 0x485   :  { %7367 = vmatpush1.bf16.msra.mxu0 %v11539_v54  ;;  %7695 = vmatpush1.bf16.msra.mxu1 %v11541_v16  ;;  %v1220_v54 = vlaneseq  ;;  %v11606_v16 = vcombine.high %v1141_v47, %v1145_v24  ;;  %v1196_v24 = vld [vmem:[#allocation2 + $0x1f50] sm:$0xff] }
 0x486   :  { %7368 = vmatprep.subr.bf16.mxu0 %v11548_v56  ;;  %7696 = vmatprep.subr.bf16.mxu1 %v11550_v39  ;;  %v1148_v56 = vld [vmem:[#allocation2 + $0x1dd0] sm:$0xff] }
 0x487   :  { %v1152_v39 = vld [vmem:[#allocation2 + $0x1df0] sm:$0xff] }
 0x488   :  { %v11611_v4 = vcombine.low %v1148_v56, %v1152_v39 }
 0x489   :  { %7369 = vmatpush1.bf16.msra.mxu0 %v11547_v63  ;;  %7697 = vmatpush1.bf16.msra.mxu1 %v11549_v12  ;;  %v11612_v63 = vcombine.high %v1148_v56, %v1152_v39  ;;  %v13503_v12 = vshrl.u32 %v1220_v54, 7 }
 0x48a   :  { %7379 = vmatprep.subr.bf16.mxu0 %v11556_v1  ;;  %7707 = vmatprep.subr.bf16.mxu1 %v11558_v59  ;;  %v11614_v1 = vcombine.high %v1149_v58, %v1153_v60  ;;  %v1156_v59 = vld [vmem:[#allocation2 + $0x1e10] sm:$0xff] }
 0x48c   :  { %7371 = vmatmul.mubr.bf16.vlgmr.msra.gmra.mrb[4].mxu0 %v13444_v20  ;;  %7699 = vmatmul.mubr.bf16.vlgmr.msra.gmra.mrb[4].mxu1 %v13444_v20  ;;  %v11573_v20 = vcombine.low %v1109_v23, %v1113_v10  ;;  %v13508_v23 = vld [vmem:[#allocation4] sm:$0xff]  ;;  %v1165_v10 = vld [vmem:[#allocation2 + $0x1e58] sm:$0xff] }
 0x48d   :  { %7380 = vmatpush1.bf16.msra.mxu0 %v11555_v5  ;;  %7708 = vmatpush1.bf16.msra.mxu1 %v11557_v6  ;;  %v11613_v5 = vcombine.low %v1149_v58, %v1153_v60  ;;  %v11620_v6 = vcombine.high %v1156_v59, %v1160_v2  ;;  %v1204_v58 = vld [vmem:[#allocation2 + $0x1f90] sm:$0xff] }
 0x48e   :  { %7381 = vmatprep.subr.bf16.mxu0 %v11564_v7  ;;  %7709 = vmatprep.subr.bf16.mxu1 %v11566_v46  ;;  %v13506_v7 = vsub.s32 1, %v13503_v12  ;;  %v11622_v46 = vcombine.high %v1157_v3, %v1161_v48  ;;  %v1208_v60 = vld [vmem:[#allocation2 + $0x1fb0] sm:$0xff] }
 0x48f   :  { %7411 = vmatprep.mubr.bf16.mxu0 %v13453_v49  ;;  %7739 = vmatprep.mubr.bf16.mxu1 %v13453_v49  ;;  %v11590_v49 = vcombine.high %v1125_v25, %v1129_v33  ;;  %v1180_v33 = vld [vmem:[#allocation2 + $0x1ed0] sm:$0xff] }
 0x490   :  { %v1227_v17 = vrot.slane %v13508_v23, %v13506_v7 }
 0x491   :  { %7382 = vmatpush1.bf16.msra.mxu0 %v11563_v53  ;;  %7710 = vmatpush1.bf16.msra.mxu1 %v11565_v11  ;;  %v1169_v53 = vld [vmem:[#allocation2 + $0x1e78] sm:$0xff]  ;;  %v11619_v11 = vcombine.low %v1156_v59, %v1160_v2  ;;  %v11668_v59 = vcombine.high %v1204_v58, %v1208_v60 }
 0x492   :  { %7383 = vmatprep.subr.bf16.mxu0 %v11572_v13  ;;  %7711 = vmatprep.subr.bf16.mxu1 %v11574_v14  ;;  %v11621_v13 = vcombine.low %v1157_v3, %v1161_v48  ;;  %v11628_v14 = vcombine.high %v1164_v8, %v1168_v9  ;;  %v11630_v19 = vcombine.high %v1165_v10, %v1169_v53  ;;  %v1212_v3 = vld [vmem:[#allocation2 + $0x1fd0] sm:$0xff] }
 0x493   :  { %v13513_v55 = vadd.f32 %v13483_v30, %v1227_v17  ;;  %v1189_v30 = vld [vmem:[#allocation2 + $0x1f18] sm:$0xff]  ;;  %v1216_v48 = vld [vmem:[#allocation2 + $0x1ff0] sm:$0xff] }
 0x494   :  { %v12295_v17 = vld [vmem:[#allocation6 + $0x4] ss:$16 sps:$4 sm:$0xff]  }
 0x495   :  { %7384 = vmatpush1.bf16.msra.mxu0 %v11571_v26  ;;  %7712 = vmatpush1.bf16.msra.mxu1 %v11573_v20  ;;  %v1173_v26 = vld [vmem:[#allocation2 + $0x1e98] sm:$0xff]  ;;  %v7758_v40 = vmul.f32 0.70710677, %v13513_v55 }
 0x496   :  { %7385 = vmatprep.subr.bf16.mxu0 %v11580_v27  ;;  %7713 = vmatprep.subr.bf16.mxu1 %v11582_v28  ;;  %v1177_v20 = vld [vmem:[#allocation2 + $0x1eb8] sm:$0xff]  ;;  %v11627_v27 = vcombine.low %v1164_v8, %v1168_v9  ;;  %v11629_v28 = vcombine.low %v1165_v10, %v1169_v53  ;;  %v11676_v9 = vcombine.high %v1212_v3, %v1216_v48 }
 0x497   :  { %v11638_v25 = vcombine.high %v1173_v26, %v1177_v20  ;;  %v11637_v57 = vcombine.low %v1173_v26, %v1177_v20  ;;  %12800 = verf.f32 %v7758_v40  ;;  %v12296_v26 = vld [vmem:[#allocation6 + $0x8] ss:$16 sps:$4 sm:$0xff]   ;;  %v12301_v20 = vld [vmem:[#allocation6 + $0x24] ss:$16 sps:$4 sm:$0xff]   ;;  %v12322_v40 = vld [vmem:[#allocation6 + $0x8c] ss:$16 sps:$4 sm:$0xff]  }
 0x499   :  { %7386 = vmatpush1.bf16.msra.mxu0 %v11579_v15  ;;  %7714 = vmatpush1.bf16.msra.mxu1 %v11581_v35  ;;  %v1184_v15 = vld [vmem:[#allocation2 + $0x1ef0] sm:$0xff]  ;;  %v1181_v35 = vld [vmem:[#allocation2 + $0x1ed8] sm:$0xff] }
 0x49a   :  { %7387 = vmatprep.subr.bf16.mxu0 %v11588_v36  ;;  %7715 = vmatprep.subr.bf16.mxu1 %v11590_v49  ;;  %v1185_v36 = vld [vmem:[#allocation2 + $0x1ef8] sm:$0xff]  ;;  %v11635_v49 = vcombine.low %v1172_v18, %v1176_v21  ;;  %v11644_v37 = vcombine.high %v1180_v33, %v1184_v15 }
 0x49b   :  { %v11646_v41 = vcombine.high %v1181_v35, %v1185_v36  ;;  %v11645_v44 = vcombine.low %v1181_v35, %v1185_v36  ;;  %v12293_v21 = vld [vmem:[#allocation6] ss:$16 sps:$4 sm:$0xff]   ;;  %v12308_v35 = vld [vmem:[#allocation6 + $0x48] ss:$16 sps:$4 sm:$0xff]   ;;  %v12313_v36 = vld [vmem:[#allocation6 + $0x64] ss:$16 sps:$4 sm:$0xff]  }
 0x49d   :  { %7388 = vmatpush1.bf16.msra.mxu0 %v11587_v38  ;;  %7716 = vmatpush1.bf16.msra.mxu1 %v11589_v34  ;;  %v1188_v38 = vld [vmem:[#allocation2 + $0x1f10] sm:$0xff] }
 0x49e   :  { %7389 = vmatprep.subr.bf16.mxu0 %v11596_v42  ;;  %7717 = vmatprep.subr.bf16.mxu1 %v11598_v43  ;;  %v1192_v34 = vld [vmem:[#allocation2 + $0x1f30] sm:$0xff]  ;;  %v1193_v42 = vld [vmem:[#allocation2 + $0x1f38] sm:$0xff]  ;;  %v11643_v43 = vcombine.low %v1180_v33, %v1184_v15 }
 0x49f   :  { %v11652_v45 = vcombine.high %v1188_v38, %v1192_v34  ;;  %v11654_v47 = vcombine.high %v1189_v30, %v1193_v42  ;;  %v11651_v54 = vcombine.low %v1188_v38, %v1192_v34  ;;  %v12310_v33 = vld [vmem:[#allocation6 + $0x4c] ss:$16 sps:$4 sm:$0xff]   ;;  %v12305_v15 = vld [vmem:[#allocation6 + $0x40] ss:$16 sps:$4 sm:$0xff]   ;;  %v12320_v38 = vld [vmem:[#allocation6 + $0x88] ss:$16 sps:$4 sm:$0xff]  }
 0x4a0   :  { %v12325_v34 = vld [vmem:[#allocation6 + $0xa4] ss:$16 sps:$4 sm:$0xff]  }
 0x4a1   :  { %7390 = vmatpush1.bf16.msra.mxu0 %v11595_v50  ;;  %7718 = vmatpush1.bf16.msra.mxu1 %v11597_v51  ;;  %v1200_v50 = vld [vmem:[#allocation2 + $0x1f70] sm:$0xff]  ;;  %v1197_v51 = vld [vmem:[#allocation2 + $0x1f58] sm:$0xff] }
 0x4a2   :  { %7391 = vmatprep.subr.bf16.mxu0 %v11604_v52  ;;  %7719 = vmatprep.subr.bf16.mxu1 %v11606_v16  ;;  %v1201_v52 = vld [vmem:[#allocation2 + $0x1f78] sm:$0xff]  ;;  %v11653_v16 = vcombine.low %v1189_v30, %v1193_v42  ;;  %v11660_v56 = vcombine.high %v1196_v24, %v1200_v50  ;;  %v12328_v30 = vld [vmem:[#allocation6 + $0xac] ss:$16 sps:$4 sm:$0xff]  }
 0x4a3   :  { %v11662_v39 = vcombine.high %v1197_v51, %v1201_v52  ;;  %v12323_v42 = vld [vmem:[#allocation6 + $0xa0] ss:$16 sps:$4 sm:$0xff]  }
 0x4a5   :  { %7392 = vmatpush1.bf16.msra.mxu0 %v11603_v61  ;;  %7720 = vmatpush1.bf16.msra.mxu1 %v11605_v62  ;;  %v1205_v61 = vld [vmem:[#allocation2 + $0x1f98] sm:$0xff] }
 0x4a6   :  { %7393 = vmatprep.subr.bf16.mxu0 %v11612_v63  ;;  %7721 = vmatprep.subr.bf16.mxu1 %v11614_v1  ;;  %v1209_v62 = vld [vmem:[#allocation2 + $0x1fb8] sm:$0xff]  ;;  %v11659_v63 = vcombine.low %v1196_v24, %v1200_v50  ;;  %v11661_v1 = vcombine.low %v1197_v51, %v1201_v52  ;;  %v12332_v24 = vld [vmem:[#allocation6 + $0xc8] ss:$16 sps:$4 sm:$0xff]   ;;  %v12340_v51 = vld [vmem:[#allocation6 + $0xec] ss:$16 sps:$4 sm:$0xff]   ;;  %v13520_v52 = vsub.s32 0, %v13503_v12 }
 0x4a7   :  { %v11670_v2 = vcombine.high %v1205_v61, %v1209_v62  ;;  %v11669_v8 = vcombine.low %v1205_v61, %v1209_v62  ;;  %v12337_v50 = vld [vmem:[#allocation6 + $0xe4] ss:$16 sps:$4 sm:$0xff]   ;;  %v12341_v61 = vld [vmem:[#allocation6 + $0x100] ss:$16 sps:$4 sm:$0xff]   ;;  %v12344_v62 = vld [vmem:[#allocation6 + $0x108] ss:$16 sps:$4 sm:$0xff]  }
 0x4a9   :  { %7394 = vmatpush1.bf16.msra.mxu0 %v11611_v4  ;;  %7722 = vmatpush1.bf16.msra.mxu1 %v11613_v5  ;;  %v1213_v4 = vld [vmem:[#allocation2 + $0x1fd8] sm:$0xff] }
 0x4aa   :  { %7395 = vmatprep.subr.bf16.mxu0 %v11620_v6  ;;  %7723 = vmatprep.subr.bf16.mxu1 %v11622_v46  ;;  %v1217_v5 = vld [vmem:[#allocation2 + $0x1ff8] sm:$0xff]  ;;  %v12801_v6 = vpop.eup %12800  ;;  %v11667_v46 = vcombine.low %v1204_v58, %v1208_v60  ;;  %v12346_v58 = vld [vmem:[#allocation6 + $0x10c] ss:$16 sps:$4 sm:$0xff]   ;;  %v1223_v60 = vrot.slane %v13508_v23, %v13520_v52 }
 0x4ab   :  { %v11678_v10 = vcombine.high %v1213_v4, %v1217_v5  ;;  %v7774_v53 = vadd.f32 1.0, %v12801_v6  ;;  %v12358_v6 = vld [vmem:[#allocation6 + $0x14c] ss:$16 sps:$4 sm:$0xff]  }
 0x4ad   :  { %7396 = vmatpush1.bf16.msra.mxu0 %v11619_v11  ;;  %7724 = vmatpush1.bf16.msra.mxu1 %v11621_v13  ;;  %v11675_v11 = vcombine.low %v1212_v3, %v1216_v48  ;;  %v7749_v13 = vmul.f32 0.5, %v13513_v55  ;;  %v12302_v55 = vld [vmem:[#allocation6 + $0x28] ss:$16 sps:$4 sm:$0xff]   ;;  %v12347_v3 = vld [vmem:[#allocation6 + $0x120] ss:$16 sps:$4 sm:$0xff]  }
 0x4ae   :  { %7397 = vmatprep.subr.bf16.mxu0 %v11628_v14  ;;  %7725 = vmatprep.subr.bf16.mxu1 %v11630_v19  ;;  %v11677_v14 = vcombine.low %v1213_v4, %v1217_v5  ;;  %v12298_v19 = vld [vmem:[#allocation6 + $0xc] ss:$16 sps:$4 sm:$0xff]   ;;  %v12350_v48 = vld [vmem:[#allocation6 + $0x128] ss:$16 sps:$4 sm:$0xff]   ;;  %v12355_v4 = vld [vmem:[#allocation6 + $0x144] ss:$16 sps:$4 sm:$0xff]  }
 0x4af   :  { %v7782_v18 = vmul.f32 %v7774_v53, %v7749_v13  ;;  %v12362_v13 = vld [vmem:[#allocation6 + $0x168] ss:$16 sps:$4 sm:$0xff]  }
 0x4b1   :  { %7398 = vmatpush1.bf16.msra.mxu0 %v11627_v27  ;;  %7726 = vmatpush1.bf16.msra.mxu1 %v11629_v28  ;;  %v8047_v27 = vpack.c.bf16 %v7782_v18, %v7782_v18  ;;  %v12304_v28 = vld [vmem:[#allocation6 + $0x2c] ss:$16 sps:$4 sm:$0xff]   ;;  %v12373_v18 = vld [vmem:[#allocation6 + $0x1a4] ss:$16 sps:$4 sm:$0xff]  }
 0x4b2   :  { %7399 = vmatprep.subr.bf16.mxu0 %v11636_v31  ;;  %7727 = vmatprep.subr.bf16.mxu1 %v11638_v25  ;;  %v12299_v31 = vld [vmem:[#allocation6 + $0x20] ss:$16 sps:$4 sm:$0xff]   ;;  %v12307_v25 = vld [vmem:[#allocation6 + $0x44] ss:$16 sps:$4 sm:$0xff]  }
 0x4b5   :  { %7400 = vmatpush1.bf16.msra.mxu0 %v11635_v49  ;;  %7728 = vmatpush1.bf16.msra.mxu1 %v11637_v57  ;;  %v12316_v49 = vld [vmem:[#allocation6 + $0x6c] ss:$16 sps:$4 sm:$0xff]   ;;  %v12314_v57 = vld [vmem:[#allocation6 + $0x68] ss:$16 sps:$4 sm:$0xff]  }
 0x4b6   :  { %7401 = vmatprep.subr.bf16.mxu0 %v11644_v37  ;;  %7729 = vmatprep.subr.bf16.mxu1 %v11646_v41  ;;  %v12319_v37 = vld [vmem:[#allocation6 + $0x84] ss:$16 sps:$4 sm:$0xff]   ;;  %v12317_v41 = vld [vmem:[#allocation6 + $0x80] ss:$16 sps:$4 sm:$0xff]  }
 0x4b9   :  { %7402 = vmatpush1.bf16.msra.mxu0 %v11643_v43  ;;  %7730 = vmatpush1.bf16.msra.mxu1 %v11645_v44  ;;  %v12326_v43 = vld [vmem:[#allocation6 + $0xa8] ss:$16 sps:$4 sm:$0xff]   ;;  %v12331_v44 = vld [vmem:[#allocation6 + $0xc4] ss:$16 sps:$4 sm:$0xff]  }
 0x4ba   :  { %7403 = vmatprep.subr.bf16.mxu0 %v11652_v45  ;;  %7731 = vmatprep.subr.bf16.mxu1 %v11654_v47  ;;  %v12334_v45 = vld [vmem:[#allocation6 + $0xcc] ss:$16 sps:$4 sm:$0xff]   ;;  %v12329_v47 = vld [vmem:[#allocation6 + $0xc0] ss:$16 sps:$4 sm:$0xff]  }
 0x4bd   :  { %7404 = vmatpush1.bf16.msra.mxu0 %v11651_v54  ;;  %7732 = vmatpush1.bf16.msra.mxu1 %v11653_v16  ;;  %v12335_v54 = vld [vmem:[#allocation6 + $0xe0] ss:$16 sps:$4 sm:$0xff]   ;;  %v12338_v16 = vld [vmem:[#allocation6 + $0xe8] ss:$16 sps:$4 sm:$0xff]  }
 0x4be   :  { %7405 = vmatprep.subr.bf16.mxu0 %v11660_v56  ;;  %7733 = vmatprep.subr.bf16.mxu1 %v11662_v39  ;;  %v12343_v56 = vld [vmem:[#allocation6 + $0x104] ss:$16 sps:$4 sm:$0xff]   ;;  %v1234_v39 = vsub.s32 3, %v13503_v12 }
 0x4c1   :  { %7406 = vmatpush1.bf16.msra.mxu0 %v11659_v63  ;;  %7734 = vmatpush1.bf16.msra.mxu1 %v11661_v1  ;;  %v12349_v63 = vld [vmem:[#allocation6 + $0x124] ss:$16 sps:$4 sm:$0xff]   ;;  %v1235_v1 = vrot.slane %v13508_v23, %v1234_v39 }
 0x4c2   :  { %7407 = vmatprep.subr.bf16.mxu0 %v11668_v59  ;;  %7735 = vmatprep.subr.bf16.mxu1 %v11670_v2  ;;  %v12352_v59 = vld [vmem:[#allocation6 + $0x12c] ss:$16 sps:$4 sm:$0xff]   ;;  %v12102_v2 = vadd.f32 %v13479_v22, %v1223_v60  ;;  %v12409_v60 = vld [vmem:[#allocation6 + $0x264] ss:$16 sps:$4 sm:$0xff]  }
 0x4c3   :  { %v12105_v5 = vadd.f32 %v13485_v32, %v1235_v1  ;;  %v12364_v22 = vld [vmem:[#allocation6 + $0x16c] ss:$16 sps:$4 sm:$0xff]   ;;  %v12415_v1 = vld [vmem:[#allocation6 + $0x284] ss:$16 sps:$4 sm:$0xff]  }
 0x4c4   :  { %v12370_v32 = vld [vmem:[#allocation6 + $0x18c] ss:$16 sps:$4 sm:$0xff]  }
 0x4c5   :  { %7408 = vmatpush1.bf16.msra.mxu0 %v11667_v46  ;;  %7736 = vmatpush1.bf16.msra.mxu1 %v11669_v8  ;;  %v7757_v46 = vmul.f32 0.70710677, %v12102_v2  ;;  %v12353_v8 = vld [vmem:[#allocation6 + $0x140] ss:$16 sps:$4 sm:$0xff]   ;;  %v7760_v53 = vmul.f32 0.70710677, %v12105_v5 }
 0x4c6   :  { %7409 = vmatprep.subr.bf16.mxu0 %v11676_v9  ;;  %7737 = vmatprep.subr.bf16.mxu1 %v11678_v10  ;;  %v12356_v9 = vld [vmem:[#allocation6 + $0x148] ss:$16 sps:$4 sm:$0xff]   ;;  %v12361_v10 = vld [vmem:[#allocation6 + $0x164] ss:$16 sps:$4 sm:$0xff]  }
 0x4c7   :  { %12802 = verf.f32 %v7757_v46  ;;  %v12427_v46 = vld [vmem:[#allocation6 + $0x2c4] ss:$16 sps:$4 sm:$0xff]  }
 0x4c8   :  { %12804 = verf.f32 %v7760_v53  ;;  %v12433_v53 = vld [vmem:[#allocation6 + $0x2e4] ss:$16 sps:$4 sm:$0xff]  }
 0x4c9   :  { %7410 = vmatpush1.bf16.msra.mxu0 %v11675_v11  ;;  %7738 = vmatpush1.bf16.msra.mxu1 %v11677_v14  ;;  %v12359_v11 = vld [vmem:[#allocation6 + $0x160] ss:$16 sps:$4 sm:$0xff]   ;;  %v12367_v14 = vld [vmem:[#allocation6 + $0x184] ss:$16 sps:$4 sm:$0xff]  }
 0x4ca   :  { %9355 = vmatprep.subr.bf16.mxu0 %v12295_v17  ;;  %9519 = vmatprep.subr.bf16.mxu1 %v12298_v19  ;;  %v12365_v17 = vld [vmem:[#allocation6 + $0x180] ss:$16 sps:$4 sm:$0xff]   ;;  %v12368_v19 = vld [vmem:[#allocation6 + $0x188] ss:$16 sps:$4 sm:$0xff]  }
 0x4cc   :  { %7412 = vmatmul.mubr.bf16.vlgmr.msra.gmra.mrb[4].mxu0 %v13461_v0  ;;  %7740 = vmatmul.mubr.bf16.vlgmr.msra.gmra.mrb[4].mxu1 %v13461_v0  ;;  %v12311_v0 = vld [vmem:[#allocation6 + $0x60] ss:$16 sps:$4 sm:$0xff]  }
 0x4cd   :  { %9356 = vmatpush1.bf16.msra.mxu0 %v12293_v21  ;;  %9387 = vmatprep.mubr.bf16.mxu0 %v8047_v27  ;;  %v12376_v21 = vld [vmem:[#allocation6 + $0x1ac] ss:$16 sps:$4 sm:$0xff]  }
 0x4ce   :  { %9520 = vmatpush1.bf16.msra.mxu1 %v12296_v26  ;;  %9551 = vmatprep.mubr.bf16.mxu1 %v8047_v27  ;;  %v12371_v26 = vld [vmem:[#allocation6 + $0x1a0] ss:$16 sps:$4 sm:$0xff]   ;;  %v12379_v27 = vld [vmem:[#allocation6 + $0x1c4] ss:$16 sps:$4 sm:$0xff]  }
 0x4cf   :  { %9357 = vmatprep.subr.bf16.mxu0 %v12301_v20  ;;  %9521 = vmatprep.subr.bf16.mxu1 %v12304_v28  ;;  %v12374_v20 = vld [vmem:[#allocation6 + $0x1a8] ss:$16 sps:$4 sm:$0xff]  }
 0x4d1   :  { %9358 = vmatpush1.bf16.msra.mxu0 %v12299_v31  ;;  %v12803_v28 = vpop.eup %12802  ;;  %v12382_v31 = vld [vmem:[#allocation6 + $0x1cc] ss:$16 sps:$4 sm:$0xff]  }
 0x4d2   :  { %9522 = vmatpush1.bf16.msra.mxu1 %v12302_v55  ;;  %9359 = vmatprep.subr.bf16.mxu0 %v12307_v25  ;;  %v12805_v55 = vpop.eup %12804  ;;  %v12377_v25 = vld [vmem:[#allocation6 + $0x1c0] ss:$16 sps:$4 sm:$0xff]  }
 0x4d3   :  { %9523 = vmatprep.subr.bf16.mxu1 %v12310_v33  ;;  %v7773_v33 = vadd.f32 1.0, %v12803_v28  ;;  %v12443_v28 = vld [vmem:[#allocation6 + $0x320] ss:$16 sps:$4 sm:$0xff]  }
 0x4d5   :  { %9360 = vmatpush1.bf16.msra.mxu0 %v12305_v15  ;;  %v12380_v15 = vld [vmem:[#allocation6 + $0x1c8] ss:$16 sps:$4 sm:$0xff]  }
 0x4d6   :  { %9524 = vmatpush1.bf16.msra.mxu1 %v12308_v35  ;;  %9361 = vmatprep.subr.bf16.mxu0 %v12313_v36  ;;  %v12385_v35 = vld [vmem:[#allocation6 + $0x1e4] ss:$16 sps:$4 sm:$0xff]   ;;  %v12388_v36 = vld [vmem:[#allocation6 + $0x1ec] ss:$16 sps:$4 sm:$0xff]  }
 0x4d7   :  { %9525 = vmatprep.subr.bf16.mxu1 %v12316_v49  ;;  %v7748_v49 = vmul.f32 0.5, %v12102_v2  ;;  %v12413_v2 = vld [vmem:[#allocation6 + $0x280] ss:$16 sps:$4 sm:$0xff]  }
 0x4d9   :  { %9362 = vmatpush1.bf16.msra.mxu0 %v12311_v0  ;;  %v7776_v0 = vadd.f32 1.0, %v12805_v55  ;;  %v12451_v55 = vld [vmem:[#allocation6 + $0x344] ss:$16 sps:$4 sm:$0xff]  }
 0x4da   :  { %9526 = vmatpush1.bf16.msra.mxu1 %v12314_v57  ;;  %9363 = vmatprep.subr.bf16.mxu0 %v12319_v37  ;;  %v12383_v57 = vld [vmem:[#allocation6 + $0x1e0] ss:$16 sps:$4 sm:$0xff]   ;;  %v7781_v37 = vmul.f32 %v7773_v33, %v7748_v49  ;;  %v12458_v49 = vld [vmem:[#allocation6 + $0x368] ss:$16 sps:$4 sm:$0xff]  }
 0x4db   :  { %9527 = vmatprep.subr.bf16.mxu1 %v12322_v40  ;;  %v7751_v40 = vmul.f32 0.5, %v12105_v5  ;;  %v12419_v5 = vld [vmem:[#allocation6 + $0x2a0] ss:$16 sps:$4 sm:$0xff]  }
 0x4dd   :  { %9364 = vmatpush1.bf16.msra.mxu0 %v12317_v41  ;;  %v12386_v41 = vld [vmem:[#allocation6 + $0x1e8] ss:$16 sps:$4 sm:$0xff]  }
 0x4de   :  { %9528 = vmatpush1.bf16.msra.mxu1 %v12320_v38  ;;  %9365 = vmatprep.subr.bf16.mxu0 %v12325_v34  ;;  %v12391_v38 = vld [vmem:[#allocation6 + $0x204] ss:$16 sps:$4 sm:$0xff]   ;;  %v12394_v34 = vld [vmem:[#allocation6 + $0x20c] ss:$16 sps:$4 sm:$0xff]  }
 0x4df   :  { %9529 = vmatprep.subr.bf16.mxu1 %v12328_v30  ;;  %v7784_v30 = vmul.f32 %v7776_v0, %v7751_v40  ;;  %v12463_v0 = vld [vmem:[#allocation6 + $0x384] ss:$16 sps:$4 sm:$0xff]   ;;  %v12464_v40 = vld [vmem:[#allocation6 + $0x388] ss:$16 sps:$4 sm:$0xff]  }
 0x4e1   :  { %9366 = vmatpush1.bf16.msra.mxu0 %v12323_v42  ;;  %v12389_v42 = vld [vmem:[#allocation6 + $0x200] ss:$16 sps:$4 sm:$0xff]  }
 0x4e2   :  { %9530 = vmatpush1.bf16.msra.mxu1 %v12326_v43  ;;  %9367 = vmatprep.subr.bf16.mxu0 %v12331_v44  ;;  %v8046_v43 = vpack.c.bf16 %v7781_v37, %v7781_v37  ;;  %v12392_v44 = vld [vmem:[#allocation6 + $0x208] ss:$16 sps:$4 sm:$0xff]   ;;  %v12461_v37 = vld [vmem:[#allocation6 + $0x380] ss:$16 sps:$4 sm:$0xff]  }
 0x4e3   :  { %9531 = vmatprep.subr.bf16.mxu1 %v12334_v45  ;;  %v12397_v45 = vld [vmem:[#allocation6 + $0x224] ss:$16 sps:$4 sm:$0xff]  }
 0x4e5   :  { %9368 = vmatpush1.bf16.msra.mxu0 %v12329_v47  ;;  %v8049_v47 = vpack.c.bf16 %v7784_v30, %v7784_v30  ;;  %v12470_v30 = vld [vmem:[#allocation6 + $0x3a8] ss:$16 sps:$4 sm:$0xff]  }
 0x4e6   :  { %9532 = vmatpush1.bf16.msra.mxu1 %v12332_v24  ;;  %9369 = vmatprep.subr.bf16.mxu0 %v12337_v50  ;;  %v12400_v24 = vld [vmem:[#allocation6 + $0x22c] ss:$16 sps:$4 sm:$0xff]   ;;  %v12395_v50 = vld [vmem:[#allocation6 + $0x220] ss:$16 sps:$4 sm:$0xff]  }
 0x4e7   :  { %9533 = vmatprep.subr.bf16.mxu1 %v12340_v51  ;;  %v12398_v51 = vld [vmem:[#allocation6 + $0x228] ss:$16 sps:$4 sm:$0xff]  }
 0x4e9   :  { %9370 = vmatpush1.bf16.msra.mxu0 %v12335_v54  ;;  %v12403_v54 = vld [vmem:[#allocation6 + $0x244] ss:$16 sps:$4 sm:$0xff]  }
 0x4ea   :  { %9534 = vmatpush1.bf16.msra.mxu1 %v12338_v16  ;;  %9371 = vmatprep.subr.bf16.mxu0 %v12343_v56  ;;  %v12406_v16 = vld [vmem:[#allocation6 + $0x24c] ss:$16 sps:$4 sm:$0xff]   ;;  %v12401_v56 = vld [vmem:[#allocation6 + $0x240] ss:$16 sps:$4 sm:$0xff]  }
 0x4eb   :  { %9535 = vmatprep.subr.bf16.mxu1 %v12346_v58  ;;  %v12404_v58 = vld [vmem:[#allocation6 + $0x248] ss:$16 sps:$4 sm:$0xff]  }
 0x4ed   :  { %9372 = vmatpush1.bf16.msra.mxu0 %v12341_v61  ;;  %v12412_v61 = vld [vmem:[#allocation6 + $0x26c] ss:$16 sps:$4 sm:$0xff]  }
 0x4ee   :  { %9536 = vmatpush1.bf16.msra.mxu1 %v12344_v62  ;;  %9373 = vmatprep.subr.bf16.mxu0 %v12349_v63  ;;  %v12407_v62 = vld [vmem:[#allocation6 + $0x260] ss:$16 sps:$4 sm:$0xff]   ;;  %v12410_v63 = vld [vmem:[#allocation6 + $0x268] ss:$16 sps:$4 sm:$0xff]  }
 0x4ef   :  { %9537 = vmatprep.subr.bf16.mxu1 %v12352_v59  ;;  %v12418_v59 = vld [vmem:[#allocation6 + $0x28c] ss:$16 sps:$4 sm:$0xff]  }
 0x4f1   :  { %9374 = vmatpush1.bf16.msra.mxu0 %v12347_v3  ;;  %v12416_v3 = vld [vmem:[#allocation6 + $0x288] ss:$16 sps:$4 sm:$0xff]  }
 0x4f2   :  { %9538 = vmatpush1.bf16.msra.mxu1 %v12350_v48  ;;  %9375 = vmatprep.subr.bf16.mxu0 %v12355_v4  ;;  %v12421_v48 = vld [vmem:[#allocation6 + $0x2a4] ss:$16 sps:$4 sm:$0xff]   ;;  %v12424_v4 = vld [vmem:[#allocation6 + $0x2ac] ss:$16 sps:$4 sm:$0xff]  }
 0x4f3   :  { %9539 = vmatprep.subr.bf16.mxu1 %v12358_v6  ;;  %v12422_v6 = vld [vmem:[#allocation6 + $0x2a8] ss:$16 sps:$4 sm:$0xff]  }
 0x4f5   :  { %9376 = vmatpush1.bf16.msra.mxu0 %v12353_v8  ;;  %v12430_v8 = vld [vmem:[#allocation6 + $0x2cc] ss:$16 sps:$4 sm:$0xff]  }
 0x4f6   :  { %9540 = vmatpush1.bf16.msra.mxu1 %v12356_v9  ;;  %9377 = vmatprep.subr.bf16.mxu0 %v12361_v10  ;;  %v12425_v9 = vld [vmem:[#allocation6 + $0x2c0] ss:$16 sps:$4 sm:$0xff]   ;;  %v12428_v10 = vld [vmem:[#allocation6 + $0x2c8] ss:$16 sps:$4 sm:$0xff]  }
 0x4f7   :  { %9541 = vmatprep.subr.bf16.mxu1 %v12364_v22  ;;  %v12436_v22 = vld [vmem:[#allocation6 + $0x2ec] ss:$16 sps:$4 sm:$0xff]  }
 0x4f9   :  { %9378 = vmatpush1.bf16.msra.mxu0 %v12359_v11  ;;  %v1230_v11 = vsub.s32 2, %v13503_v12 }
 0x4fa   :  { %9542 = vmatpush1.bf16.msra.mxu1 %v12362_v13  ;;  %9379 = vmatprep.subr.bf16.mxu0 %v12367_v14  ;;  %v12431_v13 = vld [vmem:[#allocation6 + $0x2e0] ss:$16 sps:$4 sm:$0xff]   ;;  %v12434_v14 = vld [vmem:[#allocation6 + $0x2e8] ss:$16 sps:$4 sm:$0xff]  }
 0x4fb   :  { %9543 = vmatprep.subr.bf16.mxu1 %v12370_v32  ;;  %v12439_v32 = vld [vmem:[#allocation6 + $0x304] ss:$16 sps:$4 sm:$0xff]  }
 0x4fd   :  { %9380 = vmatpush1.bf16.msra.mxu0 %v12365_v17  ;;  %v12442_v17 = vld [vmem:[#allocation6 + $0x30c] ss:$16 sps:$4 sm:$0xff]  }
 0x4fe   :  { %9544 = vmatpush1.bf16.msra.mxu1 %v12368_v19  ;;  %9381 = vmatprep.subr.bf16.mxu0 %v12373_v18  ;;  %v1231_v19 = vrot.slane %v13508_v23, %v1230_v11  ;;  %v12437_v18 = vld [vmem:[#allocation6 + $0x300] ss:$16 sps:$4 sm:$0xff]  }
 0x4ff   :  { %9545 = vmatprep.subr.bf16.mxu1 %v12376_v21  ;;  %v12440_v21 = vld [vmem:[#allocation6 + $0x308] ss:$16 sps:$4 sm:$0xff]   ;;  %v12449_v23 = vld [vmem:[#allocation6 + $0x340] ss:$16 sps:$4 sm:$0xff]  }
 0x501   :  { %9382 = vmatpush1.bf16.msra.mxu0 %v12371_v26  ;;  %v12445_v26 = vld [vmem:[#allocation6 + $0x324] ss:$16 sps:$4 sm:$0xff]  }
 0x502   :  { %9546 = vmatpush1.bf16.msra.mxu1 %v12374_v20  ;;  %9383 = vmatprep.subr.bf16.mxu0 %v12379_v27  ;;  %v12448_v20 = vld [vmem:[#allocation6 + $0x32c] ss:$16 sps:$4 sm:$0xff]   ;;  %v12104_v27 = vadd.f32 %v13481_v29, %v1231_v19  ;;  %v12455_v29 = vld [vmem:[#allocation6 + $0x360] ss:$16 sps:$4 sm:$0xff]  }
 0x503   :  { %9547 = vmatprep.subr.bf16.mxu1 %v12382_v31  ;;  %v12446_v31 = vld [vmem:[#allocation6 + $0x328] ss:$16 sps:$4 sm:$0xff]   ;;  %v12520_v19 = vld [vmem:[#allocation6 + $0x4ac] ss:$16 sps:$4 sm:$0xff]  }
 0x504   :  { %v7759_v33 = vmul.f32 0.70710677, %v12104_v27 }
 0x505   :  { %9384 = vmatpush1.bf16.msra.mxu0 %v12377_v25  ;;  %v12454_v25 = vld [vmem:[#allocation6 + $0x34c] ss:$16 sps:$4 sm:$0xff]  }
 0x506   :  { %9548 = vmatpush1.bf16.msra.mxu1 %v12380_v15  ;;  %9385 = vmatprep.subr.bf16.mxu0 %v12385_v35  ;;  %v12452_v15 = vld [vmem:[#allocation6 + $0x348] ss:$16 sps:$4 sm:$0xff]   ;;  %v12457_v35 = vld [vmem:[#allocation6 + $0x364] ss:$16 sps:$4 sm:$0xff]   ;;  %12806 = verf.f32 %v7759_v33 }
 0x507   :  { %9549 = vmatprep.subr.bf16.mxu1 %v12388_v36  ;;  %v12460_v36 = vld [vmem:[#allocation6 + $0x36c] ss:$16 sps:$4 sm:$0xff]   ;;  %v12530_v33 = vld [vmem:[#allocation6 + $0x4e8] ss:$16 sps:$4 sm:$0xff]  }
 0x509   :  { %9386 = vmatpush1.bf16.msra.mxu0 %v12383_v57  ;;  %v12466_v57 = vld [vmem:[#allocation6 + $0x38c] ss:$16 sps:$4 sm:$0xff]  }
 0x50a   :  { %9550 = vmatpush1.bf16.msra.mxu1 %v12386_v41  ;;  %9396 = vmatprep.subr.bf16.mxu0 %v12391_v38  ;;  %v12469_v41 = vld [vmem:[#allocation6 + $0x3a4] ss:$16 sps:$4 sm:$0xff]   ;;  %v12472_v38 = vld [vmem:[#allocation6 + $0x3ac] ss:$16 sps:$4 sm:$0xff]  }
 0x50b   :  { %9560 = vmatprep.subr.bf16.mxu1 %v12394_v34  ;;  %v12467_v34 = vld [vmem:[#allocation6 + $0x3a0] ss:$16 sps:$4 sm:$0xff]  }
 0x50c   :  { %9388 = vmatmul.mubr.bf16.vlgmr.msra.gmra.mrb[8].mxu0 %v8046_v43 }
 0x50d   :  { %9552 = vmatmul.mubr.bf16.vlgmr.msra.gmra.mrb[8].mxu1 %v8046_v43  ;;  %9397 = vmatpush1.bf16.msra.mxu0 %v12389_v42  ;;  %v12475_v42 = vld [vmem:[#allocation6 + $0x3c4] ss:$16 sps:$4 sm:$0xff]  }
 0x50e   :  { %9428 = vmatprep.mubr.bf16.mxu0 %v8049_v47  ;;  %9561 = vmatpush1.bf16.msra.mxu1 %v12392_v44  ;;  %v12478_v44 = vld [vmem:[#allocation6 + $0x3cc] ss:$16 sps:$4 sm:$0xff]  }
 0x50f   :  { %9592 = vmatprep.mubr.bf16.mxu1 %v8049_v47  ;;  %9398 = vmatprep.subr.bf16.mxu0 %v12397_v45  ;;  %v12473_v45 = vld [vmem:[#allocation6 + $0x3c0] ss:$16 sps:$4 sm:$0xff]  }
 0x510   :  { %9562 = vmatprep.subr.bf16.mxu1 %v12400_v24  ;;  %v12807_v43 = vpop.eup %12806  ;;  %v12476_v24 = vld [vmem:[#allocation6 + $0x3c8] ss:$16 sps:$4 sm:$0xff]  }
 0x511   :  { %9399 = vmatpush1.bf16.msra.mxu0 %v12395_v50  ;;  %v7775_v47 = vadd.f32 1.0, %v12807_v43  ;;  %v12481_v50 = vld [vmem:[#allocation6 + $0x3e4] ss:$16 sps:$4 sm:$0xff]   ;;  %v12554_v43 = vld [vmem:[#allocation6 + $0x568] ss:$16 sps:$4 sm:$0xff]  }
 0x512   :  { %9563 = vmatpush1.bf16.msra.mxu1 %v12398_v51  ;;  %9400 = vmatprep.subr.bf16.mxu0 %v12403_v54  ;;  %v12484_v51 = vld [vmem:[#allocation6 + $0x3ec] ss:$16 sps:$4 sm:$0xff]   ;;  %v7750_v54 = vmul.f32 0.5, %v12104_v27  ;;  %v12521_v27 = vld [vmem:[#allocation6 + $0x4c0] ss:$16 sps:$4 sm:$0xff]  }
 0x513   :  { %9564 = vmatprep.subr.bf16.mxu1 %v12406_v16  ;;  %v12479_v16 = vld [vmem:[#allocation6 + $0x3e0] ss:$16 sps:$4 sm:$0xff]  }
 0x515   :  { %9401 = vmatpush1.bf16.msra.mxu0 %v12401_v56  ;;  %v7783_v56 = vmul.f32 %v7775_v47, %v7750_v54  ;;  %v12557_v47 = vld [vmem:[#allocation6 + $0x580] ss:$16 sps:$4 sm:$0xff]  }
 0x516   :  { %9565 = vmatpush1.bf16.msra.mxu1 %v12404_v58  ;;  %9402 = vmatprep.subr.bf16.mxu0 %v12409_v60  ;;  %v12482_v58 = vld [vmem:[#allocation6 + $0x3e8] ss:$16 sps:$4 sm:$0xff]   ;;  %v12487_v60 = vld [vmem:[#allocation6 + $0x404] ss:$16 sps:$4 sm:$0xff]   ;;  %v12563_v54 = vld [vmem:[#allocation6 + $0x5a0] ss:$16 sps:$4 sm:$0xff]  }
 0x517   :  { %9566 = vmatprep.subr.bf16.mxu1 %v12412_v61  ;;  %v12490_v61 = vld [vmem:[#allocation6 + $0x40c] ss:$16 sps:$4 sm:$0xff]  }
 0x519   :  { %9403 = vmatpush1.bf16.msra.mxu0 %v12407_v62  ;;  %v12485_v62 = vld [vmem:[#allocation6 + $0x400] ss:$16 sps:$4 sm:$0xff]  }
 0x51a   :  { %9567 = vmatpush1.bf16.msra.mxu1 %v12410_v63  ;;  %9404 = vmatprep.subr.bf16.mxu0 %v12415_v1  ;;  %v8048_v63 = vpack.c.bf16 %v7783_v56, %v7783_v56  ;;  %v12488_v1 = vld [vmem:[#allocation6 + $0x408] ss:$16 sps:$4 sm:$0xff]   ;;  %v12571_v56 = vld [vmem:[#allocation6 + $0x5c4] ss:$16 sps:$4 sm:$0xff]  }
 0x51b   :  { %9568 = vmatprep.subr.bf16.mxu1 %v12418_v59  ;;  %v12493_v59 = vld [vmem:[#allocation6 + $0x424] ss:$16 sps:$4 sm:$0xff]  }
 0x51d   :  { %9405 = vmatpush1.bf16.msra.mxu0 %v12413_v2  ;;  %v12496_v2 = vld [vmem:[#allocation6 + $0x42c] ss:$16 sps:$4 sm:$0xff]  }
 0x51e   :  { %9569 = vmatpush1.bf16.msra.mxu1 %v12416_v3  ;;  %9406 = vmatprep.subr.bf16.mxu0 %v12421_v48  ;;  %v12491_v3 = vld [vmem:[#allocation6 + $0x420] ss:$16 sps:$4 sm:$0xff]   ;;  %v12494_v48 = vld [vmem:[#allocation6 + $0x428] ss:$16 sps:$4 sm:$0xff]  }
 0x51f   :  { %9570 = vmatprep.subr.bf16.mxu1 %v12424_v4  ;;  %v12499_v4 = vld [vmem:[#allocation6 + $0x444] ss:$16 sps:$4 sm:$0xff]  }
 0x521   :  { %9407 = vmatpush1.bf16.msra.mxu0 %v12419_v5  ;;  %v12502_v5 = vld [vmem:[#allocation6 + $0x44c] ss:$16 sps:$4 sm:$0xff]  }
 0x522   :  { %9571 = vmatpush1.bf16.msra.mxu1 %v12422_v6  ;;  %9408 = vmatprep.subr.bf16.mxu0 %v12427_v46  ;;  %v12497_v6 = vld [vmem:[#allocation6 + $0x440] ss:$16 sps:$4 sm:$0xff]   ;;  %v12500_v46 = vld [vmem:[#allocation6 + $0x448] ss:$16 sps:$4 sm:$0xff]  }
 0x523   :  { %9572 = vmatprep.subr.bf16.mxu1 %v12430_v8  ;;  %v12505_v8 = vld [vmem:[#allocation6 + $0x464] ss:$16 sps:$4 sm:$0xff]  }
 0x525   :  { %9409 = vmatpush1.bf16.msra.mxu0 %v12425_v9  ;;  %v12508_v9 = vld [vmem:[#allocation6 + $0x46c] ss:$16 sps:$4 sm:$0xff]  }
 0x526   :  { %9573 = vmatpush1.bf16.msra.mxu1 %v12428_v10  ;;  %9410 = vmatprep.subr.bf16.mxu0 %v12433_v53  ;;  %v12503_v10 = vld [vmem:[#allocation6 + $0x460] ss:$16 sps:$4 sm:$0xff]   ;;  %v12506_v53 = vld [vmem:[#allocation6 + $0x468] ss:$16 sps:$4 sm:$0xff]  }
 0x527   :  { %9574 = vmatprep.subr.bf16.mxu1 %v12436_v22  ;;  %v12511_v22 = vld [vmem:[#allocation6 + $0x484] ss:$16 sps:$4 sm:$0xff]  }
 0x529   :  { %9411 = vmatpush1.bf16.msra.mxu0 %v12431_v13  ;;  %v12514_v13 = vld [vmem:[#allocation6 + $0x48c] ss:$16 sps:$4 sm:$0xff]  }
 0x52a   :  { %9575 = vmatpush1.bf16.msra.mxu1 %v12434_v14  ;;  %9412 = vmatprep.subr.bf16.mxu0 %v12439_v32  ;;  %v12509_v14 = vld [vmem:[#allocation6 + $0x480] ss:$16 sps:$4 sm:$0xff]   ;;  %v12512_v32 = vld [vmem:[#allocation6 + $0x488] ss:$16 sps:$4 sm:$0xff]  }
 0x52b   :  { %9576 = vmatprep.subr.bf16.mxu1 %v12442_v17  ;;  %v12517_v17 = vld [vmem:[#allocation6 + $0x4a4] ss:$16 sps:$4 sm:$0xff]  }
 0x52d   :  { %9413 = vmatpush1.bf16.msra.mxu0 %v12437_v18  ;;  %v12515_v18 = vld [vmem:[#allocation6 + $0x4a0] ss:$16 sps:$4 sm:$0xff]  }
 0x52e   :  { %9577 = vmatpush1.bf16.msra.mxu1 %v12440_v21  ;;  %9414 = vmatprep.subr.bf16.mxu0 %v12445_v26  ;;  %v12518_v21 = vld [vmem:[#allocation6 + $0x4a8] ss:$16 sps:$4 sm:$0xff]   ;;  %v12523_v26 = vld [vmem:[#allocation6 + $0x4c4] ss:$16 sps:$4 sm:$0xff]  }
 0x52f   :  { %9578 = vmatprep.subr.bf16.mxu1 %v12448_v20  ;;  %v12526_v20 = vld [vmem:[#allocation6 + $0x4cc] ss:$16 sps:$4 sm:$0xff]  }
 0x531   :  { %9415 = vmatpush1.bf16.msra.mxu0 %v12443_v28  ;;  %v12524_v28 = vld [vmem:[#allocation6 + $0x4c8] ss:$16 sps:$4 sm:$0xff]  }
 0x532   :  { %9579 = vmatpush1.bf16.msra.mxu1 %v12446_v31  ;;  %9416 = vmatprep.subr.bf16.mxu0 %v12451_v55  ;;  %v12529_v31 = vld [vmem:[#allocation6 + $0x4e4] ss:$16 sps:$4 sm:$0xff]   ;;  %v12532_v55 = vld [vmem:[#allocation6 + $0x4ec] ss:$16 sps:$4 sm:$0xff]  }
 0x533   :  { %9580 = vmatprep.subr.bf16.mxu1 %v12454_v25  ;;  %v12527_v25 = vld [vmem:[#allocation6 + $0x4e0] ss:$16 sps:$4 sm:$0xff]  }
 0x535   :  { %9417 = vmatpush1.bf16.msra.mxu0 %v12449_v23  ;;  %v12535_v23 = vld [vmem:[#allocation6 + $0x504] ss:$16 sps:$4 sm:$0xff]  }
 0x536   :  { %9581 = vmatpush1.bf16.msra.mxu1 %v12452_v15  ;;  %9418 = vmatprep.subr.bf16.mxu0 %v12457_v35  ;;  %v12538_v15 = vld [vmem:[#allocation6 + $0x50c] ss:$16 sps:$4 sm:$0xff]   ;;  %v12533_v35 = vld [vmem:[#allocation6 + $0x500] ss:$16 sps:$4 sm:$0xff]  }
 0x537   :  { %9582 = vmatprep.subr.bf16.mxu1 %v12460_v36  ;;  %v12536_v36 = vld [vmem:[#allocation6 + $0x508] ss:$16 sps:$4 sm:$0xff]  }
 0x539   :  { %9419 = vmatpush1.bf16.msra.mxu0 %v12455_v29  ;;  %v12541_v29 = vld [vmem:[#allocation6 + $0x524] ss:$16 sps:$4 sm:$0xff]  }
 0x53a   :  { %9583 = vmatpush1.bf16.msra.mxu1 %v12458_v49  ;;  %9420 = vmatprep.subr.bf16.mxu0 %v12463_v0  ;;  %v12544_v49 = vld [vmem:[#allocation6 + $0x52c] ss:$16 sps:$4 sm:$0xff]   ;;  %v12539_v0 = vld [vmem:[#allocation6 + $0x520] ss:$16 sps:$4 sm:$0xff]  }
 0x53b   :  { %9584 = vmatprep.subr.bf16.mxu1 %v12466_v57  ;;  %v12542_v57 = vld [vmem:[#allocation6 + $0x528] ss:$16 sps:$4 sm:$0xff]  }
 0x53d   :  { %9421 = vmatpush1.bf16.msra.mxu0 %v12461_v37  ;;  %v12547_v37 = vld [vmem:[#allocation6 + $0x544] ss:$16 sps:$4 sm:$0xff]  }
 0x53e   :  { %9585 = vmatpush1.bf16.msra.mxu1 %v12464_v40  ;;  %9422 = vmatprep.subr.bf16.mxu0 %v12469_v41  ;;  %v12550_v40 = vld [vmem:[#allocation6 + $0x54c] ss:$16 sps:$4 sm:$0xff]   ;;  %v12545_v41 = vld [vmem:[#allocation6 + $0x540] ss:$16 sps:$4 sm:$0xff]  }
 0x53f   :  { %9586 = vmatprep.subr.bf16.mxu1 %v12472_v38  ;;  %v12548_v38 = vld [vmem:[#allocation6 + $0x548] ss:$16 sps:$4 sm:$0xff]  }
 0x541   :  { %9423 = vmatpush1.bf16.msra.mxu0 %v12467_v34  ;;  %v12553_v34 = vld [vmem:[#allocation6 + $0x564] ss:$16 sps:$4 sm:$0xff]  }
 0x542   :  { %9587 = vmatpush1.bf16.msra.mxu1 %v12470_v30  ;;  %9424 = vmatprep.subr.bf16.mxu0 %v12475_v42  ;;  %v12556_v30 = vld [vmem:[#allocation6 + $0x56c] ss:$16 sps:$4 sm:$0xff]   ;;  %v12551_v42 = vld [vmem:[#allocation6 + $0x560] ss:$16 sps:$4 sm:$0xff]  }
 0x543   :  { %9588 = vmatprep.subr.bf16.mxu1 %v12478_v44  ;;  %v12559_v44 = vld [vmem:[#allocation6 + $0x584] ss:$16 sps:$4 sm:$0xff]  }
 0x545   :  { %9425 = vmatpush1.bf16.msra.mxu0 %v12473_v45  ;;  %v12562_v45 = vld [vmem:[#allocation6 + $0x58c] ss:$16 sps:$4 sm:$0xff]  }
 0x546   :  { %9589 = vmatpush1.bf16.msra.mxu1 %v12476_v24  ;;  %9426 = vmatprep.subr.bf16.mxu0 %v12481_v50  ;;  %v12560_v24 = vld [vmem:[#allocation6 + $0x588] ss:$16 sps:$4 sm:$0xff]   ;;  %v12565_v50 = vld [vmem:[#allocation6 + $0x5a4] ss:$16 sps:$4 sm:$0xff]  }
 0x547   :  { %9590 = vmatprep.subr.bf16.mxu1 %v12484_v51  ;;  %v12568_v51 = vld [vmem:[#allocation6 + $0x5ac] ss:$16 sps:$4 sm:$0xff]  }
 0x549   :  { %9427 = vmatpush1.bf16.msra.mxu0 %v12479_v16  ;;  %v12566_v16 = vld [vmem:[#allocation6 + $0x5a8] ss:$16 sps:$4 sm:$0xff]  }
 0x54a   :  { %9591 = vmatpush1.bf16.msra.mxu1 %v12482_v58  ;;  %9437 = vmatprep.subr.bf16.mxu0 %v12487_v60  ;;  %v12574_v58 = vld [vmem:[#allocation6 + $0x5cc] ss:$16 sps:$4 sm:$0xff]   ;;  %v12569_v60 = vld [vmem:[#allocation6 + $0x5c0] ss:$16 sps:$4 sm:$0xff]  }
 0x54b   :  { %9601 = vmatprep.subr.bf16.mxu1 %v12490_v61  ;;  %v12572_v61 = vld [vmem:[#allocation6 + $0x5c8] ss:$16 sps:$4 sm:$0xff]  }
 0x54c   :  { %9429 = vmatmul.mubr.bf16.vlgmr.msra.gmra.mrb[8].mxu0 %v8048_v63 }
 0x54d   :  { %9593 = vmatmul.mubr.bf16.vlgmr.msra.gmra.mrb[8].mxu1 %v8048_v63  ;;  %9438 = vmatpush1.bf16.msra.mxu0 %v12485_v62  ;;  %v12577_v62 = vld [vmem:[#allocation6 + $0x5e4] ss:$16 sps:$4 sm:$0xff]   ;;  %v12580_v63 = vld [vmem:[#allocation6 + $0x5ec] ss:$16 sps:$4 sm:$0xff]  }
 0x54e   :  { %9602 = vmatpush1.bf16.msra.mxu1 %v12488_v1  ;;  %9439 = vmatprep.subr.bf16.mxu0 %v12493_v59  ;;  %v12575_v1 = vld [vmem:[#allocation6 + $0x5e0] ss:$16 sps:$4 sm:$0xff]   ;;  %v12578_v59 = vld [vmem:[#allocation6 + $0x5e8] ss:$16 sps:$4 sm:$0xff]  }
 0x54f   :  { %9603 = vmatprep.subr.bf16.mxu1 %v12496_v2  ;;  %v12583_v2 = vld [vmem:[#allocation6 + $0x604] ss:$16 sps:$4 sm:$0xff]  }
 0x551   :  { %9440 = vmatpush1.bf16.msra.mxu0 %v12491_v3  ;;  %v12586_v3 = vld [vmem:[#allocation6 + $0x60c] ss:$16 sps:$4 sm:$0xff]  }
 0x552   :  { %9604 = vmatpush1.bf16.msra.mxu1 %v12494_v48  ;;  %9441 = vmatprep.subr.bf16.mxu0 %v12499_v4  ;;  %v1238_v48 = vsub.s32 4, %v13503_v12  ;;  %v1242_v4 = vsub.s32 5, %v13503_v12 }
 0x553   :  { %9605 = vmatprep.subr.bf16.mxu1 %v12502_v5  ;;  %v1250_v5 = vsub.s32 7, %v13503_v12 }
 0x555   :  { %9442 = vmatpush1.bf16.msra.mxu0 %v12497_v6  ;;  %v13538_v6 = vld [vmem:[#allocation4] sm:$0xff] }
 0x556   :  { %9606 = vmatpush1.bf16.msra.mxu1 %v12500_v46  ;;  %9443 = vmatprep.subr.bf16.mxu0 %v12505_v8  ;;  %v1239_v46 = vrot.slane %v13538_v6, %v1238_v48  ;;  %v1243_v8 = vrot.slane %v13538_v6, %v1242_v4  ;;  %v12622_v48 = vld [vmem:[#allocation6 + $0x6cc] ss:$16 sps:$4 sm:$0xff]   ;;  %v12617_v4 = vld [vmem:[#allocation6 + $0x6c0] ss:$16 sps:$4 sm:$0xff]  }
 0x557   :  { %9607 = vmatprep.subr.bf16.mxu1 %v12508_v9  ;;  %v1251_v9 = vrot.slane %v13538_v6, %v1250_v5  ;;  %v12620_v5 = vld [vmem:[#allocation6 + $0x6c8] ss:$16 sps:$4 sm:$0xff]  }
 0x559   :  { %9444 = vmatpush1.bf16.msra.mxu0 %v12503_v10 }
 0x55a   :  { %9608 = vmatpush1.bf16.msra.mxu1 %v12506_v53  ;;  %9445 = vmatprep.subr.bf16.mxu0 %v12511_v22 }
 0x55b   :  { %9609 = vmatprep.subr.bf16.mxu1 %v12514_v13 }
 0x55d   :  { %9446 = vmatpush1.bf16.msra.mxu0 %v12509_v14 }
 0x55e   :  { %9610 = vmatpush1.bf16.msra.mxu1 %v12512_v32  ;;  %9447 = vmatprep.subr.bf16.mxu0 %v12517_v17 }
 0x55f   :  { %9611 = vmatprep.subr.bf16.mxu1 %v12520_v19 }
 0x561   :  { %9448 = vmatpush1.bf16.msra.mxu0 %v12515_v18 }
 0x562   :  { %9612 = vmatpush1.bf16.msra.mxu1 %v12518_v21  ;;  %9449 = vmatprep.subr.bf16.mxu0 %v12523_v26 }
 0x563   :  { %9613 = vmatprep.subr.bf16.mxu1 %v12526_v20 }
 0x565   :  { %9450 = vmatpush1.bf16.msra.mxu0 %v12521_v27 }
 0x566   :  { %9614 = vmatpush1.bf16.msra.mxu1 %v12524_v28  ;;  %9451 = vmatprep.subr.bf16.mxu0 %v12529_v31 }
 0x567   :  { %9615 = vmatprep.subr.bf16.mxu1 %v12532_v55 }
 0x569   :  { %9452 = vmatpush1.bf16.msra.mxu0 %v12527_v25 }
 0x56a   :  { %9616 = vmatpush1.bf16.msra.mxu1 %v12530_v33  ;;  %9453 = vmatprep.subr.bf16.mxu0 %v12535_v23 }
 0x56b   :  { %9617 = vmatprep.subr.bf16.mxu1 %v12538_v15 }
 0x56d   :  { %9454 = vmatpush1.bf16.msra.mxu0 %v12533_v35 }
 0x56e   :  { %9618 = vmatpush1.bf16.msra.mxu1 %v12536_v36  ;;  %9455 = vmatprep.subr.bf16.mxu0 %v12541_v29 }
 0x56f   :  { %9619 = vmatprep.subr.bf16.mxu1 %v12544_v49 }
 0x571   :  { %9456 = vmatpush1.bf16.msra.mxu0 %v12539_v0 }
 0x572   :  { %9620 = vmatpush1.bf16.msra.mxu1 %v12542_v57  ;;  %9457 = vmatprep.subr.bf16.mxu0 %v12547_v37 }
 0x573   :  { %9621 = vmatprep.subr.bf16.mxu1 %v12550_v40  ;;  %v12581_v40 = vld [vmem:[#allocation6 + $0x600] ss:$16 sps:$4 sm:$0xff]  }
 0x575   :  { %9458 = vmatpush1.bf16.msra.mxu0 %v12545_v41  ;;  %v12584_v41 = vld [vmem:[#allocation6 + $0x608] ss:$16 sps:$4 sm:$0xff]  }
 0x576   :  { %9622 = vmatpush1.bf16.msra.mxu1 %v12548_v38  ;;  %9459 = vmatprep.subr.bf16.mxu0 %v12553_v34  ;;  %v12589_v34 = vld [vmem:[#allocation6 + $0x624] ss:$16 sps:$4 sm:$0xff]  }
 0x577   :  { %9623 = vmatprep.subr.bf16.mxu1 %v12556_v30  ;;  %v12592_v30 = vld [vmem:[#allocation6 + $0x62c] ss:$16 sps:$4 sm:$0xff]  }
 0x579   :  { %9460 = vmatpush1.bf16.msra.mxu0 %v12551_v42 }
 0x57a   :  { %9624 = vmatpush1.bf16.msra.mxu1 %v12554_v43  ;;  %9461 = vmatprep.subr.bf16.mxu0 %v12559_v44  ;;  %v12587_v43 = vld [vmem:[#allocation6 + $0x620] ss:$16 sps:$4 sm:$0xff]   ;;  %v12590_v44 = vld [vmem:[#allocation6 + $0x628] ss:$16 sps:$4 sm:$0xff]  }
 0x57b   :  { %9625 = vmatprep.subr.bf16.mxu1 %v12562_v45  ;;  %v12595_v45 = vld [vmem:[#allocation6 + $0x644] ss:$16 sps:$4 sm:$0xff]  }
 0x57d   :  { %9462 = vmatpush1.bf16.msra.mxu0 %v12557_v47  ;;  %v12598_v47 = vld [vmem:[#allocation6 + $0x64c] ss:$16 sps:$4 sm:$0xff]  }
 0x57e   :  { %9626 = vmatpush1.bf16.msra.mxu1 %v12560_v24  ;;  %9463 = vmatprep.subr.bf16.mxu0 %v12565_v50  ;;  %v12593_v24 = vld [vmem:[#allocation6 + $0x640] ss:$16 sps:$4 sm:$0xff]   ;;  %v12596_v50 = vld [vmem:[#allocation6 + $0x648] ss:$16 sps:$4 sm:$0xff]  }
 0x57f   :  { %9627 = vmatprep.subr.bf16.mxu1 %v12568_v51  ;;  %v12601_v51 = vld [vmem:[#allocation6 + $0x664] ss:$16 sps:$4 sm:$0xff]  }
 0x581   :  { %9464 = vmatpush1.bf16.msra.mxu0 %v12563_v54  ;;  %v12604_v54 = vld [vmem:[#allocation6 + $0x66c] ss:$16 sps:$4 sm:$0xff]  }
 0x582   :  { %9628 = vmatpush1.bf16.msra.mxu1 %v12566_v16  ;;  %9465 = vmatprep.subr.bf16.mxu0 %v12571_v56  ;;  %v12599_v16 = vld [vmem:[#allocation6 + $0x660] ss:$16 sps:$4 sm:$0xff]   ;;  %v12602_v56 = vld [vmem:[#allocation6 + $0x668] ss:$16 sps:$4 sm:$0xff]  }
 0x583   :  { %9629 = vmatprep.subr.bf16.mxu1 %v12574_v58  ;;  %v12607_v58 = vld [vmem:[#allocation6 + $0x684] ss:$16 sps:$4 sm:$0xff]  }
 0x585   :  { %9466 = vmatpush1.bf16.msra.mxu0 %v12569_v60  ;;  %v12610_v60 = vld [vmem:[#allocation6 + $0x68c] ss:$16 sps:$4 sm:$0xff]  }
 0x586   :  { %9630 = vmatpush1.bf16.msra.mxu1 %v12572_v61  ;;  %9467 = vmatprep.subr.bf16.mxu0 %v12577_v62  ;;  %v12605_v61 = vld [vmem:[#allocation6 + $0x680] ss:$16 sps:$4 sm:$0xff]   ;;  %v12608_v62 = vld [vmem:[#allocation6 + $0x688] ss:$16 sps:$4 sm:$0xff]  }
 0x587   :  { %9631 = vmatprep.subr.bf16.mxu1 %v12580_v63  ;;  %v12613_v63 = vld [vmem:[#allocation6 + $0x6a4] ss:$16 sps:$4 sm:$0xff]  }
 0x589   :  { %9468 = vmatpush1.bf16.msra.mxu0 %v12575_v1  ;;  %v12616_v1 = vld [vmem:[#allocation6 + $0x6ac] ss:$16 sps:$4 sm:$0xff]  }
 0x58a   :  { %9632 = vmatpush1.bf16.msra.mxu1 %v12578_v59  ;;  %9478 = vmatprep.subr.bf16.mxu0 %v12583_v2  ;;  %v12611_v59 = vld [vmem:[#allocation6 + $0x6a0] ss:$16 sps:$4 sm:$0xff]   ;;  %v12614_v2 = vld [vmem:[#allocation6 + $0x6a8] ss:$16 sps:$4 sm:$0xff]  }
 0x58b   :  { %9642 = vmatprep.subr.bf16.mxu1 %v12586_v3  ;;  %v12619_v3 = vld [vmem:[#allocation6 + $0x6c4] ss:$16 sps:$4 sm:$0xff]  }
 0x59f   :  { %v7413_v10 = vpop.f32.mrb[4].mxu0  ;;  %v13543_v22 = vpop.f32.mrb[4].mxu1 }
 0x5a0   :  { %v12106_v53 = vadd.f32 %v7413_v10, %v1239_v46  ;;  %v7415_v13 = vpop.f32.mrb[5].mxu0  ;;  %v7743_v32 = vpop.f32.mrb[5].mxu1  ;;  %v12625_v46 = vld [vmem:[#allocation6 + $0x6e4] ss:$16 sps:$4 sm:$0xff]   ;;  %v12623_v10 = vld [vmem:[#allocation6 + $0x6e0] ss:$16 sps:$4 sm:$0xff]  }
 0x5a1   :  { %v12107_v14 = vadd.f32 %v7415_v13, %v1243_v8  ;;  %v7417_v17 = vpop.f32.mrb[6].mxu0  ;;  %v12109_v18 = vadd.f32 %v7743_v32, %v1251_v9  ;;  %v7745_v21 = vpop.f32.mrb[6].mxu1  ;;  %v12628_v8 = vld [vmem:[#allocation6 + $0x6ec] ss:$16 sps:$4 sm:$0xff]   ;;  %v1246_v9 = vsub.s32 6, %v13503_v12 }
 0x5a2   :  { %v7761_v19 = vmul.f32 0.70710677, %v12106_v53  ;;  %v7418_v26 = vpop.f32.mrb[7].mxu0  ;;  %v7746_v28 = vpop.f32.mrb[7].mxu1  ;;  %v7752_v33 = vmul.f32 0.5, %v12106_v53 }
 0x5a3   :  { %v7762_v20 = vmul.f32 0.70710677, %v12107_v14  ;;  %v7764_v27 = vmul.f32 0.70710677, %v12109_v18  ;;  %v7753_v15 = vmul.f32 0.5, %v12107_v14  ;;  %v7755_v29 = vmul.f32 0.5, %v12109_v18 }
 0x5a4   :  { %12808 = verf.f32 %v7761_v19  ;;  %v12626_v53 = vld [vmem:[#allocation6 + $0x6e8] ss:$16 sps:$4 sm:$0xff]   ;;  %v12631_v13 = vld [vmem:[#allocation6 + $0x704] ss:$16 sps:$4 sm:$0xff]   ;;  %v12634_v14 = vld [vmem:[#allocation6 + $0x70c] ss:$16 sps:$4 sm:$0xff]   ;;  %v1247_v32 = vrot.slane %v13538_v6, %v1246_v9 }
 0x5a5   :  { %12810 = verf.f32 %v7762_v20  ;;  %v12629_v17 = vld [vmem:[#allocation6 + $0x700] ss:$16 sps:$4 sm:$0xff]   ;;  %v12632_v19 = vld [vmem:[#allocation6 + $0x708] ss:$16 sps:$4 sm:$0xff]   ;;  %v12637_v18 = vld [vmem:[#allocation6 + $0x724] ss:$16 sps:$4 sm:$0xff]  }
 0x5a6   :  { %12812 = verf.f32 %v7764_v27  ;;  %v12640_v21 = vld [vmem:[#allocation6 + $0x72c] ss:$16 sps:$4 sm:$0xff]   ;;  %v12108_v26 = vadd.f32 %v13543_v22, %v1247_v32  ;;  %v12635_v20 = vld [vmem:[#allocation6 + $0x720] ss:$16 sps:$4 sm:$0xff]   ;;  %v12638_v27 = vld [vmem:[#allocation6 + $0x728] ss:$16 sps:$4 sm:$0xff]  }
 0x5a7   :  { %v12643_v28 = vld [vmem:[#allocation6 + $0x744] ss:$16 sps:$4 sm:$0xff]   ;;  %v12641_v6 = vld [vmem:[#allocation6 + $0x740] ss:$16 sps:$4 sm:$0xff]  }
 0x5a8   :  { %v12647_v22 = vld [vmem:[#allocation6 + $0x760] ss:$16 sps:$4 sm:$0xff]   ;;  %v12707_v32 = vld [vmem:[#allocation9 + $0xa0] ss:$8 sps:$4 sm:$0xff]   ;;  %v12758_v12 = vld [vmem:[#allocation9 + $0x1b0] ss:$8 sps:$4 sm:$0xff]  }
 0x5a9   :  { %v12703_v9 = vld [vmem:[#allocation9 + $0x84] ss:$8 sps:$4 sm:$0xff]  }
 0x5ae   :  { %v12809_v31 = vpop.eup %12808 }
 0x5af   :  { %v7777_v55 = vadd.f32 1.0, %v12809_v31  ;;  %v12811_v25 = vpop.eup %12810  ;;  %v12646_v31 = vld [vmem:[#allocation6 + $0x74c] ss:$16 sps:$4 sm:$0xff]  }
 0x5b0   :  { %v12813_v23 = vpop.eup %12812  ;;  %v7778_v35 = vadd.f32 1.0, %v12811_v25  ;;  %v12644_v25 = vld [vmem:[#allocation6 + $0x748] ss:$16 sps:$4 sm:$0xff]  }
 0x5b1   :  { %v7785_v36 = vmul.f32 %v7777_v55, %v7752_v33  ;;  %v7780_v49 = vadd.f32 1.0, %v12813_v23  ;;  %v7763_v55 = vmul.f32 0.70710677, %v12108_v26  ;;  %v12649_v33 = vld [vmem:[#allocation6 + $0x764] ss:$16 sps:$4 sm:$0xff]  }
 0x5b2   :  { %v7786_v0 = vmul.f32 %v7778_v35, %v7753_v15  ;;  %v12652_v23 = vld [vmem:[#allocation6 + $0x76c] ss:$16 sps:$4 sm:$0xff]   ;;  %v12650_v15 = vld [vmem:[#allocation6 + $0x768] ss:$16 sps:$4 sm:$0xff]   ;;  %v12655_v35 = vld [vmem:[#allocation6 + $0x784] ss:$16 sps:$4 sm:$0xff]  }
 0x5b3   :  { %v7788_v57 = vmul.f32 %v7780_v49, %v7755_v29  ;;  %v8050_v38 = vpack.c.bf16 %v7785_v36, %v7785_v36  ;;  %12814 = verf.f32 %v7763_v55  ;;  %v12658_v36 = vld [vmem:[#allocation6 + $0x78c] ss:$16 sps:$4 sm:$0xff]   ;;  %v12653_v29 = vld [vmem:[#allocation6 + $0x780] ss:$16 sps:$4 sm:$0xff]   ;;  %v12656_v49 = vld [vmem:[#allocation6 + $0x788] ss:$16 sps:$4 sm:$0xff]  }
 0x5b4   :  { %v8051_v37 = vpack.c.bf16 %v7786_v0, %v7786_v0  ;;  %v12661_v0 = vld [vmem:[#allocation6 + $0x7a4] ss:$16 sps:$4 sm:$0xff]  }
 0x5b5   :  { %v8053_v42 = vpack.c.bf16 %v7788_v57, %v7788_v57  ;;  %v12664_v57 = vld [vmem:[#allocation6 + $0x7ac] ss:$16 sps:$4 sm:$0xff]  }
 0x5b6   :  { %9469 = vmatprep.mubr.bf16.mxu0 %v8051_v37  ;;  %9633 = vmatprep.mubr.bf16.mxu1 %v8051_v37  ;;  %v12659_v37 = vld [vmem:[#allocation6 + $0x7a0] ss:$16 sps:$4 sm:$0xff]   ;;  %v12722_v55 = vld [vmem:[#allocation9 + $0xf0] ss:$8 sps:$4 sm:$0xff]  }
 0x5b7   :  { %9470 = vmatmul.mubr.bf16.vlgmr.msra.gmra.mrb[8].mxu0 %v8050_v38  ;;  %9634 = vmatmul.mubr.bf16.vlgmr.msra.gmra.mrb[8].mxu1 %v8050_v38  ;;  %v12670_v38 = vld [vmem:[#allocation6 + $0x7cc] ss:$16 sps:$4 sm:$0xff]  }
 0x5b8   :  { %9479 = vmatpush1.bf16.msra.mxu0 %v12581_v40  ;;  %9643 = vmatpush1.bf16.msra.mxu1 %v12584_v41  ;;  %v12662_v40 = vld [vmem:[#allocation6 + $0x7a8] ss:$16 sps:$4 sm:$0xff]   ;;  %v12667_v41 = vld [vmem:[#allocation6 + $0x7c4] ss:$16 sps:$4 sm:$0xff]  }
 0x5b9   :  { %9510 = vmatprep.mubr.bf16.mxu0 %v8053_v42  ;;  %9674 = vmatprep.mubr.bf16.mxu1 %v8053_v42  ;;  %v12668_v42 = vld [vmem:[#allocation6 + $0x7c8] ss:$16 sps:$4 sm:$0xff]  }
 0x5ba   :  { %9480 = vmatprep.subr.bf16.mxu0 %v12589_v34  ;;  %9644 = vmatprep.subr.bf16.mxu1 %v12592_v30  ;;  %v12665_v30 = vld [vmem:[#allocation6 + $0x7c0] ss:$16 sps:$4 sm:$0xff]  }
 0x5bc   :  { %9481 = vmatpush1.bf16.msra.mxu0 %v12587_v43  ;;  %9645 = vmatpush1.bf16.msra.mxu1 %v12590_v44  ;;  %v12673_v44 = vld [vmem:[#allocation6 + $0x7e4] ss:$16 sps:$4 sm:$0xff]  }
 0x5bd   :  { %9482 = vmatprep.subr.bf16.mxu0 %v12595_v45  ;;  %9646 = vmatprep.subr.bf16.mxu1 %v12598_v47  ;;  %v12815_v34 = vpop.eup %12814  ;;  %v12676_v45 = vld [vmem:[#allocation6 + $0x7ec] ss:$16 sps:$4 sm:$0xff]   ;;  %v7754_v47 = vmul.f32 0.5, %v12108_v26  ;;  %v12718_v26 = vld [vmem:[#allocation9 + $0xd4] ss:$8 sps:$4 sm:$0xff]  }
 0x5be   :  { %v7779_v43 = vadd.f32 1.0, %v12815_v34 }
 0x5c0   :  { %9483 = vmatpush1.bf16.msra.mxu0 %v12593_v24  ;;  %9647 = vmatpush1.bf16.msra.mxu1 %v12596_v50  ;;  %v12671_v24 = vld [vmem:[#allocation6 + $0x7e0] ss:$16 sps:$4 sm:$0xff]   ;;  %v12674_v50 = vld [vmem:[#allocation6 + $0x7e8] ss:$16 sps:$4 sm:$0xff]  }
 0x5c1   :  { %9484 = vmatprep.subr.bf16.mxu0 %v12601_v51  ;;  %9648 = vmatprep.subr.bf16.mxu1 %v12604_v54  ;;  %v7787_v51 = vmul.f32 %v7779_v43, %v7754_v47  ;;  %v12679_v54 = vld [vmem:[#allocation9 + $0x4] ss:$8 sps:$4 sm:$0xff]  }
 0x5c4   :  { %9485 = vmatpush1.bf16.msra.mxu0 %v12599_v16  ;;  %9649 = vmatpush1.bf16.msra.mxu1 %v12602_v56  ;;  %v12677_v16 = vld [vmem:[#allocation9] ss:$8 sps:$4 sm:$0xff]   ;;  %v8052_v56 = vpack.c.bf16 %v7787_v51, %v7787_v51 }
 0x5c5   :  { %9486 = vmatprep.subr.bf16.mxu0 %v12607_v58  ;;  %9650 = vmatprep.subr.bf16.mxu1 %v12610_v60  ;;  %v12682_v58 = vld [vmem:[#allocation9 + $0x14] ss:$8 sps:$4 sm:$0xff]   ;;  %v12680_v60 = vld [vmem:[#allocation9 + $0x10] ss:$8 sps:$4 sm:$0xff]  }
 0x5c8   :  { %9487 = vmatpush1.bf16.msra.mxu0 %v12605_v61  ;;  %9651 = vmatpush1.bf16.msra.mxu1 %v12608_v62  ;;  %v12685_v61 = vld [vmem:[#allocation9 + $0x24] ss:$8 sps:$4 sm:$0xff]   ;;  %v12683_v62 = vld [vmem:[#allocation9 + $0x20] ss:$8 sps:$4 sm:$0xff]  }
 0x5c9   :  { %9488 = vmatprep.subr.bf16.mxu0 %v12613_v63  ;;  %9652 = vmatprep.subr.bf16.mxu1 %v12616_v1  ;;  %v12688_v63 = vld [vmem:[#allocation9 + $0x34] ss:$8 sps:$4 sm:$0xff]   ;;  %v12686_v1 = vld [vmem:[#allocation9 + $0x30] ss:$8 sps:$4 sm:$0xff]  }
 0x5cc   :  { %9489 = vmatpush1.bf16.msra.mxu0 %v12611_v59  ;;  %9653 = vmatpush1.bf16.msra.mxu1 %v12614_v2  ;;  %v12691_v59 = vld [vmem:[#allocation9 + $0x44] ss:$8 sps:$4 sm:$0xff]   ;;  %v12689_v2 = vld [vmem:[#allocation9 + $0x40] ss:$8 sps:$4 sm:$0xff]  }
 0x5cd   :  { %9490 = vmatprep.subr.bf16.mxu0 %v12619_v3  ;;  %9654 = vmatprep.subr.bf16.mxu1 %v12622_v48  ;;  %v12694_v3 = vld [vmem:[#allocation9 + $0x54] ss:$8 sps:$4 sm:$0xff]   ;;  %v12692_v48 = vld [vmem:[#allocation9 + $0x50] ss:$8 sps:$4 sm:$0xff]  }
 0x5d0   :  { %9491 = vmatpush1.bf16.msra.mxu0 %v12617_v4  ;;  %9655 = vmatpush1.bf16.msra.mxu1 %v12620_v5  ;;  %v12697_v4 = vld [vmem:[#allocation9 + $0x64] ss:$8 sps:$4 sm:$0xff]   ;;  %v12695_v5 = vld [vmem:[#allocation9 + $0x60] ss:$8 sps:$4 sm:$0xff]  }
 0x5d1   :  { %9492 = vmatprep.subr.bf16.mxu0 %v12625_v46  ;;  %9656 = vmatprep.subr.bf16.mxu1 %v12628_v8  ;;  %v12700_v46 = vld [vmem:[#allocation9 + $0x74] ss:$8 sps:$4 sm:$0xff]   ;;  %v12698_v8 = vld [vmem:[#allocation9 + $0x70] ss:$8 sps:$4 sm:$0xff]  }
 0x5d4   :  { %9493 = vmatpush1.bf16.msra.mxu0 %v12623_v10  ;;  %9657 = vmatpush1.bf16.msra.mxu1 %v12626_v53  ;;  %v12701_v10 = vld [vmem:[#allocation9 + $0x80] ss:$8 sps:$4 sm:$0xff]   ;;  %v12706_v53 = vld [vmem:[#allocation9 + $0x94] ss:$8 sps:$4 sm:$0xff]  }
 0x5d5   :  { %9494 = vmatprep.subr.bf16.mxu0 %v12631_v13  ;;  %9658 = vmatprep.subr.bf16.mxu1 %v12634_v14  ;;  %v12704_v13 = vld [vmem:[#allocation9 + $0x90] ss:$8 sps:$4 sm:$0xff]   ;;  %v12709_v14 = vld [vmem:[#allocation9 + $0xa4] ss:$8 sps:$4 sm:$0xff]  }
 0x5d8   :  { %9495 = vmatpush1.bf16.msra.mxu0 %v12629_v17  ;;  %9659 = vmatpush1.bf16.msra.mxu1 %v12632_v19  ;;  %v12712_v17 = vld [vmem:[#allocation9 + $0xb4] ss:$8 sps:$4 sm:$0xff]   ;;  %v12710_v19 = vld [vmem:[#allocation9 + $0xb0] ss:$8 sps:$4 sm:$0xff]  }
 0x5d9   :  { %9496 = vmatprep.subr.bf16.mxu0 %v12637_v18  ;;  %9660 = vmatprep.subr.bf16.mxu1 %v12640_v21  ;;  %v12715_v18 = vld [vmem:[#allocation9 + $0xc4] ss:$8 sps:$4 sm:$0xff]   ;;  %v12713_v21 = vld [vmem:[#allocation9 + $0xc0] ss:$8 sps:$4 sm:$0xff]  }
 0x5dc   :  { %9497 = vmatpush1.bf16.msra.mxu0 %v12635_v20  ;;  %9661 = vmatpush1.bf16.msra.mxu1 %v12638_v27  ;;  %v12716_v20 = vld [vmem:[#allocation9 + $0xd0] ss:$8 sps:$4 sm:$0xff]   ;;  %v12721_v27 = vld [vmem:[#allocation9 + $0xe4] ss:$8 sps:$4 sm:$0xff]  }
 0x5dd   :  { %9498 = vmatprep.subr.bf16.mxu0 %v12643_v28  ;;  %9662 = vmatprep.subr.bf16.mxu1 %v12646_v31  ;;  %v12719_v28 = vld [vmem:[#allocation9 + $0xe0] ss:$8 sps:$4 sm:$0xff]   ;;  %v12724_v31 = vld [vmem:[#allocation9 + $0xf4] ss:$8 sps:$4 sm:$0xff]  }
 0x5e0   :  { %9499 = vmatpush1.bf16.msra.mxu0 %v12641_v6  ;;  %9663 = vmatpush1.bf16.msra.mxu1 %v12644_v25  ;;  %v12727_v6 = vld [vmem:[#allocation9 + $0x104] ss:$8 sps:$4 sm:$0xff]  }
 0x5e1   :  { %9500 = vmatprep.subr.bf16.mxu0 %v12649_v33  ;;  %9664 = vmatprep.subr.bf16.mxu1 %v12652_v23  ;;  %v12773_v25 = vld [vmem:[#allocation12 + $0x40] sm:$0xff]   ;;  %v12775_v23 = vld [vmem:[#allocation12 + $0x48] sm:$0xff]  }
 0x5e2   :  { %v12774_v33 = vld [vmem:[#allocation12] sm:$0xff]  }
 0x5e4   :  { %9501 = vmatpush1.bf16.msra.mxu0 %v12647_v22  ;;  %9665 = vmatpush1.bf16.msra.mxu1 %v12650_v15  ;;  %v12776_v22 = vld [vmem:[#allocation12 + $0x8] sm:$0xff]   ;;  %v13548_v15 = vld [vmem:[#allocation7] sm:$0xf] }
 0x5e5   :  { %9502 = vmatprep.subr.bf16.mxu0 %v12655_v35  ;;  %9666 = vmatprep.subr.bf16.mxu1 %v12658_v36  ;;  %v8058_v35 = vrot.slane %v13548_v15, %v13520_v52  ;;  %v8062_v36 = vrot.slane %v13548_v15, %v13506_v7 }
 0x5e8   :  { %9503 = vmatpush1.bf16.msra.mxu0 %v12653_v29  ;;  %9667 = vmatpush1.bf16.msra.mxu1 %v12656_v49  ;;  %v8070_v29 = vrot.slane %v13548_v15, %v1234_v39 }
 0x5e9   :  { %9504 = vmatprep.subr.bf16.mxu0 %v12661_v0  ;;  %9668 = vmatprep.subr.bf16.mxu1 %v12664_v57 }
 0x5ec   :  { %9505 = vmatpush1.bf16.msra.mxu0 %v12659_v37  ;;  %9669 = vmatpush1.bf16.msra.mxu1 %v12662_v40 }
 0x5ed   :  { %9506 = vmatprep.subr.bf16.mxu0 %v12667_v41  ;;  %9670 = vmatprep.subr.bf16.mxu1 %v12670_v38 }
 0x5f0   :  { %9507 = vmatpush1.bf16.msra.mxu0 %v12665_v30  ;;  %9671 = vmatpush1.bf16.msra.mxu1 %v12668_v42 }
 0x5f1   :  { %9508 = vmatprep.subr.bf16.mxu0 %v12673_v44  ;;  %9672 = vmatprep.subr.bf16.mxu1 %v12676_v45 }
 0x5f4   :  { %9509 = vmatpush1.bf16.msra.mxu0 %v12671_v24  ;;  %9673 = vmatpush1.bf16.msra.mxu1 %v12674_v50 }
 0x5f5   :  { %10103 = vmatprep.subr.bf16.mxu0 %v12679_v54  ;;  %12032 = vmatprep.subr.bf16.mxu1 %v12773_v25  ;;  %v12755_v25 = vld [vmem:[#allocation9 + $0x1a0] ss:$8 sps:$4 sm:$0xff]  }
 0x5f7   :  { %9511 = vmatmul.mubr.bf16.vlgmr.msra.gmra.mrb[8].mxu0 %v8052_v56  ;;  %9675 = vmatmul.mubr.bf16.vlgmr.msra.gmra.mrb[8].mxu1 %v8052_v56 }
 0x5f8   :  { %10104 = vmatpush1.bf16.msra.mxu0 %v12677_v16  ;;  %12033 = vmatpush3.bf16.msra.mxu1 %v12774_v33  ;;  %v12760_v33 = vld [vmem:[#allocation9 + $0x1b4] ss:$8 sps:$4 sm:$0xff]  }
 0x5f9   :  { %10105 = vmatprep.subr.bf16.mxu0 %v12682_v58  ;;  %12034 = vmatprep.subr.bf16.mxu1 %v12775_v23  ;;  %v12761_v23 = vld [vmem:[#allocation9 + $0x1c0] ss:$8 sps:$4 sm:$0xff]  }
 0x5fc   :  { %10106 = vmatpush1.bf16.msra.mxu0 %v12680_v60  ;;  %12035 = vmatpush3.bf16.msra.mxu1 %v12776_v22  ;;  %v12766_v22 = vld [vmem:[#allocation9 + $0x1d4] ss:$8 sps:$4 sm:$0xff]  }
 0x5fd   :  { %10107 = vmatprep.subr.bf16.mxu0 %v12685_v61 }
 0x600   :  { %10108 = vmatpush1.bf16.msra.mxu0 %v12683_v62 }
 0x601   :  { %10109 = vmatprep.subr.bf16.mxu0 %v12688_v63 }
 0x604   :  { %10110 = vmatpush1.bf16.msra.mxu0 %v12686_v1 }
 0x605   :  { %10111 = vmatprep.subr.bf16.mxu0 %v12691_v59  ;;  %v12725_v59 = vld [vmem:[#allocation9 + $0x100] ss:$8 sps:$4 sm:$0xff]  }
 0x608   :  { %10112 = vmatpush1.bf16.msra.mxu0 %v12689_v2 }
 0x609   :  { %10113 = vmatprep.subr.bf16.mxu0 %v12694_v3  ;;  %v12730_v3 = vld [vmem:[#allocation9 + $0x114] ss:$8 sps:$4 sm:$0xff]  }
 0x60c   :  { %10114 = vmatpush1.bf16.msra.mxu0 %v12692_v48 }
 0x60d   :  { %10115 = vmatprep.subr.bf16.mxu0 %v12697_v4  ;;  %v12728_v4 = vld [vmem:[#allocation9 + $0x110] ss:$8 sps:$4 sm:$0xff]  }
 0x610   :  { %10116 = vmatpush1.bf16.msra.mxu0 %v12695_v5  ;;  %v12733_v5 = vld [vmem:[#allocation9 + $0x124] ss:$8 sps:$4 sm:$0xff]  }
 0x611   :  { %10117 = vmatprep.subr.bf16.mxu0 %v12700_v46  ;;  %v12731_v46 = vld [vmem:[#allocation9 + $0x120] ss:$8 sps:$4 sm:$0xff]  }
 0x614   :  { %10118 = vmatpush1.bf16.msra.mxu0 %v12698_v8  ;;  %v12736_v8 = vld [vmem:[#allocation9 + $0x134] ss:$8 sps:$4 sm:$0xff]  }
 0x615   :  { %10119 = vmatprep.subr.bf16.mxu0 %v12703_v9  ;;  %v12734_v9 = vld [vmem:[#allocation9 + $0x130] ss:$8 sps:$4 sm:$0xff]  }
 0x618   :  { %10120 = vmatpush1.bf16.msra.mxu0 %v12701_v10  ;;  %v12739_v10 = vld [vmem:[#allocation9 + $0x144] ss:$8 sps:$4 sm:$0xff]  }
 0x619   :  { %10121 = vmatprep.subr.bf16.mxu0 %v12706_v53  ;;  %v12737_v53 = vld [vmem:[#allocation9 + $0x140] ss:$8 sps:$4 sm:$0xff]  }
 0x61c   :  { %10122 = vmatpush1.bf16.msra.mxu0 %v12704_v13  ;;  %v12742_v13 = vld [vmem:[#allocation9 + $0x154] ss:$8 sps:$4 sm:$0xff]  }
 0x61d   :  { %10123 = vmatprep.subr.bf16.mxu0 %v12709_v14  ;;  %v12740_v14 = vld [vmem:[#allocation9 + $0x150] ss:$8 sps:$4 sm:$0xff]  }
 0x620   :  { %10124 = vmatpush1.bf16.msra.mxu0 %v12707_v32  ;;  %v12745_v32 = vld [vmem:[#allocation9 + $0x164] ss:$8 sps:$4 sm:$0xff]  }
 0x621   :  { %10125 = vmatprep.subr.bf16.mxu0 %v12712_v17  ;;  %v12743_v17 = vld [vmem:[#allocation9 + $0x160] ss:$8 sps:$4 sm:$0xff]  }
 0x624   :  { %10126 = vmatpush1.bf16.msra.mxu0 %v12710_v19  ;;  %v12748_v19 = vld [vmem:[#allocation9 + $0x174] ss:$8 sps:$4 sm:$0xff]  }
 0x625   :  { %10127 = vmatprep.subr.bf16.mxu0 %v12715_v18  ;;  %v12746_v18 = vld [vmem:[#allocation9 + $0x170] ss:$8 sps:$4 sm:$0xff]  }
 0x628   :  { %10128 = vmatpush1.bf16.msra.mxu0 %v12713_v21  ;;  %v12751_v21 = vld [vmem:[#allocation9 + $0x184] ss:$8 sps:$4 sm:$0xff]  }
 0x629   :  { %10129 = vmatprep.subr.bf16.mxu0 %v12718_v26  ;;  %v8066_v26 = vrot.slane %v13548_v15, %v1230_v11  ;;  %v12763_v11 = vld [vmem:[#allocation9 + $0x1c4] ss:$8 sps:$4 sm:$0xff]   ;;  %v12764_v15 = vld [vmem:[#allocation9 + $0x1d0] ss:$8 sps:$4 sm:$0xff]  }
 0x62c   :  { %10130 = vmatpush1.bf16.msra.mxu0 %v12716_v20  ;;  %v12749_v20 = vld [vmem:[#allocation9 + $0x180] ss:$8 sps:$4 sm:$0xff]  }
 0x62d   :  { %10131 = vmatprep.subr.bf16.mxu0 %v12721_v27  ;;  %v12754_v27 = vld [vmem:[#allocation9 + $0x194] ss:$8 sps:$4 sm:$0xff]  }
 0x630   :  { %10132 = vmatpush1.bf16.msra.mxu0 %v12719_v28 }
 0x631   :  { %10133 = vmatprep.subr.bf16.mxu0 %v12724_v31  ;;  %v12752_v31 = vld [vmem:[#allocation9 + $0x190] ss:$8 sps:$4 sm:$0xff]  }
 0x634   :  { %10134 = vmatpush1.bf16.msra.mxu0 %v12722_v55  ;;  %v12757_v55 = vld [vmem:[#allocation9 + $0x1a4] ss:$8 sps:$4 sm:$0xff]  }
 0x635   :  { %10144 = vmatprep.subr.bf16.mxu0 %v12727_v6 }
 0x6ca   :  { %v9512_v49 = vpop.f32.mrb[8].mxu0  ;;  %v13557_v0 = vpop.f32.mrb[8].mxu1 }
 0x6cb   :  { %v12110_v57 = vadd.f32 %v9512_v49, %v8058_v35  ;;  %v9514_v37 = vpop.f32.mrb[9].mxu0  ;;  %v9678_v40 = vpop.f32.mrb[9].mxu1  ;;  %v12112_v28 = vadd.f32 %v13557_v0, %v8066_v26  ;;  %v12769_v35 = vld [vmem:[#allocation9 + $0x1e4] ss:$8 sps:$4 sm:$0xff]   ;;  %v12772_v0 = vld [vmem:[#allocation9 + $0x1f4] ss:$8 sps:$4 sm:$0xff]  }
 0x6cc   :  { %v12111_v41 = vadd.f32 %v9514_v37, %v8062_v36  ;;  %v12113_v38 = vadd.f32 %v9678_v40, %v8070_v29  ;;  %v9516_v34 = vpop.f32.mrb[10].mxu0  ;;  %v9680_v30 = vpop.f32.mrb[10].mxu1  ;;  %v12767_v29 = vld [vmem:[#allocation9 + $0x1e0] ss:$8 sps:$4 sm:$0xff]   ;;  %v12770_v37 = vld [vmem:[#allocation9 + $0x1f0] ss:$8 sps:$4 sm:$0xff]  }
 0x6cd   :  { %v9687_v42 = vmul.f32 0.70710677, %v12110_v57  ;;  %v9517_v45 = vpop.f32.mrb[11].mxu0  ;;  %v9681_v47 = vpop.f32.mrb[11].mxu1  ;;  %v9683_v51 = vmul.f32 0.5, %v12110_v57  ;;  %v9685_v57 = vmul.f32 0.5, %v12112_v28 }
 0x6ce   :  { %v9688_v43 = vmul.f32 0.70710677, %v12111_v41  ;;  %v9690_v44 = vmul.f32 0.70710677, %v12113_v38  ;;  %v9684_v16 = vmul.f32 0.5, %v12111_v41  ;;  %v9686_v60 = vmul.f32 0.5, %v12113_v38 }
 0x6cf   :  { %12816 = verf.f32 %v9687_v42  ;;  %v9689_v6 = vmul.f32 0.70710677, %v12112_v28  ;;  %v12777_v38 = vld [vmem:[#allocation12 + $0x50] sm:$0xff]   ;;  %v12779_v30 = vld [vmem:[#allocation12 + $0x58] sm:$0xff]   ;;  %v12783_v45 = vld [vmem:[#allocation12 + $0x68] sm:$0xff]  }
 0x6d0   :  { %12818 = verf.f32 %v9688_v43  ;;  %v12778_v34 = vld [vmem:[#allocation12 + $0x10] sm:$0xff]   ;;  %12036 = vmatprep.subr.bf16.mxu1 %v12777_v38  ;;  %v12780_v42 = vld [vmem:[#allocation12 + $0x18] sm:$0xff]   ;;  %v12781_v43 = vld [vmem:[#allocation12 + $0x60] sm:$0xff]  }
 0x6d1   :  { %12820 = verf.f32 %v9690_v44  ;;  %12037 = vmatpush3.bf16.msra.mxu1 %v12778_v34  ;;  %v12782_v44 = vld [vmem:[#allocation12 + $0x20] sm:$0xff]   ;;  %v12784_v47 = vld [vmem:[#allocation12 + $0x28] sm:$0xff]  }
 0x6d2   :  { %12822 = verf.f32 %v9689_v6  ;;  %12038 = vmatprep.subr.bf16.mxu1 %v12779_v30  ;;  %v12796_v26 = vld [vmem:[%s13627_s9 + $0x38] sm:$0xff]  }
 0x6d5   :  { %12039 = vmatpush3.bf16.msra.mxu1 %v12780_v42 }
 0x6d6   :  { %12040 = vmatprep.subr.bf16.mxu1 %v12781_v43 }
 0x6d9   :  { %v12817_v24 = vpop.eup %12816  ;;  %12041 = vmatpush3.bf16.msra.mxu1 %v12782_v44  ;;  %v12799_v44 = vld [vmem:[%s13631_s13] sm:$0xff]  }
 0x6da   :  { %v9695_v39 = vadd.f32 1.0, %v12817_v24  ;;  %v12819_v50 = vpop.eup %12818  ;;  %12042 = vmatprep.subr.bf16.mxu1 %v12783_v45  ;;  %v12785_v24 = vld [vmem:[#allocation12 + $0x70] sm:$0xff]   ;;  %v12025_v45 = vld [vmem:[#allocation16] ss:$0 sm:$0xff] }
 0x6db   :  { %v12821_v54 = vpop.eup %12820  ;;  %v9696_v56 = vadd.f32 1.0, %v12819_v50  ;;  %v12787_v50 = vld [vmem:[#allocation12 + $0x78] sm:$0xff]  }
 0x6dc   :  { %v9699_v58 = vmul.f32 %v9695_v39, %v9683_v51  ;;  %v9698_v61 = vadd.f32 1.0, %v12821_v54  ;;  %v12823_v36 = vpop.eup %12822  ;;  %v12786_v39 = vld [vmem:[#allocation12 + $0x30] sm:$0xff]   ;;  %v12788_v51 = vld [vmem:[#allocation12 + $0x38] sm:$0xff]   ;;  %v13108_v54 = vmov 0.0  }
 0x6dd   :  { %v9700_v62 = vmul.f32 %v9696_v56, %v9684_v16  ;;  %v9697_v49 = vadd.f32 1.0, %v12823_v36  ;;  %12043 = vmatpush3.bf16.msra.mxu1 %v12784_v47  ;;  %v9767_v16 = vld [vmem:[#allocation10] sm:$0x3] }
 0x6de   :  { %v9702_v63 = vmul.f32 %v9698_v61, %v9686_v60  ;;  %v9768_v2 = vpack.c.bf16 %v9699_v58, %v9699_v58  ;;  %12044 = vmatprep.subr.bf16.mxu1 %v12785_v24  ;;  %v9776_v56 = vrot.slane %v9767_v16, %v13520_v52  ;;  %v9780_v58 = vrot.slane %v9767_v16, %v13506_v7  ;;  %v12789_v7 = vld [vmem:[%s13627_s9] sm:$0xff]   ;;  %v12798_v36 = vld [vmem:[%s13629_s11 + $0x8] sm:$0xff]  }
 0x6df   :  { %v9769_v1 = vpack.c.bf16 %v9700_v62, %v9700_v62  ;;  %v9701_v40 = vmul.f32 %v9697_v49, %v9685_v57 }
 0x6e0   :  { %v9771_v48 = vpack.c.bf16 %v9702_v63, %v9702_v63 }
 0x6e1   :  { %10135 = vmatprep.mubr.bf16.mxu0 %v9769_v1  ;;  %v9770_v41 = vpack.c.bf16 %v9701_v40, %v9701_v40  ;;  %12045 = vmatpush3.bf16.msra.mxu1 %v12786_v39 }
 0x6e2   :  { %10136 = vmatmul.mubr.bf16.vlgmr.msra.gmra.mrb[12].mxu0 %v9768_v2  ;;  %12046 = vmatprep.subr.bf16.mxu1 %v12787_v50 }
 0x6e3   :  { %10145 = vmatpush1.bf16.msra.mxu0 %v12725_v59  ;;  %10176 = vmatprep.mubr.bf16.mxu0 %v9771_v48 }
 0x6e4   :  { %10146 = vmatprep.subr.bf16.mxu0 %v12730_v3 }
 0x6e5   :  { %12047 = vmatpush3.bf16.msra.mxu1 %v12788_v51 }
 0x6e6   :  { %12068 = vmatprep.subr.bf16.mxu1 %v13108_v54 }
 0x6e7   :  { %10147 = vmatpush1.bf16.msra.mxu0 %v12728_v4 }
 0x6e8   :  { %10148 = vmatprep.subr.bf16.mxu0 %v12733_v5 }
 0x6eb   :  { %10149 = vmatpush1.bf16.msra.mxu0 %v12731_v46 }
 0x6ec   :  { %10150 = vmatprep.subr.bf16.mxu0 %v12736_v8 }
 0x6ef   :  { %10151 = vmatpush1.bf16.msra.mxu0 %v12734_v9 }
 0x6f0   :  { %10152 = vmatprep.subr.bf16.mxu0 %v12739_v10 }
 0x6f3   :  { %10153 = vmatpush1.bf16.msra.mxu0 %v12737_v53 }
 0x6f4   :  { %10154 = vmatprep.subr.bf16.mxu0 %v12742_v13 }
 0x6f7   :  { %10155 = vmatpush1.bf16.msra.mxu0 %v12740_v14  ;;  %v12790_v14 = vld [vmem:[%s13627_s9 + $0x8] sm:$0xff]  }
 0x6f8   :  { %10156 = vmatprep.subr.bf16.mxu0 %v12745_v32  ;;  %v12791_v32 = vld [vmem:[%s13627_s9 + $0x10] sm:$0xff]  }
 0x6fb   :  { %10157 = vmatpush1.bf16.msra.mxu0 %v12743_v17  ;;  %v12792_v17 = vld [vmem:[%s13627_s9 + $0x18] sm:$0xff]  }
 0x6fc   :  { %10158 = vmatprep.subr.bf16.mxu0 %v12748_v19  ;;  %v12793_v19 = vld [vmem:[%s13627_s9 + $0x20] sm:$0xff]  }
 0x6ff   :  { %10159 = vmatpush1.bf16.msra.mxu0 %v12746_v18  ;;  %v12794_v18 = vld [vmem:[%s13627_s9 + $0x28] sm:$0xff]  }
 0x700   :  { %10160 = vmatprep.subr.bf16.mxu0 %v12751_v21  ;;  %v12795_v21 = vld [vmem:[%s13627_s9 + $0x30] sm:$0xff]  }
 0x703   :  { %10161 = vmatpush1.bf16.msra.mxu0 %v12749_v20 }
 0x704   :  { %10162 = vmatprep.subr.bf16.mxu0 %v12754_v27  ;;  %v11999_v27 = vld [vmem:[#allocation13] ss:$0 sm:$0xff] }
 0x707   :  { %10163 = vmatpush1.bf16.msra.mxu0 %v12752_v31 }
 0x708   :  { %10164 = vmatprep.subr.bf16.mxu0 %v12757_v55 }
 0x70b   :  { %10165 = vmatpush1.bf16.msra.mxu0 %v12755_v25 }
 0x70c   :  { %10166 = vmatprep.subr.bf16.mxu0 %v12760_v33 }
 0x70f   :  { %10167 = vmatpush1.bf16.msra.mxu0 %v12758_v12 }
 0x710   :  { %10168 = vmatprep.subr.bf16.mxu0 %v12763_v11 }
 0x713   :  { %10169 = vmatpush1.bf16.msra.mxu0 %v12761_v23 }
 0x714   :  { %10170 = vmatprep.subr.bf16.mxu0 %v12766_v22 }
 0x717   :  { %10171 = vmatpush1.bf16.msra.mxu0 %v12764_v15 }
 0x718   :  { %10172 = vmatprep.subr.bf16.mxu0 %v12769_v35  ;;  %v12797_v35 = vld [vmem:[%s13629_s11] sm:$0xff]  }
 0x71b   :  { %10173 = vmatpush1.bf16.msra.mxu0 %v12767_v29  ;;  %v12016_v29 = vld [vmem:[#allocation15] ss:$0 sm:$0xff] }
 0x71c   :  { %10174 = vmatprep.subr.bf16.mxu0 %v12772_v0 }
 0x71f   :  { %10175 = vmatpush1.bf16.msra.mxu0 %v12770_v37 }
 0x722   :  { %10177 = vmatmul.mubr.bf16.vlgmr.msra.gmra.mrb[12].mxu0 %v9770_v41 }
 0x7f5   :  { %v10178_v60 = vpop.f32.mrb[12].mxu0 }
 0x7f6   :  { %v12114_v61 = vadd.f32 %v10178_v60, %v9776_v56  ;;  %v10180_v62 = vpop.f32.mrb[13].mxu0 }
 0x7f7   :  { %v12115_v63 = vadd.f32 %v10180_v62, %v9780_v58  ;;  %v10182_v1 = vpop.f32.mrb[14].mxu0 }
 0x7f8   :  { %v10187_v59 = vmul.f32 0.70710677, %v12114_v61  ;;  %v10183_v2 = vpop.f32.mrb[15].mxu0  ;;  %v10185_v5 = vmul.f32 0.5, %v12114_v61 }
 0x7f9   :  { %v10188_v3 = vmul.f32 0.70710677, %v12115_v63  ;;  %v10186_v8 = vmul.f32 0.5, %v12115_v63 }
 0x7fa   :  { %12824 = verf.f32 %v10187_v59 }
 0x7fb   :  { %12826 = verf.f32 %v10188_v3 }
 0x804   :  { %v12825_v48 = vpop.eup %12824 }
 0x805   :  { %v12827_v4 = vpop.eup %12826  ;;  %v10191_v46 = vadd.f32 1.0, %v12825_v48 }
 0x806   :  { %v10192_v9 = vadd.f32 1.0, %v12827_v4 }
 0x807   :  { %v10193_v10 = vmul.f32 %v10191_v46, %v10185_v5 }
 0x808   :  { %v10194_v52 = vmul.f32 %v10192_v9, %v10186_v8 }
 0x809   :  { %v10228_v13 = vpack.c.bf16 %v10193_v10, %v10193_v10 }
 0x80a   :  { %v10229_v53 = vpack.c.bf16 %v10194_v52, %v10194_v52 }
 0x80c   :  { %10364 = vmatprep.mubr.bf16.mxu1 %v10229_v53 }
 0x80d   :  { %10365 = vmatmul.mubr.bf16.vlgmr.msra.gmra.mrb[12].mxu1 %v10228_v13 }
 0x80e   :  { %12069 = vmatpush3.bf16.msra.mxu1 %v12789_v7  ;;  %12084 = vmatprep.mubr.msk.bf16.mxu1 %vm13109_vm0, %v13108_v54 }
 0x80f   :  { %12070 = vmatprep.subr.bf16.mxu1 %v13108_v54 }
 0x812   :  { %12071 = vmatpush3.bf16.msra.mxu1 %v12790_v14 }
 0x813   :  { %12072 = vmatprep.subr.bf16.mxu1 %v13108_v54 }
 0x816   :  { %12073 = vmatpush3.bf16.msra.mxu1 %v12791_v32 }
 0x817   :  { %12074 = vmatprep.subr.bf16.mxu1 %v13108_v54 }
 0x81a   :  { %12075 = vmatpush3.bf16.msra.mxu1 %v12792_v17 }
 0x81b   :  { %12076 = vmatprep.subr.bf16.mxu1 %v13108_v54 }
 0x81e   :  { %12077 = vmatpush3.bf16.msra.mxu1 %v12793_v19 }
 0x81f   :  { %12078 = vmatprep.subr.bf16.mxu1 %v13108_v54 }
 0x822   :  { %12079 = vmatpush3.bf16.msra.mxu1 %v12794_v18 }
 0x823   :  { %12080 = vmatprep.subr.bf16.mxu1 %v13108_v54 }
 0x826   :  { %12081 = vmatpush3.bf16.msra.mxu1 %v12795_v21 }
 0x827   :  { %12082 = vmatprep.subr.bf16.mxu1 %v13108_v54 }
 0x82a   :  { %12083 = vmatpush3.bf16.msra.mxu1 %v12796_v26 }
 0x82b   :  { %12088 = vmatprep.subr.bf16.mxu1 %v13108_v54 }
 0x8e0   :  { %v12048_v20 = vpop.f32.mrb[12].mxu1 }
 0x8e1   :  { %v12049_v28 = vpop.f32.mrb[13].mxu1 }
 0x8e2   :  { %v12050_v31 = vadd.f32 %v12049_v28, %v12048_v20  ;;  %v12051_v55 = vpop.f32.mrb[14].mxu1 }
 0x8e3   :  { %v12052_v6 = vpop.f32.mrb[15].mxu1 }
 0x8e4   :  { %v10367_v25 = vadd.f32 %v12050_v31, %v11999_v27 }
 0x8e6   :  { %v10373_v33 = vmul.f32 0.70710677, %v10367_v25  ;;  %v10372_v11 = vmul.f32 0.5, %v10367_v25 }
 0x8e8   :  { %12828 = verf.f32 %v10373_v33 }
 0x8f2   :  { %v12829_v12 = vpop.eup %12828 }
 0x8f3   :  { %v10375_v23 = vadd.f32 1.0, %v12829_v12 }
 0x8f5   :  { %v10376_v22 = vmul.f32 %v10375_v23, %v10372_v11 }
 0x8f7   :  { %v10394_v15 = vpack.c.bf16 %v10376_v22, %v10376_v22 }
 0x8f9   :  { %12085 = vmatmul.mubr.bf16.vlgmr.msra.gmra.mrb[16].mxu1 %v10394_v15 }
 0x8fa   :  { %12092 = vmatprep.mubr.msk.bf16.mxu1 %vm13109_vm0, %v13108_v54  ;;  %12089 = vmatpush3.bf16.msra.mxu1 %v12797_v35 }
 0x8fb   :  { %12090 = vmatprep.subr.bf16.mxu1 %v13108_v54 }
 0x8fe   :  { %12091 = vmatpush3.bf16.msra.mxu1 %v12798_v36 }
 0x8ff   :  { %12096 = vmatprep.subr.bf16.mxu1 %v13108_v54 }
 0x9cc   :  { %v10483_v49 = vpop.f32.mrb[16].mxu1 }
 0x9cd   :  { %v10484_v0 = vadd.f32 %v12016_v29, %v10483_v49  ;;  %v12086_v57 = vpop.f32.mrb[17].mxu1 }
 0x9ce   :  { %v10486_v37 = vpop.f32.mrb[18].mxu1 }
 0x9cf   :  { %v10490_v40 = vmul.f32 0.70710677, %v10484_v0  ;;  %v12087_v41 = vpop.f32.mrb[19].mxu1  ;;  %v10489_v34 = vmul.f32 0.5, %v10484_v0 }
 0x9d1   :  { %12830 = verf.f32 %v10490_v40 }
 0x9db   :  { %v12831_v38 = vpop.eup %12830 }
 0x9dc   :  { %v10492_v30 = vadd.f32 1.0, %v12831_v38 }
 0x9de   :  { %v10493_v42 = vmul.f32 %v10492_v30, %v10489_v34 }
 0x9e0   :  { %v10499_v43 = vpack.c.bf16 %v10493_v42, %v10493_v42 }
 0x9e2   :  { %12093 = vmatmul.mubr.msk.bf16.vlgmr.msra.gmra.mrb[20].mxu1 %vm10518_vm1, %v10499_v43 }
 0x9e3   :  { %12098 = vmatprep.mubr.msk.bf16.mxu1 %vm13109_vm0, %v13108_v54  ;;  %12097 = vmatpush3.bf16.msra.mxu1 %v12799_v44  ;;  %v12029_v54 = vld [vmem:[#allocation18] ss:$0 sm:$0xff] }
 0xab5   :  { %v10556_v47 = vpop.f32.mrb[20].mxu1 }
 0xab6   :  { %v10557_v24 = vadd.f32 %v12025_v45, %v10556_v47  ;;  %v12094_v39 = vpop.f32.mrb[21].mxu1 }
 0xab7   :  { %v10559_v50 = vpop.f32.mrb[22].mxu1 }
 0xab8   :  { %v10563_v51 = vmul.f32 0.70710677, %v10557_v24  ;;  %v12095_v16 = vpop.f32.mrb[23].mxu1  ;;  %v10562_v58 = vmul.f32 0.5, %v10557_v24 }
 0xaba   :  { %12832 = verf.f32 %v10563_v51 }
 0xac4   :  { %v12833_v56 = vpop.eup %12832 }
 0xac5   :  { %v10565_v60 = vadd.f32 1.0, %v12833_v56 }
 0xac7   :  { %v10566_v61 = vmul.f32 %v10565_v60, %v10562_v58 }
 0xac9   :  { %v10570_v62 = vpack.c.bf16 %v10566_v61, %v10566_v61 }
 0xacb   :  { %12099 = vmatmul.mubr.msk.bf16.vlgmr.msra.gmra.mrb[24].mxu1 %vm10583_vm2, %v10570_v62 }
 0xb9e   :  { %v10621_v63 = vpop.f32.mrb[24].mxu1 }
 0xb9f   :  { %v10622_v1 = vadd.f32 %v12029_v54, %v10621_v63  ;;  %v12100_v59 = vpop.f32.mrb[25].mxu1 }
 0xba0   :  { %v10624_v2 = vpop.f32.mrb[26].mxu1 }
 0xba1   :  { %10628 = vst.msk [vmem:[%s13633_s15] sm:$0xff] %vm10627_vm3, %v10622_v1  ;;  %v12101_v3 = vpop.f32.mrb[27].mxu1 }
 0xba2   :  { %10633 = vsyncpa [#allocation3], 1 }
 0xba3   :  { %10634 = vsyncpa [#allocation5], 1 }
 0xba4   :  { %10635 = vsyncpa [#allocation8], 1 }
 0xba5   :  { %10636 = vsyncpa [#allocation11], 1 }
 0xba6   :  { %10637 = vsyncpa [#allocation14], 1 }
 0xba7   :  { %10638 = vsyncpa [#allocation17], 1 }

</bundles_post_ra>
